<compile_context>
chip_gen: v7x
topology: tpu7x:2x2x1
jax: 0.10.0
libtpu: 0.0.40
codegen_flags: <defaults>
</compile_context>

<pallas_src>
import jax
import jax.numpy as jnp
from jax.experimental import pallas as pl
from jax.experimental.pallas import tpu as pltpu

EPS = 1e-5

# Static geometry implied by nn.Linear(376, 10):
#   6000 -conv5-> 5996 -pool5-> 1199 -conv5-> 1195 -pool5-> 239
#        -conv5->  235 -pool5->   47 ;  8 * 47 = 376
L_IN = 6000
C1, C2, C3 = 32, 16, 8
NZ = 47           # final pooled length (positions per channel into the fc)
NV = 49           # input/pooled1 column groups: pooled1 index = 25*v + rho
NQ = 129          # phase-decomposed input rows: x index = 125*v + q, q in [0,129)


# --------------------------------------------------------------------------- #
# Fused kernel (one grid step == B samples interleaved along lanes)
# --------------------------------------------------------------------------- #
def _chemcam_kernel(x_ref, w1_ref, t1_ref, w2_ref, t2_ref, w3_ref, t3_ref,
                    feat_ref, p1_ref, p2_ref):
    # x_ref : (129, 49*B)   x_ref[q, v*B + b] = x[b, 125*v + q]
    # p1_ref: (32*29, 49*B) pooled1 phase blocks (mod 25) + 4 B-shifted copies
    # p2_ref: (16*9, 48*B)  pooled2 phase blocks (mod 5)  + 4 B-shifted copies
    f32 = jnp.float32
    nvb = x_ref.shape[-1]          # 49 * B
    bsz = nvb // NV                # samples per grid step
    n2 = 48 * bsz
    n3 = 47 * bsz

    # Hoisted operands (loaded / broadcast-materialized exactly once).
    w1b = w1_ref[...]                                       # (160, 9) banded conv1
    t1f = jnp.broadcast_to(t1_ref[...], (5 * C1, nvb))      # (160, 49B) BN shift
    w2 = w2_ref[...]                                        # (16, 160) im2col conv2
    t2f = jnp.broadcast_to(t2_ref[...], (C2, n2))           # (16, 48B)
    w3 = w3_ref[...]                                        # (8, 80)   im2col conv3
    t3f = jnp.broadcast_to(t3_ref[...], (C3, n3))           # (8, 47B)

    # ---- stage 1: Conv1d(1,32,5)+BN+ReLU fused with MaxPool1d(5), on the MXU -
    # Banded weight: (w1b @ x_rows)[32*j + c, :] = s1[c] * conv1[125*v + 5*rho + j]
    for rho in range(25):          # pooled1 phase (mod 25)
        rhs = x_ref[5 * rho:5 * rho + 9, :]                         # (9, 49B)
        a = jnp.dot(w1b, rhs, preferred_element_type=f32)           # (160, 49B) MXU
        a = jnp.maximum(a + t1f, 0.0)                               # BN shift + ReLU
        m = jnp.maximum(jnp.maximum(jnp.maximum(a[0:32], a[32:64]),
                                    jnp.maximum(a[64:96], a[96:128])),
                        a[128:160])                                 # pool over j
        # m[c, v*B + b] = pooled1[25*v + rho] for sample b, channel c
        p1_ref[32 * rho:32 * rho + 32, :] = m
        if rho < 4:
            # B-shifted copy so stage-2 im2col reads stay one contiguous slice
            # even when the 5 taps wrap past phase 24 (column v -> v+1).
            p1_ref[32 * (25 + rho):32 * (25 + rho) + 32, 0:n2] = m[:, bsz:nvb]

    # ---- stage 2: MaxPool(5) + Conv1d(32,16,5)+BN+ReLU (im2col K=160, MXU) ---
    for r2 in range(5):            # pooled2 phase (mod 5)
        m = None
        for j in range(5):         # h2 phase p2 = 5*r2 + j (mod 25)
            p2 = 5 * r2 + j
            rhs = p1_ref[32 * p2:32 * p2 + 160, 0:n2]               # (160, 48B)
            a = jnp.dot(w2, rhs, preferred_element_type=f32)        # (16, 48B) MXU
            a = jnp.maximum(a + t2f, 0.0)
            m = a if m is None else jnp.maximum(m, a)
        p2_ref[16 * r2:16 * r2 + 16, :] = m
        if r2 < 4:
            p2_ref[16 * (5 + r2):16 * (5 + r2) + 16, 0:n3] = m[:, bsz:n2]

    # ---- stage 3: MaxPool(5) + Conv1d(16,8,5)+BN+ReLU + final MaxPool(5) -----
    feat = None
    for j in range(5):             # h3 phase == final pool window
        rhs = p2_ref[16 * j:16 * j + 80, 0:n3]                      # (80, 47B)
        a = jnp.dot(w3, rhs, preferred_element_type=f32)            # (8, 47B) MXU
        a = jnp.maximum(a + t3f, 0.0)
        feat = a if feat is None else jnp.maximum(feat, a)
    # feat[c, z*B + b] = CNN feature z of channel c for sample b.
    feat_ref[...] = feat


# --------------------------------------------------------------------------- #
# Wrapper
# --------------------------------------------------------------------------- #
def _fold_bn(gamma, beta, mean, var, conv_bias):
    scale = gamma / jnp.sqrt(var + EPS)
    shift = beta - mean * scale + conv_bias * scale
    return (scale.reshape(-1, 1).astype(jnp.float32),
            shift.reshape(-1, 1).astype(jnp.float32))


def _pick_block_b(n):
    # Lane packing (49B lanes in stage 1) while keeping grid length >= 2 so
    # v7x's two TensorCores both get work.
    for b in (13, 5, 2):
        if n >= 2 * b:
            return b
    return 1


def chemcam_cnn_forward(x, params, block_b=None):
    n, cin, l = x.shape
    assert cin == 1 and l == L_IN, \
        "ChemCam_CNN requires (N, 1, 6000) input (fc expects 376 features)"

    bsz = _pick_block_b(n) if block_b is None else block_b
    g = -(-n // bsz)               # grid length
    n_pad = g * bsz

    # ---- input: phase decomposition + batch-in-lanes interleave -------------
    # xq[gi, q, v*B + b] = x[gi*B + b, 0, 125*v + q]
    xr = x[:, 0, :].astype(jnp.float32)
    if n_pad > n:
        xr = jnp.concatenate([xr, jnp.zeros((n_pad - n, l), jnp.float32)], axis=0)
    xpad = jnp.pad(xr, ((0, 0), (0, 125 * 50 - l)))                     # (n_pad, 6250)
    xg = jnp.transpose(xpad.reshape(n_pad, 50, 125), (0, 2, 1))         # (n_pad, 125, 50)
    xq = jnp.concatenate([xg[:, :, 0:NV], xg[:, 0:4, 1:NV + 1]], axis=1)  # (n_pad,129,49)
    xq = xq.reshape(g, bsz, NQ, NV).transpose(0, 2, 3, 1).reshape(g, NQ, NV * bsz)

    # ---- fold BN (running stats) + conv bias; fold BN scale into weights ----
    s1, t1 = _fold_bn(*params["bn1"], params["b1"])
    s2, t2 = _fold_bn(*params["bn2"], params["b2"])
    s3, t3 = _fold_bn(*params["bn3"], params["b3"])

    w1 = params["w1"][:, 0, :].astype(jnp.float32) * s1                 # (32, 5)
    w1b = jnp.zeros((5 * C1, 9), jnp.float32)                           # banded (160, 9)
    for j in range(5):
        w1b = w1b.at[32 * j:32 * (j + 1), j:j + 5].set(w1)
    t1b = jnp.tile(t1, (5, 1))                                          # (160, 1)

    w2 = jnp.transpose(params["w2"], (0, 2, 1)).reshape(C2, 5 * C1) * s2  # (16, 160)
    w3 = jnp.transpose(params["w3"], (0, 2, 1)).reshape(C3, 5 * C2) * s3  # (8, 80)

    feat_blocks = pl.pallas_call(
        _chemcam_kernel,
        out_shape=jax.ShapeDtypeStruct((g, C3, NZ * bsz), jnp.float32),
        grid=(g,),
        in_specs=[
            pl.BlockSpec((None, NQ, NV * bsz), lambda i: (i, 0, 0)),
            pl.BlockSpec((5 * C1, 9), lambda i: (0, 0)),
            pl.BlockSpec((5 * C1, 1), lambda i: (0, 0)),
            pl.BlockSpec((C2, 5 * C1), lambda i: (0, 0)),
            pl.BlockSpec((C2, 1), lambda i: (0, 0)),
            pl.BlockSpec((C3, 5 * C2), lambda i: (0, 0)),
            pl.BlockSpec((C3, 1), lambda i: (0, 0)),
        ],
        out_specs=pl.BlockSpec((None, C3, NZ * bsz), lambda i: (i, 0, 0)),
        scratch_shapes=[pltpu.VMEM((C1 * 29, NV * bsz), jnp.float32),   # pooled1
                        pltpu.VMEM((C2 * 9, 48 * bsz), jnp.float32)],   # pooled2
        compiler_params=pltpu.CompilerParams(
            dimension_semantics=("parallel",)),
    )(xq, w1b, t1b, w2, t2, w3, t3)

    # De-interleave lanes -> PyTorch's .view(N, -1) order (index = c*47 + z).
    out = (feat_blocks.reshape(g, C3, NZ, bsz)
           .transpose(0, 3, 1, 2).reshape(n_pad, C3 * NZ)[:n])
    # FC head Linear(376, 10) as one tiny XLA GEMM (moved out of the kernel).
    out2 = out @ params["wfc"].T + params["bfc"]
    return out, out2


# --------------------------------------------------------------------------- #
# Deterministic synthetic parameters (shapes from __init__)
# --------------------------------------------------------------------------- #
def init_params(key):
    keys = jax.random.split(key, 11)

    def rnd(k, shape, scale=0.1):
        return scale * jax.random.normal(k, shape, dtype=jnp.float32)

    def bn_params(k, c):
        k1, k2, k3, k4 = jax.random.split(k, 4)
        gamma = 1.0 + 0.1 * jax.random.normal(k1, (c,), dtype=jnp.float32)
        beta = 0.1 * jax.random.normal(k2, (c,), dtype=jnp.float32)
        mean = 0.1 * jax.random.normal(k3, (c,), dtype=jnp.float32)
        var = 1.0 + jax.random.uniform(k4, (c,), dtype=jnp.float32)
        return gamma, beta, mean, var

    return {
        "w1": rnd(keys[0], (32, 1, 5)), "b1": rnd(keys[1], (32,)),
        "bn1": bn_params(keys[2], 32),
        "w2": rnd(keys[3], (16, 32, 5)), "b2": rnd(keys[4], (16,)),
        "bn2": bn_params(keys[5], 16),
        "w3": rnd(keys[6], (8, 16, 5)), "b3": rnd(keys[7], (8,)),
        "bn3": bn_params(keys[8], 8),
        "wfc": rnd(keys[9], (10, 376)), "bfc": rnd(keys[10], (10,)),
    }


# --------------------------------------------------------------------------- #
# Pure-JAX reference (numerical sanity check)
# --------------------------------------------------------------------------- #
def reference_forward(x, params):
    def conv1d(h, w, b):
        out = jax.lax.conv_general_dilated(
            h, w, (1,), "VALID", dimension_numbers=("NCH", "OIH", "NCH"))
        return out + b[None, :, None]

    def bn(h, gamma, beta, mean, var):
        return ((h - mean[None, :, None]) *
                (gamma / jnp.sqrt(var + EPS))[None, :, None] + beta[None, :, None])

    def pool(h):
        n, c, l = h.shape
        lp = l // 5
        return jnp.max(h[:, :, :lp * 5].reshape(n, c, lp, 5), axis=-1)

    h = pool(jnp.maximum(bn(conv1d(x, params["w1"], params["b1"]), *params["bn1"]), 0.0))
    h = pool(jnp.maximum(bn(conv1d(h, params["w2"], params["b2"]), *params["bn2"]), 0.0))
    h = pool(jnp.maximum(bn(conv1d(h, params["w3"], params["b3"]), *params["bn3"]), 0.0))
    out = h.reshape(h.shape[0], -1)
    out2 = out @ params["wfc"].T + params["bfc"]
    return out, out2


if __name__ == "__main__":
    key = jax.random.PRNGKey(0)
    kp, kx = jax.random.split(key)
    params = init_params(kp)

    N, L = 4, 6000   # L = 6000 is required so the flattened CNN features are 376
    x = jax.random.normal(kx, (N, 1, L), dtype=jnp.float32)

    out, out2 = jax.jit(chemcam_cnn_forward)(x, params)
    jax.block_until_ready((out, out2))
    assert out.shape == (N, 376) and out2.shape == (N, 10)

    ref_out, ref_out2 = jax.jit(reference_forward)(x, params)
    jax.block_until_ready((ref_out, ref_out2))
    assert jnp.allclose(out, ref_out, atol=5e-3, rtol=5e-3), "feature mismatch"
    assert jnp.allclose(out2, ref_out2, atol=5e-3, rtol=5e-3), "logits mismatch"

    print("KERNEL_OK")
</pallas_src>

<mosaic_0001>
module attributes {stable_mosaic.version = 11 : i64} {
  func.func @_chemcam_kernel(%arg0: i32, %arg1: memref<1x129x98xf32, #tpu.memory_space<vmem>>, %arg2: memref<160x9xf32, #tpu.memory_space<vmem>>, %arg3: memref<160x1xf32, #tpu.memory_space<vmem>>, %arg4: memref<16x160xf32, #tpu.memory_space<vmem>>, %arg5: memref<16x1xf32, #tpu.memory_space<vmem>>, %arg6: memref<8x80xf32, #tpu.memory_space<vmem>>, %arg7: memref<8x1xf32, #tpu.memory_space<vmem>>, %arg8: memref<1x8x94xf32, #tpu.memory_space<vmem>>, %arg9: memref<928x98xf32, #tpu.memory_space<vmem>>, %arg10: memref<144x96xf32, #tpu.memory_space<vmem>>) attributes {dimension_semantics = [#tpu.dimension_semantics<parallel>], iteration_bounds = array<i64: 2>, scalar_prefetch = 0 : i64, scratch_operands = 2 : i64, tpu.core_type = #tpu.core_type<tc>, window_params = [{transform_indices = @transform_0, window_bounds = array<i64: 1, 129, 98>}, {pipeline_mode = #tpu.pipeline_mode<synchronous>, transform_indices = @transform_1, window_bounds = array<i64: 160, 9>}, {pipeline_mode = #tpu.pipeline_mode<synchronous>, transform_indices = @transform_2, window_bounds = array<i64: 160, 1>}, {pipeline_mode = #tpu.pipeline_mode<synchronous>, transform_indices = @transform_3, window_bounds = array<i64: 16, 160>}, {pipeline_mode = #tpu.pipeline_mode<synchronous>, transform_indices = @transform_4, window_bounds = array<i64: 16, 1>}, {pipeline_mode = #tpu.pipeline_mode<synchronous>, transform_indices = @transform_5, window_bounds = array<i64: 8, 80>}, {pipeline_mode = #tpu.pipeline_mode<synchronous>, transform_indices = @transform_6, window_bounds = array<i64: 8, 1>}, {transform_indices = @transform_7, window_bounds = array<i64: 1, 8, 94>}]} {
    %c0 = arith.constant 0 : index
    %c0_0 = arith.constant 0 : index
    %0 = vector.load %arg2[%c0, %c0_0] : memref<160x9xf32, #tpu.memory_space<vmem>>, vector<160x9xf32>
    %c0_1 = arith.constant 0 : index
    %c0_2 = arith.constant 0 : index
    %1 = vector.load %arg3[%c0_1, %c0_2] : memref<160x1xf32, #tpu.memory_space<vmem>>, vector<160x1xf32>
    %2 = vector.shape_cast %1 : vector<160x1xf32> to vector<160x1xf32>
    %3 = vector.broadcast %2 : vector<160x1xf32> to vector<160x98xf32>
    %c0_3 = arith.constant 0 : index
    %c0_4 = arith.constant 0 : index
    %4 = vector.load %arg4[%c0_3, %c0_4] : memref<16x160xf32, #tpu.memory_space<vmem>>, vector<16x160xf32>
    %c0_5 = arith.constant 0 : index
    %c0_6 = arith.constant 0 : index
    %5 = vector.load %arg5[%c0_5, %c0_6] : memref<16x1xf32, #tpu.memory_space<vmem>>, vector<16x1xf32>
    %6 = vector.shape_cast %5 : vector<16x1xf32> to vector<16x1xf32>
    %7 = vector.broadcast %6 : vector<16x1xf32> to vector<16x96xf32>
    %c0_7 = arith.constant 0 : index
    %c0_8 = arith.constant 0 : index
    %8 = vector.load %arg6[%c0_7, %c0_8] : memref<8x80xf32, #tpu.memory_space<vmem>>, vector<8x80xf32>
    %c0_9 = arith.constant 0 : index
    %c0_10 = arith.constant 0 : index
    %9 = vector.load %arg7[%c0_9, %c0_10] : memref<8x1xf32, #tpu.memory_space<vmem>>, vector<8x1xf32>
    %10 = vector.shape_cast %9 : vector<8x1xf32> to vector<8x1xf32>
    %11 = vector.broadcast %10 : vector<8x1xf32> to vector<8x94xf32>
    %c0_11 = arith.constant 0 : index
    %c0_12 = arith.constant 0 : index
    %c0_13 = arith.constant 0 : index
    %12 = vector.load %arg1[%c0_11, %c0_12, %c0_13] : memref<1x129x98xf32, #tpu.memory_space<vmem>>, vector<1x9x98xf32>
    %13 = vector.shape_cast %12 : vector<1x9x98xf32> to vector<9x98xf32>
    %cst = arith.constant dense<0.000000e+00> : vector<160x98xf32>
    %14 = tpu.matmul %0, %13, %cst {dimension_numbers = #tpu.dot_dimension_numbers<[1], [0], [0], [1], [0, 0, 1, 1], [], []>} : vector<160x9xf32>, vector<9x98xf32>, vector<160x98xf32> -> vector<160x98xf32>
    %15 = arith.addf %14, %3 : vector<160x98xf32>
    %cst_14 = arith.constant 0.000000e+00 : f32
    %16 = vector.broadcast %cst_14 : f32 to vector<160x98xf32>
    %17 = arith.maximumf %15, %16 : vector<160x98xf32>
    %18 = vector.extract_strided_slice %17 {offsets = [0, 0], sizes = [32, 98], strides = [1, 1]} : vector<160x98xf32> to vector<32x98xf32>
    %19 = vector.extract_strided_slice %17 {offsets = [32, 0], sizes = [32, 98], strides = [1, 1]} : vector<160x98xf32> to vector<32x98xf32>
    %20 = arith.maximumf %18, %19 : vector<32x98xf32>
    %21 = vector.extract_strided_slice %17 {offsets = [64, 0], sizes = [32, 98], strides = [1, 1]} : vector<160x98xf32> to vector<32x98xf32>
    %22 = vector.extract_strided_slice %17 {offsets = [96, 0], sizes = [32, 98], strides = [1, 1]} : vector<160x98xf32> to vector<32x98xf32>
    %23 = arith.maximumf %21, %22 : vector<32x98xf32>
    %24 = arith.maximumf %20, %23 : vector<32x98xf32>
    %25 = vector.extract_strided_slice %17 {offsets = [128, 0], sizes = [32, 98], strides = [1, 1]} : vector<160x98xf32> to vector<32x98xf32>
    %26 = arith.maximumf %24, %25 : vector<32x98xf32>
    %c0_15 = arith.constant 0 : index
    %c0_16 = arith.constant 0 : index
    %27 = vector.load %arg9[%c0_15, %c0_16] : memref<928x98xf32, #tpu.memory_space<vmem>>, vector<32x98xf32>
    tpu.vector_store %arg9[%c0_15, %c0_16], %26 {strides = array<i32>} : memref<928x98xf32, #tpu.memory_space<vmem>>, vector<32x98xf32>,
    %28 = vector.extract_strided_slice %26 {offsets = [0, 2], sizes = [32, 96], strides = [1, 1]} : vector<32x98xf32> to vector<32x96xf32>
    %c800 = arith.constant 800 : index
    %c0_17 = arith.constant 0 : index
    %29 = vector.load %arg9[%c800, %c0_17] : memref<928x98xf32, #tpu.memory_space<vmem>>, vector<32x96xf32>
    tpu.vector_store %arg9[%c800, %c0_17], %28 {strides = array<i32>} : memref<928x98xf32, #tpu.memory_space<vmem>>, vector<32x96xf32>,
    %c0_18 = arith.constant 0 : index
    %c5 = arith.constant 5 : index
    %c0_19 = arith.constant 0 : index
    %30 = vector.load %arg1[%c0_18, %c5, %c0_19] : memref<1x129x98xf32, #tpu.memory_space<vmem>>, vector<1x9x98xf32>
    %31 = vector.shape_cast %30 : vector<1x9x98xf32> to vector<9x98xf32>
    %cst_20 = arith.constant dense<0.000000e+00> : vector<160x98xf32>
    %32 = tpu.matmul %0, %31, %cst_20 {dimension_numbers = #tpu.dot_dimension_numbers<[1], [0], [0], [1], [0, 0, 1, 1], [], []>} : vector<160x9xf32>, vector<9x98xf32>, vector<160x98xf32> -> vector<160x98xf32>
    %33 = arith.addf %32, %3 : vector<160x98xf32>
    %cst_21 = arith.constant 0.000000e+00 : f32
    %34 = vector.broadcast %cst_21 : f32 to vector<160x98xf32>
    %35 = arith.maximumf %33, %34 : vector<160x98xf32>
    %36 = vector.extract_strided_slice %35 {offsets = [0, 0], sizes = [32, 98], strides = [1, 1]} : vector<160x98xf32> to vector<32x98xf32>
    %37 = vector.extract_strided_slice %35 {offsets = [32, 0], sizes = [32, 98], strides = [1, 1]} : vector<160x98xf32> to vector<32x98xf32>
    %38 = arith.maximumf %36, %37 : vector<32x98xf32>
    %39 = vector.extract_strided_slice %35 {offsets = [64, 0], sizes = [32, 98], strides = [1, 1]} : vector<160x98xf32> to vector<32x98xf32>
    %40 = vector.extract_strided_slice %35 {offsets = [96, 0], sizes = [32, 98], strides = [1, 1]} : vector<160x98xf32> to vector<32x98xf32>
    %41 = arith.maximumf %39, %40 : vector<32x98xf32>
    %42 = arith.maximumf %38, %41 : vector<32x98xf32>
    %43 = vector.extract_strided_slice %35 {offsets = [128, 0], sizes = [32, 98], strides = [1, 1]} : vector<160x98xf32> to vector<32x98xf32>
    %44 = arith.maximumf %42, %43 : vector<32x98xf32>
    %c32 = arith.constant 32 : index
    %c0_22 = arith.constant 0 : index
    %45 = vector.load %arg9[%c32, %c0_22] : memref<928x98xf32, #tpu.memory_space<vmem>>, vector<32x98xf32>
    tpu.vector_store %arg9[%c32, %c0_22], %44 {strides = array<i32>} : memref<928x98xf32, #tpu.memory_space<vmem>>, vector<32x98xf32>,
    %46 = vector.extract_strided_slice %44 {offsets = [0, 2], sizes = [32, 96], strides = [1, 1]} : vector<32x98xf32> to vector<32x96xf32>
    %c832 = arith.constant 832 : index
    %c0_23 = arith.constant 0 : index
    %47 = vector.load %arg9[%c832, %c0_23] : memref<928x98xf32, #tpu.memory_space<vmem>>, vector<32x96xf32>
    tpu.vector_store %arg9[%c832, %c0_23], %46 {strides = array<i32>} : memref<928x98xf32, #tpu.memory_space<vmem>>, vector<32x96xf32>,
    %c0_24 = arith.constant 0 : index
    %c10 = arith.constant 10 : index
    %c0_25 = arith.constant 0 : index
    %48 = vector.load %arg1[%c0_24, %c10, %c0_25] : memref<1x129x98xf32, #tpu.memory_space<vmem>>, vector<1x9x98xf32>
    %49 = vector.shape_cast %48 : vector<1x9x98xf32> to vector<9x98xf32>
    %cst_26 = arith.constant dense<0.000000e+00> : vector<160x98xf32>
    %50 = tpu.matmul %0, %49, %cst_26 {dimension_numbers = #tpu.dot_dimension_numbers<[1], [0], [0], [1], [0, 0, 1, 1], [], []>} : vector<160x9xf32>, vector<9x98xf32>, vector<160x98xf32> -> vector<160x98xf32>
    %51 = arith.addf %50, %3 : vector<160x98xf32>
    %cst_27 = arith.constant 0.000000e+00 : f32
    %52 = vector.broadcast %cst_27 : f32 to vector<160x98xf32>
    %53 = arith.maximumf %51, %52 : vector<160x98xf32>
    %54 = vector.extract_strided_slice %53 {offsets = [0, 0], sizes = [32, 98], strides = [1, 1]} : vector<160x98xf32> to vector<32x98xf32>
    %55 = vector.extract_strided_slice %53 {offsets = [32, 0], sizes = [32, 98], strides = [1, 1]} : vector<160x98xf32> to vector<32x98xf32>
    %56 = arith.maximumf %54, %55 : vector<32x98xf32>
    %57 = vector.extract_strided_slice %53 {offsets = [64, 0], sizes = [32, 98], strides = [1, 1]} : vector<160x98xf32> to vector<32x98xf32>
    %58 = vector.extract_strided_slice %53 {offsets = [96, 0], sizes = [32, 98], strides = [1, 1]} : vector<160x98xf32> to vector<32x98xf32>
    %59 = arith.maximumf %57, %58 : vector<32x98xf32>
    %60 = arith.maximumf %56, %59 : vector<32x98xf32>
    %61 = vector.extract_strided_slice %53 {offsets = [128, 0], sizes = [32, 98], strides = [1, 1]} : vector<160x98xf32> to vector<32x98xf32>
    %62 = arith.maximumf %60, %61 : vector<32x98xf32>
    %c64 = arith.constant 64 : index
    %c0_28 = arith.constant 0 : index
    %63 = vector.load %arg9[%c64, %c0_28] : memref<928x98xf32, #tpu.memory_space<vmem>>, vector<32x98xf32>
    tpu.vector_store %arg9[%c64, %c0_28], %62 {strides = array<i32>} : memref<928x98xf32, #tpu.memory_space<vmem>>, vector<32x98xf32>,
    %64 = vector.extract_strided_slice %62 {offsets = [0, 2], sizes = [32, 96], strides = [1, 1]} : vector<32x98xf32> to vector<32x96xf32>
    %c864 = arith.constant 864 : index
    %c0_29 = arith.constant 0 : index
    %65 = vector.load %arg9[%c864, %c0_29] : memref<928x98xf32, #tpu.memory_space<vmem>>, vector<32x96xf32>
    tpu.vector_store %arg9[%c864, %c0_29], %64 {strides = array<i32>} : memref<928x98xf32, #tpu.memory_space<vmem>>, vector<32x96xf32>,
    %c0_30 = arith.constant 0 : index
    %c15 = arith.constant 15 : index
    %c0_31 = arith.constant 0 : index
    %66 = vector.load %arg1[%c0_30, %c15, %c0_31] : memref<1x129x98xf32, #tpu.memory_space<vmem>>, vector<1x9x98xf32>
    %67 = vector.shape_cast %66 : vector<1x9x98xf32> to vector<9x98xf32>
    %cst_32 = arith.constant dense<0.000000e+00> : vector<160x98xf32>
    %68 = tpu.matmul %0, %67, %cst_32 {dimension_numbers = #tpu.dot_dimension_numbers<[1], [0], [0], [1], [0, 0, 1, 1], [], []>} : vector<160x9xf32>, vector<9x98xf32>, vector<160x98xf32> -> vector<160x98xf32>
    %69 = arith.addf %68, %3 : vector<160x98xf32>
    %cst_33 = arith.constant 0.000000e+00 : f32
    %70 = vector.broadcast %cst_33 : f32 to vector<160x98xf32>
    %71 = arith.maximumf %69, %70 : vector<160x98xf32>
    %72 = vector.extract_strided_slice %71 {offsets = [0, 0], sizes = [32, 98], strides = [1, 1]} : vector<160x98xf32> to vector<32x98xf32>
    %73 = vector.extract_strided_slice %71 {offsets = [32, 0], sizes = [32, 98], strides = [1, 1]} : vector<160x98xf32> to vector<32x98xf32>
    %74 = arith.maximumf %72, %73 : vector<32x98xf32>
    %75 = vector.extract_strided_slice %71 {offsets = [64, 0], sizes = [32, 98], strides = [1, 1]} : vector<160x98xf32> to vector<32x98xf32>
    %76 = vector.extract_strided_slice %71 {offsets = [96, 0], sizes = [32, 98], strides = [1, 1]} : vector<160x98xf32> to vector<32x98xf32>
    %77 = arith.maximumf %75, %76 : vector<32x98xf32>
    %78 = arith.maximumf %74, %77 : vector<32x98xf32>
    %79 = vector.extract_strided_slice %71 {offsets = [128, 0], sizes = [32, 98], strides = [1, 1]} : vector<160x98xf32> to vector<32x98xf32>
    %80 = arith.maximumf %78, %79 : vector<32x98xf32>
    %c96 = arith.constant 96 : index
    %c0_34 = arith.constant 0 : index
    %81 = vector.load %arg9[%c96, %c0_34] : memref<928x98xf32, #tpu.memory_space<vmem>>, vector<32x98xf32>
    tpu.vector_store %arg9[%c96, %c0_34], %80 {strides = array<i32>} : memref<928x98xf32, #tpu.memory_space<vmem>>, vector<32x98xf32>,
    %82 = vector.extract_strided_slice %80 {offsets = [0, 2], sizes = [32, 96], strides = [1, 1]} : vector<32x98xf32> to vector<32x96xf32>
    %c896 = arith.constant 896 : index
    %c0_35 = arith.constant 0 : index
    %83 = vector.load %arg9[%c896, %c0_35] : memref<928x98xf32, #tpu.memory_space<vmem>>, vector<32x96xf32>
    tpu.vector_store %arg9[%c896, %c0_35], %82 {strides = array<i32>} : memref<928x98xf32, #tpu.memory_space<vmem>>, vector<32x96xf32>,
    %c0_36 = arith.constant 0 : index
    %c20 = arith.constant 20 : index
    %c0_37 = arith.constant 0 : index
    %84 = vector.load %arg1[%c0_36, %c20, %c0_37] : memref<1x129x98xf32, #tpu.memory_space<vmem>>, vector<1x9x98xf32>
    %85 = vector.shape_cast %84 : vector<1x9x98xf32> to vector<9x98xf32>
    %cst_38 = arith.constant dense<0.000000e+00> : vector<160x98xf32>
    %86 = tpu.matmul %0, %85, %cst_38 {dimension_numbers = #tpu.dot_dimension_numbers<[1], [0], [0], [1], [0, 0, 1, 1], [], []>} : vector<160x9xf32>, vector<9x98xf32>, vector<160x98xf32> -> vector<160x98xf32>
    %87 = arith.addf %86, %3 : vector<160x98xf32>
    %cst_39 = arith.constant 0.000000e+00 : f32
    %88 = vector.broadcast %cst_39 : f32 to vector<160x98xf32>
    %89 = arith.maximumf %87, %88 : vector<160x98xf32>
    %90 = vector.extract_strided_slice %89 {offsets = [0, 0], sizes = [32, 98], strides = [1, 1]} : vector<160x98xf32> to vector<32x98xf32>
    %91 = vector.extract_strided_slice %89 {offsets = [32, 0], sizes = [32, 98], strides = [1, 1]} : vector<160x98xf32> to vector<32x98xf32>
    %92 = arith.maximumf %90, %91 : vector<32x98xf32>
    %93 = vector.extract_strided_slice %89 {offsets = [64, 0], sizes = [32, 98], strides = [1, 1]} : vector<160x98xf32> to vector<32x98xf32>
    %94 = vector.extract_strided_slice %89 {offsets = [96, 0], sizes = [32, 98], strides = [1, 1]} : vector<160x98xf32> to vector<32x98xf32>
    %95 = arith.maximumf %93, %94 : vector<32x98xf32>
    %96 = arith.maximumf %92, %95 : vector<32x98xf32>
    %97 = vector.extract_strided_slice %89 {offsets = [128, 0], sizes = [32, 98], strides = [1, 1]} : vector<160x98xf32> to vector<32x98xf32>
    %98 = arith.maximumf %96, %97 : vector<32x98xf32>
    %c128 = arith.constant 128 : index
    %c0_40 = arith.constant 0 : index
    %99 = vector.load %arg9[%c128, %c0_40] : memref<928x98xf32, #tpu.memory_space<vmem>>, vector<32x98xf32>
    tpu.vector_store %arg9[%c128, %c0_40], %98 {strides = array<i32>} : memref<928x98xf32, #tpu.memory_space<vmem>>, vector<32x98xf32>,
    %c0_41 = arith.constant 0 : index
    %c25 = arith.constant 25 : index
    %c0_42 = arith.constant 0 : index
    %100 = vector.load %arg1[%c0_41, %c25, %c0_42] : memref<1x129x98xf32, #tpu.memory_space<vmem>>, vector<1x9x98xf32>
    %101 = vector.shape_cast %100 : vector<1x9x98xf32> to vector<9x98xf32>
    %cst_43 = arith.constant dense<0.000000e+00> : vector<160x98xf32>
    %102 = tpu.matmul %0, %101, %cst_43 {dimension_numbers = #tpu.dot_dimension_numbers<[1], [0], [0], [1], [0, 0, 1, 1], [], []>} : vector<160x9xf32>, vector<9x98xf32>, vector<160x98xf32> -> vector<160x98xf32>
    %103 = arith.addf %102, %3 : vector<160x98xf32>
    %cst_44 = arith.constant 0.000000e+00 : f32
    %104 = vector.broadcast %cst_44 : f32 to vector<160x98xf32>
    %105 = arith.maximumf %103, %104 : vector<160x98xf32>
    %106 = vector.extract_strided_slice %105 {offsets = [0, 0], sizes = [32, 98], strides = [1, 1]} : vector<160x98xf32> to vector<32x98xf32>
    %107 = vector.extract_strided_slice %105 {offsets = [32, 0], sizes = [32, 98], strides = [1, 1]} : vector<160x98xf32> to vector<32x98xf32>
    %108 = arith.maximumf %106, %107 : vector<32x98xf32>
    %109 = vector.extract_strided_slice %105 {offsets = [64, 0], sizes = [32, 98], strides = [1, 1]} : vector<160x98xf32> to vector<32x98xf32>
    %110 = vector.extract_strided_slice %105 {offsets = [96, 0], sizes = [32, 98], strides = [1, 1]} : vector<160x98xf32> to vector<32x98xf32>
    %111 = arith.maximumf %109, %110 : vector<32x98xf32>
    %112 = arith.maximumf %108, %111 : vector<32x98xf32>
    %113 = vector.extract_strided_slice %105 {offsets = [128, 0], sizes = [32, 98], strides = [1, 1]} : vector<160x98xf32> to vector<32x98xf32>
    %114 = arith.maximumf %112, %113 : vector<32x98xf32>
    %c160 = arith.constant 160 : index
    %c0_45 = arith.constant 0 : index
    %115 = vector.load %arg9[%c160, %c0_45] : memref<928x98xf32, #tpu.memory_space<vmem>>, vector<32x98xf32>
    tpu.vector_store %arg9[%c160, %c0_45], %114 {strides = array<i32>} : memref<928x98xf32, #tpu.memory_space<vmem>>, vector<32x98xf32>,
    %c0_46 = arith.constant 0 : index
    %c30 = arith.constant 30 : index
    %c0_47 = arith.constant 0 : index
    %116 = vector.load %arg1[%c0_46, %c30, %c0_47] : memref<1x129x98xf32, #tpu.memory_space<vmem>>, vector<1x9x98xf32>
    %117 = vector.shape_cast %116 : vector<1x9x98xf32> to vector<9x98xf32>
    %cst_48 = arith.constant dense<0.000000e+00> : vector<160x98xf32>
    %118 = tpu.matmul %0, %117, %cst_48 {dimension_numbers = #tpu.dot_dimension_numbers<[1], [0], [0], [1], [0, 0, 1, 1], [], []>} : vector<160x9xf32>, vector<9x98xf32>, vector<160x98xf32> -> vector<160x98xf32>
    %119 = arith.addf %118, %3 : vector<160x98xf32>
    %cst_49 = arith.constant 0.000000e+00 : f32
    %120 = vector.broadcast %cst_49 : f32 to vector<160x98xf32>
    %121 = arith.maximumf %119, %120 : vector<160x98xf32>
    %122 = vector.extract_strided_slice %121 {offsets = [0, 0], sizes = [32, 98], strides = [1, 1]} : vector<160x98xf32> to vector<32x98xf32>
    %123 = vector.extract_strided_slice %121 {offsets = [32, 0], sizes = [32, 98], strides = [1, 1]} : vector<160x98xf32> to vector<32x98xf32>
    %124 = arith.maximumf %122, %123 : vector<32x98xf32>
    %125 = vector.extract_strided_slice %121 {offsets = [64, 0], sizes = [32, 98], strides = [1, 1]} : vector<160x98xf32> to vector<32x98xf32>
    %126 = vector.extract_strided_slice %121 {offsets = [96, 0], sizes = [32, 98], strides = [1, 1]} : vector<160x98xf32> to vector<32x98xf32>
    %127 = arith.maximumf %125, %126 : vector<32x98xf32>
    %128 = arith.maximumf %124, %127 : vector<32x98xf32>
    %129 = vector.extract_strided_slice %121 {offsets = [128, 0], sizes = [32, 98], strides = [1, 1]} : vector<160x98xf32> to vector<32x98xf32>
    %130 = arith.maximumf %128, %129 : vector<32x98xf32>
    %c192 = arith.constant 192 : index
    %c0_50 = arith.constant 0 : index
    %131 = vector.load %arg9[%c192, %c0_50] : memref<928x98xf32, #tpu.memory_space<vmem>>, vector<32x98xf32>
    tpu.vector_store %arg9[%c192, %c0_50], %130 {strides = array<i32>} : memref<928x98xf32, #tpu.memory_space<vmem>>, vector<32x98xf32>,
    %c0_51 = arith.constant 0 : index
    %c35 = arith.constant 35 : index
    %c0_52 = arith.constant 0 : index
    %132 = vector.load %arg1[%c0_51, %c35, %c0_52] : memref<1x129x98xf32, #tpu.memory_space<vmem>>, vector<1x9x98xf32>
    %133 = vector.shape_cast %132 : vector<1x9x98xf32> to vector<9x98xf32>
    %cst_53 = arith.constant dense<0.000000e+00> : vector<160x98xf32>
    %134 = tpu.matmul %0, %133, %cst_53 {dimension_numbers = #tpu.dot_dimension_numbers<[1], [0], [0], [1], [0, 0, 1, 1], [], []>} : vector<160x9xf32>, vector<9x98xf32>, vector<160x98xf32> -> vector<160x98xf32>
    %135 = arith.addf %134, %3 : vector<160x98xf32>
    %cst_54 = arith.constant 0.000000e+00 : f32
    %136 = vector.broadcast %cst_54 : f32 to vector<160x98xf32>
    %137 = arith.maximumf %135, %136 : vector<160x98xf32>
    %138 = vector.extract_strided_slice %137 {offsets = [0, 0], sizes = [32, 98], strides = [1, 1]} : vector<160x98xf32> to vector<32x98xf32>
    %139 = vector.extract_strided_slice %137 {offsets = [32, 0], sizes = [32, 98], strides = [1, 1]} : vector<160x98xf32> to vector<32x98xf32>
    %140 = arith.maximumf %138, %139 : vector<32x98xf32>
    %141 = vector.extract_strided_slice %137 {offsets = [64, 0], sizes = [32, 98], strides = [1, 1]} : vector<160x98xf32> to vector<32x98xf32>
    %142 = vector.extract_strided_slice %137 {offsets = [96, 0], sizes = [32, 98], strides = [1, 1]} : vector<160x98xf32> to vector<32x98xf32>
    %143 = arith.maximumf %141, %142 : vector<32x98xf32>
    %144 = arith.maximumf %140, %143 : vector<32x98xf32>
    %145 = vector.extract_strided_slice %137 {offsets = [128, 0], sizes = [32, 98], strides = [1, 1]} : vector<160x98xf32> to vector<32x98xf32>
    %146 = arith.maximumf %144, %145 : vector<32x98xf32>
    %c224 = arith.constant 224 : index
    %c0_55 = arith.constant 0 : index
    %147 = vector.load %arg9[%c224, %c0_55] : memref<928x98xf32, #tpu.memory_space<vmem>>, vector<32x98xf32>
    tpu.vector_store %arg9[%c224, %c0_55], %146 {strides = array<i32>} : memref<928x98xf32, #tpu.memory_space<vmem>>, vector<32x98xf32>,
    %c0_56 = arith.constant 0 : index
    %c40 = arith.constant 40 : index
    %c0_57 = arith.constant 0 : index
    %148 = vector.load %arg1[%c0_56, %c40, %c0_57] : memref<1x129x98xf32, #tpu.memory_space<vmem>>, vector<1x9x98xf32>
    %149 = vector.shape_cast %148 : vector<1x9x98xf32> to vector<9x98xf32>
    %cst_58 = arith.constant dense<0.000000e+00> : vector<160x98xf32>
    %150 = tpu.matmul %0, %149, %cst_58 {dimension_numbers = #tpu.dot_dimension_numbers<[1], [0], [0], [1], [0, 0, 1, 1], [], []>} : vector<160x9xf32>, vector<9x98xf32>, vector<160x98xf32> -> vector<160x98xf32>
    %151 = arith.addf %150, %3 : vector<160x98xf32>
    %cst_59 = arith.constant 0.000000e+00 : f32
    %152 = vector.broadcast %cst_59 : f32 to vector<160x98xf32>
    %153 = arith.maximumf %151, %152 : vector<160x98xf32>
    %154 = vector.extract_strided_slice %153 {offsets = [0, 0], sizes = [32, 98], strides = [1, 1]} : vector<160x98xf32> to vector<32x98xf32>
    %155 = vector.extract_strided_slice %153 {offsets = [32, 0], sizes = [32, 98], strides = [1, 1]} : vector<160x98xf32> to vector<32x98xf32>
    %156 = arith.maximumf %154, %155 : vector<32x98xf32>
    %157 = vector.extract_strided_slice %153 {offsets = [64, 0], sizes = [32, 98], strides = [1, 1]} : vector<160x98xf32> to vector<32x98xf32>
    %158 = vector.extract_strided_slice %153 {offsets = [96, 0], sizes = [32, 98], strides = [1, 1]} : vector<160x98xf32> to vector<32x98xf32>
    %159 = arith.maximumf %157, %158 : vector<32x98xf32>
    %160 = arith.maximumf %156, %159 : vector<32x98xf32>
    %161 = vector.extract_strided_slice %153 {offsets = [128, 0], sizes = [32, 98], strides = [1, 1]} : vector<160x98xf32> to vector<32x98xf32>
    %162 = arith.maximumf %160, %161 : vector<32x98xf32>
    %c256 = arith.constant 256 : index
    %c0_60 = arith.constant 0 : index
    %163 = vector.load %arg9[%c256, %c0_60] : memref<928x98xf32, #tpu.memory_space<vmem>>, vector<32x98xf32>
    tpu.vector_store %arg9[%c256, %c0_60], %162 {strides = array<i32>} : memref<928x98xf32, #tpu.memory_space<vmem>>, vector<32x98xf32>,
    %c0_61 = arith.constant 0 : index
    %c45 = arith.constant 45 : index
    %c0_62 = arith.constant 0 : index
    %164 = vector.load %arg1[%c0_61, %c45, %c0_62] : memref<1x129x98xf32, #tpu.memory_space<vmem>>, vector<1x9x98xf32>
    %165 = vector.shape_cast %164 : vector<1x9x98xf32> to vector<9x98xf32>
    %cst_63 = arith.constant dense<0.000000e+00> : vector<160x98xf32>
    %166 = tpu.matmul %0, %165, %cst_63 {dimension_numbers = #tpu.dot_dimension_numbers<[1], [0], [0], [1], [0, 0, 1, 1], [], []>} : vector<160x9xf32>, vector<9x98xf32>, vector<160x98xf32> -> vector<160x98xf32>
    %167 = arith.addf %166, %3 : vector<160x98xf32>
    %cst_64 = arith.constant 0.000000e+00 : f32
    %168 = vector.broadcast %cst_64 : f32 to vector<160x98xf32>
    %169 = arith.maximumf %167, %168 : vector<160x98xf32>
    %170 = vector.extract_strided_slice %169 {offsets = [0, 0], sizes = [32, 98], strides = [1, 1]} : vector<160x98xf32> to vector<32x98xf32>
    %171 = vector.extract_strided_slice %169 {offsets = [32, 0], sizes = [32, 98], strides = [1, 1]} : vector<160x98xf32> to vector<32x98xf32>
    %172 = arith.maximumf %170, %171 : vector<32x98xf32>
    %173 = vector.extract_strided_slice %169 {offsets = [64, 0], sizes = [32, 98], strides = [1, 1]} : vector<160x98xf32> to vector<32x98xf32>
    %174 = vector.extract_strided_slice %169 {offsets = [96, 0], sizes = [32, 98], strides = [1, 1]} : vector<160x98xf32> to vector<32x98xf32>
    %175 = arith.maximumf %173, %174 : vector<32x98xf32>
    %176 = arith.maximumf %172, %175 : vector<32x98xf32>
    %177 = vector.extract_strided_slice %169 {offsets = [128, 0], sizes = [32, 98], strides = [1, 1]} : vector<160x98xf32> to vector<32x98xf32>
    %178 = arith.maximumf %176, %177 : vector<32x98xf32>
    %c288 = arith.constant 288 : index
    %c0_65 = arith.constant 0 : index
    %179 = vector.load %arg9[%c288, %c0_65] : memref<928x98xf32, #tpu.memory_space<vmem>>, vector<32x98xf32>
    tpu.vector_store %arg9[%c288, %c0_65], %178 {strides = array<i32>} : memref<928x98xf32, #tpu.memory_space<vmem>>, vector<32x98xf32>,
    %c0_66 = arith.constant 0 : index
    %c50 = arith.constant 50 : index
    %c0_67 = arith.constant 0 : index
    %180 = vector.load %arg1[%c0_66, %c50, %c0_67] : memref<1x129x98xf32, #tpu.memory_space<vmem>>, vector<1x9x98xf32>
    %181 = vector.shape_cast %180 : vector<1x9x98xf32> to vector<9x98xf32>
    %cst_68 = arith.constant dense<0.000000e+00> : vector<160x98xf32>
    %182 = tpu.matmul %0, %181, %cst_68 {dimension_numbers = #tpu.dot_dimension_numbers<[1], [0], [0], [1], [0, 0, 1, 1], [], []>} : vector<160x9xf32>, vector<9x98xf32>, vector<160x98xf32> -> vector<160x98xf32>
    %183 = arith.addf %182, %3 : vector<160x98xf32>
    %cst_69 = arith.constant 0.000000e+00 : f32
    %184 = vector.broadcast %cst_69 : f32 to vector<160x98xf32>
    %185 = arith.maximumf %183, %184 : vector<160x98xf32>
    %186 = vector.extract_strided_slice %185 {offsets = [0, 0], sizes = [32, 98], strides = [1, 1]} : vector<160x98xf32> to vector<32x98xf32>
    %187 = vector.extract_strided_slice %185 {offsets = [32, 0], sizes = [32, 98], strides = [1, 1]} : vector<160x98xf32> to vector<32x98xf32>
    %188 = arith.maximumf %186, %187 : vector<32x98xf32>
    %189 = vector.extract_strided_slice %185 {offsets = [64, 0], sizes = [32, 98], strides = [1, 1]} : vector<160x98xf32> to vector<32x98xf32>
    %190 = vector.extract_strided_slice %185 {offsets = [96, 0], sizes = [32, 98], strides = [1, 1]} : vector<160x98xf32> to vector<32x98xf32>
    %191 = arith.maximumf %189, %190 : vector<32x98xf32>
    %192 = arith.maximumf %188, %191 : vector<32x98xf32>
    %193 = vector.extract_strided_slice %185 {offsets = [128, 0], sizes = [32, 98], strides = [1, 1]} : vector<160x98xf32> to vector<32x98xf32>
    %194 = arith.maximumf %192, %193 : vector<32x98xf32>
    %c320 = arith.constant 320 : index
    %c0_70 = arith.constant 0 : index
    %195 = vector.load %arg9[%c320, %c0_70] : memref<928x98xf32, #tpu.memory_space<vmem>>, vector<32x98xf32>
    tpu.vector_store %arg9[%c320, %c0_70], %194 {strides = array<i32>} : memref<928x98xf32, #tpu.memory_space<vmem>>, vector<32x98xf32>,
    %c0_71 = arith.constant 0 : index
    %c55 = arith.constant 55 : index
    %c0_72 = arith.constant 0 : index
    %196 = vector.load %arg1[%c0_71, %c55, %c0_72] : memref<1x129x98xf32, #tpu.memory_space<vmem>>, vector<1x9x98xf32>
    %197 = vector.shape_cast %196 : vector<1x9x98xf32> to vector<9x98xf32>
    %cst_73 = arith.constant dense<0.000000e+00> : vector<160x98xf32>
    %198 = tpu.matmul %0, %197, %cst_73 {dimension_numbers = #tpu.dot_dimension_numbers<[1], [0], [0], [1], [0, 0, 1, 1], [], []>} : vector<160x9xf32>, vector<9x98xf32>, vector<160x98xf32> -> vector<160x98xf32>
    %199 = arith.addf %198, %3 : vector<160x98xf32>
    %cst_74 = arith.constant 0.000000e+00 : f32
    %200 = vector.broadcast %cst_74 : f32 to vector<160x98xf32>
    %201 = arith.maximumf %199, %200 : vector<160x98xf32>
    %202 = vector.extract_strided_slice %201 {offsets = [0, 0], sizes = [32, 98], strides = [1, 1]} : vector<160x98xf32> to vector<32x98xf32>
    %203 = vector.extract_strided_slice %201 {offsets = [32, 0], sizes = [32, 98], strides = [1, 1]} : vector<160x98xf32> to vector<32x98xf32>
    %204 = arith.maximumf %202, %203 : vector<32x98xf32>
    %205 = vector.extract_strided_slice %201 {offsets = [64, 0], sizes = [32, 98], strides = [1, 1]} : vector<160x98xf32> to vector<32x98xf32>
    %206 = vector.extract_strided_slice %201 {offsets = [96, 0], sizes = [32, 98], strides = [1, 1]} : vector<160x98xf32> to vector<32x98xf32>
    %207 = arith.maximumf %205, %206 : vector<32x98xf32>
    %208 = arith.maximumf %204, %207 : vector<32x98xf32>
    %209 = vector.extract_strided_slice %201 {offsets = [128, 0], sizes = [32, 98], strides = [1, 1]} : vector<160x98xf32> to vector<32x98xf32>
    %210 = arith.maximumf %208, %209 : vector<32x98xf32>
    %c352 = arith.constant 352 : index
    %c0_75 = arith.constant 0 : index
    %211 = vector.load %arg9[%c352, %c0_75] : memref<928x98xf32, #tpu.memory_space<vmem>>, vector<32x98xf32>
    tpu.vector_store %arg9[%c352, %c0_75], %210 {strides = array<i32>} : memref<928x98xf32, #tpu.memory_space<vmem>>, vector<32x98xf32>,
    %c0_76 = arith.constant 0 : index
    %c60 = arith.constant 60 : index
    %c0_77 = arith.constant 0 : index
    %212 = vector.load %arg1[%c0_76, %c60, %c0_77] : memref<1x129x98xf32, #tpu.memory_space<vmem>>, vector<1x9x98xf32>
    %213 = vector.shape_cast %212 : vector<1x9x98xf32> to vector<9x98xf32>
    %cst_78 = arith.constant dense<0.000000e+00> : vector<160x98xf32>
    %214 = tpu.matmul %0, %213, %cst_78 {dimension_numbers = #tpu.dot_dimension_numbers<[1], [0], [0], [1], [0, 0, 1, 1], [], []>} : vector<160x9xf32>, vector<9x98xf32>, vector<160x98xf32> -> vector<160x98xf32>
    %215 = arith.addf %214, %3 : vector<160x98xf32>
    %cst_79 = arith.constant 0.000000e+00 : f32
    %216 = vector.broadcast %cst_79 : f32 to vector<160x98xf32>
    %217 = arith.maximumf %215, %216 : vector<160x98xf32>
    %218 = vector.extract_strided_slice %217 {offsets = [0, 0], sizes = [32, 98], strides = [1, 1]} : vector<160x98xf32> to vector<32x98xf32>
    %219 = vector.extract_strided_slice %217 {offsets = [32, 0], sizes = [32, 98], strides = [1, 1]} : vector<160x98xf32> to vector<32x98xf32>
    %220 = arith.maximumf %218, %219 : vector<32x98xf32>
    %221 = vector.extract_strided_slice %217 {offsets = [64, 0], sizes = [32, 98], strides = [1, 1]} : vector<160x98xf32> to vector<32x98xf32>
    %222 = vector.extract_strided_slice %217 {offsets = [96, 0], sizes = [32, 98], strides = [1, 1]} : vector<160x98xf32> to vector<32x98xf32>
    %223 = arith.maximumf %221, %222 : vector<32x98xf32>
    %224 = arith.maximumf %220, %223 : vector<32x98xf32>
    %225 = vector.extract_strided_slice %217 {offsets = [128, 0], sizes = [32, 98], strides = [1, 1]} : vector<160x98xf32> to vector<32x98xf32>
    %226 = arith.maximumf %224, %225 : vector<32x98xf32>
    %c384 = arith.constant 384 : index
    %c0_80 = arith.constant 0 : index
    %227 = vector.load %arg9[%c384, %c0_80] : memref<928x98xf32, #tpu.memory_space<vmem>>, vector<32x98xf32>
    tpu.vector_store %arg9[%c384, %c0_80], %226 {strides = array<i32>} : memref<928x98xf32, #tpu.memory_space<vmem>>, vector<32x98xf32>,
    %c0_81 = arith.constant 0 : index
    %c65 = arith.constant 65 : index
    %c0_82 = arith.constant 0 : index
    %228 = vector.load %arg1[%c0_81, %c65, %c0_82] : memref<1x129x98xf32, #tpu.memory_space<vmem>>, vector<1x9x98xf32>
    %229 = vector.shape_cast %228 : vector<1x9x98xf32> to vector<9x98xf32>
    %cst_83 = arith.constant dense<0.000000e+00> : vector<160x98xf32>
    %230 = tpu.matmul %0, %229, %cst_83 {dimension_numbers = #tpu.dot_dimension_numbers<[1], [0], [0], [1], [0, 0, 1, 1], [], []>} : vector<160x9xf32>, vector<9x98xf32>, vector<160x98xf32> -> vector<160x98xf32>
    %231 = arith.addf %230, %3 : vector<160x98xf32>
    %cst_84 = arith.constant 0.000000e+00 : f32
    %232 = vector.broadcast %cst_84 : f32 to vector<160x98xf32>
    %233 = arith.maximumf %231, %232 : vector<160x98xf32>
    %234 = vector.extract_strided_slice %233 {offsets = [0, 0], sizes = [32, 98], strides = [1, 1]} : vector<160x98xf32> to vector<32x98xf32>
    %235 = vector.extract_strided_slice %233 {offsets = [32, 0], sizes = [32, 98], strides = [1, 1]} : vector<160x98xf32> to vector<32x98xf32>
    %236 = arith.maximumf %234, %235 : vector<32x98xf32>
    %237 = vector.extract_strided_slice %233 {offsets = [64, 0], sizes = [32, 98], strides = [1, 1]} : vector<160x98xf32> to vector<32x98xf32>
    %238 = vector.extract_strided_slice %233 {offsets = [96, 0], sizes = [32, 98], strides = [1, 1]} : vector<160x98xf32> to vector<32x98xf32>
    %239 = arith.maximumf %237, %238 : vector<32x98xf32>
    %240 = arith.maximumf %236, %239 : vector<32x98xf32>
    %241 = vector.extract_strided_slice %233 {offsets = [128, 0], sizes = [32, 98], strides = [1, 1]} : vector<160x98xf32> to vector<32x98xf32>
    %242 = arith.maximumf %240, %241 : vector<32x98xf32>
    %c416 = arith.constant 416 : index
    %c0_85 = arith.constant 0 : index
    %243 = vector.load %arg9[%c416, %c0_85] : memref<928x98xf32, #tpu.memory_space<vmem>>, vector<32x98xf32>
    tpu.vector_store %arg9[%c416, %c0_85], %242 {strides = array<i32>} : memref<928x98xf32, #tpu.memory_space<vmem>>, vector<32x98xf32>,
    %c0_86 = arith.constant 0 : index
    %c70 = arith.constant 70 : index
    %c0_87 = arith.constant 0 : index
    %244 = vector.load %arg1[%c0_86, %c70, %c0_87] : memref<1x129x98xf32, #tpu.memory_space<vmem>>, vector<1x9x98xf32>
    %245 = vector.shape_cast %244 : vector<1x9x98xf32> to vector<9x98xf32>
    %cst_88 = arith.constant dense<0.000000e+00> : vector<160x98xf32>
    %246 = tpu.matmul %0, %245, %cst_88 {dimension_numbers = #tpu.dot_dimension_numbers<[1], [0], [0], [1], [0, 0, 1, 1], [], []>} : vector<160x9xf32>, vector<9x98xf32>, vector<160x98xf32> -> vector<160x98xf32>
    %247 = arith.addf %246, %3 : vector<160x98xf32>
    %cst_89 = arith.constant 0.000000e+00 : f32
    %248 = vector.broadcast %cst_89 : f32 to vector<160x98xf32>
    %249 = arith.maximumf %247, %248 : vector<160x98xf32>
    %250 = vector.extract_strided_slice %249 {offsets = [0, 0], sizes = [32, 98], strides = [1, 1]} : vector<160x98xf32> to vector<32x98xf32>
    %251 = vector.extract_strided_slice %249 {offsets = [32, 0], sizes = [32, 98], strides = [1, 1]} : vector<160x98xf32> to vector<32x98xf32>
    %252 = arith.maximumf %250, %251 : vector<32x98xf32>
    %253 = vector.extract_strided_slice %249 {offsets = [64, 0], sizes = [32, 98], strides = [1, 1]} : vector<160x98xf32> to vector<32x98xf32>
    %254 = vector.extract_strided_slice %249 {offsets = [96, 0], sizes = [32, 98], strides = [1, 1]} : vector<160x98xf32> to vector<32x98xf32>
    %255 = arith.maximumf %253, %254 : vector<32x98xf32>
    %256 = arith.maximumf %252, %255 : vector<32x98xf32>
    %257 = vector.extract_strided_slice %249 {offsets = [128, 0], sizes = [32, 98], strides = [1, 1]} : vector<160x98xf32> to vector<32x98xf32>
    %258 = arith.maximumf %256, %257 : vector<32x98xf32>
    %c448 = arith.constant 448 : index
    %c0_90 = arith.constant 0 : index
    %259 = vector.load %arg9[%c448, %c0_90] : memref<928x98xf32, #tpu.memory_space<vmem>>, vector<32x98xf32>
    tpu.vector_store %arg9[%c448, %c0_90], %258 {strides = array<i32>} : memref<928x98xf32, #tpu.memory_space<vmem>>, vector<32x98xf32>,
    %c0_91 = arith.constant 0 : index
    %c75 = arith.constant 75 : index
    %c0_92 = arith.constant 0 : index
    %260 = vector.load %arg1[%c0_91, %c75, %c0_92] : memref<1x129x98xf32, #tpu.memory_space<vmem>>, vector<1x9x98xf32>
    %261 = vector.shape_cast %260 : vector<1x9x98xf32> to vector<9x98xf32>
    %cst_93 = arith.constant dense<0.000000e+00> : vector<160x98xf32>
    %262 = tpu.matmul %0, %261, %cst_93 {dimension_numbers = #tpu.dot_dimension_numbers<[1], [0], [0], [1], [0, 0, 1, 1], [], []>} : vector<160x9xf32>, vector<9x98xf32>, vector<160x98xf32> -> vector<160x98xf32>
    %263 = arith.addf %262, %3 : vector<160x98xf32>
    %cst_94 = arith.constant 0.000000e+00 : f32
    %264 = vector.broadcast %cst_94 : f32 to vector<160x98xf32>
    %265 = arith.maximumf %263, %264 : vector<160x98xf32>
    %266 = vector.extract_strided_slice %265 {offsets = [0, 0], sizes = [32, 98], strides = [1, 1]} : vector<160x98xf32> to vector<32x98xf32>
    %267 = vector.extract_strided_slice %265 {offsets = [32, 0], sizes = [32, 98], strides = [1, 1]} : vector<160x98xf32> to vector<32x98xf32>
    %268 = arith.maximumf %266, %267 : vector<32x98xf32>
    %269 = vector.extract_strided_slice %265 {offsets = [64, 0], sizes = [32, 98], strides = [1, 1]} : vector<160x98xf32> to vector<32x98xf32>
    %270 = vector.extract_strided_slice %265 {offsets = [96, 0], sizes = [32, 98], strides = [1, 1]} : vector<160x98xf32> to vector<32x98xf32>
    %271 = arith.maximumf %269, %270 : vector<32x98xf32>
    %272 = arith.maximumf %268, %271 : vector<32x98xf32>
    %273 = vector.extract_strided_slice %265 {offsets = [128, 0], sizes = [32, 98], strides = [1, 1]} : vector<160x98xf32> to vector<32x98xf32>
    %274 = arith.maximumf %272, %273 : vector<32x98xf32>
    %c480 = arith.constant 480 : index
    %c0_95 = arith.constant 0 : index
    %275 = vector.load %arg9[%c480, %c0_95] : memref<928x98xf32, #tpu.memory_space<vmem>>, vector<32x98xf32>
    tpu.vector_store %arg9[%c480, %c0_95], %274 {strides = array<i32>} : memref<928x98xf32, #tpu.memory_space<vmem>>, vector<32x98xf32>,
    %c0_96 = arith.constant 0 : index
    %c80 = arith.constant 80 : index
    %c0_97 = arith.constant 0 : index
    %276 = vector.load %arg1[%c0_96, %c80, %c0_97] : memref<1x129x98xf32, #tpu.memory_space<vmem>>, vector<1x9x98xf32>
    %277 = vector.shape_cast %276 : vector<1x9x98xf32> to vector<9x98xf32>
    %cst_98 = arith.constant dense<0.000000e+00> : vector<160x98xf32>
    %278 = tpu.matmul %0, %277, %cst_98 {dimension_numbers = #tpu.dot_dimension_numbers<[1], [0], [0], [1], [0, 0, 1, 1], [], []>} : vector<160x9xf32>, vector<9x98xf32>, vector<160x98xf32> -> vector<160x98xf32>
    %279 = arith.addf %278, %3 : vector<160x98xf32>
    %cst_99 = arith.constant 0.000000e+00 : f32
    %280 = vector.broadcast %cst_99 : f32 to vector<160x98xf32>
    %281 = arith.maximumf %279, %280 : vector<160x98xf32>
    %282 = vector.extract_strided_slice %281 {offsets = [0, 0], sizes = [32, 98], strides = [1, 1]} : vector<160x98xf32> to vector<32x98xf32>
    %283 = vector.extract_strided_slice %281 {offsets = [32, 0], sizes = [32, 98], strides = [1, 1]} : vector<160x98xf32> to vector<32x98xf32>
    %284 = arith.maximumf %282, %283 : vector<32x98xf32>
    %285 = vector.extract_strided_slice %281 {offsets = [64, 0], sizes = [32, 98], strides = [1, 1]} : vector<160x98xf32> to vector<32x98xf32>
    %286 = vector.extract_strided_slice %281 {offsets = [96, 0], sizes = [32, 98], strides = [1, 1]} : vector<160x98xf32> to vector<32x98xf32>
    %287 = arith.maximumf %285, %286 : vector<32x98xf32>
    %288 = arith.maximumf %284, %287 : vector<32x98xf32>
    %289 = vector.extract_strided_slice %281 {offsets = [128, 0], sizes = [32, 98], strides = [1, 1]} : vector<160x98xf32> to vector<32x98xf32>
    %290 = arith.maximumf %288, %289 : vector<32x98xf32>
    %c512 = arith.constant 512 : index
    %c0_100 = arith.constant 0 : index
    %291 = vector.load %arg9[%c512, %c0_100] : memref<928x98xf32, #tpu.memory_space<vmem>>, vector<32x98xf32>
    tpu.vector_store %arg9[%c512, %c0_100], %290 {strides = array<i32>} : memref<928x98xf32, #tpu.memory_space<vmem>>, vector<32x98xf32>,
    %c0_101 = arith.constant 0 : index
    %c85 = arith.constant 85 : index
    %c0_102 = arith.constant 0 : index
    %292 = vector.load %arg1[%c0_101, %c85, %c0_102] : memref<1x129x98xf32, #tpu.memory_space<vmem>>, vector<1x9x98xf32>
    %293 = vector.shape_cast %292 : vector<1x9x98xf32> to vector<9x98xf32>
    %cst_103 = arith.constant dense<0.000000e+00> : vector<160x98xf32>
    %294 = tpu.matmul %0, %293, %cst_103 {dimension_numbers = #tpu.dot_dimension_numbers<[1], [0], [0], [1], [0, 0, 1, 1], [], []>} : vector<160x9xf32>, vector<9x98xf32>, vector<160x98xf32> -> vector<160x98xf32>
    %295 = arith.addf %294, %3 : vector<160x98xf32>
    %cst_104 = arith.constant 0.000000e+00 : f32
    %296 = vector.broadcast %cst_104 : f32 to vector<160x98xf32>
    %297 = arith.maximumf %295, %296 : vector<160x98xf32>
    %298 = vector.extract_strided_slice %297 {offsets = [0, 0], sizes = [32, 98], strides = [1, 1]} : vector<160x98xf32> to vector<32x98xf32>
    %299 = vector.extract_strided_slice %297 {offsets = [32, 0], sizes = [32, 98], strides = [1, 1]} : vector<160x98xf32> to vector<32x98xf32>
    %300 = arith.maximumf %298, %299 : vector<32x98xf32>
    %301 = vector.extract_strided_slice %297 {offsets = [64, 0], sizes = [32, 98], strides = [1, 1]} : vector<160x98xf32> to vector<32x98xf32>
    %302 = vector.extract_strided_slice %297 {offsets = [96, 0], sizes = [32, 98], strides = [1, 1]} : vector<160x98xf32> to vector<32x98xf32>
    %303 = arith.maximumf %301, %302 : vector<32x98xf32>
    %304 = arith.maximumf %300, %303 : vector<32x98xf32>
    %305 = vector.extract_strided_slice %297 {offsets = [128, 0], sizes = [32, 98], strides = [1, 1]} : vector<160x98xf32> to vector<32x98xf32>
    %306 = arith.maximumf %304, %305 : vector<32x98xf32>
    %c544 = arith.constant 544 : index
    %c0_105 = arith.constant 0 : index
    %307 = vector.load %arg9[%c544, %c0_105] : memref<928x98xf32, #tpu.memory_space<vmem>>, vector<32x98xf32>
    tpu.vector_store %arg9[%c544, %c0_105], %306 {strides = array<i32>} : memref<928x98xf32, #tpu.memory_space<vmem>>, vector<32x98xf32>,
    %c0_106 = arith.constant 0 : index
    %c90 = arith.constant 90 : index
    %c0_107 = arith.constant 0 : index
    %308 = vector.load %arg1[%c0_106, %c90, %c0_107] : memref<1x129x98xf32, #tpu.memory_space<vmem>>, vector<1x9x98xf32>
    %309 = vector.shape_cast %308 : vector<1x9x98xf32> to vector<9x98xf32>
    %cst_108 = arith.constant dense<0.000000e+00> : vector<160x98xf32>
    %310 = tpu.matmul %0, %309, %cst_108 {dimension_numbers = #tpu.dot_dimension_numbers<[1], [0], [0], [1], [0, 0, 1, 1], [], []>} : vector<160x9xf32>, vector<9x98xf32>, vector<160x98xf32> -> vector<160x98xf32>
    %311 = arith.addf %310, %3 : vector<160x98xf32>
    %cst_109 = arith.constant 0.000000e+00 : f32
    %312 = vector.broadcast %cst_109 : f32 to vector<160x98xf32>
    %313 = arith.maximumf %311, %312 : vector<160x98xf32>
    %314 = vector.extract_strided_slice %313 {offsets = [0, 0], sizes = [32, 98], strides = [1, 1]} : vector<160x98xf32> to vector<32x98xf32>
    %315 = vector.extract_strided_slice %313 {offsets = [32, 0], sizes = [32, 98], strides = [1, 1]} : vector<160x98xf32> to vector<32x98xf32>
    %316 = arith.maximumf %314, %315 : vector<32x98xf32>
    %317 = vector.extract_strided_slice %313 {offsets = [64, 0], sizes = [32, 98], strides = [1, 1]} : vector<160x98xf32> to vector<32x98xf32>
    %318 = vector.extract_strided_slice %313 {offsets = [96, 0], sizes = [32, 98], strides = [1, 1]} : vector<160x98xf32> to vector<32x98xf32>
    %319 = arith.maximumf %317, %318 : vector<32x98xf32>
    %320 = arith.maximumf %316, %319 : vector<32x98xf32>
    %321 = vector.extract_strided_slice %313 {offsets = [128, 0], sizes = [32, 98], strides = [1, 1]} : vector<160x98xf32> to vector<32x98xf32>
    %322 = arith.maximumf %320, %321 : vector<32x98xf32>
    %c576 = arith.constant 576 : index
    %c0_110 = arith.constant 0 : index
    %323 = vector.load %arg9[%c576, %c0_110] : memref<928x98xf32, #tpu.memory_space<vmem>>, vector<32x98xf32>
    tpu.vector_store %arg9[%c576, %c0_110], %322 {strides = array<i32>} : memref<928x98xf32, #tpu.memory_space<vmem>>, vector<32x98xf32>,
    %c0_111 = arith.constant 0 : index
    %c95 = arith.constant 95 : index
    %c0_112 = arith.constant 0 : index
    %324 = vector.load %arg1[%c0_111, %c95, %c0_112] : memref<1x129x98xf32, #tpu.memory_space<vmem>>, vector<1x9x98xf32>
    %325 = vector.shape_cast %324 : vector<1x9x98xf32> to vector<9x98xf32>
    %cst_113 = arith.constant dense<0.000000e+00> : vector<160x98xf32>
    %326 = tpu.matmul %0, %325, %cst_113 {dimension_numbers = #tpu.dot_dimension_numbers<[1], [0], [0], [1], [0, 0, 1, 1], [], []>} : vector<160x9xf32>, vector<9x98xf32>, vector<160x98xf32> -> vector<160x98xf32>
    %327 = arith.addf %326, %3 : vector<160x98xf32>
    %cst_114 = arith.constant 0.000000e+00 : f32
    %328 = vector.broadcast %cst_114 : f32 to vector<160x98xf32>
    %329 = arith.maximumf %327, %328 : vector<160x98xf32>
    %330 = vector.extract_strided_slice %329 {offsets = [0, 0], sizes = [32, 98], strides = [1, 1]} : vector<160x98xf32> to vector<32x98xf32>
    %331 = vector.extract_strided_slice %329 {offsets = [32, 0], sizes = [32, 98], strides = [1, 1]} : vector<160x98xf32> to vector<32x98xf32>
    %332 = arith.maximumf %330, %331 : vector<32x98xf32>
    %333 = vector.extract_strided_slice %329 {offsets = [64, 0], sizes = [32, 98], strides = [1, 1]} : vector<160x98xf32> to vector<32x98xf32>
    %334 = vector.extract_strided_slice %329 {offsets = [96, 0], sizes = [32, 98], strides = [1, 1]} : vector<160x98xf32> to vector<32x98xf32>
    %335 = arith.maximumf %333, %334 : vector<32x98xf32>
    %336 = arith.maximumf %332, %335 : vector<32x98xf32>
    %337 = vector.extract_strided_slice %329 {offsets = [128, 0], sizes = [32, 98], strides = [1, 1]} : vector<160x98xf32> to vector<32x98xf32>
    %338 = arith.maximumf %336, %337 : vector<32x98xf32>
    %c608 = arith.constant 608 : index
    %c0_115 = arith.constant 0 : index
    %339 = vector.load %arg9[%c608, %c0_115] : memref<928x98xf32, #tpu.memory_space<vmem>>, vector<32x98xf32>
    tpu.vector_store %arg9[%c608, %c0_115], %338 {strides = array<i32>} : memref<928x98xf32, #tpu.memory_space<vmem>>, vector<32x98xf32>,
    %c0_116 = arith.constant 0 : index
    %c100 = arith.constant 100 : index
    %c0_117 = arith.constant 0 : index
    %340 = vector.load %arg1[%c0_116, %c100, %c0_117] : memref<1x129x98xf32, #tpu.memory_space<vmem>>, vector<1x9x98xf32>
    %341 = vector.shape_cast %340 : vector<1x9x98xf32> to vector<9x98xf32>
    %cst_118 = arith.constant dense<0.000000e+00> : vector<160x98xf32>
    %342 = tpu.matmul %0, %341, %cst_118 {dimension_numbers = #tpu.dot_dimension_numbers<[1], [0], [0], [1], [0, 0, 1, 1], [], []>} : vector<160x9xf32>, vector<9x98xf32>, vector<160x98xf32> -> vector<160x98xf32>
    %343 = arith.addf %342, %3 : vector<160x98xf32>
    %cst_119 = arith.constant 0.000000e+00 : f32
    %344 = vector.broadcast %cst_119 : f32 to vector<160x98xf32>
    %345 = arith.maximumf %343, %344 : vector<160x98xf32>
    %346 = vector.extract_strided_slice %345 {offsets = [0, 0], sizes = [32, 98], strides = [1, 1]} : vector<160x98xf32> to vector<32x98xf32>
    %347 = vector.extract_strided_slice %345 {offsets = [32, 0], sizes = [32, 98], strides = [1, 1]} : vector<160x98xf32> to vector<32x98xf32>
    %348 = arith.maximumf %346, %347 : vector<32x98xf32>
    %349 = vector.extract_strided_slice %345 {offsets = [64, 0], sizes = [32, 98], strides = [1, 1]} : vector<160x98xf32> to vector<32x98xf32>
    %350 = vector.extract_strided_slice %345 {offsets = [96, 0], sizes = [32, 98], strides = [1, 1]} : vector<160x98xf32> to vector<32x98xf32>
    %351 = arith.maximumf %349, %350 : vector<32x98xf32>
    %352 = arith.maximumf %348, %351 : vector<32x98xf32>
    %353 = vector.extract_strided_slice %345 {offsets = [128, 0], sizes = [32, 98], strides = [1, 1]} : vector<160x98xf32> to vector<32x98xf32>
    %354 = arith.maximumf %352, %353 : vector<32x98xf32>
    %c640 = arith.constant 640 : index
    %c0_120 = arith.constant 0 : index
    %355 = vector.load %arg9[%c640, %c0_120] : memref<928x98xf32, #tpu.memory_space<vmem>>, vector<32x98xf32>
    tpu.vector_store %arg9[%c640, %c0_120], %354 {strides = array<i32>} : memref<928x98xf32, #tpu.memory_space<vmem>>, vector<32x98xf32>,
    %c0_121 = arith.constant 0 : index
    %c105 = arith.constant 105 : index
    %c0_122 = arith.constant 0 : index
    %356 = vector.load %arg1[%c0_121, %c105, %c0_122] : memref<1x129x98xf32, #tpu.memory_space<vmem>>, vector<1x9x98xf32>
    %357 = vector.shape_cast %356 : vector<1x9x98xf32> to vector<9x98xf32>
    %cst_123 = arith.constant dense<0.000000e+00> : vector<160x98xf32>
    %358 = tpu.matmul %0, %357, %cst_123 {dimension_numbers = #tpu.dot_dimension_numbers<[1], [0], [0], [1], [0, 0, 1, 1], [], []>} : vector<160x9xf32>, vector<9x98xf32>, vector<160x98xf32> -> vector<160x98xf32>
    %359 = arith.addf %358, %3 : vector<160x98xf32>
    %cst_124 = arith.constant 0.000000e+00 : f32
    %360 = vector.broadcast %cst_124 : f32 to vector<160x98xf32>
    %361 = arith.maximumf %359, %360 : vector<160x98xf32>
    %362 = vector.extract_strided_slice %361 {offsets = [0, 0], sizes = [32, 98], strides = [1, 1]} : vector<160x98xf32> to vector<32x98xf32>
    %363 = vector.extract_strided_slice %361 {offsets = [32, 0], sizes = [32, 98], strides = [1, 1]} : vector<160x98xf32> to vector<32x98xf32>
    %364 = arith.maximumf %362, %363 : vector<32x98xf32>
    %365 = vector.extract_strided_slice %361 {offsets = [64, 0], sizes = [32, 98], strides = [1, 1]} : vector<160x98xf32> to vector<32x98xf32>
    %366 = vector.extract_strided_slice %361 {offsets = [96, 0], sizes = [32, 98], strides = [1, 1]} : vector<160x98xf32> to vector<32x98xf32>
    %367 = arith.maximumf %365, %366 : vector<32x98xf32>
    %368 = arith.maximumf %364, %367 : vector<32x98xf32>
    %369 = vector.extract_strided_slice %361 {offsets = [128, 0], sizes = [32, 98], strides = [1, 1]} : vector<160x98xf32> to vector<32x98xf32>
    %370 = arith.maximumf %368, %369 : vector<32x98xf32>
    %c672 = arith.constant 672 : index
    %c0_125 = arith.constant 0 : index
    %371 = vector.load %arg9[%c672, %c0_125] : memref<928x98xf32, #tpu.memory_space<vmem>>, vector<32x98xf32>
    tpu.vector_store %arg9[%c672, %c0_125], %370 {strides = array<i32>} : memref<928x98xf32, #tpu.memory_space<vmem>>, vector<32x98xf32>,
    %c0_126 = arith.constant 0 : index
    %c110 = arith.constant 110 : index
    %c0_127 = arith.constant 0 : index
    %372 = vector.load %arg1[%c0_126, %c110, %c0_127] : memref<1x129x98xf32, #tpu.memory_space<vmem>>, vector<1x9x98xf32>
    %373 = vector.shape_cast %372 : vector<1x9x98xf32> to vector<9x98xf32>
    %cst_128 = arith.constant dense<0.000000e+00> : vector<160x98xf32>
    %374 = tpu.matmul %0, %373, %cst_128 {dimension_numbers = #tpu.dot_dimension_numbers<[1], [0], [0], [1], [0, 0, 1, 1], [], []>} : vector<160x9xf32>, vector<9x98xf32>, vector<160x98xf32> -> vector<160x98xf32>
    %375 = arith.addf %374, %3 : vector<160x98xf32>
    %cst_129 = arith.constant 0.000000e+00 : f32
    %376 = vector.broadcast %cst_129 : f32 to vector<160x98xf32>
    %377 = arith.maximumf %375, %376 : vector<160x98xf32>
    %378 = vector.extract_strided_slice %377 {offsets = [0, 0], sizes = [32, 98], strides = [1, 1]} : vector<160x98xf32> to vector<32x98xf32>
    %379 = vector.extract_strided_slice %377 {offsets = [32, 0], sizes = [32, 98], strides = [1, 1]} : vector<160x98xf32> to vector<32x98xf32>
    %380 = arith.maximumf %378, %379 : vector<32x98xf32>
    %381 = vector.extract_strided_slice %377 {offsets = [64, 0], sizes = [32, 98], strides = [1, 1]} : vector<160x98xf32> to vector<32x98xf32>
    %382 = vector.extract_strided_slice %377 {offsets = [96, 0], sizes = [32, 98], strides = [1, 1]} : vector<160x98xf32> to vector<32x98xf32>
    %383 = arith.maximumf %381, %382 : vector<32x98xf32>
    %384 = arith.maximumf %380, %383 : vector<32x98xf32>
    %385 = vector.extract_strided_slice %377 {offsets = [128, 0], sizes = [32, 98], strides = [1, 1]} : vector<160x98xf32> to vector<32x98xf32>
    %386 = arith.maximumf %384, %385 : vector<32x98xf32>
    %c704 = arith.constant 704 : index
    %c0_130 = arith.constant 0 : index
    %387 = vector.load %arg9[%c704, %c0_130] : memref<928x98xf32, #tpu.memory_space<vmem>>, vector<32x98xf32>
    tpu.vector_store %arg9[%c704, %c0_130], %386 {strides = array<i32>} : memref<928x98xf32, #tpu.memory_space<vmem>>, vector<32x98xf32>,
    %c0_131 = arith.constant 0 : index
    %c115 = arith.constant 115 : index
    %c0_132 = arith.constant 0 : index
    %388 = vector.load %arg1[%c0_131, %c115, %c0_132] : memref<1x129x98xf32, #tpu.memory_space<vmem>>, vector<1x9x98xf32>
    %389 = vector.shape_cast %388 : vector<1x9x98xf32> to vector<9x98xf32>
    %cst_133 = arith.constant dense<0.000000e+00> : vector<160x98xf32>
    %390 = tpu.matmul %0, %389, %cst_133 {dimension_numbers = #tpu.dot_dimension_numbers<[1], [0], [0], [1], [0, 0, 1, 1], [], []>} : vector<160x9xf32>, vector<9x98xf32>, vector<160x98xf32> -> vector<160x98xf32>
    %391 = arith.addf %390, %3 : vector<160x98xf32>
    %cst_134 = arith.constant 0.000000e+00 : f32
    %392 = vector.broadcast %cst_134 : f32 to vector<160x98xf32>
    %393 = arith.maximumf %391, %392 : vector<160x98xf32>
    %394 = vector.extract_strided_slice %393 {offsets = [0, 0], sizes = [32, 98], strides = [1, 1]} : vector<160x98xf32> to vector<32x98xf32>
    %395 = vector.extract_strided_slice %393 {offsets = [32, 0], sizes = [32, 98], strides = [1, 1]} : vector<160x98xf32> to vector<32x98xf32>
    %396 = arith.maximumf %394, %395 : vector<32x98xf32>
    %397 = vector.extract_strided_slice %393 {offsets = [64, 0], sizes = [32, 98], strides = [1, 1]} : vector<160x98xf32> to vector<32x98xf32>
    %398 = vector.extract_strided_slice %393 {offsets = [96, 0], sizes = [32, 98], strides = [1, 1]} : vector<160x98xf32> to vector<32x98xf32>
    %399 = arith.maximumf %397, %398 : vector<32x98xf32>
    %400 = arith.maximumf %396, %399 : vector<32x98xf32>
    %401 = vector.extract_strided_slice %393 {offsets = [128, 0], sizes = [32, 98], strides = [1, 1]} : vector<160x98xf32> to vector<32x98xf32>
    %402 = arith.maximumf %400, %401 : vector<32x98xf32>
    %c736 = arith.constant 736 : index
    %c0_135 = arith.constant 0 : index
    %403 = vector.load %arg9[%c736, %c0_135] : memref<928x98xf32, #tpu.memory_space<vmem>>, vector<32x98xf32>
    tpu.vector_store %arg9[%c736, %c0_135], %402 {strides = array<i32>} : memref<928x98xf32, #tpu.memory_space<vmem>>, vector<32x98xf32>,
    %c0_136 = arith.constant 0 : index
    %c120 = arith.constant 120 : index
    %c0_137 = arith.constant 0 : index
    %404 = vector.load %arg1[%c0_136, %c120, %c0_137] : memref<1x129x98xf32, #tpu.memory_space<vmem>>, vector<1x9x98xf32>
    %405 = vector.shape_cast %404 : vector<1x9x98xf32> to vector<9x98xf32>
    %cst_138 = arith.constant dense<0.000000e+00> : vector<160x98xf32>
    %406 = tpu.matmul %0, %405, %cst_138 {dimension_numbers = #tpu.dot_dimension_numbers<[1], [0], [0], [1], [0, 0, 1, 1], [], []>} : vector<160x9xf32>, vector<9x98xf32>, vector<160x98xf32> -> vector<160x98xf32>
    %407 = arith.addf %406, %3 : vector<160x98xf32>
    %cst_139 = arith.constant 0.000000e+00 : f32
    %408 = vector.broadcast %cst_139 : f32 to vector<160x98xf32>
    %409 = arith.maximumf %407, %408 : vector<160x98xf32>
    %410 = vector.extract_strided_slice %409 {offsets = [0, 0], sizes = [32, 98], strides = [1, 1]} : vector<160x98xf32> to vector<32x98xf32>
    %411 = vector.extract_strided_slice %409 {offsets = [32, 0], sizes = [32, 98], strides = [1, 1]} : vector<160x98xf32> to vector<32x98xf32>
    %412 = arith.maximumf %410, %411 : vector<32x98xf32>
    %413 = vector.extract_strided_slice %409 {offsets = [64, 0], sizes = [32, 98], strides = [1, 1]} : vector<160x98xf32> to vector<32x98xf32>
    %414 = vector.extract_strided_slice %409 {offsets = [96, 0], sizes = [32, 98], strides = [1, 1]} : vector<160x98xf32> to vector<32x98xf32>
    %415 = arith.maximumf %413, %414 : vector<32x98xf32>
    %416 = arith.maximumf %412, %415 : vector<32x98xf32>
    %417 = vector.extract_strided_slice %409 {offsets = [128, 0], sizes = [32, 98], strides = [1, 1]} : vector<160x98xf32> to vector<32x98xf32>
    %418 = arith.maximumf %416, %417 : vector<32x98xf32>
    %c768 = arith.constant 768 : index
    %c0_140 = arith.constant 0 : index
    %419 = vector.load %arg9[%c768, %c0_140] : memref<928x98xf32, #tpu.memory_space<vmem>>, vector<32x98xf32>
    tpu.vector_store %arg9[%c768, %c0_140], %418 {strides = array<i32>} : memref<928x98xf32, #tpu.memory_space<vmem>>, vector<32x98xf32>,
    %c0_141 = arith.constant 0 : index
    %c0_142 = arith.constant 0 : index
    %420 = vector.load %arg9[%c0_141, %c0_142] : memref<928x98xf32, #tpu.memory_space<vmem>>, vector<160x96xf32>
    %cst_143 = arith.constant dense<0.000000e+00> : vector<16x96xf32>
    %421 = tpu.matmul %4, %420, %cst_143 {dimension_numbers = #tpu.dot_dimension_numbers<[1], [0], [0], [1], [0, 0, 1, 1], [], []>} : vector<16x160xf32>, vector<160x96xf32>, vector<16x96xf32> -> vector<16x96xf32>
    %422 = arith.addf %421, %7 : vector<16x96xf32>
    %cst_144 = arith.constant 0.000000e+00 : f32
    %423 = vector.broadcast %cst_144 : f32 to vector<16x96xf32>
    %424 = arith.maximumf %422, %423 : vector<16x96xf32>
    %c32_145 = arith.constant 32 : index
    %c0_146 = arith.constant 0 : index
    %425 = vector.load %arg9[%c32_145, %c0_146] : memref<928x98xf32, #tpu.memory_space<vmem>>, vector<160x96xf32>
    %cst_147 = arith.constant dense<0.000000e+00> : vector<16x96xf32>
    %426 = tpu.matmul %4, %425, %cst_147 {dimension_numbers = #tpu.dot_dimension_numbers<[1], [0], [0], [1], [0, 0, 1, 1], [], []>} : vector<16x160xf32>, vector<160x96xf32>, vector<16x96xf32> -> vector<16x96xf32>
    %427 = arith.addf %426, %7 : vector<16x96xf32>
    %cst_148 = arith.constant 0.000000e+00 : f32
    %428 = vector.broadcast %cst_148 : f32 to vector<16x96xf32>
    %429 = arith.maximumf %427, %428 : vector<16x96xf32>
    %430 = arith.maximumf %424, %429 : vector<16x96xf32>
    %c64_149 = arith.constant 64 : index
    %c0_150 = arith.constant 0 : index
    %431 = vector.load %arg9[%c64_149, %c0_150] : memref<928x98xf32, #tpu.memory_space<vmem>>, vector<160x96xf32>
    %cst_151 = arith.constant dense<0.000000e+00> : vector<16x96xf32>
    %432 = tpu.matmul %4, %431, %cst_151 {dimension_numbers = #tpu.dot_dimension_numbers<[1], [0], [0], [1], [0, 0, 1, 1], [], []>} : vector<16x160xf32>, vector<160x96xf32>, vector<16x96xf32> -> vector<16x96xf32>
    %433 = arith.addf %432, %7 : vector<16x96xf32>
    %cst_152 = arith.constant 0.000000e+00 : f32
    %434 = vector.broadcast %cst_152 : f32 to vector<16x96xf32>
    %435 = arith.maximumf %433, %434 : vector<16x96xf32>
    %436 = arith.maximumf %430, %435 : vector<16x96xf32>
    %c96_153 = arith.constant 96 : index
    %c0_154 = arith.constant 0 : index
    %437 = vector.load %arg9[%c96_153, %c0_154] : memref<928x98xf32, #tpu.memory_space<vmem>>, vector<160x96xf32>
    %cst_155 = arith.constant dense<0.000000e+00> : vector<16x96xf32>
    %438 = tpu.matmul %4, %437, %cst_155 {dimension_numbers = #tpu.dot_dimension_numbers<[1], [0], [0], [1], [0, 0, 1, 1], [], []>} : vector<16x160xf32>, vector<160x96xf32>, vector<16x96xf32> -> vector<16x96xf32>
    %439 = arith.addf %438, %7 : vector<16x96xf32>
    %cst_156 = arith.constant 0.000000e+00 : f32
    %440 = vector.broadcast %cst_156 : f32 to vector<16x96xf32>
    %441 = arith.maximumf %439, %440 : vector<16x96xf32>
    %442 = arith.maximumf %436, %441 : vector<16x96xf32>
    %c128_157 = arith.constant 128 : index
    %c0_158 = arith.constant 0 : index
    %443 = vector.load %arg9[%c128_157, %c0_158] : memref<928x98xf32, #tpu.memory_space<vmem>>, vector<160x96xf32>
    %cst_159 = arith.constant dense<0.000000e+00> : vector<16x96xf32>
    %444 = tpu.matmul %4, %443, %cst_159 {dimension_numbers = #tpu.dot_dimension_numbers<[1], [0], [0], [1], [0, 0, 1, 1], [], []>} : vector<16x160xf32>, vector<160x96xf32>, vector<16x96xf32> -> vector<16x96xf32>
    %445 = arith.addf %444, %7 : vector<16x96xf32>
    %cst_160 = arith.constant 0.000000e+00 : f32
    %446 = vector.broadcast %cst_160 : f32 to vector<16x96xf32>
    %447 = arith.maximumf %445, %446 : vector<16x96xf32>
    %448 = arith.maximumf %442, %447 : vector<16x96xf32>
    %c0_161 = arith.constant 0 : index
    %c0_162 = arith.constant 0 : index
    %449 = vector.load %arg10[%c0_161, %c0_162] : memref<144x96xf32, #tpu.memory_space<vmem>>, vector<16x96xf32>
    tpu.vector_store %arg10[%c0_161, %c0_162], %448 {strides = array<i32>} : memref<144x96xf32, #tpu.memory_space<vmem>>, vector<16x96xf32>,
    %450 = vector.extract_strided_slice %448 {offsets = [0, 2], sizes = [16, 94], strides = [1, 1]} : vector<16x96xf32> to vector<16x94xf32>
    %c80_163 = arith.constant 80 : index
    %c0_164 = arith.constant 0 : index
    %451 = vector.load %arg10[%c80_163, %c0_164] : memref<144x96xf32, #tpu.memory_space<vmem>>, vector<16x94xf32>
    tpu.vector_store %arg10[%c80_163, %c0_164], %450 {strides = array<i32>} : memref<144x96xf32, #tpu.memory_space<vmem>>, vector<16x94xf32>,
    %c160_165 = arith.constant 160 : index
    %c0_166 = arith.constant 0 : index
    %452 = vector.load %arg9[%c160_165, %c0_166] : memref<928x98xf32, #tpu.memory_space<vmem>>, vector<160x96xf32>
    %cst_167 = arith.constant dense<0.000000e+00> : vector<16x96xf32>
    %453 = tpu.matmul %4, %452, %cst_167 {dimension_numbers = #tpu.dot_dimension_numbers<[1], [0], [0], [1], [0, 0, 1, 1], [], []>} : vector<16x160xf32>, vector<160x96xf32>, vector<16x96xf32> -> vector<16x96xf32>
    %454 = arith.addf %453, %7 : vector<16x96xf32>
    %cst_168 = arith.constant 0.000000e+00 : f32
    %455 = vector.broadcast %cst_168 : f32 to vector<16x96xf32>
    %456 = arith.maximumf %454, %455 : vector<16x96xf32>
    %c192_169 = arith.constant 192 : index
    %c0_170 = arith.constant 0 : index
    %457 = vector.load %arg9[%c192_169, %c0_170] : memref<928x98xf32, #tpu.memory_space<vmem>>, vector<160x96xf32>
    %cst_171 = arith.constant dense<0.000000e+00> : vector<16x96xf32>
    %458 = tpu.matmul %4, %457, %cst_171 {dimension_numbers = #tpu.dot_dimension_numbers<[1], [0], [0], [1], [0, 0, 1, 1], [], []>} : vector<16x160xf32>, vector<160x96xf32>, vector<16x96xf32> -> vector<16x96xf32>
    %459 = arith.addf %458, %7 : vector<16x96xf32>
    %cst_172 = arith.constant 0.000000e+00 : f32
    %460 = vector.broadcast %cst_172 : f32 to vector<16x96xf32>
    %461 = arith.maximumf %459, %460 : vector<16x96xf32>
    %462 = arith.maximumf %456, %461 : vector<16x96xf32>
    %c224_173 = arith.constant 224 : index
    %c0_174 = arith.constant 0 : index
    %463 = vector.load %arg9[%c224_173, %c0_174] : memref<928x98xf32, #tpu.memory_space<vmem>>, vector<160x96xf32>
    %cst_175 = arith.constant dense<0.000000e+00> : vector<16x96xf32>
    %464 = tpu.matmul %4, %463, %cst_175 {dimension_numbers = #tpu.dot_dimension_numbers<[1], [0], [0], [1], [0, 0, 1, 1], [], []>} : vector<16x160xf32>, vector<160x96xf32>, vector<16x96xf32> -> vector<16x96xf32>
    %465 = arith.addf %464, %7 : vector<16x96xf32>
    %cst_176 = arith.constant 0.000000e+00 : f32
    %466 = vector.broadcast %cst_176 : f32 to vector<16x96xf32>
    %467 = arith.maximumf %465, %466 : vector<16x96xf32>
    %468 = arith.maximumf %462, %467 : vector<16x96xf32>
    %c256_177 = arith.constant 256 : index
    %c0_178 = arith.constant 0 : index
    %469 = vector.load %arg9[%c256_177, %c0_178] : memref<928x98xf32, #tpu.memory_space<vmem>>, vector<160x96xf32>
    %cst_179 = arith.constant dense<0.000000e+00> : vector<16x96xf32>
    %470 = tpu.matmul %4, %469, %cst_179 {dimension_numbers = #tpu.dot_dimension_numbers<[1], [0], [0], [1], [0, 0, 1, 1], [], []>} : vector<16x160xf32>, vector<160x96xf32>, vector<16x96xf32> -> vector<16x96xf32>
    %471 = arith.addf %470, %7 : vector<16x96xf32>
    %cst_180 = arith.constant 0.000000e+00 : f32
    %472 = vector.broadcast %cst_180 : f32 to vector<16x96xf32>
    %473 = arith.maximumf %471, %472 : vector<16x96xf32>
    %474 = arith.maximumf %468, %473 : vector<16x96xf32>
    %c288_181 = arith.constant 288 : index
    %c0_182 = arith.constant 0 : index
    %475 = vector.load %arg9[%c288_181, %c0_182] : memref<928x98xf32, #tpu.memory_space<vmem>>, vector<160x96xf32>
    %cst_183 = arith.constant dense<0.000000e+00> : vector<16x96xf32>
    %476 = tpu.matmul %4, %475, %cst_183 {dimension_numbers = #tpu.dot_dimension_numbers<[1], [0], [0], [1], [0, 0, 1, 1], [], []>} : vector<16x160xf32>, vector<160x96xf32>, vector<16x96xf32> -> vector<16x96xf32>
    %477 = arith.addf %476, %7 : vector<16x96xf32>
    %cst_184 = arith.constant 0.000000e+00 : f32
    %478 = vector.broadcast %cst_184 : f32 to vector<16x96xf32>
    %479 = arith.maximumf %477, %478 : vector<16x96xf32>
    %480 = arith.maximumf %474, %479 : vector<16x96xf32>
    %c16 = arith.constant 16 : index
    %c0_185 = arith.constant 0 : index
    %481 = vector.load %arg10[%c16, %c0_185] : memref<144x96xf32, #tpu.memory_space<vmem>>, vector<16x96xf32>
    tpu.vector_store %arg10[%c16, %c0_185], %480 {strides = array<i32>} : memref<144x96xf32, #tpu.memory_space<vmem>>, vector<16x96xf32>,
    %482 = vector.extract_strided_slice %480 {offsets = [0, 2], sizes = [16, 94], strides = [1, 1]} : vector<16x96xf32> to vector<16x94xf32>
    %c96_186 = arith.constant 96 : index
    %c0_187 = arith.constant 0 : index
    %483 = vector.load %arg10[%c96_186, %c0_187] : memref<144x96xf32, #tpu.memory_space<vmem>>, vector<16x94xf32>
    tpu.vector_store %arg10[%c96_186, %c0_187], %482 {strides = array<i32>} : memref<144x96xf32, #tpu.memory_space<vmem>>, vector<16x94xf32>,
    %c320_188 = arith.constant 320 : index
    %c0_189 = arith.constant 0 : index
    %484 = vector.load %arg9[%c320_188, %c0_189] : memref<928x98xf32, #tpu.memory_space<vmem>>, vector<160x96xf32>
    %cst_190 = arith.constant dense<0.000000e+00> : vector<16x96xf32>
    %485 = tpu.matmul %4, %484, %cst_190 {dimension_numbers = #tpu.dot_dimension_numbers<[1], [0], [0], [1], [0, 0, 1, 1], [], []>} : vector<16x160xf32>, vector<160x96xf32>, vector<16x96xf32> -> vector<16x96xf32>
    %486 = arith.addf %485, %7 : vector<16x96xf32>
    %cst_191 = arith.constant 0.000000e+00 : f32
    %487 = vector.broadcast %cst_191 : f32 to vector<16x96xf32>
    %488 = arith.maximumf %486, %487 : vector<16x96xf32>
    %c352_192 = arith.constant 352 : index
    %c0_193 = arith.constant 0 : index
    %489 = vector.load %arg9[%c352_192, %c0_193] : memref<928x98xf32, #tpu.memory_space<vmem>>, vector<160x96xf32>
    %cst_194 = arith.constant dense<0.000000e+00> : vector<16x96xf32>
    %490 = tpu.matmul %4, %489, %cst_194 {dimension_numbers = #tpu.dot_dimension_numbers<[1], [0], [0], [1], [0, 0, 1, 1], [], []>} : vector<16x160xf32>, vector<160x96xf32>, vector<16x96xf32> -> vector<16x96xf32>
    %491 = arith.addf %490, %7 : vector<16x96xf32>
    %cst_195 = arith.constant 0.000000e+00 : f32
    %492 = vector.broadcast %cst_195 : f32 to vector<16x96xf32>
    %493 = arith.maximumf %491, %492 : vector<16x96xf32>
    %494 = arith.maximumf %488, %493 : vector<16x96xf32>
    %c384_196 = arith.constant 384 : index
    %c0_197 = arith.constant 0 : index
    %495 = vector.load %arg9[%c384_196, %c0_197] : memref<928x98xf32, #tpu.memory_space<vmem>>, vector<160x96xf32>
    %cst_198 = arith.constant dense<0.000000e+00> : vector<16x96xf32>
    %496 = tpu.matmul %4, %495, %cst_198 {dimension_numbers = #tpu.dot_dimension_numbers<[1], [0], [0], [1], [0, 0, 1, 1], [], []>} : vector<16x160xf32>, vector<160x96xf32>, vector<16x96xf32> -> vector<16x96xf32>
    %497 = arith.addf %496, %7 : vector<16x96xf32>
    %cst_199 = arith.constant 0.000000e+00 : f32
    %498 = vector.broadcast %cst_199 : f32 to vector<16x96xf32>
    %499 = arith.maximumf %497, %498 : vector<16x96xf32>
    %500 = arith.maximumf %494, %499 : vector<16x96xf32>
    %c416_200 = arith.constant 416 : index
    %c0_201 = arith.constant 0 : index
    %501 = vector.load %arg9[%c416_200, %c0_201] : memref<928x98xf32, #tpu.memory_space<vmem>>, vector<160x96xf32>
    %cst_202 = arith.constant dense<0.000000e+00> : vector<16x96xf32>
    %502 = tpu.matmul %4, %501, %cst_202 {dimension_numbers = #tpu.dot_dimension_numbers<[1], [0], [0], [1], [0, 0, 1, 1], [], []>} : vector<16x160xf32>, vector<160x96xf32>, vector<16x96xf32> -> vector<16x96xf32>
    %503 = arith.addf %502, %7 : vector<16x96xf32>
    %cst_203 = arith.constant 0.000000e+00 : f32
    %504 = vector.broadcast %cst_203 : f32 to vector<16x96xf32>
    %505 = arith.maximumf %503, %504 : vector<16x96xf32>
    %506 = arith.maximumf %500, %505 : vector<16x96xf32>
    %c448_204 = arith.constant 448 : index
    %c0_205 = arith.constant 0 : index
    %507 = vector.load %arg9[%c448_204, %c0_205] : memref<928x98xf32, #tpu.memory_space<vmem>>, vector<160x96xf32>
    %cst_206 = arith.constant dense<0.000000e+00> : vector<16x96xf32>
    %508 = tpu.matmul %4, %507, %cst_206 {dimension_numbers = #tpu.dot_dimension_numbers<[1], [0], [0], [1], [0, 0, 1, 1], [], []>} : vector<16x160xf32>, vector<160x96xf32>, vector<16x96xf32> -> vector<16x96xf32>
    %509 = arith.addf %508, %7 : vector<16x96xf32>
    %cst_207 = arith.constant 0.000000e+00 : f32
    %510 = vector.broadcast %cst_207 : f32 to vector<16x96xf32>
    %511 = arith.maximumf %509, %510 : vector<16x96xf32>
    %512 = arith.maximumf %506, %511 : vector<16x96xf32>
    %c32_208 = arith.constant 32 : index
    %c0_209 = arith.constant 0 : index
    %513 = vector.load %arg10[%c32_208, %c0_209] : memref<144x96xf32, #tpu.memory_space<vmem>>, vector<16x96xf32>
    tpu.vector_store %arg10[%c32_208, %c0_209], %512 {strides = array<i32>} : memref<144x96xf32, #tpu.memory_space<vmem>>, vector<16x96xf32>,
    %514 = vector.extract_strided_slice %512 {offsets = [0, 2], sizes = [16, 94], strides = [1, 1]} : vector<16x96xf32> to vector<16x94xf32>
    %c112 = arith.constant 112 : index
    %c0_210 = arith.constant 0 : index
    %515 = vector.load %arg10[%c112, %c0_210] : memref<144x96xf32, #tpu.memory_space<vmem>>, vector<16x94xf32>
    tpu.vector_store %arg10[%c112, %c0_210], %514 {strides = array<i32>} : memref<144x96xf32, #tpu.memory_space<vmem>>, vector<16x94xf32>,
    %c480_211 = arith.constant 480 : index
    %c0_212 = arith.constant 0 : index
    %516 = vector.load %arg9[%c480_211, %c0_212] : memref<928x98xf32, #tpu.memory_space<vmem>>, vector<160x96xf32>
    %cst_213 = arith.constant dense<0.000000e+00> : vector<16x96xf32>
    %517 = tpu.matmul %4, %516, %cst_213 {dimension_numbers = #tpu.dot_dimension_numbers<[1], [0], [0], [1], [0, 0, 1, 1], [], []>} : vector<16x160xf32>, vector<160x96xf32>, vector<16x96xf32> -> vector<16x96xf32>
    %518 = arith.addf %517, %7 : vector<16x96xf32>
    %cst_214 = arith.constant 0.000000e+00 : f32
    %519 = vector.broadcast %cst_214 : f32 to vector<16x96xf32>
    %520 = arith.maximumf %518, %519 : vector<16x96xf32>
    %c512_215 = arith.constant 512 : index
    %c0_216 = arith.constant 0 : index
    %521 = vector.load %arg9[%c512_215, %c0_216] : memref<928x98xf32, #tpu.memory_space<vmem>>, vector<160x96xf32>
    %cst_217 = arith.constant dense<0.000000e+00> : vector<16x96xf32>
    %522 = tpu.matmul %4, %521, %cst_217 {dimension_numbers = #tpu.dot_dimension_numbers<[1], [0], [0], [1], [0, 0, 1, 1], [], []>} : vector<16x160xf32>, vector<160x96xf32>, vector<16x96xf32> -> vector<16x96xf32>
    %523 = arith.addf %522, %7 : vector<16x96xf32>
    %cst_218 = arith.constant 0.000000e+00 : f32
    %524 = vector.broadcast %cst_218 : f32 to vector<16x96xf32>
    %525 = arith.maximumf %523, %524 : vector<16x96xf32>
    %526 = arith.maximumf %520, %525 : vector<16x96xf32>
    %c544_219 = arith.constant 544 : index
    %c0_220 = arith.constant 0 : index
    %527 = vector.load %arg9[%c544_219, %c0_220] : memref<928x98xf32, #tpu.memory_space<vmem>>, vector<160x96xf32>
    %cst_221 = arith.constant dense<0.000000e+00> : vector<16x96xf32>
    %528 = tpu.matmul %4, %527, %cst_221 {dimension_numbers = #tpu.dot_dimension_numbers<[1], [0], [0], [1], [0, 0, 1, 1], [], []>} : vector<16x160xf32>, vector<160x96xf32>, vector<16x96xf32> -> vector<16x96xf32>
    %529 = arith.addf %528, %7 : vector<16x96xf32>
    %cst_222 = arith.constant 0.000000e+00 : f32
    %530 = vector.broadcast %cst_222 : f32 to vector<16x96xf32>
    %531 = arith.maximumf %529, %530 : vector<16x96xf32>
    %532 = arith.maximumf %526, %531 : vector<16x96xf32>
    %c576_223 = arith.constant 576 : index
    %c0_224 = arith.constant 0 : index
    %533 = vector.load %arg9[%c576_223, %c0_224] : memref<928x98xf32, #tpu.memory_space<vmem>>, vector<160x96xf32>
    %cst_225 = arith.constant dense<0.000000e+00> : vector<16x96xf32>
    %534 = tpu.matmul %4, %533, %cst_225 {dimension_numbers = #tpu.dot_dimension_numbers<[1], [0], [0], [1], [0, 0, 1, 1], [], []>} : vector<16x160xf32>, vector<160x96xf32>, vector<16x96xf32> -> vector<16x96xf32>
    %535 = arith.addf %534, %7 : vector<16x96xf32>
    %cst_226 = arith.constant 0.000000e+00 : f32
    %536 = vector.broadcast %cst_226 : f32 to vector<16x96xf32>
    %537 = arith.maximumf %535, %536 : vector<16x96xf32>
    %538 = arith.maximumf %532, %537 : vector<16x96xf32>
    %c608_227 = arith.constant 608 : index
    %c0_228 = arith.constant 0 : index
    %539 = vector.load %arg9[%c608_227, %c0_228] : memref<928x98xf32, #tpu.memory_space<vmem>>, vector<160x96xf32>
    %cst_229 = arith.constant dense<0.000000e+00> : vector<16x96xf32>
    %540 = tpu.matmul %4, %539, %cst_229 {dimension_numbers = #tpu.dot_dimension_numbers<[1], [0], [0], [1], [0, 0, 1, 1], [], []>} : vector<16x160xf32>, vector<160x96xf32>, vector<16x96xf32> -> vector<16x96xf32>
    %541 = arith.addf %540, %7 : vector<16x96xf32>
    %cst_230 = arith.constant 0.000000e+00 : f32
    %542 = vector.broadcast %cst_230 : f32 to vector<16x96xf32>
    %543 = arith.maximumf %541, %542 : vector<16x96xf32>
    %544 = arith.maximumf %538, %543 : vector<16x96xf32>
    %c48 = arith.constant 48 : index
    %c0_231 = arith.constant 0 : index
    %545 = vector.load %arg10[%c48, %c0_231] : memref<144x96xf32, #tpu.memory_space<vmem>>, vector<16x96xf32>
    tpu.vector_store %arg10[%c48, %c0_231], %544 {strides = array<i32>} : memref<144x96xf32, #tpu.memory_space<vmem>>, vector<16x96xf32>,
    %546 = vector.extract_strided_slice %544 {offsets = [0, 2], sizes = [16, 94], strides = [1, 1]} : vector<16x96xf32> to vector<16x94xf32>
    %c128_232 = arith.constant 128 : index
    %c0_233 = arith.constant 0 : index
    %547 = vector.load %arg10[%c128_232, %c0_233] : memref<144x96xf32, #tpu.memory_space<vmem>>, vector<16x94xf32>
    tpu.vector_store %arg10[%c128_232, %c0_233], %546 {strides = array<i32>} : memref<144x96xf32, #tpu.memory_space<vmem>>, vector<16x94xf32>,
    %c640_234 = arith.constant 640 : index
    %c0_235 = arith.constant 0 : index
    %548 = vector.load %arg9[%c640_234, %c0_235] : memref<928x98xf32, #tpu.memory_space<vmem>>, vector<160x96xf32>
    %cst_236 = arith.constant dense<0.000000e+00> : vector<16x96xf32>
    %549 = tpu.matmul %4, %548, %cst_236 {dimension_numbers = #tpu.dot_dimension_numbers<[1], [0], [0], [1], [0, 0, 1, 1], [], []>} : vector<16x160xf32>, vector<160x96xf32>, vector<16x96xf32> -> vector<16x96xf32>
    %550 = arith.addf %549, %7 : vector<16x96xf32>
    %cst_237 = arith.constant 0.000000e+00 : f32
    %551 = vector.broadcast %cst_237 : f32 to vector<16x96xf32>
    %552 = arith.maximumf %550, %551 : vector<16x96xf32>
    %c672_238 = arith.constant 672 : index
    %c0_239 = arith.constant 0 : index
    %553 = vector.load %arg9[%c672_238, %c0_239] : memref<928x98xf32, #tpu.memory_space<vmem>>, vector<160x96xf32>
    %cst_240 = arith.constant dense<0.000000e+00> : vector<16x96xf32>
    %554 = tpu.matmul %4, %553, %cst_240 {dimension_numbers = #tpu.dot_dimension_numbers<[1], [0], [0], [1], [0, 0, 1, 1], [], []>} : vector<16x160xf32>, vector<160x96xf32>, vector<16x96xf32> -> vector<16x96xf32>
    %555 = arith.addf %554, %7 : vector<16x96xf32>
    %cst_241 = arith.constant 0.000000e+00 : f32
    %556 = vector.broadcast %cst_241 : f32 to vector<16x96xf32>
    %557 = arith.maximumf %555, %556 : vector<16x96xf32>
    %558 = arith.maximumf %552, %557 : vector<16x96xf32>
    %c704_242 = arith.constant 704 : index
    %c0_243 = arith.constant 0 : index
    %559 = vector.load %arg9[%c704_242, %c0_243] : memref<928x98xf32, #tpu.memory_space<vmem>>, vector<160x96xf32>
    %cst_244 = arith.constant dense<0.000000e+00> : vector<16x96xf32>
    %560 = tpu.matmul %4, %559, %cst_244 {dimension_numbers = #tpu.dot_dimension_numbers<[1], [0], [0], [1], [0, 0, 1, 1], [], []>} : vector<16x160xf32>, vector<160x96xf32>, vector<16x96xf32> -> vector<16x96xf32>
    %561 = arith.addf %560, %7 : vector<16x96xf32>
    %cst_245 = arith.constant 0.000000e+00 : f32
    %562 = vector.broadcast %cst_245 : f32 to vector<16x96xf32>
    %563 = arith.maximumf %561, %562 : vector<16x96xf32>
    %564 = arith.maximumf %558, %563 : vector<16x96xf32>
    %c736_246 = arith.constant 736 : index
    %c0_247 = arith.constant 0 : index
    %565 = vector.load %arg9[%c736_246, %c0_247] : memref<928x98xf32, #tpu.memory_space<vmem>>, vector<160x96xf32>
    %cst_248 = arith.constant dense<0.000000e+00> : vector<16x96xf32>
    %566 = tpu.matmul %4, %565, %cst_248 {dimension_numbers = #tpu.dot_dimension_numbers<[1], [0], [0], [1], [0, 0, 1, 1], [], []>} : vector<16x160xf32>, vector<160x96xf32>, vector<16x96xf32> -> vector<16x96xf32>
    %567 = arith.addf %566, %7 : vector<16x96xf32>
    %cst_249 = arith.constant 0.000000e+00 : f32
    %568 = vector.broadcast %cst_249 : f32 to vector<16x96xf32>
    %569 = arith.maximumf %567, %568 : vector<16x96xf32>
    %570 = arith.maximumf %564, %569 : vector<16x96xf32>
    %c768_250 = arith.constant 768 : index
    %c0_251 = arith.constant 0 : index
    %571 = vector.load %arg9[%c768_250, %c0_251] : memref<928x98xf32, #tpu.memory_space<vmem>>, vector<160x96xf32>
    %cst_252 = arith.constant dense<0.000000e+00> : vector<16x96xf32>
    %572 = tpu.matmul %4, %571, %cst_252 {dimension_numbers = #tpu.dot_dimension_numbers<[1], [0], [0], [1], [0, 0, 1, 1], [], []>} : vector<16x160xf32>, vector<160x96xf32>, vector<16x96xf32> -> vector<16x96xf32>
    %573 = arith.addf %572, %7 : vector<16x96xf32>
    %cst_253 = arith.constant 0.000000e+00 : f32
    %574 = vector.broadcast %cst_253 : f32 to vector<16x96xf32>
    %575 = arith.maximumf %573, %574 : vector<16x96xf32>
    %576 = arith.maximumf %570, %575 : vector<16x96xf32>
    %c64_254 = arith.constant 64 : index
    %c0_255 = arith.constant 0 : index
    %577 = vector.load %arg10[%c64_254, %c0_255] : memref<144x96xf32, #tpu.memory_space<vmem>>, vector<16x96xf32>
    tpu.vector_store %arg10[%c64_254, %c0_255], %576 {strides = array<i32>} : memref<144x96xf32, #tpu.memory_space<vmem>>, vector<16x96xf32>,
    %c0_256 = arith.constant 0 : index
    %c0_257 = arith.constant 0 : index
    %578 = vector.load %arg10[%c0_256, %c0_257] : memref<144x96xf32, #tpu.memory_space<vmem>>, vector<80x94xf32>
    %cst_258 = arith.constant dense<0.000000e+00> : vector<8x94xf32>
    %579 = tpu.matmul %8, %578, %cst_258 {dimension_numbers = #tpu.dot_dimension_numbers<[1], [0], [0], [1], [0, 0, 1, 1], [], []>} : vector<8x80xf32>, vector<80x94xf32>, vector<8x94xf32> -> vector<8x94xf32>
    %580 = arith.addf %579, %11 : vector<8x94xf32>
    %cst_259 = arith.constant 0.000000e+00 : f32
    %581 = vector.broadcast %cst_259 : f32 to vector<8x94xf32>
    %582 = arith.maximumf %580, %581 : vector<8x94xf32>
    %c16_260 = arith.constant 16 : index
    %c0_261 = arith.constant 0 : index
    %583 = vector.load %arg10[%c16_260, %c0_261] : memref<144x96xf32, #tpu.memory_space<vmem>>, vector<80x94xf32>
    %cst_262 = arith.constant dense<0.000000e+00> : vector<8x94xf32>
    %584 = tpu.matmul %8, %583, %cst_262 {dimension_numbers = #tpu.dot_dimension_numbers<[1], [0], [0], [1], [0, 0, 1, 1], [], []>} : vector<8x80xf32>, vector<80x94xf32>, vector<8x94xf32> -> vector<8x94xf32>
    %585 = arith.addf %584, %11 : vector<8x94xf32>
    %cst_263 = arith.constant 0.000000e+00 : f32
    %586 = vector.broadcast %cst_263 : f32 to vector<8x94xf32>
    %587 = arith.maximumf %585, %586 : vector<8x94xf32>
    %588 = arith.maximumf %582, %587 : vector<8x94xf32>
    %c32_264 = arith.constant 32 : index
    %c0_265 = arith.constant 0 : index
    %589 = vector.load %arg10[%c32_264, %c0_265] : memref<144x96xf32, #tpu.memory_space<vmem>>, vector<80x94xf32>
    %cst_266 = arith.constant dense<0.000000e+00> : vector<8x94xf32>
    %590 = tpu.matmul %8, %589, %cst_266 {dimension_numbers = #tpu.dot_dimension_numbers<[1], [0], [0], [1], [0, 0, 1, 1], [], []>} : vector<8x80xf32>, vector<80x94xf32>, vector<8x94xf32> -> vector<8x94xf32>
    %591 = arith.addf %590, %11 : vector<8x94xf32>
    %cst_267 = arith.constant 0.000000e+00 : f32
    %592 = vector.broadcast %cst_267 : f32 to vector<8x94xf32>
    %593 = arith.maximumf %591, %592 : vector<8x94xf32>
    %594 = arith.maximumf %588, %593 : vector<8x94xf32>
    %c48_268 = arith.constant 48 : index
    %c0_269 = arith.constant 0 : index
    %595 = vector.load %arg10[%c48_268, %c0_269] : memref<144x96xf32, #tpu.memory_space<vmem>>, vector<80x94xf32>
    %cst_270 = arith.constant dense<0.000000e+00> : vector<8x94xf32>
    %596 = tpu.matmul %8, %595, %cst_270 {dimension_numbers = #tpu.dot_dimension_numbers<[1], [0], [0], [1], [0, 0, 1, 1], [], []>} : vector<8x80xf32>, vector<80x94xf32>, vector<8x94xf32> -> vector<8x94xf32>
    %597 = arith.addf %596, %11 : vector<8x94xf32>
    %cst_271 = arith.constant 0.000000e+00 : f32
    %598 = vector.broadcast %cst_271 : f32 to vector<8x94xf32>
    %599 = arith.maximumf %597, %598 : vector<8x94xf32>
    %600 = arith.maximumf %594, %599 : vector<8x94xf32>
    %c64_272 = arith.constant 64 : index
    %c0_273 = arith.constant 0 : index
    %601 = vector.load %arg10[%c64_272, %c0_273] : memref<144x96xf32, #tpu.memory_space<vmem>>, vector<80x94xf32>
    %cst_274 = arith.constant dense<0.000000e+00> : vector<8x94xf32>
    %602 = tpu.matmul %8, %601, %cst_274 {dimension_numbers = #tpu.dot_dimension_numbers<[1], [0], [0], [1], [0, 0, 1, 1], [], []>} : vector<8x80xf32>, vector<80x94xf32>, vector<8x94xf32> -> vector<8x94xf32>
    %603 = arith.addf %602, %11 : vector<8x94xf32>
    %cst_275 = arith.constant 0.000000e+00 : f32
    %604 = vector.broadcast %cst_275 : f32 to vector<8x94xf32>
    %605 = arith.maximumf %603, %604 : vector<8x94xf32>
    %606 = arith.maximumf %600, %605 : vector<8x94xf32>
    %c0_276 = arith.constant 0 : index
    %c0_277 = arith.constant 0 : index
    %c0_278 = arith.constant 0 : index
    %607 = vector.load %arg8[%c0_276, %c0_277, %c0_278] : memref<1x8x94xf32, #tpu.memory_space<vmem>>, vector<1x8x94xf32>
    %608 = vector.shape_cast %607 : vector<1x8x94xf32> to vector<8x94xf32>
    %609 = vector.shape_cast %606 : vector<8x94xf32> to vector<1x8x94xf32>
    tpu.vector_store %arg8[%c0_276, %c0_277, %c0_278], %609 {strides = array<i32>} : memref<1x8x94xf32, #tpu.memory_space<vmem>>, vector<1x8x94xf32>,
    return
  }
  func.func @transform_0(%arg0: i32) -> (i32, i32, i32) {
    %c0_i32 = arith.constant 0 : i32
    %c0_i32_0 = arith.constant 0 : i32
    %c0_i32_1 = arith.constant 0 : i32
    return %arg0, %c0_i32, %c0_i32_0 : i32, i32, i32
  }
  func.func @transform_1(%arg0: i32) -> (i32, i32) {
    %c0_i32 = arith.constant 0 : i32
    %c0_i32_0 = arith.constant 0 : i32
    %c0_i32_1 = arith.constant 0 : i32
    return %c0_i32, %c0_i32_0 : i32, i32
  }
  func.func @transform_2(%arg0: i32) -> (i32, i32) {
    %c0_i32 = arith.constant 0 : i32
    %c0_i32_0 = arith.constant 0 : i32
    %c0_i32_1 = arith.constant 0 : i32
    return %c0_i32, %c0_i32_0 : i32, i32
  }
  func.func @transform_3(%arg0: i32) -> (i32, i32) {
    %c0_i32 = arith.constant 0 : i32
    %c0_i32_0 = arith.constant 0 : i32
    %c0_i32_1 = arith.constant 0 : i32
    return %c0_i32, %c0_i32_0 : i32, i32
  }
  func.func @transform_4(%arg0: i32) -> (i32, i32) {
    %c0_i32 = arith.constant 0 : i32
    %c0_i32_0 = arith.constant 0 : i32
    %c0_i32_1 = arith.constant 0 : i32
    return %c0_i32, %c0_i32_0 : i32, i32
  }
  func.func @transform_5(%arg0: i32) -> (i32, i32) {
    %c0_i32 = arith.constant 0 : i32
    %c0_i32_0 = arith.constant 0 : i32
    %c0_i32_1 = arith.constant 0 : i32
    return %c0_i32, %c0_i32_0 : i32, i32
  }
  func.func @transform_6(%arg0: i32) -> (i32, i32) {
    %c0_i32 = arith.constant 0 : i32
    %c0_i32_0 = arith.constant 0 : i32
    %c0_i32_1 = arith.constant 0 : i32
    return %c0_i32, %c0_i32_0 : i32, i32
  }
  func.func @transform_7(%arg0: i32) -> (i32, i32, i32) {
    %c0_i32 = arith.constant 0 : i32
    %c0_i32_0 = arith.constant 0 : i32
    %c0_i32_1 = arith.constant 0 : i32
    return %arg0, %c0_i32, %c0_i32_0 : i32, i32, i32
  }
}

</mosaic_0001>

<bundles_post_ra>
// kernel: chemcam_cnn_forward.1
= control target key start
LH: loop header
LB: loop body
LE: loop exit
PB: predicated region body
PF: predicated region fallthrough
CT: control target
= control target key end

     0   :  { %s12103_s24 = smov 0   ;;  %s15783_s0 = inlined_call_operand.vmem [shape: f32[2,129,98], index: 0, kind: input, shape index: {}]   ;;  %s15784_s1 = inlined_call_operand.vmem [shape: f32[160,9], index: 1, kind: input, shape index: {}]   ;;  %s15785_s2 = inlined_call_operand.vmem [shape: f32[160,1], index: 2, kind: input, shape index: {}]   ;;  %s15786_s3 = inlined_call_operand.vmem [shape: f32[16,160], index: 3, kind: input, shape index: {}]   ;;  %s15787_s4 = inlined_call_operand.vmem [shape: f32[16,1], index: 4, kind: input, shape index: {}]   ;;  %s15788_s5 = inlined_call_operand.vmem [shape: f32[8,80], index: 5, kind: input, shape index: {}]   ;;  %s15789_s6 = inlined_call_operand.vmem [shape: f32[8,1], index: 6, kind: input, shape index: {}]   ;;  %s15790_s7 = inlined_call_operand.vmem [shape: f32[2,8,94], index: 7, kind: output, shape index: {}]  }
   0x1 LB: > { %s8824_s25 = sadd.s32 4294967295, %s12055_s24   ;;  %p8828_p0 = scmp.ge.s32.totalorder %s12055_s24, 1  ;;  %s12055_s24 = sphi %s12103_s24, %s17_s24  }
   0x2   : > { %p237_p1 = scmp.lt.s32.totalorder %s12055_s24, 3 }
   0x4   : > { %p238_p2 = pnand %p8828_p0, %p237_p1 }
   0x6   : > { %241 = sbr.rel (%p238_p2) target bundleno = 1491 (0x5d3), region = 48 }
   0xd   : > { %p268_p3 = scmp.lt.s32.totalorder %s8824_s25, 1  ;;  %v12114_v0 = vld [vmem:[%s15784_s1] sm:$0xff]  ;;  %vm442_vm0 = vcmask 72704   ;;  %v12057_v2 = vmov 0   ;;  %vm503_vm1 = vcmask 1040384   ;;  %vm12058_vm2 = vmmov 1  }
   0xe   : > { %v12119_v1 = vld [vmem:[%s15784_s1 + $0x80] sm:$0xff]  ;;  %10022 = vmatprep.mubr.msk.f32.mxu0 %vm442_vm0, %v12114_v0  ;;  %11976 = vset.pattern.permute.xlu1 %v12057_v2  ;;  %vm12133_vm3 = vmpackc.low %vm503_vm1, %vm12058_vm2  ;;  %v15865_v3 = vmov 0  ;;  %v12152_v14 = vld [vmem:[%s15784_s1 + $0x8] sm:$0xff]  ;;  %vm708_vm4 = vcmask 801792   ;;  %s12059_s8 = smov 126   ;;  %vm729_vm5 = vcmask 785408  }
   0xf   : > { %10046 = vmatprep.mubr.msk.f32.mxu1 %vm442_vm0, %v12119_v1  ;;  %s15956_s25 = smov (!%p268_p3, %s8824_s25), 1  ;;  %11975 = vset.pattern.permute.xlu0 %v12057_v2  ;;  %v15866_v3 = vsel %vm12133_vm3, 4294967295, %v15865_v3  ;;  %v12161_v16 = vld [vmem:[%s15784_s1 + $0x88] sm:$0xff]  ;;  %v301_v17 = vld [vmem:[%s15785_s2 + $0x20] sm:$0xff]  ;;  %v12174_v19 = vld [vmem:[%s15784_s1 + $0x10] sm:$0xff]  ;;  %vm5854_vm6 = vcmask 261120  }
  0x10   : > { %s11960_s30 = smul.u32 136, %s15956_s25  ;;  %15867 = vst [vmem:[#allocation4_spill] sm:$0xff] %v15866_v3  ;;  %v297_v18 = vld [vmem:[%s15785_s2] sm:$0xff]  ;;  %v12181_v21 = vld [vmem:[%s15784_s1 + $0x90] sm:$0xff]  ;;  %339 = vperm.xlu1 %11976, %v301_v17   ;;  %v302_v24 = vld [vmem:[%s15785_s2 + $0x28] sm:$0xff]  ;;  %vm6344_vm7 = vcmask 769024  }
  0x11   : > { %319 = vperm.xlu0 %11975, %v297_v18   ;;  %v12199_v25 = vld [vmem:[%s15784_s1 + $0x18] sm:$0xff]  ;;  %v12211_v27 = vld [vmem:[%s15784_s1 + $0x20] sm:$0xff]  ;;  %v298_v31 = vld [vmem:[%s15785_s2 + $0x8] sm:$0xff]  ;;  %vm12061_vm8 = vmmov 0   ;;  %vm8367_vm9 = vcmask 654336   ;;  %s8830_s11 = sshll.u32 %s15956_s25, 3 }
  0x12   : > { %s12131_s10 = scalar_lea.vmem %s15783_s0, %s11960_s30  ;;  %v12204_v26 = vld [vmem:[%s15784_s1 + $0x98] sm:$0xff]  ;;  %v306_v32 = vld [vmem:[%s15785_s2 + $0x48] sm:$0xff]  ;;  %v12243_v34 = vld [vmem:[%s15784_s1 + $0x30] sm:$0xff]  ;;  %s276_s14 = scalar_lea.vmem %s15790_s7, %s8830_s11 }
  0x13   : > { %v440_v4 = vld [vmem:[%s12131_s10] sm:$0xff]  ;;  %v441_v5 = vld [vmem:[%s12131_s10 + $0x8] sm:$0x1]  ;;  %v735_v8 = vld [vmem:[%s12131_s10 + $0xd] sm:$0x1] }
  0x14   : > { %v734_v6 = vld [vmem:[%s12131_s10 + $0x5] sm:$0xff]  ;;  %v10983_v7 = vpack.c.bf16 %v441_v5, %v440_v4  ;;  %v1194_v9 = vld [vmem:[%s12131_s10 + $0xf] sm:$0xff]  ;;  %v1195_v11 = vld [vmem:[%s12131_s10 + $0x17] sm:$0x1]  ;;  %344 = vperm.xlu1 %11976, %v302_v24  }
  0x15   : > { %v10989_v10 = vpack.c.bf16 %v735_v8, %v734_v6  ;;  %v964_v12 = vld [vmem:[%s12131_s10 + $0xa] sm:$0xff]  ;;  %v965_v13 = vld [vmem:[%s12131_s10 + $0x12] sm:$0x1]  ;;  %v11001_v20 = vpack.c.bf16 %v1195_v11, %v1194_v9  ;;  %v1424_v22 = vld [vmem:[%s12131_s10 + $0x14] sm:$0xff]  ;;  %324 = vperm.xlu0 %11975, %v298_v31  }
  0x16   : > { %10985 = vmatprep.subr.msk.bf16.mxu0 %vm12133_vm3, %v10983_v7  ;;  %11958 = vmatprep.subr.msk.bf16.mxu1 %vm12133_vm3, %v10983_v7  ;;  %v10995_v15 = vpack.c.bf16 %v965_v13, %v964_v12  ;;  %v1425_v23 = vld [vmem:[%s12131_s10 + $0x1c] sm:$0x1]  ;;  %v1635_v30 = vld [vmem:[%s12131_s10 + $0x21] sm:$0x1]  ;;  %v12238_v33 = vld [vmem:[%s15784_s1 + $0x28] sm:$0xff] }
  0x17   : > { %10988 = vmatpush3.bf16.msk.msra.mxu0 %vm12133_vm3, %v10983_v7  ;;  %11959 = vmatpush3.bf16.msk.msra.mxu1 %vm12133_vm3, %v10983_v7  ;;  %v12215_v28 = vpack.c.bf16 %v1425_v23, %v1424_v22  ;;  %v1634_v29 = vld [vmem:[%s12131_s10 + $0x19] sm:$0xff]  ;;  %v310_v37 = vld [vmem:[%s15785_s2 + $0x68] sm:$0xff]  ;;  %v12301_v43 = vld [vmem:[%s15784_s1 + $0x50] sm:$0xff] }
  0x18   : > { %10991 = vmatprep.subr.msk.bf16.mxu1 %vm12133_vm3, %v10989_v10  ;;  %10997 = vmatprep.subr.msk.bf16.mxu0 %vm12133_vm3, %v10995_v15  ;;  %v12248_v35 = vpack.c.bf16 %v1635_v30, %v1634_v29  ;;  %v305_v36 = vld [vmem:[%s15785_s2 + $0x40] sm:$0xff]  ;;  %v12267_v38 = vld [vmem:[%s15784_s1 + $0x38] sm:$0xff]  ;;  %v12296_v42 = vld [vmem:[%s15784_s1 + $0x48] sm:$0xff]  ;;  %15868 = vst [vmem:[#allocation5_spill] sm:$0xff] %v12301_v43 }
  0x19   : > { %364 = vperm.xlu1 %11976, %v306_v32   ;;  %v12274_v39 = vld [vmem:[%s15784_s1 + $0x40] sm:$0xff]  ;;  %359 = vperm.xlu0 %11975, %v305_v36   ;;  %v300_v41 = vld [vmem:[%s15785_s2 + $0x18] sm:$0xff]  ;;  %v299_v44 = vld [vmem:[%s15785_s2 + $0x10] sm:$0xff] }
  0x1a   : > { %10023 = vmatmul.mubr.msk.f32.vlgmr.msra.gmra.mrb[0].mxu0 %vm442_vm0, %v12152_v14  ;;  %10047 = vmatmul.mubr.msk.f32.vlgmr.msra.gmra.mrb[0].mxu1 %vm442_vm0, %v12161_v16  ;;  %v309_v40 = vld [vmem:[%s15785_s2 + $0x60] sm:$0xff]  ;;  %v304_v45 = vld [vmem:[%s15785_s2 + $0x38] sm:$0xff]  ;;  %v303_v48 = vld [vmem:[%s15785_s2 + $0x30] sm:$0xff] }
  0x1b   : > { %10994 = vmatpush3.bf16.msk.msra.mxu1 %vm12133_vm3, %v10989_v10  ;;  %10025 = vmatprep.mubr.msk.f32.mxu0 %vm442_vm0, %v12174_v19  ;;  %v12320_v46 = vld [vmem:[%s15784_s1 + $0x58] sm:$0xff]  ;;  %v12325_v47 = vld [vmem:[%s15784_s1 + $0x60] sm:$0xff]  ;;  %v12344_v50 = vld [vmem:[%s15784_s1 + $0x68] sm:$0xff] }
  0x1c   : > { %10049 = vmatprep.mubr.msk.f32.mxu1 %vm442_vm0, %v12181_v21  ;;  %11003 = vmatprep.subr.msk.bf16.mxu1 %vm12133_vm3, %v11001_v20  ;;  %15869 = vst [vmem:[#allocation6_spill] sm:$0xff] %v12320_v46  ;;  %15870 = vst [vmem:[#allocation7_spill] sm:$0xff] %v12325_v47  ;;  %v308_v49 = vld [vmem:[%s15785_s2 + $0x58] sm:$0xff]  ;;  %v12349_v51 = vld [vmem:[%s15784_s1 + $0x70] sm:$0xff] }
  0x1d   : > { %11000 = vmatpush3.bf16.msk.msra.mxu0 %vm12133_vm3, %v10995_v15  ;;  %384 = vperm.xlu1 %11976, %v310_v37   ;;  %v307_v52 = vld [vmem:[%s15785_s2 + $0x50] sm:$0xff]  ;;  %v312_v53 = vld [vmem:[%s15785_s2 + $0x78] sm:$0xff]  ;;  %v314_v56 = vld [vmem:[%s15785_s2 + $0x88] sm:$0xff] }
  0x1e   : > { %10026 = vmatmul.mubr.msk.f32.gmra.mrb[2].mxu0 %vm442_vm0, %v12199_v25  ;;  %10050 = vmatmul.mubr.msk.f32.gmra.mrb[2].mxu1 %vm442_vm0, %v12204_v26  ;;  %v12368_v54 = vld [vmem:[%s15784_s1 + $0x78] sm:$0xff]  ;;  %v311_v55 = vld [vmem:[%s15785_s2 + $0x70] sm:$0xff]  ;;  %v1845_v58 = vld [vmem:[%s12131_s10 + $0x26] sm:$0x1] }
  0x1f   : > { %10028 = vmatprep.mubr.msk.f32.mxu0 %vm442_vm0, %v12211_v27  ;;  %10056 = vmatprep.mubr.msk.f32.mxu1 %vm442_vm0, %v12114_v0  ;;  %v1844_v57 = vld [vmem:[%s12131_s10 + $0x1e] sm:$0xff]  ;;  %v315_v62 = vld [vmem:[%s15785_s2 + $0x90] sm:$0xff]  ;;  %v2055_v2 = vld [vmem:[%s12131_s10 + $0x2b] sm:$0x1] }
  0x20   : > { %11009 = vmatprep.subr.msk.bf16.mxu0 %vm12133_vm3, %v12215_v28  ;;  %379 = vperm.xlu0 %11975, %v309_v40   ;;  %v11019_v59 = vpack.c.bf16 %v1845_v58, %v1844_v57  ;;  %v313_v60 = vld [vmem:[%s15785_s2 + $0x80] sm:$0xff]  ;;  %v316_v61 = vld [vmem:[%s15785_s2 + $0x98] sm:$0xff]  ;;  %v2264_v5 = vld [vmem:[%s12131_s10 + $0x28] sm:$0xff] }
  0x21   : > { %334 = vperm.xlu1 %11976, %v300_v41   ;;  %v2054_v63 = vld [vmem:[%s12131_s10 + $0x23] sm:$0xff]  ;;  %v2265_v6 = vld [vmem:[%s12131_s10 + $0x30] sm:$0x1]  ;;  %v2475_v9 = vld [vmem:[%s12131_s10 + $0x35] sm:$0x1] }
  0x22   : > { %10029 = vmatmul.mubr.msk.f32.gmra.mrb[4].mxu0 %vm442_vm0, %v12238_v33  ;;  %10057 = vmatmul.mubr.msk.f32.vlgmr.msra.gmra.mrb[4].mxu1 %vm442_vm0, %v12152_v14  ;;  %v11025_v4 = vpack.c.bf16 %v2055_v2, %v2054_v63  ;;  %v11031_v7 = vpack.c.bf16 %v2265_v6, %v2264_v5  ;;  %v2474_v8 = vld [vmem:[%s12131_s10 + $0x2d] sm:$0xff]  ;;  %v2685_v12 = vld [vmem:[%s12131_s10 + $0x3a] sm:$0x1]  ;;  %v2895_v17 = vld [vmem:[%s12131_s10 + $0x3f] sm:$0x1] }
  0x23   : > { %11006 = vmatpush3.bf16.msk.msra.mxu1 %vm12133_vm3, %v11001_v20  ;;  %10031 = vmatprep.mubr.msk.f32.mxu0 %vm442_vm0, %v12243_v34  ;;  %v11037_v10 = vpack.c.bf16 %v2475_v9, %v2474_v8  ;;  %v2684_v11 = vld [vmem:[%s12131_s10 + $0x32] sm:$0xff]  ;;  %v3104_v20 = vld [vmem:[%s12131_s10 + $0x3c] sm:$0xff]  ;;  %v3105_v22 = vld [vmem:[%s12131_s10 + $0x44] sm:$0x1] }
  0x24   : > { %10059 = vmatprep.mubr.msk.f32.mxu1 %vm442_vm0, %v12174_v19  ;;  %11015 = vmatprep.subr.msk.bf16.mxu1 %vm12133_vm3, %v12248_v35  ;;  %v11043_v13 = vpack.c.bf16 %v2685_v12, %v2684_v11  ;;  %v2894_v15 = vld [vmem:[%s12131_s10 + $0x37] sm:$0xff]  ;;  %v11055_v23 = vpack.c.bf16 %v3105_v22, %v3104_v20  ;;  %v3314_v24 = vld [vmem:[%s12131_s10 + $0x41] sm:$0xff]  ;;  %v3525_v40 = vld [vmem:[%s12131_s10 + $0x4e] sm:$0x1] }
  0x25   : > { %329 = vperm.xlu0 %11975, %v299_v44   ;;  %354 = vperm.xlu1 %11976, %v304_v45   ;;  %v11049_v18 = vpack.c.bf16 %v2895_v17, %v2894_v15  ;;  %v3524_v37 = vld [vmem:[%s12131_s10 + $0x46] sm:$0xff] }
  0x26   : > { %10032 = vmatmul.mubr.msk.f32.gmra.mrb[6].mxu0 %vm442_vm0, %v12267_v38  ;;  %10060 = vmatmul.mubr.msk.f32.gmra.mrb[6].mxu1 %vm442_vm0, %v12199_v25  ;;  %v12780_v44 = vpack.c.bf16 %v3525_v40, %v3524_v37 }
  0x27   : > { %10034 = vmatprep.mubr.msk.f32.mxu0 %vm442_vm0, %v12274_v39  ;;  %10062 = vmatprep.mubr.msk.f32.mxu1 %vm442_vm0, %v12211_v27 }
  0x29   : > { %349 = vperm.xlu0 %11975, %v303_v48   ;;  %374 = vperm.xlu1 %11976, %v308_v49  }
  0x2a   : > { %10035 = vmatmul.mubr.msk.f32.gmra.mrb[8].mxu0 %vm442_vm0, %v12296_v42  ;;  %10063 = vmatmul.mubr.msk.f32.gmra.mrb[8].mxu1 %vm442_vm0, %v12238_v33 }
  0x2b   : > { %10037 = vmatprep.mubr.msk.f32.mxu0 %vm442_vm0, %v12301_v43  ;;  %10065 = vmatprep.mubr.msk.f32.mxu1 %vm442_vm0, %v12243_v34 }
  0x2d   : > { %369 = vperm.xlu0 %11975, %v307_v52   ;;  %394 = vperm.xlu1 %11976, %v312_v53   ;;  %v3734_v53 = vld [vmem:[%s12131_s10 + $0x4b] sm:$0xff] }
  0x2e   : > { %10038 = vmatmul.mubr.msk.f32.gmra.mrb[10].mxu0 %vm442_vm0, %v12320_v46  ;;  %10066 = vmatmul.mubr.msk.f32.gmra.mrb[10].mxu1 %vm442_vm0, %v12267_v38 }
  0x2f   : > { %10040 = vmatprep.mubr.msk.f32.mxu0 %vm442_vm0, %v12325_v47  ;;  %10068 = vmatprep.mubr.msk.f32.mxu1 %vm442_vm0, %v12274_v39 }
  0x31   : > { %389 = vperm.xlu0 %11975, %v311_v55   ;;  %404 = vperm.xlu1 %11976, %v314_v56   ;;  %v3735_v55 = vld [vmem:[%s12131_s10 + $0x53] sm:$0x1] }
  0x32   : > { %10041 = vmatmul.mubr.msk.f32.gmra.mrb[12].mxu0 %vm442_vm0, %v12344_v50  ;;  %10069 = vmatmul.mubr.msk.f32.gmra.mrb[12].mxu1 %vm442_vm0, %v12296_v42  ;;  %v12831_v57 = vpack.c.bf16 %v3735_v55, %v3734_v53 }
  0x33   : > { %10043 = vmatprep.mubr.msk.f32.mxu0 %vm442_vm0, %v12349_v51  ;;  %10071 = vmatprep.mubr.msk.f32.mxu1 %vm442_vm0, %v12301_v43 }
  0x34   : > { %15877 = vst [vmem:[#allocation14_spill] sm:$0xff] %v12831_v57 }
  0x35   : > { %399 = vperm.xlu0 %11975, %v313_v60   ;;  %414 = vperm.xlu1 %11976, %v316_v61  }
  0x36   : > { %10044 = vmatmul.mubr.msk.f32.gmra.mrb[14].mxu0 %vm442_vm0, %v12368_v54  ;;  %10072 = vmatmul.mubr.msk.f32.gmra.mrb[14].mxu1 %vm442_vm0, %v12320_v46 }
  0x37   : > { %10074 = vmatprep.mubr.msk.f32.mxu1 %vm442_vm0, %v12325_v47  ;;  %10090 = vmatprep.mubr.msk.f32.mxu0 %vm442_vm0, %v12114_v0 }
  0x39   : > { %409 = vperm.xlu0 %11975, %v315_v62  }
  0x3a   : > { %10075 = vmatmul.mubr.msk.f32.gmra.mrb[16].mxu1 %vm442_vm0, %v12344_v50  ;;  %10091 = vmatmul.mubr.msk.f32.vlgmr.msra.gmra.mrb[16].mxu0 %vm442_vm0, %v12152_v14 }
  0x3b   : > { %10077 = vmatprep.mubr.msk.f32.mxu1 %vm442_vm0, %v12349_v51  ;;  %10093 = vmatprep.mubr.msk.f32.mxu0 %vm442_vm0, %v12174_v19 }
  0x3c   : > { %11012 = vmatpush3.bf16.msk.msra.mxu0 %vm12133_vm3, %v12215_v28  ;;  %v3315_v28 = vld [vmem:[%s12131_s10 + $0x49] sm:$0x1] }
  0x3d   : > { %11021 = vmatprep.subr.msk.bf16.mxu0 %vm12133_vm3, %v11019_v59  ;;  %v12711_v29 = vpack.c.bf16 %v3315_v28, %v3314_v24 }
  0x3e   : > { %10078 = vmatmul.mubr.msk.f32.gmra.mrb[18].mxu1 %vm442_vm0, %v12368_v54  ;;  %10094 = vmatmul.mubr.msk.f32.gmra.mrb[18].mxu0 %vm442_vm0, %v12199_v25 }
  0x3f   : > { %10080 = vmatprep.mubr.msk.f32.mxu1 %vm442_vm0, %v12119_v1  ;;  %10096 = vmatprep.mubr.msk.f32.mxu0 %vm442_vm0, %v12211_v27 }
  0x42   : > { %10081 = vmatmul.mubr.msk.f32.gmra.mrb[20].mxu1 %vm442_vm0, %v12161_v16  ;;  %10097 = vmatmul.mubr.msk.f32.gmra.mrb[20].mxu0 %vm442_vm0, %v12238_v33 }
  0x43   : > { %10083 = vmatprep.mubr.msk.f32.mxu1 %vm442_vm0, %v12181_v21  ;;  %10099 = vmatprep.mubr.msk.f32.mxu0 %vm442_vm0, %v12243_v34 }
  0x46   : > { %10084 = vmatmul.mubr.msk.f32.gmra.mrb[22].mxu1 %vm442_vm0, %v12204_v26  ;;  %10100 = vmatmul.mubr.msk.f32.gmra.mrb[22].mxu0 %vm442_vm0, %v12267_v38 }
  0x47   : > { %10102 = vmatprep.mubr.msk.f32.mxu0 %vm442_vm0, %v12274_v39  ;;  %10124 = vmatprep.mubr.msk.f32.mxu1 %vm442_vm0, %v12114_v0 }
  0x4a   : > { %10103 = vmatmul.mubr.msk.f32.gmra.mrb[24].mxu0 %vm442_vm0, %v12296_v42  ;;  %10125 = vmatmul.mubr.msk.f32.vlgmr.msra.gmra.mrb[24].mxu1 %vm442_vm0, %v12152_v14 }
  0x4b   : > { %11018 = vmatpush3.bf16.msk.msra.mxu1 %vm12133_vm3, %v12248_v35  ;;  %10105 = vmatprep.mubr.msk.f32.mxu0 %vm442_vm0, %v12301_v43 }
  0x4c   : > { %10127 = vmatprep.mubr.msk.f32.mxu1 %vm442_vm0, %v12174_v19  ;;  %11027 = vmatprep.subr.msk.bf16.mxu1 %vm12133_vm3, %v11025_v4 }
  0x4e   : > { %10106 = vmatmul.mubr.msk.f32.gmra.mrb[26].mxu0 %vm442_vm0, %v12320_v46  ;;  %10128 = vmatmul.mubr.msk.f32.gmra.mrb[26].mxu1 %vm442_vm0, %v12199_v25 }
  0x4f   : > { %10108 = vmatprep.mubr.msk.f32.mxu0 %vm442_vm0, %v12325_v47  ;;  %10130 = vmatprep.mubr.msk.f32.mxu1 %vm442_vm0, %v12211_v27 }
  0x52   : > { %10109 = vmatmul.mubr.msk.f32.gmra.mrb[28].mxu0 %vm442_vm0, %v12344_v50  ;;  %10131 = vmatmul.mubr.msk.f32.gmra.mrb[28].mxu1 %vm442_vm0, %v12238_v33 }
  0x53   : > { %10111 = vmatprep.mubr.msk.f32.mxu0 %vm442_vm0, %v12349_v51  ;;  %10133 = vmatprep.mubr.msk.f32.mxu1 %vm442_vm0, %v12243_v34 }
  0x56   : > { %10112 = vmatmul.mubr.msk.f32.gmra.mrb[30].mxu0 %vm442_vm0, %v12368_v54  ;;  %10134 = vmatmul.mubr.msk.f32.gmra.mrb[30].mxu1 %vm442_vm0, %v12267_v38 }
  0x57   : > { %10114 = vmatprep.mubr.msk.f32.mxu0 %vm442_vm0, %v12119_v1  ;;  %10136 = vmatprep.mubr.msk.f32.mxu1 %vm442_vm0, %v12274_v39 }
  0x5a   : > { %10115 = vmatmul.mubr.msk.f32.gmra.mrb[32].mxu0 %vm442_vm0, %v12161_v16  ;;  %10137 = vmatmul.mubr.msk.f32.gmra.mrb[32].mxu1 %vm442_vm0, %v12296_v42 }
  0x5b   : > { %10117 = vmatprep.mubr.msk.f32.mxu0 %vm442_vm0, %v12181_v21  ;;  %10139 = vmatprep.mubr.msk.f32.mxu1 %vm442_vm0, %v12301_v43 }
  0x5e   : > { %10118 = vmatmul.mubr.msk.f32.gmra.mrb[34].mxu0 %vm442_vm0, %v12204_v26  ;;  %10140 = vmatmul.mubr.msk.f32.gmra.mrb[34].mxu1 %vm442_vm0, %v12320_v46 }
  0x5f   : > { %10142 = vmatprep.mubr.msk.f32.mxu1 %vm442_vm0, %v12325_v47  ;;  %10158 = vmatprep.mubr.msk.f32.mxu0 %vm442_vm0, %v12114_v0 }
  0x62   : > { %10143 = vmatmul.mubr.msk.f32.gmra.mrb[36].mxu1 %vm442_vm0, %v12344_v50  ;;  %10159 = vmatmul.mubr.msk.f32.vlgmr.msra.gmra.mrb[36].mxu0 %vm442_vm0, %v12152_v14 }
  0x63   : > { %10145 = vmatprep.mubr.msk.f32.mxu1 %vm442_vm0, %v12349_v51  ;;  %10161 = vmatprep.mubr.msk.f32.mxu0 %vm442_vm0, %v12174_v19 }
  0x64   : > { %11024 = vmatpush3.bf16.msk.msra.mxu0 %vm12133_vm3, %v11019_v59 }
  0x65   : > { %11033 = vmatprep.subr.msk.bf16.mxu0 %vm12133_vm3, %v11031_v7 }
  0x66   : > { %10146 = vmatmul.mubr.msk.f32.gmra.mrb[38].mxu1 %vm442_vm0, %v12368_v54  ;;  %10162 = vmatmul.mubr.msk.f32.gmra.mrb[38].mxu0 %vm442_vm0, %v12199_v25 }
  0x67   : > { %10148 = vmatprep.mubr.msk.f32.mxu1 %vm442_vm0, %v12119_v1  ;;  %10164 = vmatprep.mubr.msk.f32.mxu0 %vm442_vm0, %v12211_v27 }
  0x6a   : > { %10149 = vmatmul.mubr.msk.f32.gmra.mrb[40].mxu1 %vm442_vm0, %v12161_v16  ;;  %10165 = vmatmul.mubr.msk.f32.gmra.mrb[40].mxu0 %vm442_vm0, %v12238_v33 }
  0x6b   : > { %10151 = vmatprep.mubr.msk.f32.mxu1 %vm442_vm0, %v12181_v21  ;;  %10167 = vmatprep.mubr.msk.f32.mxu0 %vm442_vm0, %v12243_v34 }
  0x6e   : > { %10152 = vmatmul.mubr.msk.f32.gmra.mrb[42].mxu1 %vm442_vm0, %v12204_v26  ;;  %10168 = vmatmul.mubr.msk.f32.gmra.mrb[42].mxu0 %vm442_vm0, %v12267_v38 }
  0x6f   : > { %10170 = vmatprep.mubr.msk.f32.mxu0 %vm442_vm0, %v12274_v39  ;;  %10192 = vmatprep.mubr.msk.f32.mxu1 %vm442_vm0, %v12114_v0 }
  0x72   : > { %10171 = vmatmul.mubr.msk.f32.gmra.mrb[44].mxu0 %vm442_vm0, %v12296_v42  ;;  %10193 = vmatmul.mubr.msk.f32.vlgmr.msra.gmra.mrb[44].mxu1 %vm442_vm0, %v12152_v14 }
  0x73   : > { %11030 = vmatpush3.bf16.msk.msra.mxu1 %vm12133_vm3, %v11025_v4  ;;  %10173 = vmatprep.mubr.msk.f32.mxu0 %vm442_vm0, %v12301_v43 }
  0x74   : > { %10195 = vmatprep.mubr.msk.f32.mxu1 %vm442_vm0, %v12174_v19  ;;  %11039 = vmatprep.subr.msk.bf16.mxu1 %vm12133_vm3, %v11037_v10 }
  0x76   : > { %10174 = vmatmul.mubr.msk.f32.gmra.mrb[46].mxu0 %vm442_vm0, %v12320_v46  ;;  %10196 = vmatmul.mubr.msk.f32.gmra.mrb[46].mxu1 %vm442_vm0, %v12199_v25 }
  0x77   : > { %10176 = vmatprep.mubr.msk.f32.mxu0 %vm442_vm0, %v12325_v47  ;;  %10198 = vmatprep.mubr.msk.f32.mxu1 %vm442_vm0, %v12211_v27 }
  0x7a   : > { %10177 = vmatmul.mubr.msk.f32.gmra.mrb[48].mxu0 %vm442_vm0, %v12344_v50  ;;  %10199 = vmatmul.mubr.msk.f32.gmra.mrb[48].mxu1 %vm442_vm0, %v12238_v33 }
  0x7b   : > { %10179 = vmatprep.mubr.msk.f32.mxu0 %vm442_vm0, %v12349_v51  ;;  %10201 = vmatprep.mubr.msk.f32.mxu1 %vm442_vm0, %v12243_v34 }
  0x7e   : > { %10180 = vmatmul.mubr.msk.f32.gmra.mrb[50].mxu0 %vm442_vm0, %v12368_v54  ;;  %10202 = vmatmul.mubr.msk.f32.gmra.mrb[50].mxu1 %vm442_vm0, %v12267_v38 }
  0x7f   : > { %10182 = vmatprep.mubr.msk.f32.mxu0 %vm442_vm0, %v12119_v1  ;;  %10204 = vmatprep.mubr.msk.f32.mxu1 %vm442_vm0, %v12274_v39 }
  0x82   : > { %10183 = vmatmul.mubr.msk.f32.gmra.mrb[52].mxu0 %vm442_vm0, %v12161_v16  ;;  %10205 = vmatmul.mubr.msk.f32.gmra.mrb[52].mxu1 %vm442_vm0, %v12296_v42 }
  0x83   : > { %10185 = vmatprep.mubr.msk.f32.mxu0 %vm442_vm0, %v12181_v21  ;;  %10207 = vmatprep.mubr.msk.f32.mxu1 %vm442_vm0, %v12301_v43 }
  0x86   : > { %10186 = vmatmul.mubr.msk.f32.gmra.mrb[54].mxu0 %vm442_vm0, %v12204_v26  ;;  %10208 = vmatmul.mubr.msk.f32.gmra.mrb[54].mxu1 %vm442_vm0, %v12320_v46 }
  0x87   : > { %10210 = vmatprep.mubr.msk.f32.mxu1 %vm442_vm0, %v12325_v47  ;;  %10226 = vmatprep.mubr.msk.f32.mxu0 %vm442_vm0, %v12114_v0 }
  0x8a   : > { %10211 = vmatmul.mubr.msk.f32.gmra.mrb[56].mxu1 %vm442_vm0, %v12344_v50  ;;  %10227 = vmatmul.mubr.msk.f32.vlgmr.msra.gmra.mrb[56].mxu0 %vm442_vm0, %v12152_v14 }
  0x8b   : > { %10213 = vmatprep.mubr.msk.f32.mxu1 %vm442_vm0, %v12349_v51  ;;  %10229 = vmatprep.mubr.msk.f32.mxu0 %vm442_vm0, %v12174_v19 }
  0x8c   : > { %11036 = vmatpush3.bf16.msk.msra.mxu0 %vm12133_vm3, %v11031_v7 }
  0x8d   : > { %11045 = vmatprep.subr.msk.bf16.mxu0 %vm12133_vm3, %v11043_v13 }
  0x8e   : > { %10214 = vmatmul.mubr.msk.f32.gmra.mrb[58].mxu1 %vm442_vm0, %v12368_v54  ;;  %10230 = vmatmul.mubr.msk.f32.gmra.mrb[58].mxu0 %vm442_vm0, %v12199_v25 }
  0x8f   : > { %10216 = vmatprep.mubr.msk.f32.mxu1 %vm442_vm0, %v12119_v1  ;;  %10232 = vmatprep.mubr.msk.f32.mxu0 %vm442_vm0, %v12211_v27  ;;  %v12734_v30 = vpop.permute.xlu1 %339 }
  0x90   : > { %15871 = vst [vmem:[#allocation8_spill] sm:$0xff] %v12734_v30  ;;  %v12744_v31 = vpop.permute.xlu0 %319 }
  0x91   : > { %15872 = vst [vmem:[#allocation9_spill] sm:$0xff] %v12744_v31 }
  0x92   : > { %10217 = vmatmul.mubr.msk.f32.gmra.mrb[60].mxu1 %vm442_vm0, %v12161_v16  ;;  %10233 = vmatmul.mubr.msk.f32.gmra.mrb[60].mxu0 %vm442_vm0, %v12238_v33 }
  0x93   : > { %10219 = vmatprep.mubr.msk.f32.mxu1 %vm442_vm0, %v12181_v21  ;;  %10235 = vmatprep.mubr.msk.f32.mxu0 %vm442_vm0, %v12243_v34  ;;  %v12750_v32 = vpop.permute.xlu1 %344 }
  0x94   : > { %15873 = vst [vmem:[#allocation10_spill] sm:$0xff] %v12750_v32  ;;  %v12756_v35 = vpop.permute.xlu0 %324 }
  0x95   : > { %15874 = vst [vmem:[#allocation11_spill] sm:$0xff] %v12756_v35 }
  0x96   : > { %10220 = vmatmul.mubr.msk.f32.gmra.mrb[62].mxu1 %vm442_vm0, %v12204_v26  ;;  %10236 = vmatmul.mubr.msk.f32.gmra.mrb[62].mxu0 %vm442_vm0, %v12267_v38 }
  0x97   : > { %10238 = vmatprep.mubr.msk.f32.mxu0 %vm442_vm0, %v12274_v39  ;;  %10260 = vmatprep.mubr.msk.f32.mxu1 %vm442_vm0, %v12114_v0 }
  0x98   : > { %v12766_v36 = vpop.permute.xlu1 %364  ;;  %v12778_v41 = vpop.permute.xlu0 %359 }
  0x9a   : > { %10239 = vmatmul.mubr.msk.f32.gmra.mrb[64].mxu0 %vm442_vm0, %v12296_v42  ;;  %10261 = vmatmul.mubr.msk.f32.vlgmr.msra.gmra.mrb[64].mxu1 %vm442_vm0, %v12152_v14 }
  0x9b   : > { %11042 = vmatpush3.bf16.msk.msra.mxu1 %vm12133_vm3, %v11037_v10  ;;  %10241 = vmatprep.mubr.msk.f32.mxu0 %vm442_vm0, %v12301_v43 }
  0x9c   : > { %10263 = vmatprep.mubr.msk.f32.mxu1 %vm442_vm0, %v12174_v19  ;;  %11051 = vmatprep.subr.msk.bf16.mxu1 %vm12133_vm3, %v11049_v18  ;;  %v12782_v45 = vpop.permute.xlu1 %384 }
  0x9e   : > { %10242 = vmatmul.mubr.msk.f32.gmra.mrb[66].mxu0 %vm442_vm0, %v12320_v46  ;;  %10264 = vmatmul.mubr.msk.f32.gmra.mrb[66].mxu1 %vm442_vm0, %v12199_v25 }
  0x9f   : > { %10244 = vmatprep.mubr.msk.f32.mxu0 %vm442_vm0, %v12325_v47  ;;  %10266 = vmatprep.mubr.msk.f32.mxu1 %vm442_vm0, %v12211_v27  ;;  %v12797_v48 = vpop.permute.xlu0 %379 }
  0xa0   : > { %v12807_v49 = vpop.permute.xlu1 %334 }
  0xa1   : > { %15875 = vst [vmem:[#allocation12_spill] sm:$0xff] %v12807_v49 }
  0xa2   : > { %10245 = vmatmul.mubr.msk.f32.gmra.mrb[68].mxu0 %vm442_vm0, %v12344_v50  ;;  %10267 = vmatmul.mubr.msk.f32.gmra.mrb[68].mxu1 %vm442_vm0, %v12238_v33 }
  0xa3   : > { %10247 = vmatprep.mubr.msk.f32.mxu0 %vm442_vm0, %v12349_v51  ;;  %10269 = vmatprep.mubr.msk.f32.mxu1 %vm442_vm0, %v12243_v34 }
  0xa4   : > { %v12817_v52 = vpop.permute.xlu0 %329  ;;  %v12821_v56 = vpop.permute.xlu1 %354 }
  0xa5   : > { %15876 = vst [vmem:[#allocation13_spill] sm:$0xff] %v12817_v52 }
  0xa6   : > { %10248 = vmatmul.mubr.msk.f32.gmra.mrb[70].mxu0 %vm442_vm0, %v12368_v54  ;;  %10270 = vmatmul.mubr.msk.f32.gmra.mrb[70].mxu1 %vm442_vm0, %v12267_v38 }
  0xa7   : > { %10250 = vmatprep.mubr.msk.f32.mxu0 %vm442_vm0, %v12119_v1  ;;  %10272 = vmatprep.mubr.msk.f32.mxu1 %vm442_vm0, %v12274_v39 }
  0xa8   : > { %v12833_v58 = vpop.permute.xlu0 %349  ;;  %v12844_v59 = vpop.permute.xlu1 %374 }
  0xaa   : > { %10251 = vmatmul.mubr.msk.f32.gmra.mrb[72].mxu0 %vm442_vm0, %v12161_v16  ;;  %10273 = vmatmul.mubr.msk.f32.gmra.mrb[72].mxu1 %vm442_vm0, %v12296_v42 }
  0xab   : > { %10253 = vmatprep.mubr.msk.f32.mxu0 %vm442_vm0, %v12181_v21  ;;  %10275 = vmatprep.mubr.msk.f32.mxu1 %vm442_vm0, %v12301_v43 }
  0xac   : > { %v12863_v2 = vpop.permute.xlu0 %369  ;;  %v12879_v10 = vpop.permute.xlu1 %394 }
  0xae   : > { %10254 = vmatmul.mubr.msk.f32.gmra.mrb[74].mxu0 %vm442_vm0, %v12204_v26  ;;  %10276 = vmatmul.mubr.msk.f32.gmra.mrb[74].mxu1 %vm442_vm0, %v12320_v46 }
  0xaf   : > { %10278 = vmatprep.mubr.msk.f32.mxu1 %vm442_vm0, %v12325_v47  ;;  %10294 = vmatprep.mubr.msk.f32.mxu0 %vm442_vm0, %v12114_v0 }
  0xb0   : > { %v12893_v28 = vpop.permute.xlu0 %389 }
  0xb2   : > { %10279 = vmatmul.mubr.msk.f32.gmra.mrb[76].mxu1 %vm442_vm0, %v12344_v50  ;;  %10295 = vmatmul.mubr.msk.f32.vlgmr.msra.gmra.mrb[76].mxu0 %vm442_vm0, %v12152_v14 }
  0xb3   : > { %10281 = vmatprep.mubr.msk.f32.mxu1 %vm442_vm0, %v12349_v51  ;;  %10297 = vmatprep.mubr.msk.f32.mxu0 %vm442_vm0, %v12174_v19 }
  0xb4   : > { %11048 = vmatpush3.bf16.msk.msra.mxu0 %vm12133_vm3, %v11043_v13 }
  0xb5   : > { %11057 = vmatprep.subr.msk.bf16.mxu0 %vm12133_vm3, %v11055_v23 }
  0xb6   : > { %10282 = vmatmul.mubr.msk.f32.gmra.mrb[78].mxu1 %vm442_vm0, %v12368_v54  ;;  %10298 = vmatmul.mubr.msk.f32.gmra.mrb[78].mxu0 %vm442_vm0, %v12199_v25 }
  0xb7   : > { %10284 = vmatprep.mubr.msk.f32.mxu1 %vm442_vm0, %v12119_v1  ;;  %10300 = vmatprep.mubr.msk.f32.mxu0 %vm442_vm0, %v12211_v27 }
  0xba   : > { %10285 = vmatmul.mubr.msk.f32.gmra.mrb[80].mxu1 %vm442_vm0, %v12161_v16  ;;  %10301 = vmatmul.mubr.msk.f32.gmra.mrb[80].mxu0 %vm442_vm0, %v12238_v33 }
  0xbb   : > { %10287 = vmatprep.mubr.msk.f32.mxu1 %vm442_vm0, %v12181_v21  ;;  %10303 = vmatprep.mubr.msk.f32.mxu0 %vm442_vm0, %v12243_v34 }
  0xbe   : > { %10288 = vmatmul.mubr.msk.f32.gmra.mrb[82].mxu1 %vm442_vm0, %v12204_v26  ;;  %10304 = vmatmul.mubr.msk.f32.gmra.mrb[82].mxu0 %vm442_vm0, %v12267_v38 }
  0xbf   : > { %10306 = vmatprep.mubr.msk.f32.mxu0 %vm442_vm0, %v12274_v39  ;;  %10328 = vmatprep.mubr.msk.f32.mxu1 %vm442_vm0, %v12114_v0 }
  0xc2   : > { %10307 = vmatmul.mubr.msk.f32.gmra.mrb[84].mxu0 %vm442_vm0, %v12296_v42  ;;  %10329 = vmatmul.mubr.msk.f32.vlgmr.msra.gmra.mrb[84].mxu1 %vm442_vm0, %v12152_v14 }
  0xc3   : > { %11054 = vmatpush3.bf16.msk.msra.mxu1 %vm12133_vm3, %v11049_v18  ;;  %10309 = vmatprep.mubr.msk.f32.mxu0 %vm442_vm0, %v12301_v43 }
  0xc4   : > { %10331 = vmatprep.mubr.msk.f32.mxu1 %vm442_vm0, %v12174_v19  ;;  %11063 = vmatprep.subr.msk.bf16.mxu1 %vm12133_vm3, %v12711_v29 }
  0xc6   : > { %10310 = vmatmul.mubr.msk.f32.gmra.mrb[86].mxu0 %vm442_vm0, %v12320_v46  ;;  %10332 = vmatmul.mubr.msk.f32.gmra.mrb[86].mxu1 %vm442_vm0, %v12199_v25 }
  0xc7   : > { %10312 = vmatprep.mubr.msk.f32.mxu0 %vm442_vm0, %v12325_v47  ;;  %10334 = vmatprep.mubr.msk.f32.mxu1 %vm442_vm0, %v12211_v27 }
  0xca   : > { %10313 = vmatmul.mubr.msk.f32.gmra.mrb[88].mxu0 %vm442_vm0, %v12344_v50  ;;  %10335 = vmatmul.mubr.msk.f32.gmra.mrb[88].mxu1 %vm442_vm0, %v12238_v33 }
  0xcb   : > { %10315 = vmatprep.mubr.msk.f32.mxu0 %vm442_vm0, %v12349_v51  ;;  %10337 = vmatprep.mubr.msk.f32.mxu1 %vm442_vm0, %v12243_v34 }
  0xce   : > { %10316 = vmatmul.mubr.msk.f32.gmra.mrb[90].mxu0 %vm442_vm0, %v12368_v54  ;;  %10338 = vmatmul.mubr.msk.f32.gmra.mrb[90].mxu1 %vm442_vm0, %v12267_v38 }
  0xcf   : > { %10318 = vmatprep.mubr.msk.f32.mxu0 %vm442_vm0, %v12119_v1  ;;  %10340 = vmatprep.mubr.msk.f32.mxu1 %vm442_vm0, %v12274_v39 }
  0xd2   : > { %10319 = vmatmul.mubr.msk.f32.gmra.mrb[92].mxu0 %vm442_vm0, %v12161_v16  ;;  %10341 = vmatmul.mubr.msk.f32.gmra.mrb[92].mxu1 %vm442_vm0, %v12296_v42 }
  0xd3   : > { %10321 = vmatprep.mubr.msk.f32.mxu0 %vm442_vm0, %v12181_v21  ;;  %10343 = vmatprep.mubr.msk.f32.mxu1 %vm442_vm0, %v12301_v43 }
  0xd6   : > { %10322 = vmatmul.mubr.msk.f32.gmra.mrb[94].mxu0 %vm442_vm0, %v12204_v26  ;;  %10344 = vmatmul.mubr.msk.f32.gmra.mrb[94].mxu1 %vm442_vm0, %v12320_v46 }
  0xd7   : > { %10346 = vmatprep.mubr.msk.f32.mxu1 %vm442_vm0, %v12325_v47  ;;  %10362 = vmatprep.mubr.msk.f32.mxu0 %vm442_vm0, %v12114_v0 }
  0xda   : > { %10347 = vmatmul.mubr.msk.f32.gmra.mrb[96].mxu1 %vm442_vm0, %v12344_v50  ;;  %10363 = vmatmul.mubr.msk.f32.vlgmr.msra.gmra.mrb[96].mxu0 %vm442_vm0, %v12152_v14 }
  0xdb   : > { %10349 = vmatprep.mubr.msk.f32.mxu1 %vm442_vm0, %v12349_v51  ;;  %10365 = vmatprep.mubr.msk.f32.mxu0 %vm442_vm0, %v12174_v19 }
  0xdc   : > { %11060 = vmatpush3.bf16.msk.msra.mxu0 %vm12133_vm3, %v11055_v23 }
  0xdd   : > { %11069 = vmatprep.subr.msk.bf16.mxu0 %vm12133_vm3, %v12780_v44 }
  0xde   : > { %10350 = vmatmul.mubr.msk.f32.gmra.mrb[98].mxu1 %vm442_vm0, %v12368_v54  ;;  %10366 = vmatmul.mubr.msk.f32.gmra.mrb[98].mxu0 %vm442_vm0, %v12199_v25 }
  0xdf   : > { %10352 = vmatprep.mubr.msk.f32.mxu1 %vm442_vm0, %v12119_v1  ;;  %10368 = vmatprep.mubr.msk.f32.mxu0 %vm442_vm0, %v12211_v27 }
  0xe2   : > { %10353 = vmatmul.mubr.msk.f32.gmra.mrb[100].mxu1 %vm442_vm0, %v12161_v16  ;;  %10369 = vmatmul.mubr.msk.f32.gmra.mrb[100].mxu0 %vm442_vm0, %v12238_v33 }
  0xe3   : > { %10355 = vmatprep.mubr.msk.f32.mxu1 %vm442_vm0, %v12181_v21  ;;  %10371 = vmatprep.mubr.msk.f32.mxu0 %vm442_vm0, %v12243_v34 }
  0xe6   : > { %10356 = vmatmul.mubr.msk.f32.gmra.mrb[102].mxu1 %vm442_vm0, %v12204_v26  ;;  %10372 = vmatmul.mubr.msk.f32.gmra.mrb[102].mxu0 %vm442_vm0, %v12267_v38 }
  0xe7   : > { %10374 = vmatprep.mubr.msk.f32.mxu0 %vm442_vm0, %v12274_v39  ;;  %10396 = vmatprep.mubr.msk.f32.mxu1 %vm442_vm0, %v12114_v0 }
  0xea   : > { %10375 = vmatmul.mubr.msk.f32.gmra.mrb[104].mxu0 %vm442_vm0, %v12296_v42  ;;  %10397 = vmatmul.mubr.msk.f32.vlgmr.msra.gmra.mrb[104].mxu1 %vm442_vm0, %v12152_v14 }
  0xeb   : > { %11066 = vmatpush3.bf16.msk.msra.mxu1 %vm12133_vm3, %v12711_v29  ;;  %10377 = vmatprep.mubr.msk.f32.mxu0 %vm442_vm0, %v12301_v43 }
  0xec   : > { %10399 = vmatprep.mubr.msk.f32.mxu1 %vm442_vm0, %v12174_v19  ;;  %11075 = vmatprep.subr.msk.bf16.mxu1 %vm12133_vm3, %v12831_v57 }
  0xed   : > { %v12851_v60 = vpop.f32.mrb[0].mxu1  ;;  %v10024_v61 = vpop.f32.mrb[0].mxu0 }
  0xee   : > { %v12853_v62 = vpop.f32.mrb[1].mxu1  ;;  %10378 = vmatmul.mubr.msk.f32.gmra.mrb[106].mxu0 %vm442_vm0, %v12320_v46  ;;  %10400 = vmatmul.mubr.msk.f32.gmra.mrb[106].mxu1 %vm442_vm0, %v12199_v25  ;;  %v573_v63 = vpop.f32.mrb[1].mxu0  ;;  %v579_v7 = vadd.f32 %v10024_v61, %v12756_v35 }
  0xef   : > { %10380 = vmatprep.mubr.msk.f32.mxu0 %vm442_vm0, %v12325_v47  ;;  %10402 = vmatprep.mubr.msk.f32.mxu1 %vm442_vm0, %v12211_v27  ;;  %v574_v9 = vadd.f32 %v573_v63, %v12744_v31 }
  0xf0   : > { %v673_v15 = vmax.f32 %v579_v7, 0.0 }
  0xf1   : > { %v12865_v4 = vpop.f32.mrb[2].mxu1  ;;  %v10027_v5 = vpop.f32.mrb[2].mxu0  ;;  %v672_v22 = vmax.f32 %v574_v9, 0.0 }
  0xf2   : > { %v12867_v6 = vpop.f32.mrb[3].mxu1  ;;  %10381 = vmatmul.mubr.msk.f32.gmra.mrb[108].mxu0 %vm442_vm0, %v12344_v50  ;;  %10403 = vmatmul.mubr.msk.f32.gmra.mrb[108].mxu1 %vm442_vm0, %v12238_v33  ;;  %v583_v8 = vpop.f32.mrb[3].mxu0  ;;  %v589_v17 = vadd.f32 %v10027_v5, %v12807_v49 }
  0xf3   : > { %10383 = vmatprep.mubr.msk.f32.mxu0 %vm442_vm0, %v12349_v51  ;;  %10405 = vmatprep.mubr.msk.f32.mxu1 %vm442_vm0, %v12243_v34  ;;  %v584_v23 = vadd.f32 %v583_v8, %v12817_v52 }
  0xf4   : > { %v675_v55 = vmax.f32 %v589_v17, 0.0  ;;  %v12909_v17 = vpop.permute.xlu1 %404 }
  0xf5   : > { %v10058_v11 = vpop.f32.mrb[4].mxu1  ;;  %v10030_v12 = vpop.f32.mrb[4].mxu0  ;;  %v674_v8 = vmax.f32 %v584_v23, 0.0  ;;  %15878 = vst [vmem:[#allocation15_spill] sm:$0xff] %v12909_v17 }
  0xf6   : > { %v805_v13 = vpop.f32.mrb[5].mxu1  ;;  %10384 = vmatmul.mubr.msk.f32.gmra.mrb[110].mxu0 %vm442_vm0, %v12368_v54  ;;  %10406 = vmatmul.mubr.msk.f32.gmra.mrb[110].mxu1 %vm442_vm0, %v12267_v38  ;;  %v599_v18 = vadd.f32 %v10030_v12, %v12750_v32  ;;  %v593_v20 = vpop.f32.mrb[5].mxu0 }
  0xf7   : > { %10386 = vmatprep.mubr.msk.f32.mxu0 %vm442_vm0, %v12119_v1  ;;  %10408 = vmatprep.mubr.msk.f32.mxu1 %vm442_vm0, %v12274_v39  ;;  %v594_v24 = vadd.f32 %v593_v20, %v12734_v30  ;;  %v806_v20 = vadd.f32 %v805_v13, %v12744_v31 }
  0xf8   : > { %v677_v29 = vmax.f32 %v599_v18, 0.0 }
  0xf9   : > { %v10061_v37 = vpop.f32.mrb[6].mxu1  ;;  %v676_v40 = vmax.f32 %v594_v24, 0.0  ;;  %v10033_v53 = vpop.f32.mrb[6].mxu0 }
  0xfa   : > { %v815_v61 = vpop.f32.mrb[7].mxu1  ;;  %10387 = vmatmul.mubr.msk.f32.gmra.mrb[112].mxu0 %vm442_vm0, %v12161_v16  ;;  %10409 = vmatmul.mubr.msk.f32.gmra.mrb[112].mxu1 %vm442_vm0, %v12296_v42  ;;  %v12899_v63 = vmax.f32 %v673_v15, %v677_v29  ;;  %v609_v5 = vadd.f32 %v10033_v53, %v12821_v56  ;;  %v603_v7 = vpop.f32.mrb[7].mxu0  ;;  %v811_v15 = vadd.f32 %v10058_v11, %v12756_v35  ;;  %v3945_v11 = vld [vmem:[%s12131_s10 + $0x58] sm:$0x1] }
  0xfb   : > { %v12902_v9 = vmax.f32 %v672_v22, %v676_v40  ;;  %10389 = vmatprep.mubr.msk.f32.mxu0 %vm442_vm0, %v12181_v21  ;;  %10411 = vmatprep.mubr.msk.f32.mxu1 %vm442_vm0, %v12301_v43  ;;  %v604_v12 = vadd.f32 %v603_v7, %v12833_v58  ;;  %v3944_v43 = vld [vmem:[%s12131_s10 + $0x50] sm:$0xff] }
  0xfc   : > { %v679_v18 = vmax.f32 %v609_v5, 0.0 }
  0xfd   : > { %v10064_v23 = vpop.f32.mrb[8].mxu1  ;;  %v678_v22 = vmax.f32 %v604_v12, 0.0  ;;  %v10036_v24 = vpop.f32.mrb[8].mxu0 }
  0xfe   : > { %v831_v29 = vadd.f32 %v10064_v23, %v12750_v32  ;;  %v825_v40 = vpop.f32.mrb[9].mxu1  ;;  %10390 = vmatmul.mubr.msk.f32.gmra.mrb[114].mxu0 %vm442_vm0, %v12204_v26  ;;  %10412 = vmatmul.mubr.msk.f32.gmra.mrb[114].mxu1 %vm442_vm0, %v12320_v46  ;;  %v12918_v53 = vmax.f32 %v675_v55, %v679_v18  ;;  %v613_v7 = vpop.f32.mrb[9].mxu0  ;;  %v905_v23 = vmax.f32 %v811_v15, 0.0  ;;  %v821_v32 = vadd.f32 %v10061_v37, %v12807_v49 }
  0xff   : > { %v826_v5 = vadd.f32 %v825_v40, %v12734_v30  ;;  %v12923_v13 = vmax.f32 %v674_v8, %v678_v22  ;;  %10414 = vmatprep.mubr.msk.f32.mxu1 %vm442_vm0, %v12325_v47  ;;  %10430 = vmatprep.mubr.msk.f32.mxu0 %vm442_vm0, %v12114_v0  ;;  %v12929_v12 = vpop.permute.xlu0 %399  ;;  %v904_v18 = vmax.f32 %v806_v20, 0.0  ;;  %v816_v46 = vadd.f32 %v815_v61, %v12817_v52 }
 0x100   : > { %15879 = vst [vmem:[#allocation16_spill] sm:$0xff] %v12929_v12  ;;  %v909_v55 = vmax.f32 %v831_v29, 0.0  ;;  %v12933_v8 = vpack.c.bf16 %v3945_v11, %v3944_v43  ;;  %v619_v30 = vadd.f32 %v10036_v24, %v12766_v36  ;;  %v614_v15 = vadd.f32 %v613_v7, %v12778_v41 }
 0x101   : > { %v908_v31 = vmax.f32 %v826_v5, 0.0  ;;  %v10067_v57 = vpop.f32.mrb[10].mxu1  ;;  %v10039_v40 = vpop.f32.mrb[10].mxu0  ;;  %v907_v20 = vmax.f32 %v821_v32, 0.0 }
 0x102   : > { %v12935_v22 = vmax.f32 %v905_v23, %v909_v55  ;;  %v841_v0 = vadd.f32 %v10067_v57, %v12821_v56  ;;  %v835_v47 = vpop.f32.mrb[11].mxu1  ;;  %10415 = vmatmul.mubr.msk.f32.gmra.mrb[116].mxu1 %vm442_vm0, %v12344_v50  ;;  %10431 = vmatmul.mubr.msk.f32.vlgmr.msra.gmra.mrb[116].mxu0 %vm442_vm0, %v12152_v14  ;;  %v623_v37 = vpop.f32.mrb[11].mxu0  ;;  %v906_v14 = vmax.f32 %v816_v46, 0.0  ;;  %v681_v7 = vmax.f32 %v619_v30, 0.0  ;;  %v4154_v46 = vld [vmem:[%s12131_s10 + $0x55] sm:$0xff] }
 0x103   : > { %v12943_v61 = vmax.f32 %v904_v18, %v908_v31  ;;  %v836_v43 = vadd.f32 %v835_v47, %v12833_v58  ;;  %10417 = vmatprep.mubr.msk.f32.mxu1 %vm442_vm0, %v12349_v51  ;;  %10433 = vmatprep.mubr.msk.f32.mxu0 %vm442_vm0, %v12174_v19  ;;  %v12951_v57 = vpop.permute.xlu1 %414  ;;  %v629_v32 = vadd.f32 %v10039_v40, %v12844_v59  ;;  %v12969_v55 = vpop.permute.xlu0 %409  ;;  %v680_v18 = vmax.f32 %v614_v15, 0.0 }
 0x104   : > { %v911_v24 = vmax.f32 %v841_v0, 0.0  ;;  %11072 = vmatpush3.bf16.msk.msra.mxu0 %vm12133_vm3, %v12780_v44  ;;  %v4155_v44 = vld [vmem:[%s12131_s10 + $0x5d] sm:$0x1]  ;;  %v624_v0 = vadd.f32 %v623_v37, %v12863_v2  ;;  %v654_v15 = vadd.f32 %v12853_v62, %v12929_v12  ;;  %v12985_v37 = vadd.f32 %v12865_v4, %v12951_v57 }
 0x105   : > { %v910_v31 = vmax.f32 %v836_v43, 0.0  ;;  %v10042_v29 = vpop.f32.mrb[12].mxu0  ;;  %v10070_v47 = vpop.f32.mrb[12].mxu1  ;;  %11081 = vmatprep.subr.msk.bf16.mxu0 %vm12133_vm3, %v12933_v8 }
 0x106   : > { %v12959_v19 = vmax.f32 %v907_v20, %v911_v24  ;;  %v639_v11 = vadd.f32 %v10042_v29, %v12782_v45  ;;  %v633_v5 = vpop.f32.mrb[13].mxu0  ;;  %v845_v23 = vpop.f32.mrb[13].mxu1  ;;  %10418 = vmatmul.mubr.msk.f32.gmra.mrb[118].mxu1 %vm442_vm0, %v12368_v54  ;;  %10434 = vmatmul.mubr.msk.f32.gmra.mrb[118].mxu0 %vm442_vm0, %v12199_v25  ;;  %v659_v25 = vadd.f32 %v12851_v60, %v12909_v17  ;;  %v682_v62 = vmax.f32 %v624_v0, 0.0 }
 0x107   : > { %v12971_v30 = vmax.f32 %v906_v14, %v910_v31  ;;  %v634_v40 = vadd.f32 %v633_v5, %v12797_v48  ;;  %10420 = vmatprep.mubr.msk.f32.mxu1 %vm442_vm0, %v12119_v1  ;;  %10436 = vmatprep.mubr.msk.f32.mxu0 %vm442_vm0, %v12211_v27  ;;  %v12987_v14 = vpack.c.bf16 %v4155_v44, %v4154_v46  ;;  %v683_v27 = vmax.f32 %v629_v32, 0.0 }
 0x108   : > { %v685_v54 = vmax.f32 %v639_v11, 0.0  ;;  %v12991_v1 = vadd.f32 %v12867_v6, %v12969_v55  ;;  %v851_v4 = vadd.f32 %v10070_v47, %v12766_v36  ;;  %v846_v6 = vadd.f32 %v845_v23, %v12778_v41 }
 0x109   : > { %v684_v43 = vmax.f32 %v634_v40, 0.0  ;;  %v10045_v20 = vpop.f32.mrb[14].mxu0  ;;  %v10073_v24 = vpop.f32.mrb[14].mxu1  ;;  %15880 = vst [vmem:[#allocation17_spill] sm:$0xff] %v12987_v14  ;;  %v689_v32 = vmax.f32 %v659_v25, 0.0  ;;  %v688_v44 = vmax.f32 %v654_v15, 0.0 }
 0x10a   : > { %v697_v31 = vmax.f32 %v681_v7, %v685_v54  ;;  %v649_v60 = vadd.f32 %v10045_v20, %v12879_v10  ;;  %v643_v29 = vpop.f32.mrb[15].mxu0  ;;  %v855_v11 = vpop.f32.mrb[15].mxu1  ;;  %10421 = vmatmul.mubr.msk.f32.gmra.mrb[120].mxu1 %vm442_vm0, %v12161_v16  ;;  %10437 = vmatmul.mubr.msk.f32.gmra.mrb[120].mxu0 %vm442_vm0, %v12238_v33  ;;  %v690_v54 = vmax.f32 %v12991_v1, 0.0  ;;  %v913_v25 = vmax.f32 %v851_v4, 0.0  ;;  %v13020_v20 = vld [vmem:[%s15784_s1] sm:$0xff] }
 0x10b   : > { %v696_v5 = vmax.f32 %v680_v18, %v684_v43  ;;  %v644_v46 = vadd.f32 %v643_v29, %v12893_v28  ;;  %10423 = vmatprep.mubr.msk.f32.mxu1 %vm442_vm0, %v12181_v21  ;;  %10439 = vmatprep.mubr.msk.f32.mxu0 %vm442_vm0, %v12243_v34  ;;  %v691_v18 = vmax.f32 %v12985_v37, 0.0  ;;  %v912_v37 = vmax.f32 %v846_v6, 0.0 }
 0x10c   : > { %v687_v7 = vmax.f32 %v649_v60, 0.0  ;;  %v701_v16 = vmax.f32 %v12899_v63, %v697_v31 }
 0x10d   : > { %v686_v33 = vmax.f32 %v644_v46, 0.0  ;;  %v10076_v0 = vpop.f32.mrb[16].mxu1  ;;  %v700_v47 = vmax.f32 %v12902_v9, %v696_v5  ;;  %v10092_v40 = vpop.f32.mrb[16].mxu0 }
 0x10e   : > { %v699_v21 = vmax.f32 %v683_v27, %v687_v7  ;;  %v871_v43 = vadd.f32 %v10076_v0, %v12782_v45  ;;  %v865_v34 = vpop.f32.mrb[17].mxu1  ;;  %10424 = vmatmul.mubr.msk.f32.gmra.mrb[122].mxu1 %vm442_vm0, %v12204_v26  ;;  %10440 = vmatmul.mubr.msk.f32.gmra.mrb[122].mxu0 %vm442_vm0, %v12267_v38  ;;  %v705_v63 = vmax.f32 %v701_v16, %v689_v32  ;;  %v1035_v23 = vpop.f32.mrb[17].mxu0  ;;  %v15881_v32 = vld [vmem:[#allocation14_spill] sm:$0xff]  ;;  %v15882_v16 = vld [vmem:[#allocation5_spill] sm:$0xff]  ;;  %v13058_v0 = vld [vmem:[%s15784_s1 + $0x10] sm:$0xff] }
 0x10f   : > { %v698_v15 = vmax.f32 %v682_v62, %v686_v33  ;;  %v866_v9 = vadd.f32 %v865_v34, %v12797_v48  ;;  %10442 = vmatprep.mubr.msk.f32.mxu0 %vm442_vm0, %v12274_v39  ;;  %10464 = vmatprep.mubr.msk.f32.mxu1 %vm442_vm0, %v13020_v20  ;;  %v704_v26 = vmax.f32 %v700_v47, %v688_v44  ;;  %v15883_v47 = vld [vmem:[#allocation9_spill] sm:$0xff] }
 0x110   : > { %v861_v38 = vadd.f32 %v10073_v24, %v12844_v59  ;;  %v917_v1 = vmax.f32 %v871_v43, 0.0  ;;  %719 = vrot.lane.b32.xlu1 %v705_v63, %s12059_s8  ;;  %710 = vst.msk [vmem:[#allocation2 + $0x8] sm:$0xff] %vm708_vm4, %v705_v63  ;;  %v703_v39 = vmax.f32 %v12918_v53, %v699_v21  ;;  %v856_v27 = vadd.f32 %v855_v11, %v12863_v2  ;;  %v13041_v53 = vld [vmem:[%s15784_s1 + $0x8] sm:$0xff] }
 0x111   : > { %v916_v31 = vmax.f32 %v866_v9, 0.0  ;;  %v10079_v60 = vpop.f32.mrb[18].mxu1  ;;  %717 = vrot.lane.b32.xlu0 %v704_v26, %s12059_s8  ;;  %709 = vst.msk [vmem:[#allocation2] sm:$0xff] %vm708_vm4, %v704_v26  ;;  %v702_v29 = vmax.f32 %v12923_v13, %v698_v15  ;;  %v13033_v24 = vadd.f32 %v10092_v40, %v12756_v35  ;;  %v10095_v62 = vpop.f32.mrb[18].mxu0  ;;  %v15884_v9 = vld [vmem:[#allocation6_spill] sm:$0xff]  ;;  %v13078_v26 = vld [vmem:[%s15784_s1 + $0x18] sm:$0xff] }
 0x112   : > { %v929_v4 = vmax.f32 %v913_v25, %v917_v1  ;;  %v881_v5 = vadd.f32 %v10079_v60, %v12879_v10  ;;  %v875_v46 = vpop.f32.mrb[19].mxu1  ;;  %10443 = vmatmul.mubr.msk.f32.gmra.mrb[124].mxu0 %vm442_vm0, %v12296_v42  ;;  %10465 = vmatmul.mubr.msk.f32.vlgmr.msra.gmra.mrb[124].mxu1 %vm442_vm0, %v13041_v53  ;;  %v707_v13 = vmax.f32 %v703_v39, %v691_v18  ;;  %v1045_v11 = vpop.f32.mrb[19].mxu0  ;;  %v915_v44 = vmax.f32 %v861_v38, 0.0  ;;  %v15888_v60 = vld [vmem:[#allocation10_spill] sm:$0xff] }
 0x113   : > { %v13045_v6 = vmax.f32 %v912_v37, %v916_v31  ;;  %v876_v7 = vadd.f32 %v875_v46, %v12893_v28  ;;  %11078 = vmatpush3.bf16.msk.msra.mxu1 %vm12133_vm3, %v15881_v32  ;;  %10445 = vmatprep.mubr.msk.f32.mxu0 %vm442_vm0, %v15882_v16  ;;  %v706_v42 = vmax.f32 %v702_v29, %v690_v54  ;;  %v914_v21 = vmax.f32 %v856_v27, 0.0  ;;  %v15886_v27 = vld [vmem:[#allocation7_spill] sm:$0xff]  ;;  %v13092_v31 = vld [vmem:[%s15784_s1 + $0x20] sm:$0xff] }
 0x114   : > { %v919_v33 = vmax.f32 %v881_v5, 0.0  ;;  %723 = vrot.lane.b32.xlu1 %v707_v13, %s12059_s8  ;;  %712 = vst.msk [vmem:[#allocation2 + $0x18] sm:$0xff] %vm708_vm4, %v707_v13  ;;  %10467 = vmatprep.mubr.msk.f32.mxu1 %vm442_vm0, %v13058_v0  ;;  %v1036_v18 = vadd.f32 %v1035_v23, %v15883_v47  ;;  %v933_v40 = vmax.f32 %v12935_v22, %v929_v4  ;;  %15885 = vst [vmem:[#allocation14_spill] sm:$0xff] %v13078_v26  ;;  %v15889_v5 = vld [vmem:[#allocation8_spill] sm:$0xff] }
 0x115   : > { %v918_v54 = vmax.f32 %v876_v7, 0.0  ;;  %v10082_v43 = vpop.f32.mrb[20].mxu1  ;;  %711 = vst.msk [vmem:[#allocation2 + $0x10] sm:$0xff] %vm708_vm4, %v706_v42  ;;  %721 = vrot.lane.b32.xlu0 %v706_v42, %s12059_s8  ;;  %v1051_v34 = vadd.f32 %v10095_v62, %v12807_v49  ;;  %v10098_v63 = vpop.f32.mrb[20].mxu0  ;;  %v932_v25 = vmax.f32 %v12943_v61, %v13045_v6  ;;  %11087 = vmatprep.subr.msk.bf16.mxu1 %vm12133_vm3, %v12987_v14  ;;  %v1135_v39 = vmax.f32 %v13033_v24, 0.0 }
 0x116   : > { %v931_v23 = vmax.f32 %v915_v44, %v919_v33  ;;  %v891_v22 = vadd.f32 %v10082_v43, %v12909_v17  ;;  %v885_v15 = vpop.f32.mrb[21].mxu1  ;;  %10446 = vmatmul.mubr.msk.f32.gmra.mrb[126].mxu0 %vm442_vm0, %v15884_v9  ;;  %10468 = vmatmul.mubr.msk.f32.gmra.mrb[126].mxu1 %vm442_vm0, %v13078_v26  ;;  %v13083_v61 = vadd.f32 %v1045_v11, %v12817_v52  ;;  %v1055_v37 = vpop.f32.mrb[21].mxu0  ;;  %v1134_v4 = vmax.f32 %v1036_v18, 0.0  ;;  %v13106_v33 = vld [vmem:[%s15784_s1 + $0x28] sm:$0xff] }
 0x117   : > { %v930_v38 = vmax.f32 %v914_v21, %v918_v54  ;;  %v886_v1 = vadd.f32 %v885_v15, %v12929_v12  ;;  %10448 = vmatprep.mubr.msk.f32.mxu0 %vm442_vm0, %v15886_v27  ;;  %15887 = vst [vmem:[#allocation5_spill] sm:$0xff] %v13092_v31  ;;  %10470 = vmatprep.mubr.msk.f32.mxu1 %vm442_vm0, %v13092_v31  ;;  %v1137_v6 = vmax.f32 %v1051_v34, 0.0 }
 0x118   : > { %v1061_v29 = vadd.f32 %v10098_v63, %v15888_v60  ;;  %v921_v62 = vmax.f32 %v891_v22, 0.0  ;;  %v1056_v46 = vadd.f32 %v1055_v37, %v15889_v5  ;;  %v935_v13 = vmax.f32 %v12959_v19, %v931_v23 }
 0x119   : > { %v920_v24 = vmax.f32 %v886_v1, 0.0  ;;  %v10085_v11 = vpop.f32.mrb[22].mxu1  ;;  %v10101_v32 = vpop.f32.mrb[22].mxu0  ;;  %v934_v16 = vmax.f32 %v12971_v30, %v930_v38  ;;  %v1136_v43 = vmax.f32 %v13083_v61, 0.0  ;;  %v13141_v38 = vld [vmem:[%s15784_s1 + $0x38] sm:$0xff] }
 0x11a   : > { %v1139_v7 = vmax.f32 %v1061_v29, 0.0  ;;  %v901_v42 = vadd.f32 %v10085_v11, %v12951_v57  ;;  %v895_v44 = vpop.f32.mrb[23].mxu1  ;;  %10449 = vmatmul.mubr.msk.f32.gmra.mrb[128].mxu0 %vm442_vm0, %v12344_v50  ;;  %10471 = vmatmul.mubr.msk.f32.gmra.mrb[128].mxu1 %vm442_vm0, %v13106_v33  ;;  %v937_v19 = vmax.f32 %v933_v40, %v921_v62  ;;  %v1138_v18 = vmax.f32 %v1056_v46, 0.0  ;;  %v1065_v54 = vpop.f32.mrb[23].mxu0  ;;  %v13120_v50 = vld [vmem:[%s15784_s1 + $0x30] sm:$0xff]  ;;  %v13150_v62 = vld [vmem:[%s15784_s1 + $0x80] sm:$0xff] }
 0x11b   : > { %v1071_v21 = vadd.f32 %v10101_v32, %v12821_v56  ;;  %v896_v30 = vadd.f32 %v895_v44, %v12969_v55  ;;  %10451 = vmatprep.mubr.msk.f32.mxu0 %vm442_vm0, %v12349_v51  ;;  %10473 = vmatprep.mubr.msk.f32.mxu1 %vm442_vm0, %v13120_v50  ;;  %v936_v40 = vmax.f32 %v932_v25, %v920_v24  ;;  %v13134_v25 = vld [vmem:[%s15784_s1 + $0x78] sm:$0xff] }
 0x11c   : > { %v13113_v34 = vmax.f32 %v1135_v39, %v1139_v7  ;;  %v923_v63 = vmax.f32 %v901_v42, 0.0  ;;  %941 = vst.msk [vmem:[#allocation2 + $0x28] sm:$0xff] %vm708_vm4, %v937_v19  ;;  %950 = vrot.lane.b32.xlu1 %v937_v19, %s12059_s8  ;;  %v13126_v23 = vmax.f32 %v1134_v4, %v1138_v18  ;;  %v1066_v15 = vadd.f32 %v1065_v54, %v12833_v58  ;;  %v13157_v4 = vld [vmem:[%s15784_s1 + $0x40] sm:$0xff]  ;;  %v13179_v42 = vld [vmem:[%s15784_s1 + $0x48] sm:$0xff] }
 0x11d   : > { %v1141_v22 = vmax.f32 %v1071_v21, 0.0  ;;  %v922_v51 = vmax.f32 %v896_v30, 0.0  ;;  %v10126_v9 = vpop.f32.mrb[24].mxu1  ;;  %940 = vst.msk [vmem:[#allocation2 + $0x20] sm:$0xff] %vm708_vm4, %v936_v40  ;;  %948 = vrot.lane.b32.xlu0 %v936_v40, %s12059_s8  ;;  %v10104_v61 = vpop.f32.mrb[24].mxu0  ;;  %15890 = vst [vmem:[#allocation6_spill] sm:$0xff] %v13179_v42 }
 0x11e   : > { %v1265_v37 = vpop.f32.mrb[25].mxu1  ;;  %10452 = vmatmul.mubr.msk.f32.gmra.mrb[130].mxu0 %vm442_vm0, %v13134_v25  ;;  %10474 = vmatmul.mubr.msk.f32.gmra.mrb[130].mxu1 %vm442_vm0, %v13141_v38  ;;  %v939_v39 = vmax.f32 %v935_v13, %v923_v63  ;;  %v1140_v27 = vmax.f32 %v1066_v15, 0.0  ;;  %v1075_v29 = vpop.f32.mrb[25].mxu0  ;;  %v1081_v7 = vadd.f32 %v10104_v61, %v12766_v36  ;;  %v4364_v19 = vld [vmem:[%s12131_s10 + $0x5a] sm:$0xff]  ;;  %v4365_v18 = vld [vmem:[%s12131_s10 + $0x62] sm:$0x1] }
 0x11f   : > { %v13145_v1 = vmax.f32 %v1137_v6, %v1141_v22  ;;  %10454 = vmatprep.mubr.msk.f32.mxu0 %vm442_vm0, %v13150_v62  ;;  %10476 = vmatprep.mubr.msk.f32.mxu1 %vm442_vm0, %v13157_v4  ;;  %v938_v46 = vmax.f32 %v934_v16, %v922_v51  ;;  %v1271_v6 = vadd.f32 %v10126_v9, %v12756_v35  ;;  %v13172_v16 = vld [vmem:[%s15784_s1 + $0x88] sm:$0xff]  ;;  %v13190_v30 = vld [vmem:[%s15784_s1 + $0x90] sm:$0xff] }
 0x120   : > { %943 = vst.msk [vmem:[#allocation2 + $0x38] sm:$0xff] %vm708_vm4, %v939_v39  ;;  %954 = vrot.lane.b32.xlu1 %v939_v39, %s12059_s8  ;;  %v13163_v13 = vmax.f32 %v1136_v43, %v1140_v27  ;;  %v1266_v21 = vadd.f32 %v1265_v37, %v15883_v47  ;;  %v1076_v54 = vadd.f32 %v1075_v29, %v12778_v41  ;;  %v13197_v43 = vld [vmem:[%s15784_s1 + $0x50] sm:$0xff]  ;;  %v1143_v61 = vmax.f32 %v1081_v7, 0.0 }
 0x121   : > { %v10129_v24 = vpop.f32.mrb[26].mxu1  ;;  %942 = vst.msk [vmem:[#allocation2 + $0x30] sm:$0xff] %vm708_vm4, %v938_v46  ;;  %952 = vrot.lane.b32.xlu0 %v938_v46, %s12059_s8  ;;  %v10107_v11 = vpop.f32.mrb[26].mxu0  ;;  %15891 = vst [vmem:[#allocation7_spill] sm:$0xff] %v13197_v43  ;;  %v13205_v51 = vpack.c.bf16 %v4365_v18, %v4364_v19  ;;  %v1365_v9 = vmax.f32 %v1271_v6, 0.0  ;;  %v13212_v46 = vld [vmem:[%s15784_s1 + $0x98] sm:$0xff] }
 0x122   : > { %v1275_v32 = vpop.f32.mrb[27].mxu1  ;;  %10455 = vmatmul.mubr.msk.f32.gmra.mrb[132].mxu0 %vm442_vm0, %v13172_v16  ;;  %10477 = vmatmul.mubr.msk.f32.gmra.mrb[132].mxu1 %vm442_vm0, %v13179_v42  ;;  %v1085_v44 = vpop.f32.mrb[27].mxu0  ;;  %v1091_v40 = vadd.f32 %v10107_v11, %v12844_v59  ;;  %v13219_v11 = vld [vmem:[%s15784_s1 + $0x58] sm:$0xff]  ;;  %v1364_v6 = vmax.f32 %v1266_v21, 0.0  ;;  %v1142_v7 = vmax.f32 %v1076_v54, 0.0  ;;  %v13228_v18 = vld [vmem:[%s15784_s1 + $0x60] sm:$0xff] }
 0x123   : > { %10457 = vmatprep.mubr.msk.f32.mxu0 %vm442_vm0, %v13190_v30  ;;  %10479 = vmatprep.mubr.msk.f32.mxu1 %vm442_vm0, %v13197_v43  ;;  %v13203_v63 = vadd.f32 %v1085_v44, %v12863_v2  ;;  %15892 = vst [vmem:[#allocation18_spill] sm:$0xff] %v13205_v51  ;;  %15893 = vst [vmem:[#allocation19_spill] sm:$0xff] %v13219_v11  ;;  %v1276_v21 = vadd.f32 %v1275_v32, %v12817_v52  ;;  %v13244_v32 = vld [vmem:[%s15784_s1 + $0x68] sm:$0xff] }
 0x124   : > { %15894 = vst [vmem:[#allocation20_spill] sm:$0xff] %v13228_v18 }
 0x125   : > { %v10110_v22 = vpop.f32.mrb[28].mxu0  ;;  %v10132_v15 = vpop.f32.mrb[28].mxu1 }
 0x126   : > { %v1101_v37 = vadd.f32 %v10110_v22, %v12782_v45  ;;  %v1291_v39 = vadd.f32 %v10132_v15, %v15888_v60  ;;  %v1095_v27 = vpop.f32.mrb[29].mxu0  ;;  %v1285_v29 = vpop.f32.mrb[29].mxu1  ;;  %10458 = vmatmul.mubr.msk.f32.gmra.mrb[134].mxu0 %vm442_vm0, %v13212_v46  ;;  %10480 = vmatmul.mubr.msk.f32.gmra.mrb[134].mxu1 %vm442_vm0, %v13219_v11  ;;  %v1281_v22 = vadd.f32 %v10129_v24, %v12807_v49 }
 0x127   : > { %v1096_v44 = vadd.f32 %v1095_v27, %v12797_v48  ;;  %v1286_v19 = vadd.f32 %v1285_v29, %v15889_v5  ;;  %10482 = vmatprep.mubr.msk.f32.mxu1 %vm442_vm0, %v13228_v18  ;;  %10498 = vmatprep.mubr.msk.f32.mxu0 %vm442_vm0, %v13020_v20  ;;  %v1145_v27 = vmax.f32 %v1091_v40, 0.0  ;;  %v1144_v29 = vmax.f32 %v13203_v63, 0.0 }
 0x128   : > { %v1147_v54 = vmax.f32 %v1101_v37, 0.0  ;;  %v1369_v15 = vmax.f32 %v1291_v39, 0.0  ;;  %v13257_v39 = vld [vmem:[%s15784_s1 + $0x70] sm:$0xff] }
 0x129   : > { %v1146_v5 = vmax.f32 %v1096_v44, 0.0  ;;  %v1368_v11 = vmax.f32 %v1286_v19, 0.0  ;;  %v10113_v60 = vpop.f32.mrb[30].mxu0  ;;  %v10135_v43 = vpop.f32.mrb[30].mxu1 }
 0x12a   : > { %v1159_v47 = vmax.f32 %v1143_v61, %v1147_v54  ;;  %v13237_v14 = vmax.f32 %v1365_v9, %v1369_v15  ;;  %v1111_v18 = vadd.f32 %v10113_v60, %v12879_v10  ;;  %v1301_v42 = vadd.f32 %v10135_v43, %v12821_v56  ;;  %v1105_v35 = vpop.f32.mrb[31].mxu0  ;;  %v1295_v24 = vpop.f32.mrb[31].mxu1  ;;  %10483 = vmatmul.mubr.msk.f32.gmra.mrb[136].mxu1 %vm442_vm0, %v13244_v32 }
 0x12b   : > { %v1158_v40 = vmax.f32 %v1142_v7, %v1146_v5  ;;  %v13248_v63 = vmax.f32 %v1364_v6, %v1368_v11  ;;  %v1106_v9 = vadd.f32 %v1105_v35, %v12893_v28  ;;  %v1296_v61 = vadd.f32 %v1295_v24, %v12833_v58  ;;  %10499 = vmatmul.mubr.msk.f32.vlgmr.msra.gmra.mrb[136].mxu0 %vm442_vm0, %v13041_v53 }
 0x12c   : > { %v1367_v60 = vmax.f32 %v1281_v22, 0.0  ;;  %v1149_v43 = vmax.f32 %v1111_v18, 0.0  ;;  %v1371_v37 = vmax.f32 %v1301_v42, 0.0  ;;  %10485 = vmatprep.mubr.msk.f32.mxu1 %vm442_vm0, %v13257_v39  ;;  %10501 = vmatprep.mubr.msk.f32.mxu0 %vm442_vm0, %v13058_v0  ;;  %v1163_v35 = vmax.f32 %v13113_v34, %v1159_v47 }
 0x12d   : > { %v1366_v5 = vmax.f32 %v1276_v21, 0.0  ;;  %v1148_v11 = vmax.f32 %v1106_v9, 0.0  ;;  %v1370_v6 = vmax.f32 %v1296_v61, 0.0  ;;  %v10116_v7 = vpop.f32.mrb[32].mxu0  ;;  %v10138_v44 = vpop.f32.mrb[32].mxu1  ;;  %v1162_v42 = vmax.f32 %v13126_v23, %v1158_v40  ;;  %11084 = vmatpush3.bf16.msk.msra.mxu0 %vm12133_vm3, %v12933_v8 }
 0x12e   : > { %v1161_v19 = vmax.f32 %v1145_v27, %v1149_v43  ;;  %v13268_v18 = vmax.f32 %v1367_v60, %v1371_v37  ;;  %v1121_v22 = vadd.f32 %v10116_v7, %v12909_v17  ;;  %v1115_v54 = vpop.f32.mrb[33].mxu0  ;;  %v1305_v15 = vpop.f32.mrb[33].mxu1  ;;  %10486 = vmatmul.mubr.msk.f32.gmra.mrb[138].mxu1 %vm442_vm0, %v13134_v25  ;;  %11093 = vmatprep.subr.msk.bf16.mxu0 %vm12133_vm3, %v13205_v51  ;;  %v15902_v51 = vld [vmem:[#allocation19_spill] sm:$0xff] }
 0x12f   : > { %v1160_v47 = vmax.f32 %v1144_v29, %v1148_v11  ;;  %v13273_v34 = vmax.f32 %v1366_v5, %v1370_v6  ;;  %v1116_v21 = vadd.f32 %v1115_v54, %v12929_v12  ;;  %10502 = vmatmul.mubr.msk.f32.gmra.mrb[138].mxu0 %vm442_vm0, %v13078_v26  ;;  %10488 = vmatprep.mubr.msk.f32.mxu1 %vm442_vm0, %v13150_v62  ;;  %v4574_v54 = vld [vmem:[%s12131_s10 + $0x5f] sm:$0xff] }
 0x130   : > { %v1151_v23 = vmax.f32 %v1121_v22, 0.0  ;;  %10504 = vmatprep.mubr.msk.f32.mxu0 %vm442_vm0, %v13092_v31  ;;  %v1165_v8 = vmax.f32 %v13145_v1, %v1161_v19 }
 0x131   : > { %v1150_v27 = vmax.f32 %v1116_v21, 0.0  ;;  %v10119_v24 = vpop.f32.mrb[34].mxu0  ;;  %v10141_v40 = vpop.f32.mrb[34].mxu1  ;;  %v1164_v29 = vmax.f32 %v13163_v13, %v1160_v47  ;;  %v1311_v13 = vadd.f32 %v10138_v44, %v12766_v36  ;;  %v4575_v47 = vld [vmem:[%s12131_s10 + $0x67] sm:$0x1] }
 0x132   : > { %v1131_v9 = vadd.f32 %v10119_v24, %v12951_v57  ;;  %v1125_v61 = vpop.f32.mrb[35].mxu0  ;;  %v1315_v60 = vpop.f32.mrb[35].mxu1  ;;  %10489 = vmatmul.mubr.msk.f32.gmra.mrb[140].mxu1 %vm442_vm0, %v13172_v16  ;;  %v1167_v43 = vmax.f32 %v1163_v35, %v1151_v23  ;;  %v1306_v35 = vadd.f32 %v1305_v15, %v12778_v41 }
 0x133   : > { %v1126_v37 = vadd.f32 %v1125_v61, %v12969_v55  ;;  %10505 = vmatmul.mubr.msk.f32.gmra.mrb[140].mxu0 %vm442_vm0, %v13106_v33  ;;  %10491 = vmatprep.mubr.msk.f32.mxu1 %vm442_vm0, %v13190_v30  ;;  %v1166_v1 = vmax.f32 %v1162_v42, %v1150_v27  ;;  %v1373_v23 = vmax.f32 %v1311_v13, 0.0  ;;  %v1321_v27 = vadd.f32 %v10141_v40, %v12844_v59 }
 0x134   : > { %v1153_v5 = vmax.f32 %v1131_v9, 0.0  ;;  %1180 = vrot.lane.b32.xlu1 %v1167_v43, %s12059_s8  ;;  %1171 = vst.msk [vmem:[#allocation2 + $0x48] sm:$0xff] %vm708_vm4, %v1167_v43  ;;  %10507 = vmatprep.mubr.msk.f32.mxu0 %vm442_vm0, %v13120_v50  ;;  %v1316_v9 = vadd.f32 %v1315_v60, %v12863_v2 }
 0x135   : > { %v1152_v11 = vmax.f32 %v1126_v37, 0.0  ;;  %v10144_v6 = vpop.f32.mrb[36].mxu1  ;;  %1170 = vst.msk [vmem:[#allocation2 + $0x40] sm:$0xff] %vm708_vm4, %v1166_v1  ;;  %1178 = vrot.lane.b32.xlu0 %v1166_v1, %s12059_s8  ;;  %v10160_v7 = vpop.f32.mrb[36].mxu0  ;;  %v13321_v37 = vpack.c.bf16 %v4575_v47, %v4574_v54  ;;  %v1375_v47 = vmax.f32 %v1321_v27, 0.0 }
 0x136   : > { %v1331_v44 = vadd.f32 %v10144_v6, %v12782_v45  ;;  %v1325_v42 = vpop.f32.mrb[37].mxu1  ;;  %10492 = vmatmul.mubr.msk.f32.gmra.mrb[142].mxu1 %vm442_vm0, %v13212_v46  ;;  %v1169_v19 = vmax.f32 %v1165_v8, %v1153_v5  ;;  %v1495_v22 = vpop.f32.mrb[37].mxu0  ;;  %v1372_v8 = vmax.f32 %v1306_v35, 0.0  ;;  %v15896_v5 = vld [vmem:[#allocation11_spill] sm:$0xff] }
 0x137   : > { %v1326_v21 = vadd.f32 %v1325_v42, %v12797_v48  ;;  %10508 = vmatmul.mubr.msk.f32.gmra.mrb[142].mxu0 %vm442_vm0, %v13141_v38  ;;  %10532 = vmatprep.mubr.msk.f32.mxu1 %vm442_vm0, %v13020_v20  ;;  %v1168_v15 = vmax.f32 %v1164_v29, %v1152_v11  ;;  %15895 = vst [vmem:[#allocation21_spill] sm:$0xff] %v13321_v37  ;;  %v15898_v42 = vld [vmem:[#allocation17_spill] sm:$0xff] }
 0x138   : > { %v1377_v24 = vmax.f32 %v1331_v44, 0.0  ;;  %1184 = vrot.lane.b32.xlu1 %v1169_v19, %s12059_s8  ;;  %1173 = vst.msk [vmem:[#allocation2 + $0x58] sm:$0xff] %vm708_vm4, %v1169_v19  ;;  %10510 = vmatprep.mubr.msk.f32.mxu0 %vm442_vm0, %v13157_v4  ;;  %v1501_v35 = vadd.f32 %v10160_v7, %v15896_v5  ;;  %v15897_v44 = vld [vmem:[#allocation6_spill] sm:$0xff]  ;;  %v15899_v19 = vld [vmem:[#allocation9_spill] sm:$0xff] }
 0x139   : > { %v1376_v61 = vmax.f32 %v1326_v21, 0.0  ;;  %v10147_v43 = vpop.f32.mrb[38].mxu1  ;;  %1172 = vst.msk [vmem:[#allocation2 + $0x50] sm:$0xff] %vm708_vm4, %v1168_v15  ;;  %1182 = vrot.lane.b32.xlu0 %v1168_v15, %s12059_s8  ;;  %v10163_v29 = vpop.f32.mrb[38].mxu0  ;;  %v1496_v54 = vadd.f32 %v1495_v22, %v15899_v19  ;;  %v15900_v15 = vld [vmem:[#allocation7_spill] sm:$0xff] }
 0x13a   : > { %v1389_v40 = vmax.f32 %v1373_v23, %v1377_v24  ;;  %v1341_v1 = vadd.f32 %v10147_v43, %v12879_v10  ;;  %v1335_v13 = vpop.f32.mrb[39].mxu1  ;;  %10533 = vmatmul.mubr.msk.f32.vlgmr.msra.gmra.mrb[144].mxu1 %vm442_vm0, %v13041_v53  ;;  %v1505_v11 = vpop.f32.mrb[39].mxu0  ;;  %v1374_v23 = vmax.f32 %v1316_v9, 0.0  ;;  %v15901_v9 = vld [vmem:[#allocation10_spill] sm:$0xff] }
 0x13b   : > { %v1388_v60 = vmax.f32 %v1372_v8, %v1376_v61  ;;  %v1336_v6 = vadd.f32 %v1335_v13, %v12893_v28  ;;  %10511 = vmatmul.mubr.msk.f32.gmra.mrb[144].mxu0 %vm442_vm0, %v15897_v44  ;;  %11090 = vmatpush3.bf16.msk.msra.mxu1 %vm12133_vm3, %v15898_v42  ;;  %v1511_v61 = vadd.f32 %v10163_v29, %v12807_v49 }
 0x13c   : > { %v1379_v21 = vmax.f32 %v1341_v1, 0.0  ;;  %10513 = vmatprep.mubr.msk.f32.mxu0 %vm442_vm0, %v15900_v15  ;;  %10535 = vmatprep.mubr.msk.f32.mxu1 %vm442_vm0, %v13058_v0  ;;  %v1393_v7 = vmax.f32 %v13237_v14, %v1389_v40  ;;  %v1595_v14 = vmax.f32 %v1501_v35, 0.0  ;;  %v1506_v35 = vadd.f32 %v1505_v11, %v12817_v52 }
 0x13d   : > { %v1378_v24 = vmax.f32 %v1336_v6, 0.0  ;;  %v10150_v8 = vpop.f32.mrb[40].mxu1  ;;  %v10166_v43 = vpop.f32.mrb[40].mxu0  ;;  %v1392_v13 = vmax.f32 %v13248_v63, %v1388_v60  ;;  %11099 = vmatprep.subr.msk.bf16.mxu1 %vm12133_vm3, %v13321_v37  ;;  %v1594_v63 = vmax.f32 %v1496_v54, 0.0  ;;  %v15903_v60 = vld [vmem:[#allocation8_spill] sm:$0xff]  ;;  %v1597_v37 = vmax.f32 %v1511_v61, 0.0 }
 0x13e   : > { %v1391_v22 = vmax.f32 %v1375_v47, %v1379_v21  ;;  %v1351_v27 = vadd.f32 %v10150_v8, %v12909_v17  ;;  %v1345_v1 = vpop.f32.mrb[41].mxu1  ;;  %10536 = vmatmul.mubr.msk.f32.gmra.mrb[146].mxu1 %vm442_vm0, %v13078_v26  ;;  %v1521_v40 = vadd.f32 %v10166_v43, %v15901_v9  ;;  %v1515_v6 = vpop.f32.mrb[41].mxu0  ;;  %v15904_v8 = vld [vmem:[#allocation20_spill] sm:$0xff] }
 0x13f   : > { %v1390_v42 = vmax.f32 %v1374_v23, %v1378_v24  ;;  %v1346_v29 = vadd.f32 %v1345_v1, %v12929_v12  ;;  %10514 = vmatmul.mubr.msk.f32.gmra.mrb[146].mxu0 %vm442_vm0, %v15902_v51  ;;  %10538 = vmatprep.mubr.msk.f32.mxu1 %vm442_vm0, %v13092_v31  ;;  %v1516_v47 = vadd.f32 %v1515_v6, %v15903_v60 }
 0x140   : > { %v1381_v21 = vmax.f32 %v1351_v27, 0.0  ;;  %10516 = vmatprep.mubr.msk.f32.mxu0 %vm442_vm0, %v15904_v8  ;;  %v1599_v43 = vmax.f32 %v1521_v40, 0.0  ;;  %v1395_v23 = vmax.f32 %v13268_v18, %v1391_v22 }
 0x141   : > { %v1380_v24 = vmax.f32 %v1346_v29, 0.0  ;;  %v10153_v1 = vpop.f32.mrb[42].mxu1  ;;  %v1598_v26 = vmax.f32 %v1516_v47, 0.0  ;;  %v10169_v12 = vpop.f32.mrb[42].mxu0  ;;  %v1394_v54 = vmax.f32 %v13273_v34, %v1390_v42  ;;  %v1596_v42 = vmax.f32 %v1506_v35, 0.0 }
 0x142   : > { %v1361_v31 = vadd.f32 %v10153_v1, %v12951_v57  ;;  %v1355_v17 = vpop.f32.mrb[43].mxu1  ;;  %10539 = vmatmul.mubr.msk.f32.gmra.mrb[148].mxu1 %vm442_vm0, %v13106_v33  ;;  %v13362_v27 = vmax.f32 %v1595_v14, %v1599_v43  ;;  %v1397_v6 = vmax.f32 %v1393_v7, %v1381_v21  ;;  %v1531_v11 = vadd.f32 %v10169_v12, %v12821_v56  ;;  %v1525_v40 = vpop.f32.mrb[43].mxu0 }
 0x143   : > { %v1356_v18 = vadd.f32 %v1355_v17, %v12969_v55  ;;  %10517 = vmatmul.mubr.msk.f32.gmra.mrb[148].mxu0 %vm442_vm0, %v13244_v32  ;;  %v13368_v61 = vmax.f32 %v1594_v63, %v1598_v26  ;;  %10541 = vmatprep.mubr.msk.f32.mxu1 %vm442_vm0, %v13120_v50  ;;  %v1396_v34 = vmax.f32 %v1392_v13, %v1380_v24 }
 0x144   : > { %v1383_v22 = vmax.f32 %v1361_v31, 0.0  ;;  %1401 = vst.msk [vmem:[#allocation2 + $0x68] sm:$0xff] %vm708_vm4, %v1397_v6  ;;  %1410 = vrot.lane.b32.xlu1 %v1397_v6, %s12059_s8  ;;  %10519 = vmatprep.mubr.msk.f32.mxu0 %vm442_vm0, %v13257_v39  ;;  %v1601_v12 = vmax.f32 %v1531_v11, 0.0  ;;  %v1526_v17 = vadd.f32 %v1525_v40, %v12833_v58  ;;  %v421_v11 = vld [vmem:[%s15787_s4] sm:$0xff] }
 0x145   : > { %v1382_v7 = vmax.f32 %v1356_v18, 0.0  ;;  %v10194_v14 = vpop.f32.mrb[44].mxu1  ;;  %1400 = vst.msk [vmem:[#allocation2 + $0x60] sm:$0xff] %vm708_vm4, %v1396_v34  ;;  %1408 = vrot.lane.b32.xlu0 %v1396_v34, %s12059_s8  ;;  %v10172_v26 = vpop.f32.mrb[44].mxu0  ;;  %v4784_v40 = vld [vmem:[%s12131_s10 + $0x64] sm:$0xff] }
 0x146   : > { %v1705_v13 = vpop.f32.mrb[45].mxu1  ;;  %10542 = vmatmul.mubr.msk.f32.gmra.mrb[150].mxu1 %vm442_vm0, %v13141_v38  ;;  %v13381_v31 = vmax.f32 %v1597_v37, %v1601_v12  ;;  %v1399_v29 = vmax.f32 %v1395_v23, %v1383_v22  ;;  %v1600_v63 = vmax.f32 %v1526_v17, 0.0  ;;  %v1535_v47 = vpop.f32.mrb[45].mxu0  ;;  %v422_v23 = vld [vmem:[%s15787_s4 + $0x8] sm:$0xff]  ;;  %v1711_v24 = vadd.f32 %v10194_v14, %v15896_v5 }
 0x147   : > { %10520 = vmatmul.mubr.msk.f32.gmra.mrb[150].mxu0 %vm442_vm0, %v13134_v25  ;;  %10544 = vmatprep.mubr.msk.f32.mxu1 %vm442_vm0, %v13157_v4  ;;  %v1398_v21 = vmax.f32 %v1394_v54, %v1382_v7  ;;  %v1541_v1 = vadd.f32 %v10172_v26, %v12766_v36  ;;  %v4785_v18 = vld [vmem:[%s12131_s10 + $0x6c] sm:$0x1]  ;;  %v1706_v34 = vadd.f32 %v1705_v13, %v15899_v19 }
 0x148   : > { %1403 = vst.msk [vmem:[#allocation2 + $0x78] sm:$0xff] %vm708_vm4, %v1399_v29  ;;  %1414 = vrot.lane.b32.xlu1 %v1399_v29, %s12059_s8  ;;  %v13389_v35 = vmax.f32 %v1596_v42, %v1600_v63  ;;  %10522 = vmatprep.mubr.msk.f32.mxu0 %vm442_vm0, %v13150_v62  ;;  %v1536_v22 = vadd.f32 %v1535_v47, %v12778_v41  ;;  %v1805_v26 = vmax.f32 %v1711_v24, 0.0 }
 0x149   : > { %v10197_v37 = vpop.f32.mrb[46].mxu1  ;;  %1402 = vst.msk [vmem:[#allocation2 + $0x70] sm:$0xff] %vm708_vm4, %v1398_v21  ;;  %1412 = vrot.lane.b32.xlu0 %v1398_v21, %s12059_s8  ;;  %v10175_v43 = vpop.f32.mrb[46].mxu0  ;;  %v13417_v14 = vpack.c.bf16 %v4785_v18, %v4784_v40  ;;  %v1603_v13 = vmax.f32 %v1541_v1, 0.0 }
 0x14a   : > { %v1715_v54 = vpop.f32.mrb[47].mxu1  ;;  %10545 = vmatmul.mubr.msk.f32.gmra.mrb[152].mxu1 %vm442_vm0, %v15897_v44  ;;  %v1545_v6 = vpop.f32.mrb[47].mxu0  ;;  %v1551_v42 = vadd.f32 %v10175_v43, %v12844_v59  ;;  %v1602_v43 = vmax.f32 %v1536_v22, 0.0  ;;  %v1721_v24 = vadd.f32 %v10197_v37, %v12807_v49 }
 0x14b   : > { %10523 = vmatmul.mubr.msk.f32.gmra.mrb[152].mxu0 %vm442_vm0, %v13172_v16  ;;  %10547 = vmatprep.mubr.msk.f32.mxu1 %vm442_vm0, %v15900_v15  ;;  %v1546_v12 = vadd.f32 %v1545_v6, %v12863_v2  ;;  %v1716_v1 = vadd.f32 %v1715_v54, %v12817_v52 }
 0x14c   : > { %430 = vperm.xlu1 %11976, %v422_v23   ;;  %10525 = vmatprep.mubr.msk.f32.mxu0 %vm442_vm0, %v13190_v30  ;;  %v1804_v23 = vmax.f32 %v1706_v34, 0.0  ;;  %v1605_v18 = vmax.f32 %v1551_v42, 0.0 }
 0x14d   : > { %v10178_v17 = vpop.f32.mrb[48].mxu0  ;;  %v10200_v7 = vpop.f32.mrb[48].mxu1  ;;  %425 = vperm.xlu0 %11975, %v421_v11   ;;  %v1604_v34 = vmax.f32 %v1546_v12, 0.0  ;;  %v1807_v12 = vmax.f32 %v1721_v24, 0.0 }
 0x14e   : > { %v1561_v29 = vadd.f32 %v10178_v17, %v12782_v45  ;;  %v1731_v63 = vadd.f32 %v10200_v7, %v15901_v9  ;;  %v1555_v47 = vpop.f32.mrb[49].mxu0  ;;  %v1725_v21 = vpop.f32.mrb[49].mxu1  ;;  %10548 = vmatmul.mubr.msk.f32.gmra.mrb[154].mxu1 %vm442_vm0, %v15902_v51 }
 0x14f   : > { %v1556_v6 = vadd.f32 %v1555_v47, %v12797_v48  ;;  %v1726_v15 = vadd.f32 %v1725_v21, %v15903_v60  ;;  %10526 = vmatmul.mubr.msk.f32.gmra.mrb[154].mxu0 %vm442_vm0, %v13212_v46  ;;  %10550 = vmatprep.mubr.msk.f32.mxu1 %vm442_vm0, %v15904_v8 }
 0x150   : > { %v1607_v11 = vmax.f32 %v1561_v29, 0.0  ;;  %v1809_v40 = vmax.f32 %v1731_v63, 0.0  ;;  %10566 = vmatprep.mubr.msk.f32.mxu0 %vm442_vm0, %v13020_v20 }
 0x151   : > { %v1606_v22 = vmax.f32 %v1556_v6, 0.0  ;;  %v1808_v17 = vmax.f32 %v1726_v15, 0.0  ;;  %v10181_v7 = vpop.f32.mrb[50].mxu0  ;;  %v10203_v47 = vpop.f32.mrb[50].mxu1 }
 0x152   : > { %v1619_v21 = vmax.f32 %v1603_v13, %v1607_v11  ;;  %v13433_v60 = vmax.f32 %v1805_v26, %v1809_v40  ;;  %v1571_v8 = vadd.f32 %v10181_v7, %v12879_v10  ;;  %v1741_v37 = vadd.f32 %v10203_v47, %v12821_v56  ;;  %v1565_v51 = vpop.f32.mrb[51].mxu0  ;;  %v1735_v54 = vpop.f32.mrb[51].mxu1  ;;  %10551 = vmatmul.mubr.msk.f32.gmra.mrb[156].mxu1 %vm442_vm0, %v13244_v32 }
 0x153   : > { %v1618_v29 = vmax.f32 %v1602_v43, %v1606_v22  ;;  %v13439_v63 = vmax.f32 %v1804_v23, %v1808_v17  ;;  %v1566_v42 = vadd.f32 %v1565_v51, %v12893_v28  ;;  %v1736_v15 = vadd.f32 %v1735_v54, %v12833_v58  ;;  %10567 = vmatmul.mubr.msk.f32.vlgmr.msra.gmra.mrb[156].mxu0 %vm442_vm0, %v13041_v53  ;;  %v15905_v17 = vld [vmem:[#allocation18_spill] sm:$0xff]  ;;  %v15907_v54 = vld [vmem:[#allocation16_spill] sm:$0xff] }
 0x154   : > { %v1609_v26 = vmax.f32 %v1571_v8, 0.0  ;;  %v1811_v13 = vmax.f32 %v1741_v37, 0.0  ;;  %v1623_v6 = vmax.f32 %v13362_v27, %v1619_v21  ;;  %10553 = vmatprep.mubr.msk.f32.mxu1 %vm442_vm0, %v13257_v39  ;;  %10569 = vmatprep.mubr.msk.f32.mxu0 %vm442_vm0, %v13058_v0  ;;  %v1806_v23 = vmax.f32 %v1716_v1, 0.0  ;;  %v15906_v27 = vld [vmem:[#allocation15_spill] sm:$0xff] }
 0x155   : > { %v1608_v43 = vmax.f32 %v1566_v42, 0.0  ;;  %v1810_v11 = vmax.f32 %v1736_v15, 0.0  ;;  %v10184_v51 = vpop.f32.mrb[52].mxu0  ;;  %v10206_v40 = vpop.f32.mrb[52].mxu1  ;;  %v1622_v22 = vmax.f32 %v13368_v61, %v1618_v29  ;;  %11096 = vmatpush3.bf16.msk.msra.mxu0 %vm12133_vm3, %v15905_v17  ;;  %v15908_v61 = vld [vmem:[#allocation14_spill] sm:$0xff]  ;;  %v15909_v15 = vld [vmem:[#allocation5_spill] sm:$0xff] }
 0x156   : > { %v1621_v8 = vmax.f32 %v1605_v18, %v1609_v26  ;;  %v13454_v24 = vmax.f32 %v1807_v12, %v1811_v13  ;;  %v1581_v7 = vadd.f32 %v10184_v51, %v15906_v27  ;;  %v1575_v47 = vpop.f32.mrb[53].mxu0  ;;  %v1745_v21 = vpop.f32.mrb[53].mxu1  ;;  %10554 = vmatmul.mubr.msk.f32.gmra.mrb[158].mxu1 %vm442_vm0, %v13134_v25  ;;  %11105 = vmatprep.subr.msk.bf16.mxu0 %vm12133_vm3, %v13417_v14 }
 0x157   : > { %v1620_v1 = vmax.f32 %v1604_v34, %v1608_v43  ;;  %v13459_v37 = vmax.f32 %v1806_v23, %v1810_v11  ;;  %v1576_v42 = vadd.f32 %v1575_v47, %v15907_v54  ;;  %10570 = vmatmul.mubr.msk.f32.gmra.mrb[158].mxu0 %vm442_vm0, %v15908_v61  ;;  %10556 = vmatprep.mubr.msk.f32.mxu1 %vm442_vm0, %v13150_v62 }
 0x158   : > { %v1611_v29 = vmax.f32 %v1581_v7, 0.0  ;;  %v1625_v18 = vmax.f32 %v13381_v31, %v1621_v8  ;;  %10572 = vmatprep.mubr.msk.f32.mxu0 %vm442_vm0, %v15909_v15 }
 0x159   : > { %v1610_v12 = vmax.f32 %v1576_v42, 0.0  ;;  %v10187_v26 = vpop.f32.mrb[54].mxu0  ;;  %v10209_v13 = vpop.f32.mrb[54].mxu1  ;;  %v1624_v34 = vmax.f32 %v13389_v35, %v1620_v1  ;;  %v1751_v35 = vadd.f32 %v10206_v40, %v12766_v36  ;;  %v4994_v40 = vld [vmem:[%s12131_s10 + $0x69] sm:$0xff] }
 0x15a   : > { %v1627_v23 = vmax.f32 %v1623_v6, %v1611_v29  ;;  %v1591_v43 = vadd.f32 %v10187_v26, %v12951_v57  ;;  %v1585_v11 = vpop.f32.mrb[55].mxu0  ;;  %v1755_v31 = vpop.f32.mrb[55].mxu1  ;;  %10557 = vmatmul.mubr.msk.f32.gmra.mrb[160].mxu1 %vm442_vm0, %v13172_v16  ;;  %v4995_v26 = vld [vmem:[%s12131_s10 + $0x71] sm:$0x1] }
 0x15b   : > { %v1626_v51 = vmax.f32 %v1622_v22, %v1610_v12  ;;  %v1586_v17 = vadd.f32 %v1585_v11, %v12969_v55  ;;  %10573 = vmatmul.mubr.msk.f32.gmra.mrb[160].mxu0 %vm442_vm0, %v13106_v33  ;;  %10559 = vmatprep.mubr.msk.f32.mxu1 %vm442_vm0, %v13190_v30  ;;  %v1746_v22 = vadd.f32 %v1745_v21, %v12778_v41  ;;  %v1813_v21 = vmax.f32 %v1751_v35, 0.0 }
 0x15c   : > { %1631 = vst.msk [vmem:[#allocation2 + $0x88] sm:$0xff] %vm708_vm4, %v1627_v23  ;;  %v1613_v6 = vmax.f32 %v1591_v43, 0.0  ;;  %10575 = vmatprep.mubr.msk.f32.mxu0 %vm442_vm0, %v13120_v50 }
 0x15d   : > { %1630 = vst.msk [vmem:[#allocation2 + $0x80] sm:$0xff] %vm708_vm4, %v1626_v51  ;;  %v1612_v8 = vmax.f32 %v1586_v17, 0.0  ;;  %v10212_v7 = vpop.f32.mrb[56].mxu1  ;;  %v10228_v47 = vpop.f32.mrb[56].mxu0  ;;  %v1812_v51 = vmax.f32 %v1746_v22, 0.0 }
 0x15e   : > { %v1629_v1 = vmax.f32 %v1625_v18, %v1613_v6  ;;  %v1771_v42 = vadd.f32 %v10212_v7, %v12782_v45  ;;  %v1765_v29 = vpop.f32.mrb[57].mxu1  ;;  %10560 = vmatmul.mubr.msk.f32.gmra.mrb[162].mxu1 %vm442_vm0, %v13212_v46  ;;  %v1915_v12 = vpop.f32.mrb[57].mxu0  ;;  %v1761_v18 = vadd.f32 %v10209_v13, %v12844_v59  ;;  %v13503_v7 = vpack.c.bf16 %v4995_v26, %v4994_v40 }
 0x15f   : > { %v1628_v23 = vmax.f32 %v1624_v34, %v1612_v8  ;;  %v1766_v43 = vadd.f32 %v1765_v29, %v12797_v48  ;;  %10576 = vmatmul.mubr.msk.f32.gmra.mrb[162].mxu0 %vm442_vm0, %v13141_v38  ;;  %10600 = vmatprep.mubr.msk.f32.mxu1 %vm442_vm0, %v13020_v20  ;;  %v1756_v34 = vadd.f32 %v1755_v31, %v12863_v2  ;;  %v15911_v31 = vld [vmem:[#allocation21_spill] sm:$0xff] }
 0x160   : > { %1633 = vst.msk [vmem:[#allocation2 + $0x98] sm:$0xff] %vm708_vm4, %v1629_v1  ;;  %v1817_v11 = vmax.f32 %v1771_v42, 0.0  ;;  %10578 = vmatprep.mubr.msk.f32.mxu0 %vm442_vm0, %v13157_v4  ;;  %15910 = vst [vmem:[#allocation11_spill] sm:$0xff] %v13503_v7  ;;  %v1921_v13 = vadd.f32 %v10228_v47, %v15896_v5  ;;  %v1916_v40 = vadd.f32 %v1915_v12, %v15899_v19  ;;  %v1815_v26 = vmax.f32 %v1761_v18, 0.0 }
 0x161   : > { %1632 = vst.msk [vmem:[#allocation2 + $0x90] sm:$0xff] %vm708_vm4, %v1628_v23  ;;  %v1816_v17 = vmax.f32 %v1766_v43, 0.0  ;;  %v10215_v6 = vpop.f32.mrb[58].mxu1  ;;  %v10231_v8 = vpop.f32.mrb[58].mxu0  ;;  %v1814_v47 = vmax.f32 %v1756_v34, 0.0 }
 0x162   : > { %v1829_v20 = vmax.f32 %v1813_v21, %v1817_v11  ;;  %v1781_v35 = vadd.f32 %v10215_v6, %v12879_v10  ;;  %v1775_v1 = vpop.f32.mrb[59].mxu1  ;;  %10601 = vmatmul.mubr.msk.f32.vlgmr.msra.gmra.mrb[164].mxu1 %vm442_vm0, %v13041_v53  ;;  %v1925_v42 = vpop.f32.mrb[59].mxu0  ;;  %v15912_v53 = vld [vmem:[#allocation7_spill] sm:$0xff] }
 0x163   : > { %v1828_v22 = vmax.f32 %v1812_v51, %v1816_v17  ;;  %v1776_v29 = vadd.f32 %v1775_v1, %v12893_v28  ;;  %10579 = vmatmul.mubr.msk.f32.gmra.mrb[164].mxu0 %vm442_vm0, %v15897_v44  ;;  %11102 = vmatpush3.bf16.msk.msra.mxu1 %vm12133_vm3, %v15911_v31  ;;  %v1931_v17 = vadd.f32 %v10231_v8, %v12807_v49  ;;  %v15913_v8 = vld [vmem:[#allocation19_spill] sm:$0xff]  ;;  %v2014_v1 = vmax.f32 %v1916_v40, 0.0 }
 0x164   : > { %v1819_v23 = vmax.f32 %v1781_v35, 0.0  ;;  %v1833_v43 = vmax.f32 %v13433_v60, %v1829_v20  ;;  %10581 = vmatprep.mubr.msk.f32.mxu0 %vm442_vm0, %v15912_v53  ;;  %10603 = vmatprep.mubr.msk.f32.mxu1 %vm442_vm0, %v13058_v0  ;;  %v2015_v0 = vmax.f32 %v1921_v13, 0.0  ;;  %v1926_v13 = vadd.f32 %v1925_v42, %v12817_v52 }
 0x165   : > { %v1818_v21 = vmax.f32 %v1776_v29, 0.0  ;;  %v10218_v11 = vpop.f32.mrb[60].mxu1  ;;  %v1832_v51 = vmax.f32 %v13439_v63, %v1828_v22  ;;  %v10234_v6 = vpop.f32.mrb[60].mxu0  ;;  %11111 = vmatprep.subr.msk.bf16.mxu1 %vm12133_vm3, %v13503_v7  ;;  %v15914_v22 = vld [vmem:[#allocation8_spill] sm:$0xff] }
 0x166   : > { %v1831_v12 = vmax.f32 %v1815_v26, %v1819_v23  ;;  %v1791_v60 = vadd.f32 %v10218_v11, %v15906_v27  ;;  %v1785_v18 = vpop.f32.mrb[61].mxu1  ;;  %10604 = vmatmul.mubr.msk.f32.gmra.mrb[166].mxu1 %vm442_vm0, %v15908_v61  ;;  %v1941_v34 = vadd.f32 %v10234_v6, %v15901_v9  ;;  %v1935_v20 = vpop.f32.mrb[61].mxu0  ;;  %v15915_v61 = vld [vmem:[#allocation20_spill] sm:$0xff]  ;;  %v2017_v11 = vmax.f32 %v1931_v17, 0.0 }
 0x167   : > { %v1830_v35 = vmax.f32 %v1814_v47, %v1818_v21  ;;  %v1786_v63 = vadd.f32 %v1785_v18, %v15907_v54  ;;  %10582 = vmatmul.mubr.msk.f32.gmra.mrb[166].mxu0 %vm442_vm0, %v15913_v8  ;;  %10606 = vmatprep.mubr.msk.f32.mxu1 %vm442_vm0, %v15909_v15  ;;  %v1936_v29 = vadd.f32 %v1935_v20, %v15914_v22 }
 0x168   : > { %v1821_v31 = vmax.f32 %v1791_v60, 0.0  ;;  %v1835_v26 = vmax.f32 %v13454_v24, %v1831_v12  ;;  %10584 = vmatprep.mubr.msk.f32.mxu0 %vm442_vm0, %v15915_v61  ;;  %v2019_v23 = vmax.f32 %v1941_v34, 0.0 }
 0x169   : > { %v1820_v47 = vmax.f32 %v1786_v63, 0.0  ;;  %v10221_v21 = vpop.f32.mrb[62].mxu1  ;;  %v1834_v6 = vmax.f32 %v13459_v37, %v1830_v35  ;;  %v2018_v40 = vmax.f32 %v1936_v29, 0.0  ;;  %v10237_v18 = vpop.f32.mrb[62].mxu0 }
 0x16a   : > { %v1837_v7 = vmax.f32 %v1833_v43, %v1821_v31  ;;  %v1801_v15 = vadd.f32 %v10221_v21, %v12951_v57  ;;  %v1795_v20 = vpop.f32.mrb[63].mxu1  ;;  %10607 = vmatmul.mubr.msk.f32.gmra.mrb[168].mxu1 %vm442_vm0, %v13106_v33  ;;  %v13544_v24 = vmax.f32 %v2015_v0, %v2019_v23  ;;  %v1951_v12 = vadd.f32 %v10237_v18, %v12821_v56  ;;  %v1945_v42 = vpop.f32.mrb[63].mxu0 }
 0x16b   : > { %v1836_v60 = vmax.f32 %v1832_v51, %v1820_v47  ;;  %v1796_v34 = vadd.f32 %v1795_v20, %v12969_v55  ;;  %10585 = vmatmul.mubr.msk.f32.gmra.mrb[168].mxu0 %vm442_vm0, %v13244_v32  ;;  %v13550_v37 = vmax.f32 %v2014_v1, %v2018_v40  ;;  %10609 = vmatprep.mubr.msk.f32.mxu1 %vm442_vm0, %v13120_v50  ;;  %v2016_v33 = vmax.f32 %v1926_v13, 0.0 }
 0x16c   : > { %1841 = vst.msk [vmem:[#allocation2 + $0xa8] sm:$0xff] %vm708_vm4, %v1837_v7  ;;  %v1823_v43 = vmax.f32 %v1801_v15, 0.0  ;;  %10587 = vmatprep.mubr.msk.f32.mxu0 %vm442_vm0, %v13257_v39  ;;  %v2021_v17 = vmax.f32 %v1951_v12, 0.0  ;;  %v1946_v51 = vadd.f32 %v1945_v42, %v12833_v58 }
 0x16d   : > { %1840 = vst.msk [vmem:[#allocation2 + $0xa0] sm:$0xff] %vm708_vm4, %v1836_v60  ;;  %v1822_v0 = vmax.f32 %v1796_v34, 0.0  ;;  %v10262_v35 = vpop.f32.mrb[64].mxu1  ;;  %v10240_v63 = vpop.f32.mrb[64].mxu0 }
 0x16e   : > { %v1839_v1 = vmax.f32 %v1835_v26, %v1823_v43  ;;  %v2125_v29 = vpop.f32.mrb[65].mxu1  ;;  %10610 = vmatmul.mubr.msk.f32.gmra.mrb[170].mxu1 %vm442_vm0, %v13141_v38  ;;  %v13561_v50 = vmax.f32 %v2017_v11, %v2021_v17  ;;  %v2020_v7 = vmax.f32 %v1946_v51, 0.0  ;;  %v1955_v31 = vpop.f32.mrb[65].mxu0  ;;  %v2131_v47 = vadd.f32 %v10262_v35, %v15896_v5 }
 0x16f   : > { %v1838_v13 = vmax.f32 %v1834_v6, %v1822_v0  ;;  %10588 = vmatmul.mubr.msk.f32.gmra.mrb[170].mxu0 %vm442_vm0, %v13134_v25  ;;  %10612 = vmatprep.mubr.msk.f32.mxu1 %vm442_vm0, %v13157_v4  ;;  %v1961_v21 = vadd.f32 %v10240_v63, %v12766_v36  ;;  %v5204_v4 = vld [vmem:[%s12131_s10 + $0x6e] sm:$0xff]  ;;  %v5205_v6 = vld [vmem:[%s12131_s10 + $0x76] sm:$0x1]  ;;  %v2126_v40 = vadd.f32 %v2125_v29, %v15899_v19 }
 0x170   : > { %1843 = vst.msk [vmem:[#allocation2 + $0xb8] sm:$0xff] %vm708_vm4, %v1839_v1  ;;  %v13568_v26 = vmax.f32 %v2016_v33, %v2020_v7  ;;  %10590 = vmatprep.mubr.msk.f32.mxu0 %vm442_vm0, %v13150_v62  ;;  %v1956_v18 = vadd.f32 %v1955_v31, %v12778_v41  ;;  %v13591_v12 = vpack.c.bf16 %v5205_v6, %v5204_v4  ;;  %v2225_v42 = vmax.f32 %v2131_v47, 0.0 }
 0x171   : > { %1842 = vst.msk [vmem:[#allocation2 + $0xb0] sm:$0xff] %vm708_vm4, %v1838_v13  ;;  %v10265_v38 = vpop.f32.mrb[66].mxu1  ;;  %v10243_v23 = vpop.f32.mrb[66].mxu0  ;;  %v2023_v60 = vmax.f32 %v1961_v21, 0.0 }
 0x172   : > { %v2135_v11 = vpop.f32.mrb[67].mxu1  ;;  %10613 = vmatmul.mubr.msk.f32.gmra.mrb[172].mxu1 %vm442_vm0, %v15897_v44  ;;  %v1965_v25 = vpop.f32.mrb[67].mxu0  ;;  %v1971_v62 = vadd.f32 %v10243_v23, %v12844_v59  ;;  %v2022_v33 = vmax.f32 %v1956_v18, 0.0  ;;  %v2141_v0 = vadd.f32 %v10265_v38, %v12807_v49 }
 0x173   : > { %10591 = vmatmul.mubr.msk.f32.gmra.mrb[172].mxu0 %vm442_vm0, %v13172_v16  ;;  %10615 = vmatprep.mubr.msk.f32.mxu1 %vm442_vm0, %v15912_v53  ;;  %v13589_v44 = vadd.f32 %v1965_v25, %v12863_v2  ;;  %v2136_v35 = vadd.f32 %v2135_v11, %v12817_v52 }
 0x174   : > { %10593 = vmatprep.mubr.msk.f32.mxu0 %vm442_vm0, %v13190_v30  ;;  %v2224_v30 = vmax.f32 %v2126_v40, 0.0  ;;  %v2025_v29 = vmax.f32 %v1971_v62, 0.0  ;;  %v13626_v62 = vld [vmem:[%s15784_s1 + $0x8] sm:$0xff] }
 0x175   : > { %v10246_v15 = vpop.f32.mrb[68].mxu0  ;;  %v10268_v20 = vpop.f32.mrb[68].mxu1 }
 0x176   : > { %v1981_v34 = vadd.f32 %v10246_v15, %v12782_v45  ;;  %v2151_v16 = vadd.f32 %v10268_v20, %v15901_v9  ;;  %v1975_v43 = vpop.f32.mrb[69].mxu0  ;;  %v2145_v53 = vpop.f32.mrb[69].mxu1  ;;  %10616 = vmatmul.mubr.msk.f32.gmra.mrb[174].mxu1 %vm442_vm0, %v15913_v8  ;;  %v13608_v8 = vld [vmem:[%s15784_s1] sm:$0xff] }
 0x177   : > { %v1976_v17 = vadd.f32 %v1975_v43, %v12797_v48  ;;  %v2146_v51 = vadd.f32 %v2145_v53, %v15914_v22  ;;  %10594 = vmatmul.mubr.msk.f32.gmra.mrb[174].mxu0 %vm442_vm0, %v13212_v46  ;;  %10618 = vmatprep.mubr.msk.f32.mxu1 %vm442_vm0, %v15915_v61  ;;  %v2024_v46 = vmax.f32 %v13589_v44, 0.0  ;;  %v2227_v44 = vmax.f32 %v2141_v0, 0.0  ;;  %v13650_v0 = vld [vmem:[%s15784_s1 + $0x78] sm:$0xff] }
 0x178   : > { %v2027_v63 = vmax.f32 %v1981_v34, 0.0  ;;  %v2229_v1 = vmax.f32 %v2151_v16, 0.0  ;;  %10634 = vmatprep.mubr.msk.f32.mxu0 %vm442_vm0, %v13608_v8 }
 0x179   : > { %v2026_v7 = vmax.f32 %v1976_v17, 0.0  ;;  %v2228_v31 = vmax.f32 %v2146_v51, 0.0  ;;  %v10249_v61 = vpop.f32.mrb[70].mxu0  ;;  %v10271_v13 = vpop.f32.mrb[70].mxu1 }
 0x17a   : > { %v2039_v38 = vmax.f32 %v2023_v60, %v2027_v63  ;;  %v13613_v23 = vmax.f32 %v2225_v42, %v2229_v1  ;;  %v1991_v47 = vadd.f32 %v10249_v61, %v12879_v10  ;;  %v2161_v21 = vadd.f32 %v10271_v13, %v12821_v56  ;;  %v1985_v11 = vpop.f32.mrb[71].mxu0  ;;  %v2155_v25 = vpop.f32.mrb[71].mxu1  ;;  %10619 = vmatmul.mubr.msk.f32.gmra.mrb[176].mxu1 %vm442_vm0, %v13244_v32  ;;  %v13636_v42 = vld [vmem:[%s15784_s1 + $0x10] sm:$0xff]  ;;  %v13662_v63 = vld [vmem:[%s15784_s1 + $0x18] sm:$0xff] }
 0x17b   : > { %v2038_v4 = vmax.f32 %v2022_v33, %v2026_v7  ;;  %v13619_v6 = vmax.f32 %v2224_v30, %v2228_v31  ;;  %v1986_v40 = vadd.f32 %v1985_v11, %v12893_v28  ;;  %v2156_v18 = vadd.f32 %v2155_v25, %v12833_v58  ;;  %10635 = vmatmul.mubr.msk.f32.vlgmr.msra.gmra.mrb[176].mxu0 %vm442_vm0, %v13626_v62  ;;  %v13677_v7 = vld [vmem:[%s15784_s1 + $0x20] sm:$0xff]  ;;  %v13690_v11 = vld [vmem:[%s15784_s1 + $0x88] sm:$0xff] }
 0x17c   : > { %v2029_v15 = vmax.f32 %v1991_v47, 0.0  ;;  %v2231_v20 = vmax.f32 %v2161_v21, 0.0  ;;  %v2043_v32 = vmax.f32 %v13544_v24, %v2039_v38  ;;  %10621 = vmatprep.mubr.msk.f32.mxu1 %vm442_vm0, %v13257_v39  ;;  %10637 = vmatprep.mubr.msk.f32.mxu0 %vm442_vm0, %v13636_v42  ;;  %v2226_v60 = vmax.f32 %v2136_v35, 0.0  ;;  %15916 = vst [vmem:[#allocation6_spill] sm:$0xff] %v13662_v63  ;;  %15917 = vst [vmem:[#allocation17_spill] sm:$0xff] %v13677_v7 }
 0x17d   : > { %v2028_v34 = vmax.f32 %v1986_v40, 0.0  ;;  %v2230_v16 = vmax.f32 %v2156_v18, 0.0  ;;  %v10252_v43 = vpop.f32.mrb[72].mxu0  ;;  %v10274_v53 = vpop.f32.mrb[72].mxu1  ;;  %v2042_v30 = vmax.f32 %v13550_v37, %v2038_v4  ;;  %11108 = vmatpush3.bf16.msk.msra.mxu0 %vm12133_vm3, %v13417_v14 }
 0x17e   : > { %v2041_v39 = vmax.f32 %v2025_v29, %v2029_v15  ;;  %v13644_v24 = vmax.f32 %v2227_v44, %v2231_v20  ;;  %v2001_v33 = vadd.f32 %v10252_v43, %v15906_v27  ;;  %v1995_v17 = vpop.f32.mrb[73].mxu0  ;;  %v2165_v51 = vpop.f32.mrb[73].mxu1  ;;  %10622 = vmatmul.mubr.msk.f32.gmra.mrb[178].mxu1 %vm442_vm0, %v13650_v0  ;;  %11117 = vmatprep.subr.msk.bf16.mxu0 %vm12133_vm3, %v13591_v12  ;;  %v13705_v44 = vld [vmem:[%s15784_s1 + $0x90] sm:$0xff] }
 0x17f   : > { %v13654_v37 = vmax.f32 %v2024_v46, %v2028_v34  ;;  %v13656_v35 = vmax.f32 %v2226_v60, %v2230_v16  ;;  %v1996_v14 = vadd.f32 %v1995_v17, %v15907_v54  ;;  %10638 = vmatmul.mubr.msk.f32.gmra.mrb[178].mxu0 %vm442_vm0, %v13662_v63  ;;  %v13670_v46 = vld [vmem:[%s15784_s1 + $0x80] sm:$0xff]  ;;  %v2171_v15 = vadd.f32 %v10274_v53, %v12766_v36  ;;  %v13716_v60 = vld [vmem:[%s15784_s1 + $0x30] sm:$0xff]  ;;  %v5415_v16 = vld [vmem:[%s12131_s10 + $0x7b] sm:$0x1] }
 0x180   : > { %v2031_v1 = vmax.f32 %v2001_v33, 0.0  ;;  %v2045_v29 = vmax.f32 %v13561_v50, %v2041_v39  ;;  %10624 = vmatprep.mubr.msk.f32.mxu1 %vm442_vm0, %v13670_v46  ;;  %10640 = vmatprep.mubr.msk.f32.mxu0 %vm442_vm0, %v13677_v7  ;;  %v5414_v34 = vld [vmem:[%s12131_s10 + $0x73] sm:$0xff]  ;;  %v2166_v43 = vadd.f32 %v2165_v51, %v12778_v41 }
 0x181   : > { %v2030_v31 = vmax.f32 %v1996_v14, 0.0  ;;  %v10255_v61 = vpop.f32.mrb[74].mxu0  ;;  %v10277_v50 = vpop.f32.mrb[74].mxu1  ;;  %v2044_v13 = vmax.f32 %v13568_v26, %v13654_v37  ;;  %v13697_v26 = vld [vmem:[%s15784_s1 + $0x28] sm:$0xff]  ;;  %v13728_v14 = vld [vmem:[%s15784_s1 + $0x98] sm:$0xff] }
 0x182   : > { %v2047_v38 = vmax.f32 %v2043_v32, %v2031_v1  ;;  %v2011_v47 = vadd.f32 %v10255_v61, %v12951_v57  ;;  %v2175_v21 = vpop.f32.mrb[75].mxu1  ;;  %10625 = vmatmul.mubr.msk.f32.gmra.mrb[180].mxu1 %vm442_vm0, %v13690_v11  ;;  %v720_v25 = vpop.permute.xlu1 %719  ;;  %v13736_v51 = vld [vmem:[%s15784_s1 + $0x38] sm:$0xff] }
 0x183   : > { %v2046_v4 = vmax.f32 %v2042_v30, %v2030_v31  ;;  %10641 = vmatmul.mubr.msk.f32.gmra.mrb[180].mxu0 %vm442_vm0, %v13697_v26  ;;  %731 = vst.msk [vmem:[#allocation2 + $0x328] sm:$0xff] %vm729_vm5, %v720_v25  ;;  %v2005_v40 = vpop.f32.mrb[75].mxu0  ;;  %v718_v18 = vpop.permute.xlu0 %717  ;;  %10627 = vmatprep.mubr.msk.f32.mxu1 %vm442_vm0, %v13705_v44  ;;  %v2181_v25 = vadd.f32 %v10277_v50, %v12844_v59 }
 0x184   : > { %2051 = vst.msk [vmem:[#allocation2 + $0xc8] sm:$0xff] %vm708_vm4, %v2047_v38  ;;  %v2033_v20 = vmax.f32 %v2011_v47, 0.0  ;;  %v2006_v32 = vadd.f32 %v2005_v40, %v12969_v55  ;;  %10643 = vmatprep.mubr.msk.f32.mxu0 %vm442_vm0, %v13716_v60  ;;  %v13743_v38 = vpack.c.bf16 %v5415_v16, %v5414_v34  ;;  %v2233_v47 = vmax.f32 %v2171_v15, 0.0 }
 0x185   : > { %730 = vst.msk [vmem:[#allocation2 + $0x320] sm:$0xff] %vm729_vm5, %v718_v18  ;;  %v10280_v53 = vpop.f32.mrb[76].mxu1  ;;  %v10296_v30 = vpop.f32.mrb[76].mxu0  ;;  %v13751_v18 = vld [vmem:[%s15784_s1 + $0x40] sm:$0xff] }
 0x186   : > { %2050 = vst.msk [vmem:[#allocation2 + $0xc0] sm:$0xff] %vm708_vm4, %v2046_v4  ;;  %v2049_v39 = vmax.f32 %v2045_v29, %v2033_v20  ;;  %v2032_v33 = vmax.f32 %v2006_v32, 0.0  ;;  %v2191_v17 = vadd.f32 %v10280_v53, %v12782_v45  ;;  %v2185_v37 = vpop.f32.mrb[77].mxu1  ;;  %10628 = vmatmul.mubr.msk.f32.gmra.mrb[182].mxu1 %vm442_vm0, %v13728_v14  ;;  %v724_v1 = vpop.permute.xlu1 %723  ;;  %15918 = vst [vmem:[#allocation18_spill] sm:$0xff] %v13743_v38  ;;  %v2232_v20 = vmax.f32 %v2166_v43, 0.0 }
 0x187   : > { %v2186_v31 = vadd.f32 %v2185_v37, %v12797_v48  ;;  %10644 = vmatmul.mubr.msk.f32.gmra.mrb[182].mxu0 %vm442_vm0, %v13736_v51  ;;  %733 = vst.msk [vmem:[#allocation2 + $0x338] sm:$0xff] %vm729_vm5, %v724_v1  ;;  %v722_v29 = vpop.permute.xlu0 %721  ;;  %10668 = vmatprep.mubr.msk.f32.mxu1 %vm442_vm0, %v13608_v8  ;;  %v2335_v61 = vpop.f32.mrb[77].mxu0  ;;  %v2176_v32 = vadd.f32 %v2175_v21, %v12863_v2  ;;  %v13765_v21 = vld [vmem:[%s15784_s1 + $0x48] sm:$0xff]  ;;  %v2235_v1 = vmax.f32 %v2181_v25, 0.0 }
 0x188   : > { %2053 = vst.msk [vmem:[#allocation2 + $0xd8] sm:$0xff] %vm708_vm4, %v2049_v39  ;;  %v2048_v4 = vmax.f32 %v2044_v13, %v2032_v33  ;;  %v2237_v40 = vmax.f32 %v2191_v17, 0.0  ;;  %10646 = vmatprep.mubr.msk.f32.mxu0 %vm442_vm0, %v13751_v18  ;;  %v2341_v16 = vadd.f32 %v10296_v30, %v15896_v5  ;;  %15919 = vst [vmem:[#allocation15_spill] sm:$0xff] %v13765_v21  ;;  %v15920_v30 = vld [vmem:[#allocation11_spill] sm:$0xff] }
 0x189   : > { %732 = vst.msk [vmem:[#allocation2 + $0x330] sm:$0xff] %vm729_vm5, %v722_v29  ;;  %v2236_v15 = vmax.f32 %v2186_v31, 0.0  ;;  %v10283_v34 = vpop.f32.mrb[78].mxu1  ;;  %v10299_v50 = vpop.f32.mrb[78].mxu0  ;;  %v13773_v37 = vadd.f32 %v2335_v61, %v15899_v19 }
 0x18a   : > { %2052 = vst.msk [vmem:[#allocation2 + $0xd0] sm:$0xff] %vm708_vm4, %v2048_v4  ;;  %v2249_v13 = vmax.f32 %v2233_v47, %v2237_v40  ;;  %v2201_v53 = vadd.f32 %v10283_v34, %v12879_v10  ;;  %v2195_v39 = vpop.f32.mrb[79].mxu1  ;;  %10669 = vmatmul.mubr.msk.f32.vlgmr.msra.gmra.mrb[184].mxu1 %vm442_vm0, %v13626_v62  ;;  %v2345_v33 = vpop.f32.mrb[79].mxu0  ;;  %v13779_v47 = vld [vmem:[%s15784_s1 + $0x50] sm:$0xff]  ;;  %v2234_v4 = vmax.f32 %v2176_v32, 0.0  ;;  %v2435_v25 = vmax.f32 %v2341_v16, 0.0 }
 0x18b   : > { %v2248_v17 = vmax.f32 %v2232_v20, %v2236_v15  ;;  %v2196_v43 = vadd.f32 %v2195_v39, %v12893_v28  ;;  %10647 = vmatmul.mubr.msk.f32.gmra.mrb[184].mxu0 %vm442_vm0, %v13765_v21  ;;  %11114 = vmatpush3.bf16.msk.msra.mxu1 %vm12133_vm3, %v15920_v30  ;;  %15921 = vst [vmem:[#allocation14_spill] sm:$0xff] %v13779_v47  ;;  %v13798_v16 = vld [vmem:[%s15784_s1 + $0x58] sm:$0xff]  ;;  %v2434_v30 = vmax.f32 %v13773_v37, 0.0 }
 0x18c   : > { %v2239_v31 = vmax.f32 %v2201_v53, 0.0  ;;  %v2253_v29 = vmax.f32 %v13613_v23, %v2249_v13  ;;  %10649 = vmatprep.mubr.msk.f32.mxu0 %vm442_vm0, %v13779_v47  ;;  %10671 = vmatprep.mubr.msk.f32.mxu1 %vm442_vm0, %v13636_v42  ;;  %v2351_v32 = vadd.f32 %v10299_v50, %v12807_v49  ;;  %15922 = vst [vmem:[#allocation5_spill] sm:$0xff] %v13798_v16 }
 0x18d   : > { %v2238_v40 = vmax.f32 %v2196_v43, 0.0  ;;  %v10286_v20 = vpop.f32.mrb[80].mxu1  ;;  %v2252_v61 = vmax.f32 %v13619_v6, %v2248_v17  ;;  %v10302_v15 = vpop.f32.mrb[80].mxu0  ;;  %11123 = vmatprep.subr.msk.bf16.mxu1 %vm12133_vm3, %v13743_v38  ;;  %v2346_v50 = vadd.f32 %v2345_v33, %v12817_v52 }
 0x18e   : > { %v2251_v23 = vmax.f32 %v2235_v1, %v2239_v31  ;;  %v2211_v34 = vadd.f32 %v10286_v20, %v15906_v27  ;;  %v2205_v13 = vpop.f32.mrb[81].mxu1  ;;  %10672 = vmatmul.mubr.msk.f32.gmra.mrb[186].mxu1 %vm442_vm0, %v13662_v63  ;;  %v951_v53 = vpop.permute.xlu1 %950  ;;  %v2361_v39 = vadd.f32 %v10302_v15, %v15901_v9 }
 0x18f   : > { %v2250_v43 = vmax.f32 %v2234_v4, %v2238_v40  ;;  %v2206_v6 = vadd.f32 %v2205_v13, %v15907_v54  ;;  %10650 = vmatmul.mubr.msk.f32.gmra.mrb[186].mxu0 %vm442_vm0, %v13798_v16  ;;  %961 = vst.msk [vmem:[#allocation2 + $0x348] sm:$0xff] %vm729_vm5, %v951_v53  ;;  %v949_v17 = vpop.permute.xlu0 %948  ;;  %10674 = vmatprep.mubr.msk.f32.mxu1 %vm442_vm0, %v13677_v7  ;;  %v2355_v1 = vpop.f32.mrb[81].mxu0  ;;  %v13812_v40 = vld [vmem:[%s15784_s1 + $0x60] sm:$0xff] }
 0x190   : > { %v2241_v31 = vmax.f32 %v2211_v34, 0.0  ;;  %960 = vst.msk [vmem:[#allocation2 + $0x340] sm:$0xff] %vm729_vm5, %v949_v17  ;;  %v2255_v4 = vmax.f32 %v13644_v24, %v2251_v23  ;;  %15923 = vst [vmem:[#allocation21_spill] sm:$0xff] %v13812_v40  ;;  %10652 = vmatprep.mubr.msk.f32.mxu0 %vm442_vm0, %v13812_v40  ;;  %v2439_v37 = vmax.f32 %v2361_v39, 0.0  ;;  %v2356_v20 = vadd.f32 %v2355_v1, %v15914_v22 }
 0x191   : > { %v2240_v15 = vmax.f32 %v2206_v6, 0.0  ;;  %v10289_v13 = vpop.f32.mrb[82].mxu1  ;;  %v2254_v33 = vmax.f32 %v13656_v35, %v2250_v43  ;;  %v10305_v34 = vpop.f32.mrb[82].mxu0  ;;  %v2437_v39 = vmax.f32 %v2351_v32, 0.0  ;;  %v13827_v35 = vld [vmem:[%s15784_s1 + $0x68] sm:$0xff]  ;;  %v2436_v43 = vmax.f32 %v2346_v50, 0.0 }
 0x192   : > { %v2257_v53 = vmax.f32 %v2253_v29, %v2241_v31  ;;  %v2221_v17 = vadd.f32 %v10289_v13, %v12951_v57  ;;  %v2215_v24 = vpop.f32.mrb[83].mxu1  ;;  %10675 = vmatmul.mubr.msk.f32.gmra.mrb[188].mxu1 %vm442_vm0, %v13697_v26  ;;  %v955_v23 = vpop.permute.xlu1 %954  ;;  %v13821_v38 = vmax.f32 %v2435_v25, %v2439_v37  ;;  %v2438_v7 = vmax.f32 %v2356_v20, 0.0  ;;  %v13842_v31 = vld [vmem:[%s15784_s1 + $0x70] sm:$0xff] }
 0x193   : > { %v2256_v54 = vmax.f32 %v2252_v61, %v2240_v15  ;;  %v2216_v1 = vadd.f32 %v2215_v24, %v12969_v55  ;;  %10653 = vmatmul.mubr.msk.f32.gmra.mrb[188].mxu0 %vm442_vm0, %v13827_v35  ;;  %963 = vst.msk [vmem:[#allocation2 + $0x358] sm:$0xff] %vm729_vm5, %v955_v23  ;;  %v953_v29 = vpop.permute.xlu0 %952  ;;  %10677 = vmatprep.mubr.msk.f32.mxu1 %vm442_vm0, %v13716_v60  ;;  %v2365_v61 = vpop.f32.mrb[83].mxu0  ;;  %v15930_v3 = vld [vmem:[#allocation5_spill] sm:$0xff] }
 0x194   : > { %v2371_v25 = vadd.f32 %v10305_v34, %v12821_v56  ;;  %2261 = vst.msk [vmem:[#allocation2 + $0xe8] sm:$0xff] %vm708_vm4, %v2257_v53  ;;  %v2243_v32 = vmax.f32 %v2221_v17, 0.0  ;;  %v13837_v6 = vmax.f32 %v2434_v30, %v2438_v7  ;;  %10655 = vmatprep.mubr.msk.f32.mxu0 %vm442_vm0, %v13842_v31  ;;  %v2366_v37 = vadd.f32 %v2365_v61, %v12833_v58  ;;  %v5625_v61 = vld [vmem:[%s12131_s10 + $0x80] sm:$0x1] }
 0x195   : > { %962 = vst.msk [vmem:[#allocation2 + $0x350] sm:$0xff] %vm729_vm5, %v953_v29  ;;  %v2242_v20 = vmax.f32 %v2216_v1, 0.0  ;;  %v10330_v15 = vpop.f32.mrb[84].mxu1  ;;  %v10308_v50 = vpop.f32.mrb[84].mxu0 }
 0x196   : > { %2260 = vst.msk [vmem:[#allocation2 + $0xe0] sm:$0xff] %vm708_vm4, %v2256_v54  ;;  %v2441_v13 = vmax.f32 %v2371_v25, 0.0  ;;  %v2259_v34 = vmax.f32 %v2255_v4, %v2243_v32  ;;  %v2545_v53 = vpop.f32.mrb[85].mxu1  ;;  %10678 = vmatmul.mubr.msk.f32.gmra.mrb[190].mxu1 %vm442_vm0, %v13736_v51  ;;  %v2440_v7 = vmax.f32 %v2366_v37, 0.0  ;;  %v2375_v30 = vpop.f32.mrb[85].mxu0  ;;  %v2551_v23 = vadd.f32 %v10330_v15, %v15896_v5  ;;  %v5624_v25 = vld [vmem:[%s12131_s10 + $0x78] sm:$0xff] }
 0x197   : > { %v2258_v17 = vmax.f32 %v2254_v33, %v2242_v20  ;;  %10656 = vmatmul.mubr.msk.f32.gmra.mrb[190].mxu0 %vm442_vm0, %v13650_v0  ;;  %10680 = vmatprep.mubr.msk.f32.mxu1 %vm442_vm0, %v13751_v18  ;;  %v2381_v1 = vadd.f32 %v10308_v50, %v12766_v36  ;;  %v2546_v32 = vadd.f32 %v2545_v53, %v15899_v19 }
 0x198   : > { %v13852_v24 = vmax.f32 %v2437_v39, %v2441_v13  ;;  %2263 = vst.msk [vmem:[#allocation2 + $0xf8] sm:$0xff] %vm708_vm4, %v2259_v34  ;;  %v13857_v54 = vmax.f32 %v2436_v43, %v2440_v7  ;;  %10658 = vmatprep.mubr.msk.f32.mxu0 %vm442_vm0, %v13670_v46  ;;  %v2376_v43 = vadd.f32 %v2375_v30, %v12778_v41  ;;  %v2645_v34 = vmax.f32 %v2551_v23, 0.0 }
 0x199   : > { %2262 = vst.msk [vmem:[#allocation2 + $0xf0] sm:$0xff] %vm708_vm4, %v2258_v17  ;;  %v10333_v4 = vpop.f32.mrb[86].mxu1  ;;  %v10311_v33 = vpop.f32.mrb[86].mxu0  ;;  %v13878_v50 = vpack.c.bf16 %v5625_v61, %v5624_v25  ;;  %v2443_v53 = vmax.f32 %v2381_v1, 0.0 }
 0x19a   : > { %v2555_v39 = vpop.f32.mrb[87].mxu1  ;;  %10681 = vmatmul.mubr.msk.f32.gmra.mrb[192].mxu1 %vm442_vm0, %v13765_v21  ;;  %v2385_v29 = vpop.f32.mrb[87].mxu0  ;;  %v2391_v37 = vadd.f32 %v10311_v33, %v12844_v59  ;;  %v2442_v19 = vmax.f32 %v2376_v43, 0.0  ;;  %v2561_v23 = vadd.f32 %v10333_v4, %v12807_v49 }
 0x19b   : > { %10659 = vmatmul.mubr.msk.f32.gmra.mrb[192].mxu0 %vm442_vm0, %v13690_v11  ;;  %10683 = vmatprep.mubr.msk.f32.mxu1 %vm442_vm0, %v13779_v47  ;;  %v2386_v20 = vadd.f32 %v2385_v29, %v12863_v2  ;;  %v2644_v47 = vmax.f32 %v2546_v32, 0.0  ;;  %v2556_v1 = vadd.f32 %v2555_v39, %v12817_v52 }
 0x19c   : > { %10661 = vmatprep.mubr.msk.f32.mxu0 %vm442_vm0, %v13705_v44  ;;  %v2445_v32 = vmax.f32 %v2391_v37, 0.0 }
 0x19d   : > { %v10314_v15 = vpop.f32.mrb[88].mxu0  ;;  %v10336_v13 = vpop.f32.mrb[88].mxu1  ;;  %v2444_v43 = vmax.f32 %v2386_v20, 0.0 }
 0x19e   : > { %v2401_v7 = vadd.f32 %v10314_v15, %v12782_v45  ;;  %v2571_v30 = vadd.f32 %v10336_v13, %v15901_v9  ;;  %v2395_v17 = vpop.f32.mrb[89].mxu0  ;;  %v2565_v21 = vpop.f32.mrb[89].mxu1  ;;  %10684 = vmatmul.mubr.msk.f32.gmra.mrb[194].mxu1 %vm442_vm0, %v13798_v16 }
 0x19f   : > { %v2396_v33 = vadd.f32 %v2395_v17, %v12797_v48  ;;  %v2566_v29 = vadd.f32 %v2565_v21, %v15914_v22  ;;  %10662 = vmatmul.mubr.msk.f32.gmra.mrb[194].mxu0 %vm442_vm0, %v13728_v14  ;;  %10686 = vmatprep.mubr.msk.f32.mxu1 %vm442_vm0, %v13812_v40 }
 0x1a0   : > { %v2447_v25 = vmax.f32 %v2401_v7, 0.0  ;;  %v2649_v61 = vmax.f32 %v2571_v30, 0.0  ;;  %10702 = vmatprep.mubr.msk.f32.mxu0 %vm442_vm0, %v13608_v8 }
 0x1a1   : > { %v2446_v15 = vmax.f32 %v2396_v33, 0.0  ;;  %v2648_v13 = vmax.f32 %v2566_v29, 0.0  ;;  %v10317_v21 = vpop.f32.mrb[90].mxu0  ;;  %v10339_v17 = vpop.f32.mrb[90].mxu1 }
 0x1a2   : > { %v2459_v22 = vmax.f32 %v2443_v53, %v2447_v25  ;;  %v13894_v16 = vmax.f32 %v2645_v34, %v2649_v61  ;;  %v2411_v40 = vadd.f32 %v10317_v21, %v12879_v10  ;;  %v2581_v4 = vadd.f32 %v10339_v17, %v12821_v56  ;;  %v2405_v49 = vpop.f32.mrb[91].mxu0  ;;  %v2575_v39 = vpop.f32.mrb[91].mxu1  ;;  %10687 = vmatmul.mubr.msk.f32.gmra.mrb[196].mxu1 %vm442_vm0, %v13827_v35  ;;  %v15924_v17 = vld [vmem:[#allocation16_spill] sm:$0xff] }
 0x1a3   : > { %v2458_v7 = vmax.f32 %v2442_v19, %v2446_v15  ;;  %v13900_v30 = vmax.f32 %v2644_v47, %v2648_v13  ;;  %v2406_v37 = vadd.f32 %v2405_v49, %v12893_v28  ;;  %v2576_v20 = vadd.f32 %v2575_v39, %v12833_v58  ;;  %10703 = vmatmul.mubr.msk.f32.vlgmr.msra.gmra.mrb[196].mxu0 %vm442_vm0, %v13626_v62 }
 0x1a4   : > { %v2647_v34 = vmax.f32 %v2561_v23, 0.0  ;;  %v2449_v53 = vmax.f32 %v2411_v40, 0.0  ;;  %v2651_v33 = vmax.f32 %v2581_v4, 0.0  ;;  %v2463_v29 = vmax.f32 %v13821_v38, %v2459_v22  ;;  %10689 = vmatprep.mubr.msk.f32.mxu1 %vm442_vm0, %v13842_v31  ;;  %10705 = vmatprep.mubr.msk.f32.mxu0 %vm442_vm0, %v13636_v42 }
 0x1a5   : > { %v2646_v19 = vmax.f32 %v2556_v1, 0.0  ;;  %v2448_v47 = vmax.f32 %v2406_v37, 0.0  ;;  %v2650_v25 = vmax.f32 %v2576_v20, 0.0  ;;  %v10320_v49 = vpop.f32.mrb[92].mxu0  ;;  %v10342_v61 = vpop.f32.mrb[92].mxu1  ;;  %v2462_v15 = vmax.f32 %v13837_v6, %v2458_v7  ;;  %11120 = vmatpush3.bf16.msk.msra.mxu0 %vm12133_vm3, %v13591_v12 }
 0x1a6   : > { %v2461_v40 = vmax.f32 %v2445_v32, %v2449_v53  ;;  %v13915_v23 = vmax.f32 %v2647_v34, %v2651_v33  ;;  %v2421_v22 = vadd.f32 %v10320_v49, %v15906_v27  ;;  %v2585_v38 = vpop.f32.mrb[93].mxu1  ;;  %10690 = vmatmul.mubr.msk.f32.gmra.mrb[198].mxu1 %vm442_vm0, %v13650_v0  ;;  %v1181_v1 = vpop.permute.xlu1 %1180  ;;  %11129 = vmatprep.subr.msk.bf16.mxu0 %vm12133_vm3, %v13878_v50 }
 0x1a7   : > { %v2460_v13 = vmax.f32 %v2444_v43, %v2448_v47  ;;  %v13920_v21 = vmax.f32 %v2646_v19, %v2650_v25  ;;  %10706 = vmatmul.mubr.msk.f32.gmra.mrb[198].mxu0 %vm442_vm0, %v13662_v63  ;;  %1191 = vst.msk [vmem:[#allocation2 + $0x368] sm:$0xff] %vm729_vm5, %v1181_v1  ;;  %v2415_v6 = vpop.f32.mrb[93].mxu0  ;;  %v1179_v12 = vpop.permute.xlu0 %1178  ;;  %10692 = vmatprep.mubr.msk.f32.mxu1 %vm442_vm0, %v13670_v46  ;;  %v15925_v43 = vld [vmem:[#allocation17_spill] sm:$0xff] }
 0x1a8   : > { %v2451_v32 = vmax.f32 %v2421_v22, 0.0  ;;  %v2416_v4 = vadd.f32 %v2415_v6, %v15924_v17  ;;  %1190 = vst.msk [vmem:[#allocation2 + $0x360] sm:$0xff] %vm729_vm5, %v1179_v12  ;;  %v2465_v39 = vmax.f32 %v13852_v24, %v2461_v40  ;;  %10708 = vmatprep.mubr.msk.f32.mxu0 %vm442_vm0, %v15925_v43  ;;  %v2586_v22 = vadd.f32 %v2585_v38, %v12778_v41 }
 0x1a9   : > { %v10323_v7 = vpop.f32.mrb[94].mxu0  ;;  %v10345_v37 = vpop.f32.mrb[94].mxu1  ;;  %v2464_v20 = vmax.f32 %v13857_v54, %v2460_v13  ;;  %v2591_v54 = vadd.f32 %v10342_v61, %v12766_v36 }
 0x1aa   : > { %v2467_v34 = vmax.f32 %v2463_v29, %v2451_v32  ;;  %v2450_v53 = vmax.f32 %v2416_v4, 0.0  ;;  %v2431_v33 = vadd.f32 %v10323_v7, %v12951_v57  ;;  %v2595_v19 = vpop.f32.mrb[95].mxu1  ;;  %10693 = vmatmul.mubr.msk.f32.gmra.mrb[200].mxu1 %vm442_vm0, %v13690_v11  ;;  %v1185_v24 = vpop.permute.xlu1 %1184 }
 0x1ab   : > { %10709 = vmatmul.mubr.msk.f32.gmra.mrb[200].mxu0 %vm442_vm0, %v13697_v26  ;;  %1193 = vst.msk [vmem:[#allocation2 + $0x378] sm:$0xff] %vm729_vm5, %v1185_v24  ;;  %v2425_v47 = vpop.f32.mrb[95].mxu0  ;;  %v1183_v25 = vpop.permute.xlu0 %1182  ;;  %10695 = vmatprep.mubr.msk.f32.mxu1 %vm442_vm0, %v13705_v44  ;;  %v2653_v38 = vmax.f32 %v2591_v54, 0.0 }
 0x1ac   : > { %2471 = vst.msk [vmem:[#allocation2 + $0x108] sm:$0xff] %vm708_vm4, %v2467_v34  ;;  %v2466_v29 = vmax.f32 %v2462_v15, %v2450_v53  ;;  %v2453_v49 = vmax.f32 %v2431_v33, 0.0  ;;  %v2426_v40 = vadd.f32 %v2425_v47, %v12969_v55  ;;  %10711 = vmatprep.mubr.msk.f32.mxu0 %vm442_vm0, %v13716_v60  ;;  %v2652_v53 = vmax.f32 %v2586_v22, 0.0 }
 0x1ad   : > { %1192 = vst.msk [vmem:[#allocation2 + $0x370] sm:$0xff] %vm729_vm5, %v1183_v25  ;;  %v10348_v1 = vpop.f32.mrb[96].mxu1  ;;  %v10364_v13 = vpop.f32.mrb[96].mxu0  ;;  %v2596_v33 = vadd.f32 %v2595_v19, %v12863_v2 }
 0x1ae   : > { %2470 = vst.msk [vmem:[#allocation2 + $0x100] sm:$0xff] %vm708_vm4, %v2466_v29  ;;  %v2469_v6 = vmax.f32 %v2465_v39, %v2453_v49  ;;  %v2452_v12 = vmax.f32 %v2426_v40, 0.0  ;;  %v2611_v32 = vadd.f32 %v10348_v1, %v12782_v45  ;;  %v2605_v61 = vpop.f32.mrb[97].mxu1  ;;  %v2755_v15 = vpop.f32.mrb[97].mxu0  ;;  %10696 = vmatmul.mubr.msk.f32.gmra.mrb[202].mxu1 %vm442_vm0, %v13728_v14  ;;  %v2601_v39 = vadd.f32 %v10345_v37, %v12844_v59  ;;  %v15926_v1 = vld [vmem:[#allocation9_spill] sm:$0xff] }
 0x1af   : > { %v2606_v4 = vadd.f32 %v2605_v61, %v12797_v48  ;;  %10712 = vmatmul.mubr.msk.f32.gmra.mrb[202].mxu0 %vm442_vm0, %v13736_v51  ;;  %10736 = vmatprep.mubr.msk.f32.mxu1 %vm442_vm0, %v13608_v8  ;;  %v2761_v54 = vadd.f32 %v10364_v13, %v15896_v5  ;;  %v2756_v22 = vadd.f32 %v2755_v15, %v15926_v1  ;;  %v2654_v15 = vmax.f32 %v2596_v33, 0.0 }
 0x1b0   : > { %2473 = vst.msk [vmem:[#allocation2 + $0x118] sm:$0xff] %vm708_vm4, %v2469_v6  ;;  %v2468_v7 = vmax.f32 %v2464_v20, %v2452_v12  ;;  %v2657_v34 = vmax.f32 %v2611_v32, 0.0  ;;  %10714 = vmatprep.mubr.msk.f32.mxu0 %vm442_vm0, %v13751_v18  ;;  %v15927_v6 = vld [vmem:[#allocation15_spill] sm:$0xff]  ;;  %v15928_v12 = vld [vmem:[#allocation18_spill] sm:$0xff]  ;;  %v2655_v13 = vmax.f32 %v2601_v39, 0.0 }
 0x1b1   : > { %v2656_v24 = vmax.f32 %v2606_v4, 0.0  ;;  %v10351_v47 = vpop.f32.mrb[98].mxu1  ;;  %v10367_v25 = vpop.f32.mrb[98].mxu0  ;;  %v15929_v4 = vld [vmem:[#allocation14_spill] sm:$0xff]  ;;  %v2854_v33 = vmax.f32 %v2756_v22, 0.0  ;;  %v15932_v22 = vld [vmem:[#allocation21_spill] sm:$0xff] }
 0x1b2   : > { %2472 = vst.msk [vmem:[#allocation2 + $0x110] sm:$0xff] %vm708_vm4, %v2468_v7  ;;  %v2669_v29 = vmax.f32 %v2653_v38, %v2657_v34  ;;  %v2621_v49 = vadd.f32 %v10351_v47, %v12879_v10  ;;  %v2615_v40 = vpop.f32.mrb[99].mxu1  ;;  %v2765_v37 = vpop.f32.mrb[99].mxu0  ;;  %10737 = vmatmul.mubr.msk.f32.vlgmr.msra.gmra.mrb[204].mxu1 %vm442_vm0, %v13626_v62 }
 0x1b3   : > { %v2668_v20 = vmax.f32 %v2652_v53, %v2656_v24  ;;  %v2616_v19 = vadd.f32 %v2615_v40, %v12893_v28  ;;  %10715 = vmatmul.mubr.msk.f32.gmra.mrb[204].mxu0 %vm442_vm0, %v15927_v6  ;;  %11126 = vmatpush3.bf16.msk.msra.mxu1 %vm12133_vm3, %v15928_v12  ;;  %v15847_v24 = vmov 0.0|0.0   ;;  %v2855_v40 = vmax.f32 %v2761_v54, 0.0 }
 0x1b4   : > { %v2659_v32 = vmax.f32 %v2621_v49, 0.0  ;;  %v2673_v61 = vmax.f32 %v13894_v16, %v2669_v29  ;;  %10717 = vmatprep.mubr.msk.f32.mxu0 %vm442_vm0, %v15929_v4  ;;  %10739 = vmatprep.mubr.msk.f32.mxu1 %vm442_vm0, %v13636_v42 }
 0x1b5   : > { %v2658_v38 = vmax.f32 %v2616_v19, 0.0  ;;  %v10354_v7 = vpop.f32.mrb[100].mxu1  ;;  %v10370_v34 = vpop.f32.mrb[100].mxu0  ;;  %v2672_v53 = vmax.f32 %v13900_v30, %v2668_v20  ;;  %11133 = vmatprep.subr.bf16.mxu1 %v15847_v24 }
 0x1b6   : > { %v2671_v47 = vmax.f32 %v2655_v13, %v2659_v32  ;;  %v2631_v39 = vadd.f32 %v10354_v7, %v15906_v27  ;;  %v2781_v16 = vadd.f32 %v10370_v34, %v15901_v9  ;;  %v2625_v29 = vpop.f32.mrb[101].mxu1  ;;  %10740 = vmatmul.mubr.msk.f32.gmra.mrb[206].mxu1 %vm442_vm0, %v13662_v63  ;;  %v1411_v49 = vpop.permute.xlu1 %1410  ;;  %v15931_v7 = vld [vmem:[#allocation8_spill] sm:$0xff] }
 0x1b7   : > { %v2670_v19 = vmax.f32 %v2654_v15, %v2658_v38  ;;  %v2626_v12 = vadd.f32 %v2625_v29, %v15924_v17  ;;  %10718 = vmatmul.mubr.msk.f32.gmra.mrb[206].mxu0 %vm442_vm0, %v15930_v3  ;;  %1421 = vst.msk [vmem:[#allocation2 + $0x388] sm:$0xff] %vm729_vm5, %v1411_v49  ;;  %v2775_v30 = vpop.f32.mrb[101].mxu0  ;;  %v1409_v20 = vpop.permute.xlu0 %1408  ;;  %10742 = vmatprep.mubr.msk.f32.mxu1 %vm442_vm0, %v15925_v43  ;;  %v15933_v15 = vld [vmem:[#allocation12_spill] sm:$0xff] }
 0x1b8   : > { %v2661_v13 = vmax.f32 %v2631_v39, 0.0  ;;  %v2859_v32 = vmax.f32 %v2781_v16, 0.0  ;;  %v2776_v34 = vadd.f32 %v2775_v30, %v15931_v7  ;;  %1420 = vst.msk [vmem:[#allocation2 + $0x380] sm:$0xff] %vm729_vm5, %v1409_v20  ;;  %v2675_v54 = vmax.f32 %v13915_v23, %v2671_v47  ;;  %10720 = vmatprep.mubr.msk.f32.mxu0 %vm442_vm0, %v15932_v22 }
 0x1b9   : > { %v2771_v38 = vadd.f32 %v10367_v25, %v15933_v15  ;;  %v2766_v29 = vadd.f32 %v2765_v37, %v12817_v52  ;;  %v2660_v49 = vmax.f32 %v2626_v12, 0.0  ;;  %v10357_v24 = vpop.f32.mrb[102].mxu1  ;;  %v10373_v63 = vpop.f32.mrb[102].mxu0  ;;  %v2674_v43 = vmax.f32 %v13920_v21, %v2670_v19 }
 0x1ba   : > { %v2677_v39 = vmax.f32 %v2673_v61, %v2661_v13  ;;  %v14002_v16 = vmax.f32 %v2855_v40, %v2859_v32  ;;  %v2858_v30 = vmax.f32 %v2776_v34, 0.0  ;;  %v2641_v20 = vadd.f32 %v10357_v24, %v12951_v57  ;;  %v2635_v17 = vpop.f32.mrb[103].mxu1  ;;  %10743 = vmatmul.mubr.msk.f32.gmra.mrb[208].mxu1 %vm442_vm0, %v13697_v26  ;;  %v1415_v23 = vpop.permute.xlu1 %1414 }
 0x1bb   : > { %v2676_v47 = vmax.f32 %v2672_v53, %v2660_v49  ;;  %v2791_v25 = vadd.f32 %v10373_v63, %v12821_v56  ;;  %v2636_v37 = vadd.f32 %v2635_v17, %v12969_v55  ;;  %10721 = vmatmul.mubr.msk.f32.gmra.mrb[208].mxu0 %vm442_vm0, %v13827_v35  ;;  %1423 = vst.msk [vmem:[#allocation2 + $0x398] sm:$0xff] %vm729_vm5, %v1415_v23  ;;  %v2785_v21 = vpop.f32.mrb[103].mxu0  ;;  %v1413_v61 = vpop.permute.xlu0 %1412  ;;  %v2857_v63 = vmax.f32 %v2771_v38, 0.0 }
 0x1bc   : > { %10745 = vmatprep.mubr.msk.f32.mxu1 %vm442_vm0, %v13716_v60  ;;  %2681 = vst.msk [vmem:[#allocation2 + $0x128] sm:$0xff] %vm708_vm4, %v2677_v39  ;;  %v14015_v24 = vmax.f32 %v2854_v33, %v2858_v30  ;;  %v2663_v40 = vmax.f32 %v2641_v20, 0.0  ;;  %v2786_v53 = vadd.f32 %v2785_v21, %v12833_v58  ;;  %10723 = vmatprep.mubr.msk.f32.mxu0 %vm442_vm0, %v13842_v31  ;;  %v2856_v32 = vmax.f32 %v2766_v29, 0.0 }
 0x1bd   : > { %1422 = vst.msk [vmem:[#allocation2 + $0x390] sm:$0xff] %vm729_vm5, %v1413_v61  ;;  %v2861_v17 = vmax.f32 %v2791_v25, 0.0  ;;  %v2662_v19 = vmax.f32 %v2636_v37, 0.0  ;;  %v10376_v12 = vpop.f32.mrb[104].mxu0  ;;  %v10398_v13 = vpop.f32.mrb[104].mxu1 }
 0x1be   : > { %2680 = vst.msk [vmem:[#allocation2 + $0x120] sm:$0xff] %vm708_vm4, %v2676_v47  ;;  %v2679_v34 = vmax.f32 %v2675_v54, %v2663_v40  ;;  %v2860_v49 = vmax.f32 %v2786_v53, 0.0  ;;  %v2795_v33 = vpop.f32.mrb[105].mxu0  ;;  %v2965_v39 = vpop.f32.mrb[105].mxu1  ;;  %10746 = vmatmul.mubr.msk.f32.gmra.mrb[210].mxu1 %vm442_vm0, %v13736_v51  ;;  %v2801_v23 = vadd.f32 %v10376_v12, %v12766_v36 }
 0x1bf   : > { %v14024_v30 = vmax.f32 %v2857_v63, %v2861_v17  ;;  %v2678_v20 = vmax.f32 %v2674_v43, %v2662_v19  ;;  %10724 = vmatmul.mubr.msk.f32.gmra.mrb[210].mxu0 %vm442_vm0, %v13650_v0  ;;  %10748 = vmatprep.mubr.msk.f32.mxu1 %vm442_vm0, %v13751_v18  ;;  %v2971_v43 = vadd.f32 %v10398_v13, %v15896_v5 }
 0x1c0   : > { %2683 = vst.msk [vmem:[#allocation2 + $0x138] sm:$0xff] %vm708_vm4, %v2679_v34  ;;  %v14029_v38 = vmax.f32 %v2856_v32, %v2860_v49  ;;  %10726 = vmatprep.mubr.msk.f32.mxu0 %vm442_vm0, %v13670_v46  ;;  %v2796_v37 = vadd.f32 %v2795_v33, %v12778_v41  ;;  %v2966_v21 = vadd.f32 %v2965_v39, %v15926_v1  ;;  %v2863_v17 = vmax.f32 %v2801_v23, 0.0 }
 0x1c1   : > { %2682 = vst.msk [vmem:[#allocation2 + $0x130] sm:$0xff] %vm708_vm4, %v2678_v20  ;;  %v10379_v54 = vpop.f32.mrb[106].mxu0  ;;  %v10401_v29 = vpop.f32.mrb[106].mxu1  ;;  %v3065_v19 = vmax.f32 %v2971_v43, 0.0 }
 0x1c2   : > { %v2805_v47 = vpop.f32.mrb[107].mxu0  ;;  %v2975_v25 = vpop.f32.mrb[107].mxu1  ;;  %10749 = vmatmul.mubr.msk.f32.gmra.mrb[212].mxu1 %vm442_vm0, %v15927_v6  ;;  %v2811_v61 = vadd.f32 %v10379_v54, %v12844_v59  ;;  %v2981_v40 = vadd.f32 %v10401_v29, %v15933_v15  ;;  %v2862_v49 = vmax.f32 %v2796_v37, 0.0  ;;  %v3064_v33 = vmax.f32 %v2966_v21, 0.0 }
 0x1c3   : > { %10727 = vmatmul.mubr.msk.f32.gmra.mrb[212].mxu0 %vm442_vm0, %v13690_v11  ;;  %10751 = vmatprep.mubr.msk.f32.mxu1 %vm442_vm0, %v15929_v4  ;;  %v2806_v54 = vadd.f32 %v2805_v47, %v12863_v2  ;;  %v2976_v29 = vadd.f32 %v2975_v25, %v12817_v52 }
 0x1c4   : > { %10729 = vmatprep.mubr.msk.f32.mxu0 %vm442_vm0, %v13705_v44  ;;  %v2865_v37 = vmax.f32 %v2811_v61, 0.0  ;;  %v3067_v21 = vmax.f32 %v2981_v40, 0.0 }
 0x1c5   : > { %v10382_v53 = vpop.f32.mrb[108].mxu0  ;;  %v10404_v63 = vpop.f32.mrb[108].mxu1 }
 0x1c6   : > { %v2821_v12 = vadd.f32 %v10382_v53, %v12782_v45  ;;  %v2991_v13 = vadd.f32 %v10404_v63, %v15901_v9  ;;  %v2815_v32 = vpop.f32.mrb[109].mxu0  ;;  %v2985_v34 = vpop.f32.mrb[109].mxu1  ;;  %10752 = vmatmul.mubr.msk.f32.gmra.mrb[214].mxu1 %vm442_vm0, %v15930_v3 }
 0x1c7   : > { %v2816_v39 = vadd.f32 %v2815_v32, %v12797_v48  ;;  %v2986_v20 = vadd.f32 %v2985_v34, %v15931_v7  ;;  %10730 = vmatmul.mubr.msk.f32.gmra.mrb[214].mxu0 %vm442_vm0, %v13728_v14  ;;  %10754 = vmatprep.mubr.msk.f32.mxu1 %vm442_vm0, %v15932_v22 }
 0x1c8   : > { %v2867_v23 = vmax.f32 %v2821_v12, 0.0  ;;  %v3069_v43 = vmax.f32 %v2991_v13, 0.0  ;;  %10770 = vmatprep.mubr.msk.f32.mxu0 %vm442_vm0, %v13608_v8 }
 0x1c9   : > { %v2866_v53 = vmax.f32 %v2816_v39, 0.0  ;;  %v3068_v63 = vmax.f32 %v2986_v20, 0.0  ;;  %v10385_v32 = vpop.f32.mrb[110].mxu0  ;;  %v10407_v34 = vpop.f32.mrb[110].mxu1 }
 0x1ca   : > { %v2879_v15 = vmax.f32 %v2863_v17, %v2867_v23  ;;  %v14064_v3 = vmax.f32 %v3065_v19, %v3069_v43  ;;  %v2831_v22 = vadd.f32 %v10385_v32, %v12879_v10  ;;  %v3001_v47 = vadd.f32 %v10407_v34, %v12821_v56  ;;  %v2825_v7 = vpop.f32.mrb[111].mxu0  ;;  %v2995_v25 = vpop.f32.mrb[111].mxu1  ;;  %10755 = vmatmul.mubr.msk.f32.gmra.mrb[216].mxu1 %vm442_vm0, %v13827_v35 }
 0x1cb   : > { %v2878_v12 = vmax.f32 %v2862_v49, %v2866_v53  ;;  %v14070_v8 = vmax.f32 %v3064_v33, %v3068_v63  ;;  %v2826_v61 = vadd.f32 %v2825_v7, %v12893_v28  ;;  %v2996_v40 = vadd.f32 %v2995_v25, %v12833_v58  ;;  %10771 = vmatmul.mubr.msk.f32.vlgmr.msra.gmra.mrb[216].mxu0 %vm442_vm0, %v13626_v62  ;;  %v15935_v63 = vld [vmem:[#allocation16_spill] sm:$0xff] }
 0x1cc   : > { %v2864_v17 = vmax.f32 %v2806_v54, 0.0  ;;  %v2869_v19 = vmax.f32 %v2831_v22, 0.0  ;;  %v3071_v13 = vmax.f32 %v3001_v47, 0.0  ;;  %v2883_v39 = vmax.f32 %v14002_v16, %v2879_v15  ;;  %10757 = vmatprep.mubr.msk.f32.mxu1 %vm442_vm0, %v13842_v31  ;;  %10773 = vmatprep.mubr.msk.f32.mxu0 %vm442_vm0, %v13636_v42 }
 0x1cd   : > { %v3066_v49 = vmax.f32 %v2976_v29, 0.0  ;;  %v2868_v33 = vmax.f32 %v2826_v61, 0.0  ;;  %v3070_v20 = vmax.f32 %v2996_v40, 0.0  ;;  %v10388_v7 = vpop.f32.mrb[112].mxu0  ;;  %v10410_v23 = vpop.f32.mrb[112].mxu1  ;;  %v2882_v43 = vmax.f32 %v14015_v24, %v2878_v12  ;;  %11132 = vmatpush3.bf16.msk.msra.mxu0 %vm12133_vm3, %v13878_v50  ;;  %v15936_v24 = vld [vmem:[#allocation6_spill] sm:$0xff] }
 0x1ce   : > { %v2881_v22 = vmax.f32 %v2865_v37, %v2869_v19  ;;  %v14085_v54 = vmax.f32 %v3067_v21, %v3071_v13  ;;  %v2841_v15 = vadd.f32 %v10388_v7, %v15906_v27  ;;  %v2835_v16 = vpop.f32.mrb[113].mxu0  ;;  %v3005_v53 = vpop.f32.mrb[113].mxu1  ;;  %10758 = vmatmul.mubr.msk.f32.gmra.mrb[218].mxu1 %vm442_vm0, %v13650_v0  ;;  %v15937_v37 = vld [vmem:[#allocation17_spill] sm:$0xff]  ;;  %v15938_v12 = vmov 0.0|0.0  }
 0x1cf   : > { %v2880_v42 = vmax.f32 %v2864_v17, %v2868_v33  ;;  %v14090_v29 = vmax.f32 %v3066_v49, %v3070_v20  ;;  %v2836_v32 = vadd.f32 %v2835_v16, %v15935_v63  ;;  %10774 = vmatmul.mubr.msk.f32.gmra.mrb[218].mxu0 %vm442_vm0, %v15936_v24  ;;  %10760 = vmatprep.mubr.msk.f32.mxu1 %vm442_vm0, %v13670_v46 }
 0x1d0   : > { %v2871_v34 = vmax.f32 %v2841_v15, 0.0  ;;  %v2885_v50 = vmax.f32 %v14024_v30, %v2881_v22  ;;  %10776 = vmatprep.mubr.msk.f32.mxu0 %vm442_vm0, %v15937_v37  ;;  %11163 = vmatprep.subr.bf16.mxu0 %v15938_v12  ;;  %v14125_v22 = vld [vmem:[%s15784_s1] sm:$0xff]  ;;  %v5837_v37 = vld [vmem:[#allocation2 + $0x18] sm:$0xff] }
 0x1d1   : > { %v2870_v21 = vmax.f32 %v2836_v32, 0.0  ;;  %v10391_v47 = vpop.f32.mrb[114].mxu0  ;;  %v10413_v0 = vpop.f32.mrb[114].mxu1  ;;  %v2884_v25 = vmax.f32 %v14029_v38, %v2880_v42  ;;  %v3011_v38 = vadd.f32 %v10410_v23, %v12766_v36  ;;  %v5834_v23 = vld [vmem:[#allocation2] sm:$0xff] }
 0x1d2   : > { %v2887_v61 = vmax.f32 %v2883_v39, %v2871_v34  ;;  %v2851_v40 = vadd.f32 %v10391_v47, %v12951_v57  ;;  %v2845_v17 = vpop.f32.mrb[115].mxu0  ;;  %v3015_v19 = vpop.f32.mrb[115].mxu1  ;;  %10761 = vmatmul.mubr.msk.f32.gmra.mrb[220].mxu1 %vm442_vm0, %v13690_v11  ;;  %v3006_v11 = vadd.f32 %v3005_v53, %v12778_v41 }
 0x1d3   : > { %v2886_v30 = vmax.f32 %v2882_v43, %v2870_v21  ;;  %v2846_v46 = vadd.f32 %v2845_v17, %v12969_v55  ;;  %10777 = vmatmul.mubr.msk.f32.gmra.mrb[220].mxu0 %vm442_vm0, %v13697_v26  ;;  %10763 = vmatprep.mubr.msk.f32.mxu1 %vm442_vm0, %v13705_v44  ;;  %v5835_v43 = vld [vmem:[#allocation2 + $0x8] sm:$0xff]  ;;  %v3073_v15 = vmax.f32 %v3011_v38, 0.0 }
 0x1d4   : > { %2891 = vst.msk [vmem:[#allocation2 + $0x148] sm:$0xff] %vm708_vm4, %v2887_v61  ;;  %v2873_v13 = vmax.f32 %v2851_v40, 0.0  ;;  %10779 = vmatprep.mubr.msk.f32.mxu0 %vm442_vm0, %v13716_v60  ;;  %v3072_v53 = vmax.f32 %v3006_v11, 0.0  ;;  %v11134_v34 = vpack.c.bf16 %v5835_v43, %v5834_v23  ;;  %v5838_v40 = vld [vmem:[#allocation2 + $0x20] sm:$0xff]  ;;  %v5839_v17 = vld [vmem:[#allocation2 + $0x28] sm:$0xff] }
 0x1d5   : > { %2890 = vst.msk [vmem:[#allocation2 + $0x140] sm:$0xff] %vm708_vm4, %v2886_v30  ;;  %v2872_v39 = vmax.f32 %v2846_v46, 0.0  ;;  %v10416_v49 = vpop.f32.mrb[116].mxu1  ;;  %v10432_v33 = vpop.f32.mrb[116].mxu0 }
 0x1d6   : > { %v2889_v20 = vmax.f32 %v2885_v50, %v2873_v13  ;;  %v3031_v26 = vadd.f32 %v10416_v49, %v12782_v45  ;;  %v3025_v7 = vpop.f32.mrb[117].mxu1  ;;  %v3175_v44 = vpop.f32.mrb[117].mxu0  ;;  %10764 = vmatmul.mubr.msk.f32.gmra.mrb[222].mxu1 %vm442_vm0, %v13728_v14  ;;  %v3021_v14 = vadd.f32 %v10413_v0, %v12844_v59  ;;  %v5836_v50 = vld [vmem:[#allocation2 + $0x10] sm:$0xff]  ;;  %v3181_v47 = vadd.f32 %v10432_v33, %v15896_v5 }
 0x1d7   : > { %v2888_v62 = vmax.f32 %v2884_v25, %v2872_v39  ;;  %v3026_v60 = vadd.f32 %v3025_v7, %v12797_v48  ;;  %10780 = vmatmul.mubr.msk.f32.gmra.mrb[222].mxu0 %vm442_vm0, %v13736_v51  ;;  %10804 = vmatprep.mubr.msk.f32.mxu1 %vm442_vm0, %v14125_v22  ;;  %v3016_v51 = vadd.f32 %v3015_v19, %v12863_v2  ;;  %v14154_v39 = vld [vmem:[%s15784_s1 + $0x10] sm:$0xff] }
 0x1d8   : > { %2893 = vst.msk [vmem:[#allocation2 + $0x158] sm:$0xff] %vm708_vm4, %v2889_v20  ;;  %v3077_v16 = vmax.f32 %v3031_v26, 0.0  ;;  %10782 = vmatprep.mubr.msk.f32.mxu0 %vm442_vm0, %v13751_v18  ;;  %v14140_v18 = vld [vmem:[%s15784_s1 + $0x8] sm:$0xff]  ;;  %v3176_v30 = vadd.f32 %v3175_v44, %v15926_v1  ;;  %v3075_v38 = vmax.f32 %v3021_v14, 0.0  ;;  %v11137_v49 = vpack.c.bf16 %v5837_v37, %v5836_v50 }
 0x1d9   : > { %2892 = vst.msk [vmem:[#allocation2 + $0x150] sm:$0xff] %vm708_vm4, %v2888_v62  ;;  %v3076_v42 = vmax.f32 %v3026_v60, 0.0  ;;  %v10419_v32 = vpop.f32.mrb[118].mxu1  ;;  %v10435_v24 = vpop.f32.mrb[118].mxu0  ;;  %v3074_v33 = vmax.f32 %v3016_v51, 0.0  ;;  %v14160_v7 = vpack.c.bf16 %v5839_v17, %v5838_v40 }
 0x1da   : > { %v3089_v21 = vmax.f32 %v3073_v15, %v3077_v16  ;;  %v3041_v0 = vadd.f32 %v10419_v32, %v12879_v10  ;;  %v3035_v25 = vpop.f32.mrb[119].mxu1  ;;  %v3185_v61 = vpop.f32.mrb[119].mxu0  ;;  %10805 = vmatmul.mubr.msk.f32.vlgmr.msra.gmra.mrb[224].mxu1 %vm442_vm0, %v14140_v18  ;;  %v14167_v15 = vld [vmem:[%s15784_s1 + $0x18] sm:$0xff]  ;;  %v3274_v14 = vmax.f32 %v3176_v30, 0.0  ;;  %v15941_v32 = vld [vmem:[#allocation12_spill] sm:$0xff] }
 0x1db   : > { %v3088_v19 = vmax.f32 %v3072_v53, %v3076_v42  ;;  %v3036_v46 = vadd.f32 %v3035_v25, %v12893_v28  ;;  %10783 = vmatmul.mubr.msk.f32.gmra.mrb[224].mxu0 %vm442_vm0, %v15927_v6  ;;  %11135 = vmatpush1.bf16.msra.mxu1 %v11134_v34  ;;  %v15939_v53 = vld [vmem:[#allocation8_spill] sm:$0xff]  ;;  %v15940_v42 = vld [vmem:[#allocation5_spill] sm:$0xff]  ;;  %v3191_v34 = vadd.f32 %v10435_v24, %v15941_v32 }
 0x1dc   : > { %v3079_v13 = vmax.f32 %v3041_v0, 0.0  ;;  %v3093_v11 = vmax.f32 %v14064_v3, %v3089_v21  ;;  %10785 = vmatprep.mubr.msk.f32.mxu0 %vm442_vm0, %v15929_v4  ;;  %10807 = vmatprep.mubr.msk.f32.mxu1 %vm442_vm0, %v14154_v39  ;;  %v3275_v4 = vmax.f32 %v3181_v47, 0.0  ;;  %v15942_v47 = vld [vmem:[#allocation21_spill] sm:$0xff]  ;;  %v14182_v0 = vld [vmem:[%s15784_s1 + $0x20] sm:$0xff]  ;;  %v3186_v25 = vadd.f32 %v3185_v61, %v12817_v52  ;;  %v14196_v61 = vld [vmem:[%s15784_s1 + $0x28] sm:$0xff] }
 0x1dd   : > { %v3078_v20 = vmax.f32 %v3036_v46, 0.0  ;;  %v10422_v6 = vpop.f32.mrb[120].mxu1  ;;  %v10438_v26 = vpop.f32.mrb[120].mxu0  ;;  %11136 = vmatprep.subr.bf16.mxu1 %v15938_v12  ;;  %v3092_v3 = vmax.f32 %v14070_v8, %v3088_v19 }
 0x1de   : > { %v3091_v44 = vmax.f32 %v3075_v38, %v3079_v13  ;;  %v3051_v23 = vadd.f32 %v10422_v6, %v15906_v27  ;;  %v3201_v43 = vadd.f32 %v10438_v26, %v15901_v9  ;;  %v3045_v62 = vpop.f32.mrb[121].mxu1  ;;  %v3195_v60 = vpop.f32.mrb[121].mxu0  ;;  %10808 = vmatmul.mubr.msk.f32.gmra.mrb[226].mxu1 %vm442_vm0, %v14167_v15  ;;  %v5840_v26 = vld [vmem:[#allocation2 + $0x30] sm:$0xff] }
 0x1df   : > { %v3090_v8 = vmax.f32 %v3074_v33, %v3078_v20  ;;  %v3046_v16 = vadd.f32 %v3045_v62, %v15935_v63  ;;  %v3196_v51 = vadd.f32 %v3195_v60, %v15939_v53  ;;  %10786 = vmatmul.mubr.msk.f32.gmra.mrb[226].mxu0 %vm442_vm0, %v15940_v42  ;;  %11138 = vmatpush1.bf16.msra.mxu1 %v11137_v49 }
 0x1e0   : > { %v3081_v50 = vmax.f32 %v3051_v23, 0.0  ;;  %v3279_v37 = vmax.f32 %v3201_v43, 0.0  ;;  %v3095_v21 = vmax.f32 %v14085_v54, %v3091_v44  ;;  %10788 = vmatprep.mubr.msk.f32.mxu0 %vm442_vm0, %v15942_v47  ;;  %10810 = vmatprep.mubr.msk.f32.mxu1 %vm442_vm0, %v14182_v0  ;;  %v3277_v44 = vmax.f32 %v3191_v34, 0.0  ;;  %v14224_v34 = vld [vmem:[%s15784_s1 + $0x38] sm:$0xff] }
 0x1e1   : > { %v3080_v40 = vmax.f32 %v3046_v16, 0.0  ;;  %v3278_v17 = vmax.f32 %v3196_v51, 0.0  ;;  %v10425_v24 = vpop.f32.mrb[122].mxu1  ;;  %v10441_v19 = vpop.f32.mrb[122].mxu0  ;;  %11139 = vmatprep.subr.bf16.mxu1 %v15938_v12  ;;  %v3094_v54 = vmax.f32 %v14090_v29, %v3090_v8 }
 0x1e2   : > { %v3097_v30 = vmax.f32 %v3093_v11, %v3081_v50  ;;  %v14189_v46 = vmax.f32 %v3275_v4, %v3279_v37  ;;  %v3061_v38 = vadd.f32 %v10425_v24, %v12951_v57  ;;  %v3211_v13 = vadd.f32 %v10441_v19, %v12821_v56  ;;  %v3055_v49 = vpop.f32.mrb[123].mxu1  ;;  %v3205_v33 = vpop.f32.mrb[123].mxu0  ;;  %10811 = vmatmul.mubr.msk.f32.gmra.mrb[228].mxu1 %vm442_vm0, %v14196_v61  ;;  %v5841_v4 = vld [vmem:[#allocation2 + $0x38] sm:$0xff] }
 0x1e3   : > { %v3096_v20 = vmax.f32 %v3092_v3, %v3080_v40  ;;  %v14200_v6 = vmax.f32 %v3274_v14, %v3278_v17  ;;  %v3056_v29 = vadd.f32 %v3055_v49, %v12969_v55  ;;  %v3206_v11 = vadd.f32 %v3205_v33, %v12833_v58  ;;  %10789 = vmatmul.mubr.msk.f32.gmra.mrb[228].mxu0 %vm442_vm0, %v13827_v35  ;;  %v14214_v35 = vld [vmem:[%s15784_s1 + $0x30] sm:$0xff]  ;;  %v5843_v40 = vld [vmem:[#allocation2 + $0x48] sm:$0xff]  ;;  %v14244_v17 = vld [vmem:[%s15784_s1 + $0x80] sm:$0xff] }
 0x1e4   : > { %3101 = vst.msk [vmem:[#allocation2 + $0x168] sm:$0xff] %vm708_vm4, %v3097_v30  ;;  %v3083_v23 = vmax.f32 %v3061_v38, 0.0  ;;  %v3281_v43 = vmax.f32 %v3211_v13, 0.0  ;;  %11141 = vmatpush1.bf16.msra.mxu1 %v14160_v7  ;;  %10791 = vmatprep.mubr.msk.f32.mxu0 %vm442_vm0, %v13842_v31  ;;  %v3276_v3 = vmax.f32 %v3186_v25, 0.0  ;;  %v14228_v50 = vpack.c.bf16 %v5841_v4, %v5840_v26  ;;  %v5842_v25 = vld [vmem:[#allocation2 + $0x40] sm:$0xff]  ;;  %v5845_v30 = vld [vmem:[#allocation2 + $0x58] sm:$0xff] }
 0x1e5   : > { %3100 = vst.msk [vmem:[#allocation2 + $0x160] sm:$0xff] %vm708_vm4, %v3096_v20  ;;  %v3082_v62 = vmax.f32 %v3056_v29, 0.0  ;;  %v3280_v60 = vmax.f32 %v3206_v11, 0.0  ;;  %v10444_v14 = vpop.f32.mrb[124].mxu0  ;;  %v10466_v8 = vpop.f32.mrb[124].mxu1  ;;  %10813 = vmatprep.mubr.msk.f32.mxu1 %vm442_vm0, %v14214_v35  ;;  %11142 = vmatprep.subr.bf16.mxu1 %v15938_v12  ;;  %v14262_v20 = vld [vmem:[%s15784_s1 + $0x48] sm:$0xff]  ;;  %v14266_v29 = vpack.c.bf16 %v5843_v40, %v5842_v25 }
 0x1e6   : > { %v3099_v16 = vmax.f32 %v3095_v21, %v3083_v23  ;;  %v14219_v51 = vmax.f32 %v3277_v44, %v3281_v43  ;;  %v3215_v31 = vpop.f32.mrb[125].mxu0  ;;  %v3385_v42 = vpop.f32.mrb[125].mxu1  ;;  %10814 = vmatmul.mubr.msk.f32.gmra.mrb[230].mxu1 %vm442_vm0, %v14224_v34  ;;  %v14235_v21 = vld [vmem:[%s15784_s1 + $0x78] sm:$0xff]  ;;  %v3221_v38 = vadd.f32 %v10444_v14, %v12766_v36  ;;  %v3391_v13 = vadd.f32 %v10466_v8, %v15896_v5  ;;  %v5844_v11 = vld [vmem:[#allocation2 + $0x50] sm:$0xff]  ;;  %v5846_v26 = vld [vmem:[#allocation2 + $0x60] sm:$0xff] }
 0x1e7   : > { %v3098_v37 = vmax.f32 %v3094_v54, %v3082_v62  ;;  %v14230_v47 = vmax.f32 %v3276_v3, %v3280_v60  ;;  %10792 = vmatmul.mubr.msk.f32.gmra.mrb[230].mxu0 %vm442_vm0, %v14235_v21  ;;  %v14252_v54 = vld [vmem:[%s15784_s1 + $0x40] sm:$0xff]  ;;  %15943 = vst [vmem:[#allocation7_spill] sm:$0xff] %v14262_v20  ;;  %v5847_v4 = vld [vmem:[#allocation2 + $0x68] sm:$0xff]  ;;  %v3216_v44 = vadd.f32 %v3215_v31, %v12778_v41  ;;  %v14280_v3 = vld [vmem:[%s15784_s1 + $0x50] sm:$0xff] }
 0x1e8   : > { %3103 = vst.msk [vmem:[#allocation2 + $0x178] sm:$0xff] %vm708_vm4, %v3099_v16  ;;  %11144 = vmatpush1.bf16.msra.mxu1 %v14228_v50  ;;  %10794 = vmatprep.mubr.msk.f32.mxu0 %vm442_vm0, %v14244_v17  ;;  %v3386_v23 = vadd.f32 %v3385_v42, %v15926_v1  ;;  %v14273_v43 = vld [vmem:[%s15784_s1 + $0x88] sm:$0xff]  ;;  %15944 = vst [vmem:[#allocation19_spill] sm:$0xff] %v14280_v3  ;;  %v14288_v62 = vld [vmem:[%s15784_s1 + $0x90] sm:$0xff]  ;;  %v14299_v31 = vpack.c.bf16 %v5845_v30, %v5844_v11  ;;  %v3485_v25 = vmax.f32 %v3391_v13, 0.0 }
 0x1e9   : > { %3102 = vst.msk [vmem:[#allocation2 + $0x170] sm:$0xff] %vm708_vm4, %v3098_v37  ;;  %v10447_v24 = vpop.f32.mrb[126].mxu0  ;;  %v10469_v19 = vpop.f32.mrb[126].mxu1  ;;  %10816 = vmatprep.mubr.msk.f32.mxu1 %vm442_vm0, %v14252_v54  ;;  %11145 = vmatprep.subr.bf16.mxu1 %v15938_v12  ;;  %v14301_v42 = vpack.c.bf16 %v5847_v4, %v5846_v26  ;;  %v3283_v37 = vmax.f32 %v3221_v38, 0.0  ;;  %v3282_v30 = vmax.f32 %v3216_v44, 0.0  ;;  %v14317_v13 = vld [vmem:[%s15784_s1 + $0x98] sm:$0xff] }
 0x1ea   : > { %v3225_v49 = vpop.f32.mrb[127].mxu0  ;;  %v3395_v33 = vpop.f32.mrb[127].mxu1  ;;  %10817 = vmatmul.mubr.msk.f32.gmra.mrb[232].mxu1 %vm442_vm0, %v14262_v20  ;;  %v14293_v60 = vadd.f32 %v10447_v24, %v12844_v59  ;;  %v14296_v14 = vadd.f32 %v10469_v19, %v15941_v32  ;;  %v14308_v19 = vld [vmem:[%s15784_s1 + $0x58] sm:$0xff]  ;;  %v3484_v11 = vmax.f32 %v3386_v23, 0.0  ;;  %v14324_v4 = vld [vmem:[%s15784_s1 + $0x60] sm:$0xff] }
 0x1eb   : > { %10795 = vmatmul.mubr.msk.f32.gmra.mrb[232].mxu0 %vm442_vm0, %v14273_v43  ;;  %10819 = vmatprep.mubr.msk.f32.mxu1 %vm442_vm0, %v14280_v3  ;;  %15945 = vst [vmem:[#allocation20_spill] sm:$0xff] %v14308_v19  ;;  %15946 = vst [vmem:[#allocation11_spill] sm:$0xff] %v14324_v4  ;;  %v3396_v44 = vadd.f32 %v3395_v33, %v12817_v52 }
 0x1ec   : > { %11147 = vmatpush1.bf16.msra.mxu1 %v14266_v29  ;;  %10797 = vmatprep.mubr.msk.f32.mxu0 %vm442_vm0, %v14288_v62 }
 0x1ed   : > { %v10450_v8 = vpop.f32.mrb[128].mxu0  ;;  %v10472_v16 = vpop.f32.mrb[128].mxu1  ;;  %11148 = vmatprep.subr.bf16.mxu1 %v15938_v12 }
 0x1ee   : > { %v3241_v40 = vadd.f32 %v10450_v8, %v12782_v45  ;;  %v3411_v3 = vadd.f32 %v10472_v16, %v15901_v9  ;;  %v3235_v20 = vpop.f32.mrb[129].mxu0  ;;  %v3405_v24 = vpop.f32.mrb[129].mxu1  ;;  %10820 = vmatmul.mubr.msk.f32.gmra.mrb[234].mxu1 %vm442_vm0, %v14308_v19  ;;  %v3285_v16 = vmax.f32 %v14293_v60, 0.0 }
 0x1ef   : > { %v3236_v26 = vadd.f32 %v3235_v20, %v12797_v48  ;;  %v3406_v38 = vadd.f32 %v3405_v24, %v15939_v53  ;;  %10798 = vmatmul.mubr.msk.f32.gmra.mrb[234].mxu0 %vm442_vm0, %v14317_v13  ;;  %10822 = vmatprep.mubr.msk.f32.mxu1 %vm442_vm0, %v14324_v4  ;;  %v3226_v20 = vadd.f32 %v3225_v49, %v12863_v2  ;;  %v3487_v24 = vmax.f32 %v14296_v14, 0.0 }
 0x1f0   : > { %v3287_v23 = vmax.f32 %v3241_v40, 0.0  ;;  %v3489_v8 = vmax.f32 %v3411_v3, 0.0  ;;  %11150 = vmatpush1.bf16.msra.mxu1 %v14299_v31  ;;  %10838 = vmatprep.mubr.msk.f32.mxu0 %vm442_vm0, %v14125_v22  ;;  %v14343_v22 = vld [vmem:[%s15784_s1 + $0x68] sm:$0xff] }
 0x1f1   : > { %v3286_v32 = vmax.f32 %v3236_v26, 0.0  ;;  %v3488_v19 = vmax.f32 %v3406_v38, 0.0  ;;  %v10453_v53 = vpop.f32.mrb[130].mxu0  ;;  %v10475_v9 = vpop.f32.mrb[130].mxu1  ;;  %11151 = vmatprep.subr.bf16.mxu1 %v15938_v12 }
 0x1f2   : > { %v3299_v49 = vmax.f32 %v3283_v37, %v3287_v23  ;;  %v14336_v4 = vmax.f32 %v3485_v25, %v3489_v8  ;;  %v3251_v33 = vadd.f32 %v10453_v53, %v12879_v10  ;;  %v3421_v3 = vadd.f32 %v10475_v9, %v12821_v56  ;;  %v3245_v40 = vpop.f32.mrb[131].mxu0  ;;  %v3415_v52 = vpop.f32.mrb[131].mxu1  ;;  %10823 = vmatmul.mubr.msk.f32.gmra.mrb[236].mxu1 %vm442_vm0, %v14343_v22  ;;  %v5848_v23 = vld [vmem:[#allocation2 + $0x70] sm:$0xff] }
 0x1f3   : > { %v3298_v60 = vmax.f32 %v3282_v30, %v3286_v32  ;;  %v14347_v14 = vmax.f32 %v3484_v11, %v3488_v19  ;;  %v3246_v37 = vadd.f32 %v3245_v40, %v12893_v28  ;;  %v3416_v25 = vadd.f32 %v3415_v52, %v12833_v58  ;;  %10839 = vmatmul.mubr.msk.f32.vlgmr.msra.gmra.mrb[236].mxu0 %vm442_vm0, %v14140_v18  ;;  %v5849_v32 = vld [vmem:[#allocation2 + $0x78] sm:$0xff]  ;;  %v14359_v52 = vld [vmem:[%s15784_s1 + $0x70] sm:$0xff] }
 0x1f4   : > { %v3284_v9 = vmax.f32 %v3226_v20, 0.0  ;;  %v3289_v53 = vmax.f32 %v3251_v33, 0.0  ;;  %v3491_v26 = vmax.f32 %v3421_v3, 0.0  ;;  %11153 = vmatpush1.bf16.msra.mxu1 %v14301_v42  ;;  %11165 = vmatpush1.bf16.msra.mxu0 %v14160_v7  ;;  %v3303_v38 = vmax.f32 %v14189_v46, %v3299_v49 }
 0x1f5   : > { %v3486_v19 = vmax.f32 %v3396_v44, 0.0  ;;  %v3288_v30 = vmax.f32 %v3246_v37, 0.0  ;;  %v3490_v11 = vmax.f32 %v3416_v25, 0.0  ;;  %v10456_v8 = vpop.f32.mrb[132].mxu0  ;;  %v10478_v40 = vpop.f32.mrb[132].mxu1  ;;  %10825 = vmatprep.mubr.msk.f32.mxu1 %vm442_vm0, %v14359_v52  ;;  %10841 = vmatprep.mubr.msk.f32.mxu0 %vm442_vm0, %v14154_v39  ;;  %v3302_v18 = vmax.f32 %v14200_v6, %v3298_v60 }
 0x1f6   : > { %v3301_v7 = vmax.f32 %v3285_v16, %v3289_v53  ;;  %v14366_v46 = vmax.f32 %v3487_v24, %v3491_v26  ;;  %v3261_v20 = vadd.f32 %v10456_v8, %v15906_v27  ;;  %11154 = vmatprep.subr.bf16.mxu1 %v15938_v12  ;;  %v3255_v44 = vpop.f32.mrb[133].mxu0  ;;  %v3425_v49 = vpop.f32.mrb[133].mxu1  ;;  %11166 = vmatprep.subr.bf16.mxu0 %v15938_v12  ;;  %v5850_v16 = vld [vmem:[#allocation2 + $0x80] sm:$0xff]  ;;  %v5851_v24 = vld [vmem:[#allocation2 + $0x88] sm:$0xff] }
 0x1f7   : > { %v3300_v33 = vmax.f32 %v3284_v9, %v3288_v30  ;;  %v14370_v3 = vmax.f32 %v3486_v19, %v3490_v11  ;;  %v3256_v37 = vadd.f32 %v3255_v44, %v15935_v63  ;;  %v14374_v25 = vpack.c.bf16 %v5849_v32, %v5848_v23  ;;  %10826 = vmatmul.mubr.msk.f32.gmra.mrb[238].mxu1 %vm442_vm0, %v14235_v21  ;;  %v5853_v11 = vld [vmem:[#allocation2 + $0x98] sm:$0xff] }
 0x1f8   : > { %v3291_v39 = vmax.f32 %v3261_v20, 0.0  ;;  %10842 = vmatmul.mubr.msk.f32.gmra.mrb[238].mxu0 %vm442_vm0, %v14167_v15  ;;  %v3305_v6 = vmax.f32 %v14219_v51, %v3301_v7  ;;  %10828 = vmatprep.mubr.msk.f32.mxu1 %vm442_vm0, %v14244_v17  ;;  %v14392_v30 = vpack.c.bf16 %v5851_v24, %v5850_v16  ;;  %v3426_v8 = vadd.f32 %v3425_v49, %v12778_v41 }
 0x1f9   : > { %v3290_v60 = vmax.f32 %v3256_v37, 0.0  ;;  %11156 = vmatpush1.bf16.msra.mxu1 %v14374_v25  ;;  %11168 = vmatpush1.bf16.msra.mxu0 %v14228_v50  ;;  %v10459_v9 = vpop.f32.mrb[134].mxu0  ;;  %v10481_v53 = vpop.f32.mrb[134].mxu1  ;;  %v3304_v26 = vmax.f32 %v14230_v47, %v3300_v33  ;;  %v3431_v47 = vadd.f32 %v10478_v40, %v12766_v36 }
 0x1fa   : > { %v3307_v23 = vmax.f32 %v3303_v38, %v3291_v39  ;;  %v3271_v32 = vadd.f32 %v10459_v9, %v12951_v57  ;;  %10844 = vmatprep.mubr.msk.f32.mxu0 %vm442_vm0, %v14182_v0  ;;  %v3265_v15 = vpop.f32.mrb[135].mxu0  ;;  %v3435_v51 = vpop.f32.mrb[135].mxu1  ;;  %11157 = vmatprep.subr.bf16.mxu1 %v15938_v12  ;;  %v5852_v0 = vld [vmem:[#allocation2 + $0x90] sm:$0xff] }
 0x1fb   : > { %v3306_v19 = vmax.f32 %v3302_v18, %v3290_v60  ;;  %11169 = vmatprep.subr.bf16.mxu0 %v15938_v12  ;;  %v3266_v50 = vadd.f32 %v3265_v15, %v12969_v55  ;;  %10829 = vmatmul.mubr.msk.f32.gmra.mrb[240].mxu1 %vm442_vm0, %v14273_v43  ;;  %v14412_v39 = vpack.c.bf16 %v5853_v11, %v5852_v0  ;;  %v3493_v16 = vmax.f32 %v3431_v47, 0.0  ;;  %v14446_v0 = vld [vmem:[%s15786_s3 + $0x18] sm:$0xff] }
 0x1fc   : > { %3311 = vst.msk [vmem:[#allocation2 + $0x188] sm:$0xff] %vm708_vm4, %v3307_v23  ;;  %v3293_v38 = vmax.f32 %v3271_v32, 0.0  ;;  %10845 = vmatmul.mubr.msk.f32.gmra.mrb[240].mxu0 %vm442_vm0, %v14196_v61  ;;  %10831 = vmatprep.mubr.msk.f32.mxu1 %vm442_vm0, %v14288_v62  ;;  %v3492_v60 = vmax.f32 %v3426_v8, 0.0  ;;  %v3436_v9 = vadd.f32 %v3435_v51, %v12863_v2 }
 0x1fd   : > { %3310 = vst.msk [vmem:[#allocation2 + $0x180] sm:$0xff] %vm708_vm4, %v3306_v19  ;;  %v3292_v18 = vmax.f32 %v3266_v50, 0.0  ;;  %11159 = vmatpush1.bf16.msra.mxu1 %v14392_v30  ;;  %11171 = vmatpush1.bf16.msra.mxu0 %v14266_v29  ;;  %v10484_v7 = vpop.f32.mrb[136].mxu1 }
 0x1fe   : > { %v3309_v40 = vmax.f32 %v3305_v6, %v3293_v38  ;;  %v3451_v20 = vadd.f32 %v10484_v7, %v12782_v45  ;;  %v10500_v44 = vpop.f32.mrb[136].mxu0  ;;  %10847 = vmatprep.mubr.msk.f32.mxu0 %vm442_vm0, %v14214_v35  ;;  %v3445_v61 = vpop.f32.mrb[137].mxu1  ;;  %11160 = vmatprep.subr.bf16.mxu1 %v15938_v12  ;;  %v14417_v6 = vld [vmem:[%s15786_s3 + $0x8] sm:$0xff]  ;;  %v3441_v35 = vadd.f32 %v10481_v53, %v12844_v59  ;;  %v14432_v53 = vld [vmem:[%s15786_s3] sm:$0xff] }
 0x1ff   : > { %v3308_v33 = vmax.f32 %v3304_v26, %v3292_v18  ;;  %11172 = vmatprep.subr.bf16.mxu0 %v15938_v12  ;;  %v3446_v49 = vadd.f32 %v3445_v61, %v12797_v48  ;;  %v3595_v37 = vpop.f32.mrb[137].mxu0  ;;  %10832 = vmatmul.mubr.msk.f32.gmra.mrb[242].mxu1 %vm442_vm0, %v14317_v13  ;;  %v3601_v19 = vadd.f32 %v10500_v44, %v15896_v5  ;;  %v15947_v18 = vld [vmem:[#allocation7_spill] sm:$0xff] }
 0x200   : > { %3313 = vst.msk [vmem:[#allocation2 + $0x198] sm:$0xff] %vm708_vm4, %v3309_v40  ;;  %v3497_v24 = vmax.f32 %v3451_v20, 0.0  ;;  %10848 = vmatmul.mubr.msk.f32.gmra.mrb[242].mxu0 %vm442_vm0, %v14224_v34  ;;  %9356 = vmatprep.mubr.msk.f32.mxu1 %vm5854_vm6, %v14417_v6  ;;  %v3596_v11 = vadd.f32 %v3595_v37, %v15926_v1  ;;  %v3494_v40 = vmax.f32 %v3436_v9, 0.0 }
 0x201   : > { %3312 = vst.msk [vmem:[#allocation2 + $0x190] sm:$0xff] %vm708_vm4, %v3308_v33  ;;  %v3496_v26 = vmax.f32 %v3446_v49, 0.0  ;;  %11162 = vmatpush1.bf16.msra.mxu1 %v14412_v39  ;;  %11174 = vmatpush1.bf16.msra.mxu0 %v14299_v31  ;;  %v10487_v23 = vpop.f32.mrb[138].mxu1  ;;  %v14459_v33 = vld [vmem:[%s15786_s3 + $0x10] sm:$0xff] }
 0x202   : > { %v3509_v32 = vmax.f32 %v3493_v16, %v3497_v24  ;;  %v3461_v15 = vadd.f32 %v10487_v23, %v12879_v10  ;;  %v10503_v34 = vpop.f32.mrb[138].mxu0  ;;  %10850 = vmatprep.mubr.msk.f32.mxu0 %vm442_vm0, %v14252_v54  ;;  %v3455_v51 = vpop.f32.mrb[139].mxu1  ;;  %11175 = vmatprep.subr.bf16.mxu0 %v15938_v12  ;;  %v3495_v54 = vmax.f32 %v3441_v35, 0.0  ;;  %v15948_v35 = vld [vmem:[#allocation19_spill] sm:$0xff]  ;;  %v3694_v23 = vmax.f32 %v3596_v11, 0.0 }
 0x203   : > { %v3508_v50 = vmax.f32 %v3492_v60, %v3496_v26  ;;  %11193 = vmatprep.subr.bf16.mxu1 %v15938_v12  ;;  %v3456_v47 = vadd.f32 %v3455_v51, %v12893_v28  ;;  %v3605_v38 = vpop.f32.mrb[139].mxu0  ;;  %v15949_v60 = vld [vmem:[#allocation10_spill] sm:$0xff] }
 0x204   : > { %v3499_v8 = vmax.f32 %v3461_v15, 0.0  ;;  %10851 = vmatmul.mubr.msk.f32.gmra.mrb[244].mxu0 %vm442_vm0, %v15947_v18  ;;  %5926 = vmatmul.mubr.f32.vlgmr.msra.gmra.mrb[244].mxu1 %v14432_v53  ;;  %v3513_v7 = vmax.f32 %v14336_v4, %v3509_v32  ;;  %v15950_v15 = vld [vmem:[#allocation8_spill] sm:$0xff] }
 0x205   : > { %v3498_v20 = vmax.f32 %v3456_v47, 0.0  ;;  %11177 = vmatpush1.bf16.msra.mxu0 %v14301_v42  ;;  %11195 = vmatpush1.bf16.msra.mxu1 %v14266_v29  ;;  %v10490_v44 = vpop.f32.mrb[140].mxu1  ;;  %v3512_v61 = vmax.f32 %v14347_v14, %v3508_v50  ;;  %v3695_v29 = vmax.f32 %v3601_v19, 0.0  ;;  %v15951_v50 = vld [vmem:[#allocation20_spill] sm:$0xff] }
 0x206   : > { %v3511_v49 = vmax.f32 %v3495_v54, %v3499_v8  ;;  %v3471_v37 = vadd.f32 %v10490_v44, %v15906_v27  ;;  %v10506_v16 = vpop.f32.mrb[140].mxu0  ;;  %10853 = vmatprep.mubr.msk.f32.mxu0 %vm442_vm0, %v15948_v35  ;;  %9357 = vmatprep.mubr.msk.f32.mxu1 %vm5854_vm6, %v14446_v0  ;;  %v3465_v4 = vpop.f32.mrb[141].mxu1  ;;  %v15952_v47 = vld [vmem:[#allocation12_spill] sm:$0xff] }
 0x207   : > { %v3510_v24 = vmax.f32 %v3494_v40, %v3498_v20  ;;  %v3621_v14 = vadd.f32 %v10506_v16, %v15949_v60  ;;  %11178 = vmatprep.subr.bf16.mxu0 %v15938_v12  ;;  %11196 = vmatprep.subr.bf16.mxu1 %v15938_v12  ;;  %v3466_v9 = vadd.f32 %v3465_v4, %v15935_v63  ;;  %v3615_v26 = vpop.f32.mrb[141].mxu0  ;;  %v15953_v20 = vld [vmem:[#allocation13_spill] sm:$0xff] }
 0x208   : > { %v3501_v32 = vmax.f32 %v3471_v37, 0.0  ;;  %v3616_v51 = vadd.f32 %v3615_v26, %v15950_v15  ;;  %10854 = vmatmul.mubr.msk.f32.gmra.mrb[246].mxu0 %vm442_vm0, %v15951_v50  ;;  %5931 = vmatmul.mubr.f32.gmra.mrb[246].mxu1 %v14459_v33  ;;  %v3515_v19 = vmax.f32 %v14366_v46, %v3511_v49  ;;  %v3611_v54 = vadd.f32 %v10503_v34, %v15952_v47  ;;  %v15954_v26 = vld [vmem:[#allocation11_spill] sm:$0xff] }
 0x209   : > { %v3699_v8 = vmax.f32 %v3621_v14, 0.0  ;;  %v3500_v18 = vmax.f32 %v3466_v9, 0.0  ;;  %11180 = vmatpush1.bf16.msra.mxu0 %v14374_v25  ;;  %11198 = vmatpush1.bf16.msra.mxu1 %v14299_v31  ;;  %v10493_v40 = vpop.f32.mrb[142].mxu1  ;;  %v3514_v11 = vmax.f32 %v14370_v3, %v3510_v24  ;;  %v3606_v44 = vadd.f32 %v3605_v38, %v15953_v20 }
 0x20a   : > { %v3517_v37 = vmax.f32 %v3513_v7, %v3501_v32  ;;  %v3698_v16 = vmax.f32 %v3616_v51, 0.0  ;;  %v3481_v35 = vadd.f32 %v10493_v40, %v12951_v57  ;;  %v10509_v4 = vpop.f32.mrb[142].mxu0  ;;  %10856 = vmatprep.mubr.msk.f32.mxu0 %vm442_vm0, %v15954_v26  ;;  %11181 = vmatprep.subr.bf16.mxu0 %v15938_v12  ;;  %v3475_v46 = vpop.f32.mrb[143].mxu1 }
 0x20b   : > { %v14484_v34 = vmax.f32 %v3695_v29, %v3699_v8  ;;  %v3516_v49 = vmax.f32 %v3512_v61, %v3500_v18  ;;  %v3631_v31 = vadd.f32 %v10509_v4, %v12821_v56  ;;  %11199 = vmatprep.subr.bf16.mxu1 %v15938_v12  ;;  %v3476_v3 = vadd.f32 %v3475_v46, %v12969_v55  ;;  %v3625_v38 = vpop.f32.mrb[143].mxu0 }
 0x20c   : > { %3521 = vst.msk [vmem:[#allocation2 + $0x1a8] sm:$0xff] %vm708_vm4, %v3517_v37  ;;  %v14490_v7 = vmax.f32 %v3694_v23, %v3698_v16  ;;  %v3503_v24 = vmax.f32 %v3481_v35, 0.0  ;;  %v3626_v14 = vadd.f32 %v3625_v38, %v12833_v58  ;;  %10857 = vmatmul.mubr.msk.f32.gmra.mrb[248].mxu0 %vm442_vm0, %v14343_v22  ;;  %9360 = vmatprep.mubr.msk.f32.mxu1 %vm5854_vm6, %v14417_v6  ;;  %v3697_v61 = vmax.f32 %v3611_v54, 0.0 }
 0x20d   : > { %3520 = vst.msk [vmem:[#allocation2 + $0x1a0] sm:$0xff] %vm708_vm4, %v3516_v49  ;;  %v3701_v29 = vmax.f32 %v3631_v31, 0.0  ;;  %v3502_v9 = vmax.f32 %v3476_v3, 0.0  ;;  %11183 = vmatpush1.bf16.msra.mxu0 %v14392_v30  ;;  %11201 = vmatpush1.bf16.msra.mxu1 %v14301_v42  ;;  %v10534_v23 = vpop.f32.mrb[144].mxu1  ;;  %v3696_v32 = vmax.f32 %v3606_v44, 0.0  ;;  %v5955_v44 = vld [vmem:[#allocation2 + $0xa8] sm:$0xff] }
 0x20e   : > { %v3519_v51 = vmax.f32 %v3515_v19, %v3503_v24  ;;  %v3700_v50 = vmax.f32 %v3626_v14, 0.0  ;;  %v10512_v8 = vpop.f32.mrb[144].mxu0  ;;  %10859 = vmatprep.mubr.msk.f32.mxu0 %vm442_vm0, %v14359_v52  ;;  %11184 = vmatprep.subr.bf16.mxu0 %v15938_v12  ;;  %v3805_v22 = vpop.f32.mrb[145].mxu1  ;;  %v5954_v19 = vld [vmem:[#allocation2 + $0xa0] sm:$0xff]  ;;  %v5956_v49 = vld [vmem:[#allocation2 + $0xb0] sm:$0xff]  ;;  %v5957_v31 = vld [vmem:[#allocation2 + $0xb8] sm:$0xff] }
 0x20f   : > { %v14503_v54 = vmax.f32 %v3697_v61, %v3701_v29  ;;  %v3518_v18 = vmax.f32 %v3514_v11, %v3502_v9  ;;  %11202 = vmatprep.subr.bf16.mxu1 %v15938_v12  ;;  %v3635_v40 = vpop.f32.mrb[145].mxu0  ;;  %v3811_v11 = vadd.f32 %v10534_v23, %v15896_v5  ;;  %v3806_v4 = vadd.f32 %v3805_v22, %v15926_v1 }
 0x210   : > { %3523 = vst.msk [vmem:[#allocation2 + $0x1b8] sm:$0xff] %vm708_vm4, %v3519_v51  ;;  %v14507_v37 = vmax.f32 %v3696_v32, %v3700_v50  ;;  %10860 = vmatmul.mubr.msk.f32.gmra.mrb[250].mxu0 %vm442_vm0, %v14235_v21  ;;  %v3641_v21 = vadd.f32 %v10512_v8, %v12766_v36  ;;  %v14521_v46 = vpack.c.bf16 %v5955_v44, %v5954_v19 }
 0x211   : > { %3522 = vst.msk [vmem:[#allocation2 + $0x1b0] sm:$0xff] %vm708_vm4, %v3518_v18  ;;  %11186 = vmatpush1.bf16.msra.mxu0 %v14412_v39  ;;  %11204 = vmatpush1.bf16.msra.mxu1 %v14374_v25  ;;  %v10537_v52 = vpop.f32.mrb[146].mxu1  ;;  %v3636_v3 = vadd.f32 %v3635_v40, %v12778_v41  ;;  %v3905_v24 = vmax.f32 %v3811_v11, 0.0  ;;  %v14533_v9 = vpack.c.bf16 %v5957_v31, %v5956_v49  ;;  %v3904_v23 = vmax.f32 %v3806_v4, 0.0 }
 0x212   : > { %v10515_v16 = vpop.f32.mrb[146].mxu0  ;;  %10862 = vmatprep.mubr.msk.f32.mxu0 %vm442_vm0, %v14244_v17  ;;  %11187 = vmatprep.subr.bf16.mxu0 %v15938_v12  ;;  %v3815_v35 = vpop.f32.mrb[147].mxu1  ;;  %v3821_v17 = vadd.f32 %v10537_v52, %v15952_v47 }
 0x213   : > { %11205 = vmatprep.subr.bf16.mxu1 %v15938_v12  ;;  %v3645_v26 = vpop.f32.mrb[147].mxu0  ;;  %v3702_v8 = vmax.f32 %v3636_v3, 0.0  ;;  %v3651_v22 = vadd.f32 %v10515_v16, %v12844_v59  ;;  %v3816_v19 = vadd.f32 %v3815_v35, %v15953_v20 }
 0x214   : > { %10863 = vmatmul.mubr.msk.f32.gmra.mrb[252].mxu0 %vm442_vm0, %v14273_v43  ;;  %v3703_v43 = vmax.f32 %v3641_v21, 0.0  ;;  %v3907_v40 = vmax.f32 %v3821_v17, 0.0  ;;  %v3646_v21 = vadd.f32 %v3645_v26, %v12863_v2 }
 0x215   : > { %11189 = vmatpush1.bf16.msra.mxu0 %v14521_v46  ;;  %11207 = vmatpush1.bf16.msra.mxu1 %v14392_v30  ;;  %v10540_v38 = vpop.f32.mrb[148].mxu1 }
 0x216   : > { %v10518_v14 = vpop.f32.mrb[148].mxu0  ;;  %v3831_v61 = vadd.f32 %v10540_v38, %v15949_v60  ;;  %10865 = vmatprep.mubr.msk.f32.mxu0 %vm442_vm0, %v14288_v62  ;;  %11190 = vmatprep.subr.bf16.mxu0 %v15938_v12  ;;  %v3825_v29 = vpop.f32.mrb[149].mxu1 }
 0x217   : > { %v3661_v32 = vadd.f32 %v10518_v14, %v12782_v45  ;;  %11208 = vmatprep.subr.bf16.mxu1 %v15938_v12  ;;  %v3655_v51 = vpop.f32.mrb[149].mxu0  ;;  %v3826_v50 = vadd.f32 %v3825_v29, %v15950_v15 }
 0x218   : > { %v3909_v18 = vmax.f32 %v3831_v61, 0.0  ;;  %v3656_v62 = vadd.f32 %v3655_v51, %v12797_v48  ;;  %10866 = vmatmul.mubr.msk.f32.gmra.mrb[254].mxu0 %vm442_vm0, %v14317_v13 }
 0x219   : > { %v3707_v44 = vmax.f32 %v3661_v32, 0.0  ;;  %v3908_v52 = vmax.f32 %v3826_v50, 0.0  ;;  %11192 = vmatpush1.bf16.msra.mxu0 %v14533_v9  ;;  %11210 = vmatpush1.bf16.msra.mxu1 %v14412_v39  ;;  %v10543_v11 = vpop.f32.mrb[150].mxu1  ;;  %v3906_v32 = vmax.f32 %v3816_v19, 0.0 }
 0x21a   : > { %v14546_v4 = vmax.f32 %v3905_v24, %v3909_v18  ;;  %v3706_v16 = vmax.f32 %v3656_v62, 0.0  ;;  %v10521_v49 = vpop.f32.mrb[150].mxu0  ;;  %v3841_v31 = vadd.f32 %v10543_v11, %v12821_v56  ;;  %9358 = vmatprep.mubr.msk.f32.mxu0 %vm5854_vm6, %v14417_v6  ;;  %11211 = vmatprep.subr.bf16.mxu1 %v15938_v12  ;;  %v3835_v13 = vpop.f32.mrb[151].mxu1  ;;  %v3705_v24 = vmax.f32 %v3651_v22, 0.0 }
 0x21b   : > { %v3719_v35 = vmax.f32 %v3703_v43, %v3707_v44  ;;  %v14552_v3 = vmax.f32 %v3904_v23, %v3908_v52  ;;  %v3671_v17 = vadd.f32 %v10521_v49, %v12879_v10  ;;  %11223 = vmatprep.subr.bf16.mxu0 %v15938_v12  ;;  %v3665_v26 = vpop.f32.mrb[151].mxu0  ;;  %v3836_v38 = vadd.f32 %v3835_v13, %v12833_v58  ;;  %v6054_v49 = vld [vmem:[#allocation2 + $0xc8] sm:$0xff] }
 0x21c   : > { %v3718_v14 = vmax.f32 %v3702_v8, %v3706_v16  ;;  %v3911_v61 = vmax.f32 %v3841_v31, 0.0  ;;  %v3666_v29 = vadd.f32 %v3665_v26, %v12893_v28  ;;  %6023 = vmatmul.mubr.f32.vlgmr.msra.gmra.mrb[0].mxu0 %v14432_v53  ;;  %v3704_v18 = vmax.f32 %v3646_v21, 0.0  ;;  %v6053_v16 = vld [vmem:[#allocation2 + $0xc0] sm:$0xff] }
 0x21d   : > { %v3709_v51 = vmax.f32 %v3671_v17, 0.0  ;;  %v3910_v50 = vmax.f32 %v3836_v38, 0.0  ;;  %11213 = vmatpush1.bf16.msra.mxu1 %v14521_v46  ;;  %11225 = vmatpush1.bf16.msra.mxu0 %v14301_v42  ;;  %v3723_v43 = vmax.f32 %v14484_v34, %v3719_v35  ;;  %v10546_v23 = vpop.f32.mrb[152].mxu1 }
 0x21e   : > { %v14562_v62 = vmax.f32 %v3907_v40, %v3911_v61  ;;  %v3708_v22 = vmax.f32 %v3666_v29, 0.0  ;;  %v10524_v8 = vpop.f32.mrb[152].mxu0  ;;  %9359 = vmatprep.mubr.msk.f32.mxu0 %vm5854_vm6, %v14446_v0  ;;  %11214 = vmatprep.subr.bf16.mxu1 %v15938_v12  ;;  %v3722_v19 = vmax.f32 %v14490_v7, %v3718_v14  ;;  %v3845_v44 = vpop.f32.mrb[153].mxu1  ;;  %v14581_v29 = vpack.c.bf16 %v6054_v49, %v6053_v16 }
 0x21f   : > { %v3721_v52 = vmax.f32 %v3705_v24, %v3709_v51  ;;  %v14568_v11 = vmax.f32 %v3906_v32, %v3910_v50  ;;  %v3681_v42 = vadd.f32 %v10524_v8, %v15906_v27  ;;  %11226 = vmatprep.subr.bf16.mxu0 %v15938_v12  ;;  %v3675_v34 = vpop.f32.mrb[153].mxu0  ;;  %v6055_v51 = vld [vmem:[#allocation2 + $0xd0] sm:$0xff]  ;;  %v6056_v50 = vld [vmem:[#allocation2 + $0xd8] sm:$0xff] }
 0x220   : > { %v3720_v40 = vmax.f32 %v3704_v18, %v3708_v22  ;;  %v3676_v21 = vadd.f32 %v3675_v34, %v15935_v63  ;;  %6028 = vmatmul.mubr.f32.gmra.mrb[2].mxu0 %v14459_v33  ;;  %v14596_v34 = vpack.c.bf16 %v6056_v50, %v6055_v51 }
 0x221   : > { %v3711_v31 = vmax.f32 %v3681_v42, 0.0  ;;  %11216 = vmatpush1.bf16.msra.mxu1 %v14533_v9  ;;  %11228 = vmatpush1.bf16.msra.mxu0 %v14374_v25  ;;  %v3725_v7 = vmax.f32 %v14503_v54, %v3721_v52  ;;  %v10549_v13 = vpop.f32.mrb[154].mxu1  ;;  %v3851_v25 = vadd.f32 %v10546_v23, %v12766_v36 }
 0x222   : > { %v3710_v35 = vmax.f32 %v3676_v21, 0.0  ;;  %v10527_v17 = vpop.f32.mrb[154].mxu0  ;;  %11217 = vmatprep.subr.bf16.mxu1 %v15938_v12  ;;  %11229 = vmatprep.subr.bf16.mxu0 %v15938_v12  ;;  %v3724_v26 = vmax.f32 %v14507_v37, %v3720_v40  ;;  %v3855_v38 = vpop.f32.mrb[155].mxu1  ;;  %v3846_v37 = vadd.f32 %v3845_v44, %v12778_v41  ;;  %v3861_v21 = vadd.f32 %v10549_v13, %v12844_v59 }
 0x223   : > { %v3727_v24 = vmax.f32 %v3723_v43, %v3711_v31  ;;  %v3691_v14 = vadd.f32 %v10527_v17, %v12951_v57  ;;  %v3685_v61 = vpop.f32.mrb[155].mxu0  ;;  %9362 = vmatprep.mubr.msk.f32.mxu0 %vm5854_vm6, %v14417_v6  ;;  %v3913_v40 = vmax.f32 %v3851_v25, 0.0 }
 0x224   : > { %v3726_v54 = vmax.f32 %v3722_v19, %v3710_v35  ;;  %v3686_v32 = vadd.f32 %v3685_v61, %v12969_v55  ;;  %v3912_v31 = vmax.f32 %v3846_v37, 0.0  ;;  %v3856_v35 = vadd.f32 %v3855_v38, %v12863_v2 }
 0x225   : > { %3731 = vst.msk [vmem:[#allocation2 + $0x1c8] sm:$0xff] %vm708_vm4, %v3727_v24  ;;  %v3713_v43 = vmax.f32 %v3691_v14, 0.0  ;;  %11219 = vmatpush1.bf16.msra.mxu1 %v14581_v29  ;;  %11231 = vmatpush1.bf16.msra.mxu0 %v14392_v30  ;;  %v10552_v18 = vpop.f32.mrb[156].mxu1 }
 0x226   : > { %3730 = vst.msk [vmem:[#allocation2 + $0x1c0] sm:$0xff] %vm708_vm4, %v3726_v54  ;;  %v3712_v22 = vmax.f32 %v3686_v32, 0.0  ;;  %v3871_v23 = vadd.f32 %v10552_v18, %v12782_v45  ;;  %v10568_v8 = vpop.f32.mrb[156].mxu0  ;;  %11220 = vmatprep.subr.bf16.mxu1 %v15938_v12  ;;  %11232 = vmatprep.subr.bf16.mxu0 %v15938_v12  ;;  %v3865_v19 = vpop.f32.mrb[157].mxu1  ;;  %v3915_v32 = vmax.f32 %v3861_v21, 0.0 }
 0x227   : > { %v3729_v52 = vmax.f32 %v3725_v7, %v3713_v43  ;;  %v3866_v44 = vadd.f32 %v3865_v19, %v12797_v48  ;;  %v4015_v42 = vpop.f32.mrb[157].mxu0  ;;  %v3914_v43 = vmax.f32 %v3856_v35, 0.0 }
 0x228   : > { %v3728_v16 = vmax.f32 %v3724_v26, %v3712_v22  ;;  %v3917_v49 = vmax.f32 %v3871_v23, 0.0  ;;  %v4021_v26 = vadd.f32 %v10568_v8, %v15896_v5  ;;  %v4016_v51 = vadd.f32 %v4015_v42, %v15926_v1 }
 0x229   : > { %3733 = vst.msk [vmem:[#allocation2 + $0x1d8] sm:$0xff] %vm708_vm4, %v3729_v52  ;;  %v3916_v17 = vmax.f32 %v3866_v44, 0.0  ;;  %11222 = vmatpush1.bf16.msra.mxu1 %v14596_v34  ;;  %11234 = vmatpush1.bf16.msra.mxu0 %v14412_v39  ;;  %v10555_v7 = vpop.f32.mrb[158].mxu1 }
 0x22a   : > { %3732 = vst.msk [vmem:[#allocation2 + $0x1d0] sm:$0xff] %vm708_vm4, %v3728_v16  ;;  %v3929_v24 = vmax.f32 %v3913_v40, %v3917_v49  ;;  %v3881_v14 = vadd.f32 %v10555_v7, %v12879_v10  ;;  %v10571_v61 = vpop.f32.mrb[158].mxu0  ;;  %11235 = vmatprep.subr.bf16.mxu0 %v15938_v12  ;;  %11253 = vmatprep.subr.bf16.mxu1 %v15938_v12  ;;  %v3875_v13 = vpop.f32.mrb[159].mxu1 }
 0x22b   : > { %v3928_v38 = vmax.f32 %v3912_v31, %v3916_v17  ;;  %v3876_v25 = vadd.f32 %v3875_v13, %v12893_v28  ;;  %v4025_v54 = vpop.f32.mrb[159].mxu0  ;;  %v4031_v35 = vadd.f32 %v10571_v61, %v15952_v47 }
 0x22c   : > { %v3919_v50 = vmax.f32 %v3881_v14, 0.0  ;;  %6122 = vmatmul.mubr.f32.vlgmr.msra.gmra.mrb[248].mxu1 %v14432_v53  ;;  %v3933_v37 = vmax.f32 %v14546_v4, %v3929_v24  ;;  %v4115_v4 = vmax.f32 %v4021_v26, 0.0  ;;  %v4026_v13 = vadd.f32 %v4025_v54, %v15953_v20 }
 0x22d   : > { %v3918_v18 = vmax.f32 %v3876_v25, 0.0  ;;  %11237 = vmatpush1.bf16.msra.mxu0 %v14521_v46  ;;  %11255 = vmatpush1.bf16.msra.mxu1 %v14392_v30  ;;  %v10558_v22 = vpop.f32.mrb[160].mxu1  ;;  %v3932_v23 = vmax.f32 %v14552_v3, %v3928_v38  ;;  %v4114_v3 = vmax.f32 %v4016_v51, 0.0 }
 0x22e   : > { %v3931_v8 = vmax.f32 %v3915_v32, %v3919_v50  ;;  %9361 = vmatprep.mubr.msk.f32.mxu1 %vm5854_vm6, %v14446_v0  ;;  %v3891_v19 = vadd.f32 %v10558_v22, %v15906_v27  ;;  %v10574_v52 = vpop.f32.mrb[160].mxu0  ;;  %11238 = vmatprep.subr.bf16.mxu0 %v15938_v12  ;;  %v3885_v44 = vpop.f32.mrb[161].mxu1 }
 0x22f   : > { %v3930_v42 = vmax.f32 %v3914_v43, %v3918_v18  ;;  %v4041_v40 = vadd.f32 %v10574_v52, %v15949_v60  ;;  %11256 = vmatprep.subr.bf16.mxu1 %v15938_v12  ;;  %v3886_v30 = vadd.f32 %v3885_v44, %v15935_v63  ;;  %v4035_v21 = vpop.f32.mrb[161].mxu0  ;;  %v4117_v18 = vmax.f32 %v4031_v35, 0.0 }
 0x230   : > { %v3921_v16 = vmax.f32 %v3891_v19, 0.0  ;;  %6127 = vmatmul.mubr.f32.gmra.mrb[250].mxu1 %v14459_v33  ;;  %v4036_v49 = vadd.f32 %v4035_v21, %v15950_v15  ;;  %v3935_v31 = vmax.f32 %v14562_v62, %v3931_v8  ;;  %v4116_v19 = vmax.f32 %v4026_v13, 0.0 }
 0x231   : > { %v4119_v17 = vmax.f32 %v4041_v40, 0.0  ;;  %v3920_v7 = vmax.f32 %v3886_v30, 0.0  ;;  %11240 = vmatpush1.bf16.msra.mxu0 %v14533_v9  ;;  %11258 = vmatpush1.bf16.msra.mxu1 %v14412_v39  ;;  %v10561_v24 = vpop.f32.mrb[162].mxu1  ;;  %v3934_v14 = vmax.f32 %v14568_v11, %v3930_v42 }
 0x232   : > { %v3937_v26 = vmax.f32 %v3933_v37, %v3921_v16  ;;  %v4118_v38 = vmax.f32 %v4036_v49, 0.0  ;;  %v3901_v25 = vadd.f32 %v10561_v24, %v12951_v57  ;;  %v10577_v32 = vpop.f32.mrb[162].mxu0  ;;  %11241 = vmatprep.subr.bf16.mxu0 %v15938_v12  ;;  %11259 = vmatprep.subr.bf16.mxu1 %v15938_v12  ;;  %v3895_v62 = vpop.f32.mrb[163].mxu1  ;;  %v6152_v16 = vld [vmem:[#allocation2 + $0xe0] sm:$0xff]  ;;  %v6153_v49 = vld [vmem:[#allocation2 + $0xe8] sm:$0xff] }
 0x233   : > { %v14633_v61 = vmax.f32 %v4115_v4, %v4119_v17  ;;  %v3936_v51 = vmax.f32 %v3932_v23, %v3920_v7  ;;  %v4051_v39 = vadd.f32 %v10577_v32, %v12821_v56  ;;  %v3896_v50 = vadd.f32 %v3895_v62, %v12969_v55  ;;  %v4045_v11 = vpop.f32.mrb[163].mxu0  ;;  %9364 = vmatprep.mubr.msk.f32.mxu1 %vm5854_vm6, %v14417_v6 }
 0x234   : > { %3941 = vst.msk [vmem:[#allocation2 + $0x1e8] sm:$0xff] %vm708_vm4, %v3937_v26  ;;  %v14640_v54 = vmax.f32 %v4114_v3, %v4118_v38  ;;  %v3923_v37 = vmax.f32 %v3901_v25, 0.0  ;;  %v4046_v43 = vadd.f32 %v4045_v11, %v12833_v58  ;;  %v14661_v26 = vpack.c.bf16 %v6153_v49, %v6152_v16  ;;  %v6154_v38 = vld [vmem:[#allocation2 + $0xf0] sm:$0xff]  ;;  %v6155_v25 = vld [vmem:[#allocation2 + $0xf8] sm:$0xff] }
 0x235   : > { %3940 = vst.msk [vmem:[#allocation2 + $0x1e0] sm:$0xff] %vm708_vm4, %v3936_v51  ;;  %v4121_v22 = vmax.f32 %v4051_v39, 0.0  ;;  %v3922_v23 = vmax.f32 %v3896_v50, 0.0  ;;  %11243 = vmatpush1.bf16.msra.mxu0 %v14581_v29  ;;  %11261 = vmatpush1.bf16.msra.mxu1 %v14521_v46  ;;  %v10602_v8 = vpop.f32.mrb[164].mxu1 }
 0x236   : > { %v3939_v52 = vmax.f32 %v3935_v31, %v3923_v37  ;;  %v4120_v44 = vmax.f32 %v4046_v43, 0.0  ;;  %v10580_v4 = vpop.f32.mrb[164].mxu0  ;;  %11244 = vmatprep.subr.bf16.mxu0 %v15938_v12  ;;  %11262 = vmatprep.subr.bf16.mxu1 %v15938_v12  ;;  %v4225_v42 = vpop.f32.mrb[165].mxu1  ;;  %v4231_v35 = vadd.f32 %v10602_v8, %v15896_v5  ;;  %v14670_v43 = vpack.c.bf16 %v6155_v25, %v6154_v38 }
 0x237   : > { %v14648_v40 = vmax.f32 %v4117_v18, %v4121_v22  ;;  %v3938_v30 = vmax.f32 %v3934_v14, %v3922_v23  ;;  %v4055_v21 = vpop.f32.mrb[165].mxu0  ;;  %v4061_v24 = vadd.f32 %v10580_v4, %v12766_v36  ;;  %v4226_v14 = vadd.f32 %v4225_v42, %v15926_v1 }
 0x238   : > { %3943 = vst.msk [vmem:[#allocation2 + $0x1f8] sm:$0xff] %vm708_vm4, %v3939_v52  ;;  %v14651_v3 = vmax.f32 %v4116_v19, %v4120_v44  ;;  %v4056_v32 = vadd.f32 %v4055_v21, %v12778_v41  ;;  %v4325_v39 = vmax.f32 %v4231_v35, 0.0 }
 0x239   : > { %3942 = vst.msk [vmem:[#allocation2 + $0x1f0] sm:$0xff] %vm708_vm4, %v3938_v30  ;;  %11246 = vmatpush1.bf16.msra.mxu0 %v14596_v34  ;;  %11264 = vmatpush1.bf16.msra.mxu1 %v14533_v9  ;;  %v10605_v31 = vpop.f32.mrb[166].mxu1  ;;  %v4123_v18 = vmax.f32 %v4061_v24, 0.0  ;;  %v4324_v22 = vmax.f32 %v4226_v14, 0.0 }
 0x23a   : > { %v10583_v17 = vpop.f32.mrb[166].mxu0  ;;  %11247 = vmatprep.subr.bf16.mxu0 %v15938_v12  ;;  %11265 = vmatprep.subr.bf16.mxu1 %v15938_v12  ;;  %v4235_v7 = vpop.f32.mrb[167].mxu1  ;;  %v4241_v62 = vadd.f32 %v10605_v31, %v15952_v47  ;;  %v4122_v52 = vmax.f32 %v4056_v32, 0.0 }
 0x23b   : > { %v4065_v13 = vpop.f32.mrb[167].mxu0  ;;  %v4071_v44 = vadd.f32 %v10583_v17, %v12844_v59  ;;  %v4236_v21 = vadd.f32 %v4235_v7, %v15953_v20 }
 0x23c   : > { %v4327_v30 = vmax.f32 %v4241_v62, 0.0  ;;  %v4066_v35 = vadd.f32 %v4065_v13, %v12863_v2 }
 0x23d   : > { %11249 = vmatpush1.bf16.msra.mxu0 %v14661_v26  ;;  %11267 = vmatpush1.bf16.msra.mxu1 %v14581_v29  ;;  %v10608_v51 = vpop.f32.mrb[168].mxu1  ;;  %v4125_v13 = vmax.f32 %v4071_v44, 0.0 }
 0x23e   : > { %v10586_v50 = vpop.f32.mrb[168].mxu0  ;;  %v4251_v11 = vadd.f32 %v10608_v51, %v15949_v60  ;;  %11250 = vmatprep.subr.bf16.mxu0 %v15938_v12  ;;  %11268 = vmatprep.subr.bf16.mxu1 %v15938_v12  ;;  %v4245_v37 = vpop.f32.mrb[169].mxu1 }
 0x23f   : > { %v4081_v23 = vadd.f32 %v10586_v50, %v12782_v45  ;;  %v4075_v8 = vpop.f32.mrb[169].mxu0  ;;  %v4246_v19 = vadd.f32 %v4245_v37, %v15950_v15 }
 0x240   : > { %v4329_v4 = vmax.f32 %v4251_v11, 0.0  ;;  %v4076_v42 = vadd.f32 %v4075_v8, %v12797_v48 }
 0x241   : > { %v4127_v16 = vmax.f32 %v4081_v23, 0.0  ;;  %v4328_v49 = vmax.f32 %v4246_v19, 0.0  ;;  %11252 = vmatpush1.bf16.msra.mxu0 %v14670_v43  ;;  %11270 = vmatpush1.bf16.msra.mxu1 %v14596_v34  ;;  %v10611_v31 = vpop.f32.mrb[170].mxu1  ;;  %v4326_v23 = vmax.f32 %v4236_v21, 0.0 }
 0x242   : > { %v14680_v24 = vmax.f32 %v4325_v39, %v4329_v4  ;;  %v4126_v14 = vmax.f32 %v4076_v42, 0.0  ;;  %v10589_v38 = vpop.f32.mrb[170].mxu0  ;;  %v4261_v17 = vadd.f32 %v10611_v31, %v12821_v56  ;;  %11271 = vmatprep.subr.bf16.mxu1 %v15938_v12  ;;  %11283 = vmatprep.subr.bf16.mxu0 %v15938_v12  ;;  %v4255_v7 = vpop.f32.mrb[171].mxu1  ;;  %v4124_v4 = vmax.f32 %v4066_v35, 0.0 }
 0x243   : > { %v4139_v25 = vmax.f32 %v4123_v18, %v4127_v16  ;;  %v14685_v32 = vmax.f32 %v4324_v22, %v4328_v49  ;;  %v4091_v62 = vadd.f32 %v10589_v38, %v12879_v10  ;;  %v4085_v51 = vpop.f32.mrb[171].mxu0  ;;  %v4256_v50 = vadd.f32 %v4255_v7, %v12833_v58  ;;  %v6252_v38 = vld [vmem:[#allocation2 + $0x108] sm:$0xff] }
 0x244   : > { %v4138_v39 = vmax.f32 %v4122_v52, %v4126_v14  ;;  %v4331_v11 = vmax.f32 %v4261_v17, 0.0  ;;  %6221 = vmatmul.mubr.f32.vlgmr.msra.gmra.mrb[4].mxu0 %v14432_v53  ;;  %v4086_v37 = vadd.f32 %v4085_v51, %v12893_v28  ;;  %v6251_v14 = vld [vmem:[#allocation2 + $0x100] sm:$0xff] }
 0x245   : > { %v4129_v8 = vmax.f32 %v4091_v62, 0.0  ;;  %v4330_v19 = vmax.f32 %v4256_v50, 0.0  ;;  %11273 = vmatpush1.bf16.msra.mxu1 %v14661_v26  ;;  %11285 = vmatpush1.bf16.msra.mxu0 %v14521_v46  ;;  %v4143_v18 = vmax.f32 %v14633_v61, %v4139_v25  ;;  %v10614_v22 = vpop.f32.mrb[172].mxu1 }
 0x246   : > { %v14694_v42 = vmax.f32 %v4327_v30, %v4331_v11  ;;  %v4128_v44 = vmax.f32 %v4086_v37, 0.0  ;;  %9363 = vmatprep.mubr.msk.f32.mxu0 %vm5854_vm6, %v14446_v0  ;;  %v10592_v52 = vpop.f32.mrb[172].mxu0  ;;  %11274 = vmatprep.subr.bf16.mxu1 %v15938_v12  ;;  %v4142_v21 = vmax.f32 %v14640_v54, %v4138_v39  ;;  %v4265_v16 = vpop.f32.mrb[173].mxu1  ;;  %v14713_v37 = vpack.c.bf16 %v6252_v38, %v6251_v14 }
 0x247   : > { %v4141_v49 = vmax.f32 %v4125_v13, %v4129_v8  ;;  %v14700_v31 = vmax.f32 %v4326_v23, %v4330_v19  ;;  %v4101_v46 = vadd.f32 %v10592_v52, %v15906_v27  ;;  %11286 = vmatprep.subr.bf16.mxu0 %v15938_v12  ;;  %v4095_v61 = vpop.f32.mrb[173].mxu0  ;;  %v6253_v8 = vld [vmem:[#allocation2 + $0x110] sm:$0xff]  ;;  %v6254_v19 = vld [vmem:[#allocation2 + $0x118] sm:$0xff] }
 0x248   : > { %v4140_v30 = vmax.f32 %v4124_v4, %v4128_v44  ;;  %6226 = vmatmul.mubr.f32.gmra.mrb[6].mxu0 %v14459_v33  ;;  %v4096_v35 = vadd.f32 %v4095_v61, %v15935_v63 }
 0x249   : > { %v4131_v17 = vmax.f32 %v4101_v46, 0.0  ;;  %11276 = vmatpush1.bf16.msra.mxu1 %v14670_v43  ;;  %11288 = vmatpush1.bf16.msra.mxu0 %v14533_v9  ;;  %v4145_v54 = vmax.f32 %v14648_v40, %v4141_v49  ;;  %v10617_v7 = vpop.f32.mrb[174].mxu1  ;;  %v4271_v9 = vadd.f32 %v10614_v22, %v12766_v36  ;;  %v14728_v46 = vpack.c.bf16 %v6254_v19, %v6253_v8 }
 0x24a   : > { %v4130_v25 = vmax.f32 %v4096_v35, 0.0  ;;  %v10595_v62 = vpop.f32.mrb[174].mxu0  ;;  %11277 = vmatprep.subr.bf16.mxu1 %v15938_v12  ;;  %11289 = vmatprep.subr.bf16.mxu0 %v15938_v12  ;;  %v4144_v51 = vmax.f32 %v14651_v3, %v4140_v30  ;;  %v4275_v50 = vpop.f32.mrb[175].mxu1  ;;  %v4266_v3 = vadd.f32 %v4265_v16, %v12778_v41  ;;  %v4281_v30 = vadd.f32 %v10617_v7, %v12844_v59 }
 0x24b   : > { %v4147_v13 = vmax.f32 %v4143_v18, %v4131_v17  ;;  %v4111_v39 = vadd.f32 %v10595_v62, %v12951_v57  ;;  %v4105_v11 = vpop.f32.mrb[175].mxu0  ;;  %9366 = vmatprep.mubr.msk.f32.mxu0 %vm5854_vm6, %v14417_v6  ;;  %v4333_v61 = vmax.f32 %v4271_v9, 0.0  ;;  %v4276_v17 = vadd.f32 %v4275_v50, %v12863_v2 }
 0x24c   : > { %v4146_v40 = vmax.f32 %v4142_v21, %v4130_v25  ;;  %v4106_v23 = vadd.f32 %v4105_v11, %v12969_v55  ;;  %v4332_v38 = vmax.f32 %v4266_v3, 0.0 }
 0x24d   : > { %4151 = vst.msk [vmem:[#allocation2 + $0x208] sm:$0xff] %vm708_vm4, %v4147_v13  ;;  %v4133_v18 = vmax.f32 %v4111_v39, 0.0  ;;  %11279 = vmatpush1.bf16.msra.mxu1 %v14713_v37  ;;  %11291 = vmatpush1.bf16.msra.mxu0 %v14581_v29  ;;  %v10620_v4 = vpop.f32.mrb[176].mxu1  ;;  %v4334_v3 = vmax.f32 %v4276_v17, 0.0 }
 0x24e   : > { %4150 = vst.msk [vmem:[#allocation2 + $0x200] sm:$0xff] %vm708_vm4, %v4146_v40  ;;  %v4132_v6 = vmax.f32 %v4106_v23, 0.0  ;;  %v4291_v22 = vadd.f32 %v10620_v4, %v12782_v45  ;;  %v10636_v44 = vpop.f32.mrb[176].mxu0  ;;  %11280 = vmatprep.subr.bf16.mxu1 %v15938_v12  ;;  %11292 = vmatprep.subr.bf16.mxu0 %v15938_v12  ;;  %v4285_v52 = vpop.f32.mrb[177].mxu1  ;;  %v4335_v40 = vmax.f32 %v4281_v30, 0.0 }
 0x24f   : > { %v4149_v21 = vmax.f32 %v4145_v54, %v4133_v18  ;;  %v4286_v16 = vadd.f32 %v4285_v52, %v12797_v48  ;;  %v4435_v49 = vpop.f32.mrb[177].mxu0 }
 0x250   : > { %v4148_v35 = vmax.f32 %v4144_v51, %v4132_v6  ;;  %v4337_v14 = vmax.f32 %v4291_v22, 0.0  ;;  %v4441_v51 = vadd.f32 %v10636_v44, %v15896_v5  ;;  %v4436_v23 = vadd.f32 %v4435_v49, %v15926_v1 }
 0x251   : > { %4153 = vst.msk [vmem:[#allocation2 + $0x218] sm:$0xff] %vm708_vm4, %v4149_v21  ;;  %v4336_v25 = vmax.f32 %v4286_v16, 0.0  ;;  %11282 = vmatpush1.bf16.msra.mxu1 %v14728_v46  ;;  %11294 = vmatpush1.bf16.msra.mxu0 %v14596_v34  ;;  %v10623_v54 = vpop.f32.mrb[178].mxu1 }
 0x252   : > { %4152 = vst.msk [vmem:[#allocation2 + $0x210] sm:$0xff] %vm708_vm4, %v4148_v35  ;;  %v4349_v62 = vmax.f32 %v4333_v61, %v4337_v14  ;;  %v4301_v13 = vadd.f32 %v10623_v54, %v12879_v10  ;;  %v10639_v39 = vpop.f32.mrb[178].mxu0  ;;  %11295 = vmatprep.subr.bf16.mxu0 %v15938_v12  ;;  %11313 = vmatprep.subr.bf16.mxu1 %v15938_v12  ;;  %v4295_v7 = vpop.f32.mrb[179].mxu1 }
 0x253   : > { %v4348_v50 = vmax.f32 %v4332_v38, %v4336_v25  ;;  %v4296_v11 = vadd.f32 %v4295_v7, %v12893_v28  ;;  %v4445_v9 = vpop.f32.mrb[179].mxu0  ;;  %v4451_v35 = vadd.f32 %v10639_v39, %v15952_v47 }
 0x254   : > { %v4339_v8 = vmax.f32 %v4301_v13, 0.0  ;;  %6320 = vmatmul.mubr.f32.vlgmr.msra.gmra.mrb[252].mxu1 %v14432_v53  ;;  %v4353_v19 = vmax.f32 %v14680_v24, %v4349_v62  ;;  %v4535_v24 = vmax.f32 %v4441_v51, 0.0  ;;  %v4446_v54 = vadd.f32 %v4445_v9, %v15953_v20 }
 0x255   : > { %v4338_v18 = vmax.f32 %v4296_v11, 0.0  ;;  %11297 = vmatpush1.bf16.msra.mxu0 %v14661_v26  ;;  %11315 = vmatpush1.bf16.msra.mxu1 %v14581_v29  ;;  %v10626_v4 = vpop.f32.mrb[180].mxu1  ;;  %v4352_v6 = vmax.f32 %v14685_v32, %v4348_v50  ;;  %v4534_v32 = vmax.f32 %v4436_v23, 0.0  ;;  %v14772_v11 = vld [vmem:[%s15786_s3 + $0x8] sm:$0xff] }
 0x256   : > { %v4351_v22 = vmax.f32 %v4335_v40, %v4339_v8  ;;  %9365 = vmatprep.mubr.msk.f32.mxu1 %vm5854_vm6, %v14446_v0  ;;  %v4311_v44 = vadd.f32 %v10626_v4, %v15906_v27  ;;  %v10642_v52 = vpop.f32.mrb[180].mxu0  ;;  %11298 = vmatprep.subr.bf16.mxu0 %v15938_v12  ;;  %v4305_v53 = vpop.f32.mrb[181].mxu1  ;;  %v4537_v8 = vmax.f32 %v4451_v35, 0.0  ;;  %v4536_v4 = vmax.f32 %v4446_v54, 0.0  ;;  %v6366_v54 = vld [vmem:[#allocation2 + $0x138] sm:$0xff] }
 0x257   : > { %v4350_v21 = vmax.f32 %v4334_v3, %v4338_v18  ;;  %v4461_v16 = vadd.f32 %v10642_v52, %v15949_v60  ;;  %11316 = vmatprep.subr.bf16.mxu1 %v15938_v12  ;;  %v4306_v29 = vadd.f32 %v4305_v53, %v15935_v63  ;;  %v4455_v49 = vpop.f32.mrb[181].mxu0 }
 0x258   : > { %v4341_v61 = vmax.f32 %v4311_v44, 0.0  ;;  %6325 = vmatmul.mubr.f32.gmra.mrb[254].mxu1 %v14459_v33  ;;  %v4456_v0 = vadd.f32 %v4455_v49, %v15950_v15  ;;  %v4355_v30 = vmax.f32 %v14694_v42, %v4351_v22  ;;  %v6364_v49 = vld [vmem:[#allocation2 + $0x128] sm:$0xff] }
 0x259   : > { %v4539_v14 = vmax.f32 %v4461_v16, 0.0  ;;  %v4340_v38 = vmax.f32 %v4306_v29, 0.0  ;;  %11300 = vmatpush1.bf16.msra.mxu0 %v14670_v43  ;;  %11318 = vmatpush1.bf16.msra.mxu1 %v14596_v34  ;;  %v10629_v17 = vpop.f32.mrb[182].mxu1  ;;  %v4354_v25 = vmax.f32 %v14700_v31, %v4350_v21  ;;  %v6363_v29 = vld [vmem:[#allocation2 + $0x120] sm:$0xff] }
 0x25a   : > { %v4357_v62 = vmax.f32 %v4353_v19, %v4341_v61  ;;  %v4538_v13 = vmax.f32 %v4456_v0, 0.0  ;;  %v4321_v33 = vadd.f32 %v10629_v17, %v12951_v57  ;;  %v10645_v7 = vpop.f32.mrb[182].mxu0  ;;  %11301 = vmatprep.subr.bf16.mxu0 %v15938_v12  ;;  %11319 = vmatprep.subr.bf16.mxu1 %v15938_v12  ;;  %v4315_v42 = vpop.f32.mrb[183].mxu1  ;;  %v14798_v17 = vpack.c.bf16 %v6364_v49, %v6363_v29 }
 0x25b   : > { %v14765_v39 = vmax.f32 %v4535_v24, %v4539_v14  ;;  %v4356_v51 = vmax.f32 %v4352_v6, %v4340_v38  ;;  %v4471_v34 = vadd.f32 %v10645_v7, %v12821_v56  ;;  %v4316_v50 = vadd.f32 %v4315_v42, %v12969_v55  ;;  %v4465_v31 = vpop.f32.mrb[183].mxu0  ;;  %9368 = vmatprep.mubr.msk.f32.mxu1 %vm5854_vm6, %v14772_v11 }
 0x25c   : > { %4361 = vst.msk [vmem:[#allocation2 + $0x228] sm:$0xff] %vm708_vm4, %v4357_v62  ;;  %v14777_v9 = vmax.f32 %v4534_v32, %v4538_v13  ;;  %v4343_v40 = vmax.f32 %v4321_v33, 0.0  ;;  %v4466_v23 = vadd.f32 %v4465_v31, %v12833_v58 }
 0x25d   : > { %4360 = vst.msk [vmem:[#allocation2 + $0x220] sm:$0xff] %vm708_vm4, %v4356_v51  ;;  %v4541_v19 = vmax.f32 %v4471_v34, 0.0  ;;  %v4342_v3 = vmax.f32 %v4316_v50, 0.0  ;;  %11303 = vmatpush1.bf16.msra.mxu0 %v14713_v37  ;;  %11321 = vmatpush1.bf16.msra.mxu1 %v14661_v26  ;;  %v10670_v18 = vpop.f32.mrb[184].mxu1 }
 0x25e   : > { %v4359_v6 = vmax.f32 %v4355_v30, %v4343_v40  ;;  %v4540_v22 = vmax.f32 %v4466_v23, 0.0  ;;  %v10648_v44 = vpop.f32.mrb[184].mxu0  ;;  %11304 = vmatprep.subr.bf16.mxu0 %v15938_v12  ;;  %11322 = vmatprep.subr.bf16.mxu1 %v15938_v12  ;;  %v4645_v52 = vpop.f32.mrb[185].mxu1  ;;  %v4651_v61 = vadd.f32 %v10670_v18, %v15896_v5 }
 0x25f   : > { %v14785_v53 = vmax.f32 %v4537_v8, %v4541_v19  ;;  %v4358_v24 = vmax.f32 %v4354_v25, %v4342_v3  ;;  %v4475_v21 = vpop.f32.mrb[185].mxu0  ;;  %v4481_v35 = vadd.f32 %v10648_v44, %v12766_v36  ;;  %v4646_v14 = vadd.f32 %v4645_v52, %v15926_v1  ;;  %v6365_v25 = vld [vmem:[#allocation2 + $0x130] sm:$0xff] }
 0x260   : > { %4363 = vst.msk [vmem:[#allocation2 + $0x238] sm:$0xff] %vm708_vm4, %v4359_v6  ;;  %v14788_v16 = vmax.f32 %v4536_v4, %v4540_v22  ;;  %v4476_v62 = vadd.f32 %v4475_v21, %v12778_v41  ;;  %v4745_v7 = vmax.f32 %v4651_v61, 0.0  ;;  %v14807_v50 = vpack.c.bf16 %v6366_v54, %v6365_v25 }
 0x261   : > { %4362 = vst.msk [vmem:[#allocation2 + $0x230] sm:$0xff] %vm708_vm4, %v4358_v24  ;;  %11306 = vmatpush1.bf16.msra.mxu0 %v14728_v46  ;;  %11324 = vmatpush1.bf16.msra.mxu1 %v14670_v43  ;;  %v10673_v32 = vpop.f32.mrb[186].mxu1  ;;  %v4543_v31 = vmax.f32 %v4481_v35, 0.0  ;;  %v4744_v40 = vmax.f32 %v4646_v14, 0.0 }
 0x262   : > { %v10651_v0 = vpop.f32.mrb[186].mxu0  ;;  %11307 = vmatprep.subr.bf16.mxu0 %v15938_v12  ;;  %11325 = vmatprep.subr.bf16.mxu1 %v15938_v12  ;;  %v4655_v30 = vpop.f32.mrb[187].mxu1  ;;  %v4661_v13 = vadd.f32 %v10673_v32, %v15952_v47  ;;  %v4542_v3 = vmax.f32 %v4476_v62, 0.0 }
 0x263   : > { %v4485_v38 = vpop.f32.mrb[187].mxu0  ;;  %v4491_v18 = vadd.f32 %v10651_v0, %v12844_v59  ;;  %v4656_v44 = vadd.f32 %v4655_v30, %v15953_v20 }
 0x264   : > { %v4747_v22 = vmax.f32 %v4661_v13, 0.0  ;;  %v4486_v29 = vadd.f32 %v4485_v38, %v12863_v2 }
 0x265   : > { %11309 = vmatpush1.bf16.msra.mxu0 %v14798_v17  ;;  %11327 = vmatpush1.bf16.msra.mxu1 %v14713_v37  ;;  %v10676_v33 = vpop.f32.mrb[188].mxu1  ;;  %v4545_v38 = vmax.f32 %v4491_v18, 0.0  ;;  %v14841_v18 = vld [vmem:[%s15786_s3 + $0x18] sm:$0xff] }
 0x266   : > { %v10654_v42 = vpop.f32.mrb[188].mxu0  ;;  %v4671_v51 = vadd.f32 %v10676_v33, %v15949_v60  ;;  %11310 = vmatprep.subr.bf16.mxu0 %v15938_v12  ;;  %11328 = vmatprep.subr.bf16.mxu1 %v15938_v12  ;;  %v4665_v34 = vpop.f32.mrb[189].mxu1 }
 0x267   : > { %v4501_v23 = vadd.f32 %v10654_v42, %v12782_v45  ;;  %v4495_v8 = vpop.f32.mrb[189].mxu0  ;;  %v4666_v19 = vadd.f32 %v4665_v34, %v15950_v15 }
 0x268   : > { %v4749_v4 = vmax.f32 %v4671_v51, 0.0  ;;  %v4496_v6 = vadd.f32 %v4495_v8, %v12797_v48  ;;  %v4746_v51 = vmax.f32 %v4656_v44, 0.0  ;;  %v4544_v8 = vmax.f32 %v4486_v29, 0.0 }
 0x269   : > { %v4547_v52 = vmax.f32 %v4501_v23, 0.0  ;;  %v4748_v24 = vmax.f32 %v4666_v19, 0.0  ;;  %11312 = vmatpush1.bf16.msra.mxu0 %v14807_v50  ;;  %11330 = vmatpush1.bf16.msra.mxu1 %v14728_v46  ;;  %v10679_v21 = vpop.f32.mrb[190].mxu1 }
 0x26a   : > { %v14817_v49 = vmax.f32 %v4745_v7, %v4749_v4  ;;  %v4546_v32 = vmax.f32 %v4496_v6, 0.0  ;;  %v10657_v61 = vpop.f32.mrb[190].mxu0  ;;  %v4681_v0 = vadd.f32 %v10679_v21, %v12821_v56  ;;  %11331 = vmatprep.subr.bf16.mxu1 %v15938_v12  ;;  %11343 = vmatprep.subr.bf16.mxu0 %v15938_v12  ;;  %v4675_v30 = vpop.f32.mrb[191].mxu1  ;;  %v14829_v7 = vld [vmem:[%s15786_s3] sm:$0xff]  ;;  %v14854_v21 = vld [vmem:[%s15786_s3 + $0x10] sm:$0xff] }
 0x26b   : > { %v4559_v35 = vmax.f32 %v4543_v31, %v4547_v52  ;;  %v14822_v14 = vmax.f32 %v4744_v40, %v4748_v24  ;;  %v4511_v25 = vadd.f32 %v10657_v61, %v12879_v10  ;;  %v4505_v54 = vpop.f32.mrb[191].mxu0  ;;  %v4676_v62 = vadd.f32 %v4675_v30, %v12833_v58 }
 0x26c   : > { %v4558_v13 = vmax.f32 %v4542_v3, %v4546_v32  ;;  %v4751_v33 = vmax.f32 %v4681_v0, 0.0  ;;  %6432 = vmatmul.mubr.f32.vlgmr.msra.gmra.mrb[8].mxu0 %v14829_v7  ;;  %v4506_v42 = vadd.f32 %v4505_v54, %v12893_v28  ;;  %v6461_v32 = vld [vmem:[#allocation2 + $0x148] sm:$0xff] }
 0x26d   : > { %v4549_v34 = vmax.f32 %v4511_v25, 0.0  ;;  %v4750_v31 = vmax.f32 %v4676_v62, 0.0  ;;  %11333 = vmatpush1.bf16.msra.mxu1 %v14798_v17  ;;  %11345 = vmatpush1.bf16.msra.mxu0 %v14661_v26  ;;  %v4563_v40 = vmax.f32 %v14765_v39, %v4559_v35  ;;  %v10682_v23 = vpop.f32.mrb[192].mxu1 }
 0x26e   : > { %v14836_v19 = vmax.f32 %v4747_v22, %v4751_v33  ;;  %v4548_v3 = vmax.f32 %v4506_v42, 0.0  ;;  %9367 = vmatprep.mubr.msk.f32.mxu0 %vm5854_vm6, %v14841_v18  ;;  %v10660_v4 = vpop.f32.mrb[192].mxu0  ;;  %11334 = vmatprep.subr.bf16.mxu1 %v15938_v12  ;;  %v4562_v26 = vmax.f32 %v14777_v9, %v4558_v13  ;;  %v4685_v6 = vpop.f32.mrb[193].mxu1  ;;  %v6460_v9 = vld [vmem:[#allocation2 + $0x140] sm:$0xff] }
 0x26f   : > { %v4561_v39 = vmax.f32 %v4545_v38, %v4549_v34  ;;  %v14847_v44 = vmax.f32 %v4746_v51, %v4750_v31  ;;  %v4521_v22 = vadd.f32 %v10660_v4, %v15906_v27  ;;  %11346 = vmatprep.subr.bf16.mxu0 %v15938_v12  ;;  %v4515_v52 = vpop.f32.mrb[193].mxu0  ;;  %v14865_v42 = vpack.c.bf16 %v6461_v32, %v6460_v9  ;;  %v6462_v34 = vld [vmem:[#allocation2 + $0x150] sm:$0xff]  ;;  %v6463_v31 = vld [vmem:[#allocation2 + $0x158] sm:$0xff] }
 0x270   : > { %v4560_v24 = vmax.f32 %v4544_v8, %v4548_v3  ;;  %6437 = vmatmul.mubr.f32.gmra.mrb[10].mxu0 %v14854_v21  ;;  %v4516_v29 = vadd.f32 %v4515_v52, %v15935_v63  ;;  %v14880_v52 = vpack.c.bf16 %v6463_v31, %v6462_v34 }
 0x271   : > { %v4551_v61 = vmax.f32 %v4521_v22, 0.0  ;;  %11336 = vmatpush1.bf16.msra.mxu1 %v14807_v50  ;;  %11348 = vmatpush1.bf16.msra.mxu0 %v14670_v43  ;;  %v4565_v0 = vmax.f32 %v14785_v53, %v4561_v39  ;;  %v10685_v30 = vpop.f32.mrb[194].mxu1  ;;  %v4691_v43 = vadd.f32 %v10682_v23, %v12766_v36 }
 0x272   : > { %v4550_v35 = vmax.f32 %v4516_v29, 0.0  ;;  %v10663_v25 = vpop.f32.mrb[194].mxu0  ;;  %11337 = vmatprep.subr.bf16.mxu1 %v15938_v12  ;;  %11349 = vmatprep.subr.bf16.mxu0 %v15938_v12  ;;  %v4564_v54 = vmax.f32 %v14788_v16, %v4560_v24  ;;  %v4695_v62 = vpop.f32.mrb[195].mxu1  ;;  %v4686_v16 = vadd.f32 %v4685_v6, %v12778_v41  ;;  %v4701_v29 = vadd.f32 %v10685_v30, %v12844_v59 }
 0x273   : > { %v4567_v38 = vmax.f32 %v4563_v40, %v4551_v61  ;;  %v4531_v13 = vadd.f32 %v10663_v25, %v12951_v57  ;;  %v4525_v33 = vpop.f32.mrb[195].mxu0  ;;  %9370 = vmatprep.mubr.msk.f32.mxu0 %vm5854_vm6, %v14772_v11  ;;  %v4753_v24 = vmax.f32 %v4691_v43, 0.0 }
 0x274   : > { %v4566_v53 = vmax.f32 %v4562_v26, %v4550_v35  ;;  %v4526_v51 = vadd.f32 %v4525_v33, %v12969_v55  ;;  %v4752_v61 = vmax.f32 %v4686_v16, 0.0  ;;  %v4696_v35 = vadd.f32 %v4695_v62, %v12863_v2 }
 0x275   : > { %4571 = vst.msk [vmem:[#allocation2 + $0x248] sm:$0xff] %vm708_vm4, %v4567_v38  ;;  %v4553_v40 = vmax.f32 %v4531_v13, 0.0  ;;  %11339 = vmatpush1.bf16.msra.mxu1 %v14865_v42  ;;  %11351 = vmatpush1.bf16.msra.mxu0 %v14713_v37  ;;  %v10688_v8 = vpop.f32.mrb[196].mxu1 }
 0x276   : > { %4570 = vst.msk [vmem:[#allocation2 + $0x240] sm:$0xff] %vm708_vm4, %v4566_v53  ;;  %v4552_v3 = vmax.f32 %v4526_v51, 0.0  ;;  %v4711_v23 = vadd.f32 %v10688_v8, %v12782_v45  ;;  %v10704_v4 = vpop.f32.mrb[196].mxu0  ;;  %11340 = vmatprep.subr.bf16.mxu1 %v15938_v12  ;;  %11352 = vmatprep.subr.bf16.mxu0 %v15938_v12  ;;  %v4705_v26 = vpop.f32.mrb[197].mxu1  ;;  %v4755_v51 = vmax.f32 %v4701_v29, 0.0 }
 0x277   : > { %v4569_v39 = vmax.f32 %v4565_v0, %v4553_v40  ;;  %v4706_v6 = vadd.f32 %v4705_v26, %v12797_v48  ;;  %v4855_v22 = vpop.f32.mrb[197].mxu0  ;;  %v4754_v40 = vmax.f32 %v4696_v35, 0.0 }
 0x278   : > { %v4568_v9 = vmax.f32 %v4564_v54, %v4552_v3  ;;  %v4757_v32 = vmax.f32 %v4711_v23, 0.0  ;;  %v4861_v54 = vadd.f32 %v10704_v4, %v15896_v5  ;;  %v4856_v34 = vadd.f32 %v4855_v22, %v15926_v1 }
 0x279   : > { %4573 = vst.msk [vmem:[#allocation2 + $0x258] sm:$0xff] %vm708_vm4, %v4569_v39  ;;  %v4756_v25 = vmax.f32 %v4706_v6, 0.0  ;;  %11342 = vmatpush1.bf16.msra.mxu1 %v14880_v52  ;;  %11354 = vmatpush1.bf16.msra.mxu0 %v14728_v46  ;;  %v10691_v0 = vpop.f32.mrb[198].mxu1 }
 0x27a   : > { %4572 = vst.msk [vmem:[#allocation2 + $0x250] sm:$0xff] %vm708_vm4, %v4568_v9  ;;  %v4769_v38 = vmax.f32 %v4753_v24, %v4757_v32  ;;  %v4721_v13 = vadd.f32 %v10691_v0, %v12879_v10  ;;  %v10707_v33 = vpop.f32.mrb[198].mxu0  ;;  %11355 = vmatprep.subr.bf16.mxu0 %v15938_v12  ;;  %11373 = vmatprep.subr.bf16.mxu1 %v15938_v12  ;;  %v4715_v30 = vpop.f32.mrb[199].mxu1 }
 0x27b   : > { %v4768_v62 = vmax.f32 %v4752_v61, %v4756_v25  ;;  %v4716_v43 = vadd.f32 %v4715_v30, %v12893_v28  ;;  %v4865_v53 = vpop.f32.mrb[199].mxu0  ;;  %v4871_v35 = vadd.f32 %v10707_v33, %v15952_v47 }
 0x27c   : > { %v4759_v31 = vmax.f32 %v4721_v13, 0.0  ;;  %6529 = vmatmul.mubr.f32.vlgmr.msra.gmra.mrb[0].mxu1 %v14829_v7  ;;  %v4773_v16 = vmax.f32 %v14817_v49, %v4769_v38  ;;  %v4955_v49 = vmax.f32 %v4861_v54, 0.0  ;;  %v4866_v30 = vadd.f32 %v4865_v53, %v15953_v20 }
 0x27d   : > { %v4758_v8 = vmax.f32 %v4716_v43, 0.0  ;;  %11357 = vmatpush1.bf16.msra.mxu0 %v14798_v17  ;;  %11375 = vmatpush1.bf16.msra.mxu1 %v14713_v37  ;;  %v10694_v3 = vpop.f32.mrb[200].mxu1  ;;  %v4772_v23 = vmax.f32 %v14822_v14, %v4768_v62  ;;  %v4954_v14 = vmax.f32 %v4856_v34, 0.0 }
 0x27e   : > { %v4771_v4 = vmax.f32 %v4755_v51, %v4759_v31  ;;  %9369 = vmatprep.mubr.msk.f32.mxu1 %vm5854_vm6, %v14841_v18  ;;  %v4731_v26 = vadd.f32 %v10694_v3, %v15906_v27  ;;  %v10710_v39 = vpop.f32.mrb[200].mxu0  ;;  %11358 = vmatprep.subr.bf16.mxu0 %v15938_v12  ;;  %v4725_v6 = vpop.f32.mrb[201].mxu1 }
 0x27f   : > { %v4770_v22 = vmax.f32 %v4754_v40, %v4758_v8  ;;  %v4881_v24 = vadd.f32 %v10710_v39, %v15949_v60  ;;  %11376 = vmatprep.subr.bf16.mxu1 %v15938_v12  ;;  %v4726_v37 = vadd.f32 %v4725_v6, %v15935_v63  ;;  %v4875_v29 = vpop.f32.mrb[201].mxu0  ;;  %v4957_v8 = vmax.f32 %v4871_v35, 0.0 }
 0x280   : > { %v4761_v9 = vmax.f32 %v4731_v26, 0.0  ;;  %6534 = vmatmul.mubr.f32.gmra.mrb[2].mxu1 %v14854_v21  ;;  %v4876_v32 = vadd.f32 %v4875_v29, %v15950_v15  ;;  %v4775_v61 = vmax.f32 %v14836_v19, %v4771_v4  ;;  %v4956_v26 = vmax.f32 %v4866_v30, 0.0 }
 0x281   : > { %v4959_v25 = vmax.f32 %v4881_v24, 0.0  ;;  %v4760_v0 = vmax.f32 %v4726_v37, 0.0  ;;  %11360 = vmatpush1.bf16.msra.mxu0 %v14807_v50  ;;  %11378 = vmatpush1.bf16.msra.mxu1 %v14728_v46  ;;  %v10697_v38 = vpop.f32.mrb[202].mxu1  ;;  %v4774_v13 = vmax.f32 %v14847_v44, %v4770_v22 }
 0x282   : > { %v4777_v54 = vmax.f32 %v4773_v16, %v4761_v9  ;;  %v4958_v62 = vmax.f32 %v4876_v32, 0.0  ;;  %v4741_v43 = vadd.f32 %v10697_v38, %v12951_v57  ;;  %v10713_v51 = vpop.f32.mrb[202].mxu0  ;;  %11361 = vmatprep.subr.bf16.mxu0 %v15938_v12  ;;  %11379 = vmatprep.subr.bf16.mxu1 %v15938_v12  ;;  %v4735_v19 = vpop.f32.mrb[203].mxu1  ;;  %v6559_v9 = vld [vmem:[#allocation2 + $0x160] sm:$0xff]  ;;  %v6560_v32 = vld [vmem:[#allocation2 + $0x168] sm:$0xff] }
 0x283   : > { %v14917_v33 = vmax.f32 %v4955_v49, %v4959_v25  ;;  %v4776_v34 = vmax.f32 %v4772_v23, %v4760_v0  ;;  %v4891_v46 = vadd.f32 %v10713_v51, %v12821_v56  ;;  %v4736_v31 = vadd.f32 %v4735_v19, %v12969_v55  ;;  %v4885_v44 = vpop.f32.mrb[203].mxu0  ;;  %9372 = vmatprep.mubr.msk.f32.mxu1 %vm5854_vm6, %v14772_v11 }
 0x284   : > { %4781 = vst.msk [vmem:[#allocation2 + $0x268] sm:$0xff] %vm708_vm4, %v4777_v54  ;;  %v14924_v53 = vmax.f32 %v4954_v14, %v4958_v62  ;;  %v4763_v16 = vmax.f32 %v4741_v43, 0.0  ;;  %v4886_v40 = vadd.f32 %v4885_v44, %v12833_v58  ;;  %v14945_v54 = vpack.c.bf16 %v6560_v32, %v6559_v9  ;;  %v6561_v62 = vld [vmem:[#allocation2 + $0x170] sm:$0xff]  ;;  %v6562_v43 = vld [vmem:[#allocation2 + $0x178] sm:$0xff] }
 0x285   : > { %4780 = vst.msk [vmem:[#allocation2 + $0x260] sm:$0xff] %vm708_vm4, %v4776_v34  ;;  %v4961_v3 = vmax.f32 %v4891_v46, 0.0  ;;  %v4762_v23 = vmax.f32 %v4736_v31, 0.0  ;;  %11363 = vmatpush1.bf16.msra.mxu0 %v14865_v42  ;;  %11381 = vmatpush1.bf16.msra.mxu1 %v14798_v17  ;;  %v10738_v4 = vpop.f32.mrb[204].mxu1 }
 0x286   : > { %v4779_v39 = vmax.f32 %v4775_v61, %v4763_v16  ;;  %v4960_v6 = vmax.f32 %v4886_v40, 0.0  ;;  %v10716_v49 = vpop.f32.mrb[204].mxu0  ;;  %11364 = vmatprep.subr.bf16.mxu0 %v15938_v12  ;;  %11382 = vmatprep.subr.bf16.mxu1 %v15938_v12  ;;  %v5065_v22 = vpop.f32.mrb[205].mxu1  ;;  %v5071_v35 = vadd.f32 %v10738_v4, %v15896_v5  ;;  %v14954_v40 = vpack.c.bf16 %v6562_v43, %v6561_v62 }
 0x287   : > { %v14932_v24 = vmax.f32 %v4957_v8, %v4961_v3  ;;  %v4778_v37 = vmax.f32 %v4774_v13, %v4762_v23  ;;  %v4895_v29 = vpop.f32.mrb[205].mxu0  ;;  %v4901_v38 = vadd.f32 %v10716_v49, %v12766_v36  ;;  %v5066_v13 = vadd.f32 %v5065_v22, %v15926_v1 }
 0x288   : > { %4783 = vst.msk [vmem:[#allocation2 + $0x278] sm:$0xff] %vm708_vm4, %v4779_v39  ;;  %v14935_v14 = vmax.f32 %v4956_v26, %v4960_v6  ;;  %v4896_v51 = vadd.f32 %v4895_v29, %v12778_v41  ;;  %v5165_v46 = vmax.f32 %v5071_v35, 0.0 }
 0x289   : > { %4782 = vst.msk [vmem:[#allocation2 + $0x270] sm:$0xff] %vm708_vm4, %v4778_v37  ;;  %11366 = vmatpush1.bf16.msra.mxu0 %v14880_v52  ;;  %11384 = vmatpush1.bf16.msra.mxu1 %v14807_v50  ;;  %v10741_v61 = vpop.f32.mrb[206].mxu1  ;;  %v4963_v8 = vmax.f32 %v4901_v38, 0.0  ;;  %v5164_v3 = vmax.f32 %v5066_v13, 0.0 }
 0x28a   : > { %v10719_v25 = vpop.f32.mrb[206].mxu0  ;;  %11367 = vmatprep.subr.bf16.mxu0 %v15938_v12  ;;  %11385 = vmatprep.subr.bf16.mxu1 %v15938_v12  ;;  %v5075_v0 = vpop.f32.mrb[207].mxu1  ;;  %v5081_v19 = vadd.f32 %v10741_v61, %v15952_v47  ;;  %v4962_v39 = vmax.f32 %v4896_v51, 0.0 }
 0x28b   : > { %v4905_v30 = vpop.f32.mrb[207].mxu0  ;;  %v4911_v6 = vadd.f32 %v10719_v25, %v12844_v59  ;;  %v5076_v29 = vadd.f32 %v5075_v0, %v15953_v20 }
 0x28c   : > { %v5167_v37 = vmax.f32 %v5081_v19, 0.0  ;;  %v4906_v35 = vadd.f32 %v4905_v30, %v12863_v2 }
 0x28d   : > { %11369 = vmatpush1.bf16.msra.mxu0 %v14945_v54  ;;  %11387 = vmatpush1.bf16.msra.mxu1 %v14865_v42  ;;  %v10744_v34 = vpop.f32.mrb[208].mxu1  ;;  %v4965_v30 = vmax.f32 %v4911_v6, 0.0 }
 0x28e   : > { %v10722_v31 = vpop.f32.mrb[208].mxu0  ;;  %v5091_v44 = vadd.f32 %v10744_v34, %v15949_v60  ;;  %11370 = vmatprep.subr.bf16.mxu0 %v15938_v12  ;;  %11388 = vmatprep.subr.bf16.mxu1 %v15938_v12  ;;  %v5085_v16 = vpop.f32.mrb[209].mxu1 }
 0x28f   : > { %v4921_v23 = vadd.f32 %v10722_v31, %v12782_v45  ;;  %v4915_v4 = vpop.f32.mrb[209].mxu0  ;;  %v5086_v26 = vadd.f32 %v5085_v16, %v15950_v15 }
 0x290   : > { %v5169_v49 = vmax.f32 %v5091_v44, 0.0  ;;  %v4916_v22 = vadd.f32 %v4915_v4, %v12797_v48 }
 0x291   : > { %v4967_v9 = vmax.f32 %v4921_v23, 0.0  ;;  %v5168_v32 = vmax.f32 %v5086_v26, 0.0  ;;  %11372 = vmatpush1.bf16.msra.mxu0 %v14954_v40  ;;  %11390 = vmatpush1.bf16.msra.mxu1 %v14880_v52  ;;  %v10747_v61 = vpop.f32.mrb[210].mxu1  ;;  %v5166_v23 = vmax.f32 %v5076_v29, 0.0 }
 0x292   : > { %v14964_v38 = vmax.f32 %v5165_v46, %v5169_v49  ;;  %v4966_v13 = vmax.f32 %v4916_v22, 0.0  ;;  %v10725_v62 = vpop.f32.mrb[210].mxu0  ;;  %v5101_v25 = vadd.f32 %v10747_v61, %v12821_v56  ;;  %11391 = vmatprep.subr.bf16.mxu1 %v15938_v12  ;;  %11403 = vmatprep.subr.bf16.mxu0 %v15938_v12  ;;  %v5095_v0 = vpop.f32.mrb[211].mxu1  ;;  %v4964_v49 = vmax.f32 %v4906_v35, 0.0 }
 0x293   : > { %v4979_v43 = vmax.f32 %v4963_v8, %v4967_v9  ;;  %v14969_v51 = vmax.f32 %v5164_v3, %v5168_v32  ;;  %v4931_v19 = vadd.f32 %v10725_v62, %v12879_v10  ;;  %v4925_v34 = vpop.f32.mrb[211].mxu0  ;;  %v5096_v31 = vadd.f32 %v5095_v0, %v12833_v58  ;;  %v6659_v62 = vld [vmem:[#allocation2 + $0x188] sm:$0xff] }
 0x294   : > { %v4978_v46 = vmax.f32 %v4962_v39, %v4966_v13  ;;  %v5171_v44 = vmax.f32 %v5101_v25, 0.0  ;;  %6628 = vmatmul.mubr.f32.vlgmr.msra.gmra.mrb[12].mxu0 %v14829_v7  ;;  %v4926_v16 = vadd.f32 %v4925_v34, %v12893_v28  ;;  %v6658_v13 = vld [vmem:[#allocation2 + $0x180] sm:$0xff] }
 0x295   : > { %v4969_v4 = vmax.f32 %v4931_v19, 0.0  ;;  %v5170_v26 = vmax.f32 %v5096_v31, 0.0  ;;  %11393 = vmatpush1.bf16.msra.mxu1 %v14945_v54  ;;  %11405 = vmatpush1.bf16.msra.mxu0 %v14798_v17  ;;  %v4983_v8 = vmax.f32 %v14917_v33, %v4979_v43  ;;  %v10750_v3 = vpop.f32.mrb[212].mxu1 }
 0x296   : > { %v14978_v22 = vmax.f32 %v5167_v37, %v5171_v44  ;;  %v4968_v6 = vmax.f32 %v4926_v16, 0.0  ;;  %9371 = vmatprep.mubr.msk.f32.mxu0 %vm5854_vm6, %v14841_v18  ;;  %v10728_v39 = vpop.f32.mrb[212].mxu0  ;;  %11394 = vmatprep.subr.bf16.mxu1 %v15938_v12  ;;  %v4982_v29 = vmax.f32 %v14924_v53, %v4978_v46  ;;  %v5105_v9 = vpop.f32.mrb[213].mxu1  ;;  %v14997_v16 = vpack.c.bf16 %v6659_v62, %v6658_v13 }
 0x297   : > { %v4981_v32 = vmax.f32 %v4965_v30, %v4969_v4  ;;  %v14984_v61 = vmax.f32 %v5166_v23, %v5170_v26  ;;  %v4941_v17 = vadd.f32 %v10728_v39, %v15906_v27  ;;  %11406 = vmatprep.subr.bf16.mxu0 %v15938_v12  ;;  %v4935_v33 = vpop.f32.mrb[213].mxu0  ;;  %v6660_v4 = vld [vmem:[#allocation2 + $0x190] sm:$0xff]  ;;  %v6661_v26 = vld [vmem:[#allocation2 + $0x198] sm:$0xff] }
 0x298   : > { %v4980_v37 = vmax.f32 %v4964_v49, %v4968_v6  ;;  %6633 = vmatmul.mubr.f32.gmra.mrb[14].mxu0 %v14854_v21  ;;  %v4936_v35 = vadd.f32 %v4935_v33, %v15935_v63  ;;  %v15012_v33 = vpack.c.bf16 %v6661_v26, %v6660_v4 }
 0x299   : > { %v4971_v25 = vmax.f32 %v4941_v17, 0.0  ;;  %11396 = vmatpush1.bf16.msra.mxu1 %v14954_v40  ;;  %11408 = vmatpush1.bf16.msra.mxu0 %v14807_v50  ;;  %v4985_v53 = vmax.f32 %v14932_v24, %v4981_v32  ;;  %v10753_v0 = vpop.f32.mrb[214].mxu1  ;;  %v5111_v50 = vadd.f32 %v10750_v3, %v12766_v36 }
 0x29a   : > { %v4970_v43 = vmax.f32 %v4936_v35, 0.0  ;;  %v10731_v19 = vpop.f32.mrb[214].mxu0  ;;  %11397 = vmatprep.subr.bf16.mxu1 %v15938_v12  ;;  %11409 = vmatprep.subr.bf16.mxu0 %v15938_v12  ;;  %v4984_v34 = vmax.f32 %v14935_v14, %v4980_v37  ;;  %v5115_v31 = vpop.f32.mrb[215].mxu1  ;;  %v5106_v14 = vadd.f32 %v5105_v9, %v12778_v41  ;;  %v5121_v35 = vadd.f32 %v10753_v0, %v12844_v59 }
 0x29b   : > { %v4987_v30 = vmax.f32 %v4983_v8, %v4971_v25  ;;  %v4951_v46 = vadd.f32 %v10731_v19, %v12951_v57  ;;  %v4945_v44 = vpop.f32.mrb[215].mxu0  ;;  %9374 = vmatprep.mubr.msk.f32.mxu0 %vm5854_vm6, %v14772_v11  ;;  %v5173_v37 = vmax.f32 %v5111_v50, 0.0 }
 0x29c   : > { %v4986_v24 = vmax.f32 %v4982_v29, %v4970_v43  ;;  %v4946_v23 = vadd.f32 %v4945_v44, %v12969_v55  ;;  %v5172_v25 = vmax.f32 %v5106_v14, 0.0  ;;  %v5116_v43 = vadd.f32 %v5115_v31, %v12863_v2 }
 0x29d   : > { %4991 = vst.msk [vmem:[#allocation2 + $0x288] sm:$0xff] %vm708_vm4, %v4987_v30  ;;  %v4973_v8 = vmax.f32 %v4951_v46, 0.0  ;;  %11399 = vmatpush1.bf16.msra.mxu1 %v14997_v16  ;;  %11411 = vmatpush1.bf16.msra.mxu0 %v14865_v42  ;;  %v10756_v49 = vpop.f32.mrb[216].mxu1 }
 0x29e   : > { %4990 = vst.msk [vmem:[#allocation2 + $0x280] sm:$0xff] %vm708_vm4, %v4986_v24  ;;  %v4972_v6 = vmax.f32 %v4946_v23, 0.0  ;;  %v5131_v3 = vadd.f32 %v10756_v49, %v12782_v45  ;;  %v10772_v39 = vpop.f32.mrb[216].mxu0  ;;  %11400 = vmatprep.subr.bf16.mxu1 %v15938_v12  ;;  %11412 = vmatprep.subr.bf16.mxu0 %v15938_v12  ;;  %v5125_v29 = vpop.f32.mrb[217].mxu1  ;;  %v5175_v23 = vmax.f32 %v5121_v35, 0.0 }
 0x29f   : > { %v4989_v32 = vmax.f32 %v4985_v53, %v4973_v8  ;;  %v5126_v9 = vadd.f32 %v5125_v29, %v12797_v48  ;;  %v5275_v17 = vpop.f32.mrb[217].mxu0  ;;  %v5174_v8 = vmax.f32 %v5116_v43, 0.0 }
 0x2a0   : > { %v4988_v13 = vmax.f32 %v4984_v34, %v4972_v6  ;;  %v5177_v62 = vmax.f32 %v5131_v3, 0.0  ;;  %v5281_v34 = vadd.f32 %v10772_v39, %v15896_v5  ;;  %v5276_v4 = vadd.f32 %v5275_v17, %v15926_v1 }
 0x2a1   : > { %4993 = vst.msk [vmem:[#allocation2 + $0x298] sm:$0xff] %vm708_vm4, %v4989_v32  ;;  %v5176_v19 = vmax.f32 %v5126_v9, 0.0  ;;  %11402 = vmatpush1.bf16.msra.mxu1 %v15012_v33  ;;  %11414 = vmatpush1.bf16.msra.mxu0 %v14880_v52  ;;  %v10759_v53 = vpop.f32.mrb[218].mxu1 }
 0x2a2   : > { %4992 = vst.msk [vmem:[#allocation2 + $0x290] sm:$0xff] %vm708_vm4, %v4988_v13  ;;  %v5189_v30 = vmax.f32 %v5173_v37, %v5177_v62  ;;  %v5141_v46 = vadd.f32 %v10759_v53, %v12879_v10  ;;  %v10775_v44 = vpop.f32.mrb[218].mxu0  ;;  %11415 = vmatprep.subr.bf16.mxu0 %v15938_v12  ;;  %11433 = vmatprep.subr.bf16.mxu1 %v15938_v12  ;;  %v5135_v0 = vpop.f32.mrb[219].mxu1 }
 0x2a3   : > { %v5188_v31 = vmax.f32 %v5172_v25, %v5176_v19  ;;  %v5136_v50 = vadd.f32 %v5135_v0, %v12893_v28  ;;  %v5285_v24 = vpop.f32.mrb[219].mxu0  ;;  %v5291_v43 = vadd.f32 %v10775_v44, %v15952_v47 }
 0x2a4   : > { %v5179_v26 = vmax.f32 %v5141_v46, 0.0  ;;  %6727 = vmatmul.mubr.f32.vlgmr.msra.gmra.mrb[4].mxu1 %v14829_v7  ;;  %v5193_v14 = vmax.f32 %v14964_v38, %v5189_v30  ;;  %v5375_v38 = vmax.f32 %v5281_v34, 0.0  ;;  %v5286_v0 = vadd.f32 %v5285_v24, %v15953_v20 }
 0x2a5   : > { %v5178_v49 = vmax.f32 %v5136_v50, 0.0  ;;  %11417 = vmatpush1.bf16.msra.mxu0 %v14945_v54  ;;  %11435 = vmatpush1.bf16.msra.mxu1 %v14865_v42  ;;  %v10762_v6 = vpop.f32.mrb[220].mxu1  ;;  %v5192_v3 = vmax.f32 %v14969_v51, %v5188_v31  ;;  %v5374_v51 = vmax.f32 %v5276_v4, 0.0 }
 0x2a6   : > { %v5191_v39 = vmax.f32 %v5175_v23, %v5179_v26  ;;  %9373 = vmatprep.mubr.msk.f32.mxu1 %vm5854_vm6, %v14841_v18  ;;  %v5151_v29 = vadd.f32 %v10762_v6, %v15906_v27  ;;  %v10778_v32 = vpop.f32.mrb[220].mxu0  ;;  %11418 = vmatprep.subr.bf16.mxu0 %v15938_v12  ;;  %v5145_v9 = vpop.f32.mrb[221].mxu1 }
 0x2a7   : > { %v5190_v17 = vmax.f32 %v5174_v8, %v5178_v49  ;;  %v5301_v37 = vadd.f32 %v10778_v32, %v15949_v60  ;;  %11436 = vmatprep.subr.bf16.mxu1 %v15938_v12  ;;  %v5146_v42 = vadd.f32 %v5145_v9, %v15935_v63  ;;  %v5295_v35 = vpop.f32.mrb[221].mxu0  ;;  %v5377_v49 = vmax.f32 %v5291_v43, 0.0 }
 0x2a8   : > { %v5181_v13 = vmax.f32 %v5151_v29, 0.0  ;;  %6732 = vmatmul.mubr.f32.gmra.mrb[6].mxu1 %v14854_v21  ;;  %v5296_v62 = vadd.f32 %v5295_v35, %v15950_v15  ;;  %v5195_v25 = vmax.f32 %v14978_v22, %v5191_v39  ;;  %v5376_v29 = vmax.f32 %v5286_v0, 0.0 }
 0x2a9   : > { %v5379_v19 = vmax.f32 %v5301_v37, 0.0  ;;  %v5180_v53 = vmax.f32 %v5146_v42, 0.0  ;;  %11420 = vmatpush1.bf16.msra.mxu0 %v14954_v40  ;;  %11438 = vmatpush1.bf16.msra.mxu1 %v14880_v52  ;;  %v10765_v30 = vpop.f32.mrb[222].mxu1  ;;  %v5194_v46 = vmax.f32 %v14984_v61, %v5190_v17 }
 0x2aa   : > { %v5197_v34 = vmax.f32 %v5193_v14, %v5181_v13  ;;  %v5378_v31 = vmax.f32 %v5296_v62, 0.0  ;;  %v5161_v50 = vadd.f32 %v10765_v30, %v12951_v57  ;;  %v10781_v23 = vpop.f32.mrb[222].mxu0  ;;  %11421 = vmatprep.subr.bf16.mxu0 %v15938_v12  ;;  %11439 = vmatprep.subr.bf16.mxu1 %v15938_v12  ;;  %v5155_v22 = vpop.f32.mrb[223].mxu1  ;;  %v6758_v13 = vld [vmem:[#allocation2 + $0x1a8] sm:$0xff] }
 0x2ab   : > { %v15049_v44 = vmax.f32 %v5375_v38, %v5379_v19  ;;  %v5196_v4 = vmax.f32 %v5192_v3, %v5180_v53  ;;  %v5311_v52 = vadd.f32 %v10781_v23, %v12821_v56  ;;  %v5156_v26 = vadd.f32 %v5155_v22, %v12969_v55  ;;  %v5305_v61 = vpop.f32.mrb[223].mxu0  ;;  %9376 = vmatprep.mubr.msk.f32.mxu1 %vm5854_vm6, %v14772_v11 }
 0x2ac   : > { %5201 = vst.msk [vmem:[#allocation2 + $0x2a8] sm:$0xff] %vm708_vm4, %v5197_v34  ;;  %v15056_v24 = vmax.f32 %v5374_v51, %v5378_v31  ;;  %v5183_v14 = vmax.f32 %v5161_v50, 0.0  ;;  %v5306_v8 = vadd.f32 %v5305_v61, %v12833_v58  ;;  %v6757_v51 = vld [vmem:[#allocation2 + $0x1a0] sm:$0xff]  ;;  %v6759_v34 = vld [vmem:[#allocation2 + $0x1b0] sm:$0xff]  ;;  %v6760_v31 = vld [vmem:[#allocation2 + $0x1b8] sm:$0xff] }
 0x2ad   : > { %5200 = vst.msk [vmem:[#allocation2 + $0x2a0] sm:$0xff] %vm708_vm4, %v5196_v4  ;;  %v5381_v6 = vmax.f32 %v5311_v52, 0.0  ;;  %v5182_v3 = vmax.f32 %v5156_v26, 0.0  ;;  %11423 = vmatpush1.bf16.msra.mxu0 %v14997_v16  ;;  %11441 = vmatpush1.bf16.msra.mxu1 %v14945_v54  ;;  %v10806_v39 = vpop.f32.mrb[224].mxu1  ;;  %v15077_v0 = vpack.c.bf16 %v6758_v13, %v6757_v51 }
 0x2ae   : > { %v5199_v32 = vmax.f32 %v5195_v25, %v5183_v14  ;;  %v5380_v11 = vmax.f32 %v5306_v8, 0.0  ;;  %v10784_v9 = vpop.f32.mrb[224].mxu0  ;;  %11424 = vmatprep.subr.bf16.mxu0 %v15938_v12  ;;  %11442 = vmatprep.subr.bf16.mxu1 %v15938_v12  ;;  %v5485_v38 = vpop.f32.mrb[225].mxu1  ;;  %v5491_v25 = vadd.f32 %v10806_v39, %v15896_v5  ;;  %v15086_v14 = vpack.c.bf16 %v6760_v31, %v6759_v34 }
 0x2af   : > { %v15064_v17 = vmax.f32 %v5377_v49, %v5381_v6  ;;  %v5198_v37 = vmax.f32 %v5194_v46, %v5182_v3  ;;  %v5315_v42 = vpop.f32.mrb[225].mxu0  ;;  %v5321_v53 = vadd.f32 %v10784_v9, %v12766_v36  ;;  %v5486_v30 = vadd.f32 %v5485_v38, %v15926_v1 }
 0x2b0   : > { %5203 = vst.msk [vmem:[#allocation2 + $0x2b8] sm:$0xff] %vm708_vm4, %v5199_v32  ;;  %v15067_v35 = vmax.f32 %v5376_v29, %v5380_v11  ;;  %v5316_v50 = vadd.f32 %v5315_v42, %v12778_v41  ;;  %v5585_v4 = vmax.f32 %v5491_v25, 0.0 }
 0x2b1   : > { %5202 = vst.msk [vmem:[#allocation2 + $0x2b0] sm:$0xff] %vm708_vm4, %v5198_v37  ;;  %11426 = vmatpush1.bf16.msra.mxu0 %v15012_v33  ;;  %11444 = vmatpush1.bf16.msra.mxu1 %v14954_v40  ;;  %v10809_v62 = vpop.f32.mrb[226].mxu1  ;;  %v5383_v8 = vmax.f32 %v5321_v53, 0.0  ;;  %v5584_v49 = vmax.f32 %v5486_v30, 0.0 }
 0x2b2   : > { %v10787_v43 = vpop.f32.mrb[226].mxu0  ;;  %11427 = vmatprep.subr.bf16.mxu0 %v15938_v12  ;;  %11445 = vmatprep.subr.bf16.mxu1 %v15938_v12  ;;  %v5495_v19 = vpop.f32.mrb[227].mxu1  ;;  %v5501_v23 = vadd.f32 %v10809_v62, %v15952_v47  ;;  %v5382_v29 = vmax.f32 %v5316_v50, 0.0 }
 0x2b3   : > { %v5325_v46 = vpop.f32.mrb[227].mxu0  ;;  %v5331_v32 = vadd.f32 %v10787_v43, %v12844_v59  ;;  %v5496_v37 = vadd.f32 %v5495_v19, %v15953_v20 }
 0x2b4   : > { %v5587_v38 = vmax.f32 %v5501_v23, 0.0  ;;  %v5326_v62 = vadd.f32 %v5325_v46, %v12863_v2 }
 0x2b5   : > { %11429 = vmatpush1.bf16.msra.mxu0 %v15077_v0  ;;  %11447 = vmatpush1.bf16.msra.mxu1 %v14997_v16  ;;  %v10812_v22 = vpop.f32.mrb[228].mxu1  ;;  %v5385_v46 = vmax.f32 %v5331_v32, 0.0 }
 0x2b6   : > { %v10790_v52 = vpop.f32.mrb[228].mxu0  ;;  %v5511_v26 = vadd.f32 %v10812_v22, %v15949_v60  ;;  %11430 = vmatprep.subr.bf16.mxu0 %v15938_v12  ;;  %11448 = vmatprep.subr.bf16.mxu1 %v15938_v12  ;;  %v5505_v61 = vpop.f32.mrb[229].mxu1 }
 0x2b7   : > { %v5341_v6 = vadd.f32 %v10790_v52, %v12782_v45  ;;  %v5335_v3 = vpop.f32.mrb[229].mxu0  ;;  %v5506_v39 = vadd.f32 %v5505_v61, %v15950_v15  ;;  %v5586_v61 = vmax.f32 %v5496_v37, 0.0 }
 0x2b8   : > { %v5589_v11 = vmax.f32 %v5511_v26, 0.0  ;;  %v5336_v9 = vadd.f32 %v5335_v3, %v12797_v48 }
 0x2b9   : > { %v5387_v42 = vmax.f32 %v5341_v6, 0.0  ;;  %v5588_v51 = vmax.f32 %v5506_v39, 0.0  ;;  %11432 = vmatpush1.bf16.msra.mxu0 %v15086_v14  ;;  %11450 = vmatpush1.bf16.msra.mxu1 %v15012_v33  ;;  %v10815_v13 = vpop.f32.mrb[230].mxu1  ;;  %v5384_v39 = vmax.f32 %v5326_v62, 0.0 }
 0x2ba   : > { %v15096_v25 = vmax.f32 %v5585_v4, %v5589_v11  ;;  %v5386_v53 = vmax.f32 %v5336_v9, 0.0  ;;  %v10793_v30 = vpop.f32.mrb[230].mxu0  ;;  %v5521_v43 = vadd.f32 %v10815_v13, %v12821_v56  ;;  %11451 = vmatprep.subr.bf16.mxu1 %v15938_v12  ;;  %11463 = vmatprep.subr.bf16.mxu0 %v15938_v12  ;;  %v5515_v19 = vpop.f32.mrb[231].mxu1  ;;  %v6869_v13 = vld [vmem:[#allocation2 + $0x1c8] sm:$0xff] }
 0x2bb   : > { %v5399_v34 = vmax.f32 %v5383_v8, %v5387_v42  ;;  %v15101_v31 = vmax.f32 %v5584_v49, %v5588_v51  ;;  %v5351_v50 = vadd.f32 %v10793_v30, %v12879_v10  ;;  %v5345_v23 = vpop.f32.mrb[231].mxu0  ;;  %v5516_v22 = vadd.f32 %v5515_v19, %v12833_v58 }
 0x2bc   : > { %v5398_v4 = vmax.f32 %v5382_v29, %v5386_v53  ;;  %v5591_v52 = vmax.f32 %v5521_v43, 0.0  ;;  %6826 = vmatmul.mubr.f32.vlgmr.msra.gmra.mrb[16].mxu0 %v14829_v7  ;;  %v5346_v26 = vadd.f32 %v5345_v23, %v12893_v28 }
 0x2bd   : > { %v5389_v6 = vmax.f32 %v5351_v50, 0.0  ;;  %v5590_v3 = vmax.f32 %v5516_v22, 0.0  ;;  %11453 = vmatpush1.bf16.msra.mxu1 %v15077_v0  ;;  %11465 = vmatpush1.bf16.msra.mxu0 %v14945_v54  ;;  %v5403_v8 = vmax.f32 %v15049_v44, %v5399_v34  ;;  %v10818_v49 = vpop.f32.mrb[232].mxu1 }
 0x2be   : > { %v15110_v11 = vmax.f32 %v5587_v38, %v5591_v52  ;;  %v5388_v32 = vmax.f32 %v5346_v26, 0.0  ;;  %9375 = vmatprep.mubr.msk.f32.mxu0 %vm5854_vm6, %v14841_v18  ;;  %v10796_v7 = vpop.f32.mrb[232].mxu0  ;;  %11454 = vmatprep.subr.bf16.mxu1 %v15938_v12  ;;  %v5402_v29 = vmax.f32 %v15056_v24, %v5398_v4  ;;  %v5525_v9 = vpop.f32.mrb[233].mxu1  ;;  %v6868_v18 = vld [vmem:[#allocation2 + $0x1c0] sm:$0xff]  ;;  %v6870_v4 = vld [vmem:[#allocation2 + $0x1d0] sm:$0xff]  ;;  %v6871_v52 = vld [vmem:[#allocation2 + $0x1d8] sm:$0xff] }
 0x2bf   : > { %v5401_v37 = vmax.f32 %v5385_v46, %v5389_v6  ;;  %v15116_v42 = vmax.f32 %v5586_v61, %v5590_v3  ;;  %v5361_v54 = vadd.f32 %v10796_v7, %v15906_v27  ;;  %11466 = vmatprep.subr.bf16.mxu0 %v15938_v12  ;;  %v5355_v44 = vpop.f32.mrb[233].mxu0  ;;  %v15129_v22 = vpack.c.bf16 %v6869_v13, %v6868_v18 }
 0x2c0   : > { %v5400_v38 = vmax.f32 %v5384_v39, %v5388_v32  ;;  %6831 = vmatmul.mubr.f32.gmra.mrb[18].mxu0 %v14854_v21  ;;  %v5356_v51 = vadd.f32 %v5355_v44, %v15935_v63  ;;  %v5526_v26 = vadd.f32 %v5525_v9, %v12778_v41  ;;  %v15149_v9 = vpack.c.bf16 %v6871_v52, %v6870_v4  ;;  %v15176_v52 = vld [vmem:[%s15786_s3 + $0x18] sm:$0xff] }
 0x2c1   : > { %v5391_v62 = vmax.f32 %v5361_v54, 0.0  ;;  %11456 = vmatpush1.bf16.msra.mxu1 %v15086_v14  ;;  %11468 = vmatpush1.bf16.msra.mxu0 %v14954_v40  ;;  %v5405_v24 = vmax.f32 %v15064_v17, %v5401_v37  ;;  %v10821_v53 = vpop.f32.mrb[234].mxu1  ;;  %v15134_v40 = vld [vmem:[%s15786_s3 + $0x8] sm:$0xff]  ;;  %v5531_v17 = vadd.f32 %v10818_v49, %v12766_v36 }
 0x2c2   : > { %v5390_v30 = vmax.f32 %v5356_v51, 0.0  ;;  %v10799_v43 = vpop.f32.mrb[234].mxu0  ;;  %11457 = vmatprep.subr.bf16.mxu1 %v15938_v12  ;;  %11469 = vmatprep.subr.bf16.mxu0 %v15938_v12  ;;  %v5404_v21 = vmax.f32 %v15067_v35, %v5400_v38  ;;  %v5535_v19 = vpop.f32.mrb[235].mxu1  ;;  %v5592_v38 = vmax.f32 %v5526_v26, 0.0  ;;  %v5541_v18 = vadd.f32 %v10821_v53, %v12844_v59  ;;  %v15164_v53 = vld [vmem:[%s15786_s3] sm:$0xff] }
 0x2c3   : > { %v5407_v34 = vmax.f32 %v5403_v8, %v5391_v62  ;;  %v5371_v50 = vadd.f32 %v10799_v43, %v12951_v57  ;;  %v5365_v23 = vpop.f32.mrb[235].mxu0  ;;  %9378 = vmatprep.mubr.msk.f32.mxu0 %vm5854_vm6, %v15134_v40  ;;  %v5593_v37 = vmax.f32 %v5531_v17, 0.0  ;;  %v5536_v62 = vadd.f32 %v5535_v19, %v12863_v2 }
 0x2c4   : > { %v5406_v46 = vmax.f32 %v5402_v29, %v5390_v30  ;;  %v5366_v35 = vadd.f32 %v5365_v23, %v12969_v55 }
 0x2c5   : > { %5411 = vst.msk [vmem:[#allocation2 + $0x2c8] sm:$0xff] %vm708_vm4, %v5407_v34  ;;  %v5393_v61 = vmax.f32 %v5371_v50, 0.0  ;;  %11459 = vmatpush1.bf16.msra.mxu1 %v15129_v22  ;;  %11471 = vmatpush1.bf16.msra.mxu0 %v14997_v16  ;;  %v10824_v6 = vpop.f32.mrb[236].mxu1 }
 0x2c6   : > { %5410 = vst.msk [vmem:[#allocation2 + $0x2c0] sm:$0xff] %vm708_vm4, %v5406_v46  ;;  %v5392_v3 = vmax.f32 %v5366_v35, 0.0  ;;  %v5551_v8 = vadd.f32 %v10824_v6, %v12782_v45  ;;  %v10840_v49 = vpop.f32.mrb[236].mxu0  ;;  %11460 = vmatprep.subr.bf16.mxu1 %v15938_v12  ;;  %11472 = vmatprep.subr.bf16.mxu0 %v15938_v12  ;;  %v5545_v39 = vpop.f32.mrb[237].mxu1  ;;  %v5595_v35 = vmax.f32 %v5541_v18, 0.0 }
 0x2c7   : > { %v5409_v32 = vmax.f32 %v5405_v24, %v5393_v61  ;;  %v5546_v7 = vadd.f32 %v5545_v39, %v12797_v48  ;;  %v5695_v29 = vpop.f32.mrb[237].mxu0 }
 0x2c8   : > { %v5408_v54 = vmax.f32 %v5404_v21, %v5392_v3  ;;  %v5597_v44 = vmax.f32 %v5551_v8, 0.0  ;;  %v5701_v21 = vadd.f32 %v10840_v49, %v15896_v5  ;;  %v5696_v19 = vadd.f32 %v5695_v29, %v15926_v1  ;;  %v15187_v8 = vld [vmem:[%s15786_s3 + $0x10] sm:$0xff] }
 0x2c9   : > { %5413 = vst.msk [vmem:[#allocation2 + $0x2d8] sm:$0xff] %vm708_vm4, %v5409_v32  ;;  %v5596_v51 = vmax.f32 %v5546_v7, 0.0  ;;  %11462 = vmatpush1.bf16.msra.mxu1 %v15149_v9  ;;  %11474 = vmatpush1.bf16.msra.mxu0 %v15012_v33  ;;  %v5594_v1 = vmax.f32 %v5536_v62, 0.0 }
 0x2ca   : > { %5412 = vst.msk [vmem:[#allocation2 + $0x2d0] sm:$0xff] %vm708_vm4, %v5408_v54  ;;  %v5609_v13 = vmax.f32 %v5593_v37, %v5597_v44  ;;  %11475 = vmatprep.subr.bf16.mxu0 %v15938_v12  ;;  %11493 = vmatprep.subr.bf16.mxu1 %v15938_v12  ;;  %v10827_v30 = vpop.f32.mrb[238].mxu1  ;;  %v5794_v32 = vmax.f32 %v5696_v19, 0.0 }
 0x2cb   : > { %v5608_v24 = vmax.f32 %v5592_v38, %v5596_v51  ;;  %v10843_v43 = vpop.f32.mrb[238].mxu0  ;;  %v5561_v34 = vadd.f32 %v10827_v30, %v12879_v10  ;;  %v5555_v50 = vpop.f32.mrb[239].mxu1 }
 0x2cc   : > { %6937 = vmatmul.mubr.f32.vlgmr.msra.gmra.mrb[8].mxu1 %v15164_v53  ;;  %v5705_v23 = vpop.f32.mrb[239].mxu0  ;;  %v5613_v17 = vmax.f32 %v15096_v25, %v5609_v13  ;;  %v5556_v46 = vadd.f32 %v5555_v50, %v12893_v28 }
 0x2cd   : > { %11477 = vmatpush1.bf16.msra.mxu0 %v15077_v0  ;;  %11495 = vmatpush1.bf16.msra.mxu1 %v14997_v16  ;;  %v5612_v5 = vmax.f32 %v15101_v31, %v5608_v24  ;;  %v5599_v4 = vmax.f32 %v5561_v34, 0.0  ;;  %v5795_v16 = vmax.f32 %v5701_v21, 0.0  ;;  %v5706_v51 = vadd.f32 %v5705_v23, %v15953_v20 }
 0x2ce   : > { %9377 = vmatprep.mubr.msk.f32.mxu1 %vm5854_vm6, %v15176_v52  ;;  %11478 = vmatprep.subr.bf16.mxu0 %v15938_v12  ;;  %v5598_v25 = vmax.f32 %v5556_v46, 0.0  ;;  %v10830_v26 = vpop.f32.mrb[240].mxu1 }
 0x2cf   : > { %v10846_v61 = vpop.f32.mrb[240].mxu0  ;;  %11496 = vmatprep.subr.bf16.mxu1 %v15938_v12  ;;  %v5611_v31 = vmax.f32 %v5595_v35, %v5599_v4  ;;  %v5571_v6 = vadd.f32 %v10830_v26, %v15906_v27  ;;  %v5565_v49 = vpop.f32.mrb[241].mxu1 }
 0x2d0   : > { %v5721_v3 = vadd.f32 %v10846_v61, %v15949_v60  ;;  %6942 = vmatmul.mubr.f32.gmra.mrb[10].mxu1 %v15187_v8  ;;  %v5715_v39 = vpop.f32.mrb[241].mxu0  ;;  %v5610_v7 = vmax.f32 %v5594_v1, %v5598_v25  ;;  %v5566_v29 = vadd.f32 %v5565_v49, %v15935_v63  ;;  %v5711_v60 = vadd.f32 %v10843_v43, %v15952_v47  ;;  %v6965_v61 = vld [vmem:[#allocation2 + $0x1e0] sm:$0xff] }
 0x2d1   : > { %v5716_v37 = vadd.f32 %v5715_v39, %v15950_v15  ;;  %11480 = vmatpush1.bf16.msra.mxu0 %v15086_v14  ;;  %11498 = vmatpush1.bf16.msra.mxu1 %v15012_v33  ;;  %v5601_v54 = vmax.f32 %v5571_v6, 0.0  ;;  %v5615_v38 = vmax.f32 %v15110_v11, %v5611_v31 }
 0x2d2   : > { %v5799_v44 = vmax.f32 %v5721_v3, 0.0  ;;  %11481 = vmatprep.subr.bf16.mxu0 %v15938_v12  ;;  %11499 = vmatprep.subr.bf16.mxu1 %v15938_v12  ;;  %v5600_v18 = vmax.f32 %v5566_v29, 0.0  ;;  %v10833_v62 = vpop.f32.mrb[242].mxu1  ;;  %v5614_v24 = vmax.f32 %v15116_v42, %v5610_v7  ;;  %v5797_v42 = vmax.f32 %v5711_v60, 0.0  ;;  %v6967_v7 = vld [vmem:[#allocation2 + $0x1f0] sm:$0xff]  ;;  %v6968_v29 = vld [vmem:[#allocation2 + $0x1f8] sm:$0xff] }
 0x2d3   : > { %v5798_v13 = vmax.f32 %v5716_v37, 0.0  ;;  %v10849_v15 = vpop.f32.mrb[242].mxu0  ;;  %9380 = vmatprep.mubr.msk.f32.mxu1 %vm5854_vm6, %v15134_v40  ;;  %v5617_v47 = vmax.f32 %v5613_v17, %v5601_v54  ;;  %v5581_v11 = vadd.f32 %v10833_v62, %v12951_v57  ;;  %v5575_v43 = vpop.f32.mrb[243].mxu1 }
 0x2d4   : > { %v15202_v33 = vmax.f32 %v5795_v16, %v5799_v44  ;;  %v5731_v30 = vadd.f32 %v10849_v15, %v12821_v56  ;;  %v5725_v21 = vpop.f32.mrb[243].mxu0  ;;  %v5616_v34 = vmax.f32 %v5612_v5, %v5600_v18  ;;  %v5576_v50 = vadd.f32 %v5575_v43, %v12969_v55  ;;  %v6966_v16 = vld [vmem:[#allocation2 + $0x1e8] sm:$0xff] }
 0x2d5   : > { %v15206_v20 = vmax.f32 %v5794_v32, %v5798_v13  ;;  %v5726_v23 = vadd.f32 %v5725_v21, %v12833_v58  ;;  %11483 = vmatpush1.bf16.msra.mxu0 %v15129_v22  ;;  %5621 = vst.msk [vmem:[#allocation2 + $0x2e8] sm:$0xff] %vm708_vm4, %v5617_v47  ;;  %v5603_v17 = vmax.f32 %v5581_v11, 0.0  ;;  %11501 = vmatpush1.bf16.msra.mxu1 %v15077_v0  ;;  %v5796_v56 = vmax.f32 %v5706_v51, 0.0 }
 0x2d6   : > { %v5801_v19 = vmax.f32 %v5731_v30, 0.0  ;;  %11484 = vmatprep.subr.bf16.mxu0 %v15938_v12  ;;  %5620 = vst.msk [vmem:[#allocation2 + $0x2e0] sm:$0xff] %vm708_vm4, %v5616_v34  ;;  %v5602_v46 = vmax.f32 %v5576_v50, 0.0  ;;  %11502 = vmatprep.subr.bf16.mxu1 %v15938_v12  ;;  %v15230_v39 = vpack.c.bf16 %v6966_v16, %v6965_v61  ;;  %v15273_v61 = vpop.permute.xlu0 %425 }
 0x2d7   : > { %v5800_v5 = vmax.f32 %v5726_v23, 0.0  ;;  %v10852_v35 = vpop.f32.mrb[244].mxu0  ;;  %v15215_v4 = vpop.f32.mrb[244].mxu1  ;;  %v5619_v58 = vmax.f32 %v5615_v38, %v5603_v17  ;;  %v15238_v38 = vpack.c.bf16 %v6968_v29, %v6967_v7 }
 0x2d8   : > { %v15218_v1 = vmax.f32 %v5797_v42, %v5801_v19  ;;  %v5735_v25 = vpop.f32.mrb[245].mxu0  ;;  %v5929_v26 = vpop.f32.mrb[245].mxu1  ;;  %v5618_v31 = vmax.f32 %v5614_v24, %v5602_v46  ;;  %v5741_v60 = vadd.f32 %v10852_v35, %v12766_v36  ;;  %v7065_v46 = vld [vmem:[#allocation2 + $0x208] sm:$0xff] }
 0x2d9   : > { %v15220_v6 = vmax.f32 %v5796_v56, %v5800_v5  ;;  %11486 = vmatpush1.bf16.msra.mxu0 %v15149_v9  ;;  %5623 = vst.msk [vmem:[#allocation2 + $0x2f8] sm:$0xff] %vm708_vm4, %v5619_v58  ;;  %11504 = vmatpush1.bf16.msra.mxu1 %v15086_v14  ;;  %v5736_v54 = vadd.f32 %v5735_v25, %v12778_v41 }
 0x2da   : > { %11487 = vmatprep.subr.bf16.mxu0 %v15938_v12  ;;  %5622 = vst.msk [vmem:[#allocation2 + $0x2f0] sm:$0xff] %vm708_vm4, %v5618_v31  ;;  %11505 = vmatprep.subr.bf16.mxu1 %v15938_v12  ;;  %v5803_v62 = vmax.f32 %v5741_v60, 0.0 }
 0x2db   : > { %v10855_v3 = vpop.f32.mrb[246].mxu0  ;;  %v15227_v49 = vpop.f32.mrb[246].mxu1  ;;  %v5802_v41 = vmax.f32 %v5736_v54, 0.0 }
 0x2dc   : > { %v5745_v32 = vpop.f32.mrb[247].mxu0  ;;  %v5934_v37 = vpop.f32.mrb[247].mxu1  ;;  %v5751_v36 = vadd.f32 %v10855_v3, %v12844_v59  ;;  %v7067_v3 = vld [vmem:[#allocation2 + $0x218] sm:$0xff] }
 0x2dd   : > { %11489 = vmatpush1.bf16.msra.mxu0 %v15230_v39  ;;  %11507 = vmatpush1.bf16.msra.mxu1 %v15129_v22  ;;  %v5746_v24 = vadd.f32 %v5745_v32, %v12863_v2  ;;  %v5928_v32 = vadd.f32 %v15215_v4, %v15273_v61  ;;  %v15287_v4 = vpop.permute.xlu1 %430 }
 0x2de   : > { %11490 = vmatprep.subr.bf16.mxu0 %v15938_v12  ;;  %11508 = vmatprep.subr.bf16.mxu1 %v15938_v12  ;;  %v5805_v21 = vmax.f32 %v5751_v36, 0.0 }
 0x2df   : > { %v10858_v44 = vpop.f32.mrb[248].mxu0 }
 0x2e0   : > { %v5761_v51 = vadd.f32 %v10858_v44, %v12782_v45  ;;  %v5755_v18 = vpop.f32.mrb[249].mxu0  ;;  %v5936_v44 = vmax.f32 %v5928_v32, 0.0 }
 0x2e1   : > { %v5756_v13 = vadd.f32 %v5755_v18, %v12797_v48  ;;  %11492 = vmatpush1.bf16.msra.mxu0 %v15238_v38  ;;  %11510 = vmatpush1.bf16.msra.mxu1 %v15149_v9 }
 0x2e2   : > { %v5807_v15 = vmax.f32 %v5761_v51, 0.0  ;;  %11523 = vmatprep.subr.bf16.mxu0 %v15938_v12  ;;  %11511 = vmatprep.subr.bf16.mxu1 %v15938_v12  ;;  %v5933_v51 = vadd.f32 %v15227_v49, %v15287_v4 }
 0x2e3   : > { %v5806_v47 = vmax.f32 %v5756_v13, 0.0  ;;  %v10861_v11 = vpop.f32.mrb[250].mxu0 }
 0x2e4   : > { %v5819_v45 = vmax.f32 %v5803_v62, %v5807_v15  ;;  %v5771_v48 = vadd.f32 %v10861_v11, %v12879_v10  ;;  %7034 = vmatmul.mubr.f32.vlgmr.msra.gmra.mrb[20].mxu0 %v15164_v53  ;;  %v5765_v30 = vpop.f32.mrb[251].mxu0  ;;  %v5804_v10 = vmax.f32 %v5746_v24, 0.0  ;;  %v5937_v49 = vmax.f32 %v5933_v51, 0.0  ;;  %v7470_v51 = vld [vmem:[#allocation2 + $0x280] sm:$0xff] }
 0x2e5   : > { %v5818_v43 = vmax.f32 %v5802_v41, %v5806_v47  ;;  %v5766_v59 = vadd.f32 %v5765_v30, %v12893_v28  ;;  %11525 = vmatpush1.bf16.msra.mxu0 %v15077_v0  ;;  %9379 = vmatprep.mubr.msk.f32.mxu0 %vm5854_vm6, %v15176_v52 }
 0x2e6   : > { %v5809_v2 = vmax.f32 %v5771_v48, 0.0  ;;  %11513 = vmatpush1.bf16.msra.mxu1 %v15230_v39  ;;  %v5823_v34 = vmax.f32 %v15202_v33, %v5819_v45  ;;  %11526 = vmatprep.subr.bf16.mxu0 %v15938_v12  ;;  %v7064_v33 = vld [vmem:[#allocation2 + $0x200] sm:$0xff]  ;;  %v7164_v45 = vld [vmem:[#allocation2 + $0x228] sm:$0xff] }
 0x2e7   : > { %v5808_v50 = vmax.f32 %v5766_v59, 0.0  ;;  %v10864_v23 = vpop.f32.mrb[252].mxu0  ;;  %11514 = vmatprep.subr.bf16.mxu1 %v15938_v12  ;;  %v5822_v28 = vmax.f32 %v15206_v20, %v5818_v43  ;;  %v15271_v26 = vpack.c.bf16 %v7065_v46, %v7064_v33 }
 0x2e8   : > { %v5821_v42 = vmax.f32 %v5805_v21, %v5809_v2  ;;  %v5781_v0 = vadd.f32 %v10864_v23, %v15906_v27  ;;  %7039 = vmatmul.mubr.f32.gmra.mrb[22].mxu0 %v15187_v8  ;;  %v5775_v17 = vpop.f32.mrb[253].mxu0  ;;  %v7165_v2 = vld [vmem:[#allocation2 + $0x230] sm:$0xff] }
 0x2e9   : > { %v5820_v19 = vmax.f32 %v5804_v10, %v5808_v50  ;;  %v5776_v56 = vadd.f32 %v5775_v17, %v15935_v63  ;;  %11528 = vmatpush1.bf16.msra.mxu0 %v15086_v14  ;;  %9382 = vmatprep.mubr.msk.f32.mxu0 %vm5854_vm6, %v15134_v40  ;;  %v7264_v17 = vld [vmem:[#allocation2 + $0x250] sm:$0xff] }
 0x2ea   : > { %v5811_v5 = vmax.f32 %v5781_v0, 0.0  ;;  %11516 = vmatpush1.bf16.msra.mxu1 %v15238_v38  ;;  %v5825_v20 = vmax.f32 %v15218_v1, %v5821_v42  ;;  %11529 = vmatprep.subr.bf16.mxu0 %v15938_v12  ;;  %v7066_v1 = vld [vmem:[#allocation2 + $0x210] sm:$0xff]  ;;  %v7262_v42 = vld [vmem:[#allocation2 + $0x240] sm:$0xff]  ;;  %v7263_v0 = vld [vmem:[#allocation2 + $0x248] sm:$0xff] }
 0x2eb   : > { %v5810_v27 = vmax.f32 %v5776_v56, 0.0  ;;  %v10867_v35 = vpop.f32.mrb[254].mxu0  ;;  %11517 = vmatprep.subr.bf16.mxu1 %v15938_v12  ;;  %v5824_v63 = vmax.f32 %v15220_v6, %v5820_v19  ;;  %v15285_v37 = vpack.c.bf16 %v7067_v3, %v7066_v1  ;;  %v7265_v19 = vld [vmem:[#allocation2 + $0x258] sm:$0xff]  ;;  %v7374_v1 = vld [vmem:[#allocation2 + $0x268] sm:$0xff] }
 0x2ec   : > { %v5827_v58 = vmax.f32 %v5823_v34, %v5811_v5  ;;  %v5791_v14 = vadd.f32 %v10867_v35, %v12951_v57  ;;  %v5785_v25 = vpop.f32.mrb[255].mxu0  ;;  %v7166_v34 = vld [vmem:[#allocation2 + $0x238] sm:$0xff]  ;;  %v15355_v33 = vpack.c.bf16 %v7265_v19, %v7264_v17 }
 0x2ed   : > { %v5826_v16 = vmax.f32 %v5822_v28, %v5810_v27  ;;  %v5786_v31 = vadd.f32 %v5785_v25, %v12969_v55  ;;  %11531 = vmatpush1.bf16.msra.mxu0 %v15129_v22  ;;  %v15328_v23 = vpack.c.bf16 %v7166_v34, %v7165_v2 }
 0x2ee   : > { %5831 = vst.msk [vmem:[#allocation2 + $0x308] sm:$0xff] %vm708_vm4, %v5827_v58  ;;  %v5813_v6 = vmax.f32 %v5791_v14, 0.0  ;;  %11519 = vmatpush1.bf16.msra.mxu1 %v15271_v26  ;;  %11532 = vmatprep.subr.bf16.mxu0 %v15938_v12 }
 0x2ef   : > { %5830 = vst.msk [vmem:[#allocation2 + $0x300] sm:$0xff] %vm708_vm4, %v5826_v16  ;;  %v5812_v57 = vmax.f32 %v5786_v31, 0.0  ;;  %v6024_v7 = vpop.f32.mrb[0].mxu0  ;;  %11520 = vmatprep.subr.bf16.mxu1 %v15938_v12  ;;  %v7373_v31 = vld [vmem:[#allocation2 + $0x260] sm:$0xff] }
 0x2f0   : > { %v5829_v55 = vmax.f32 %v5825_v20, %v5813_v6  ;;  %v6025_v29 = vadd.f32 %v6024_v7, %v15273_v61  ;;  %v6026_v60 = vpop.f32.mrb[1].mxu0  ;;  %v15385_v6 = vpack.c.bf16 %v7374_v1, %v7373_v31 }
 0x2f1   : > { %v5828_v54 = vmax.f32 %v5824_v63, %v5812_v57  ;;  %11534 = vmatpush1.bf16.msra.mxu0 %v15149_v9 }
 0x2f2   : > { %5833 = vst.msk [vmem:[#allocation2 + $0x318] sm:$0xff] %vm708_vm4, %v5829_v55  ;;  %v6033_v18 = vmax.f32 %v6025_v29, 0.0  ;;  %11522 = vmatpush1.bf16.msra.mxu1 %v15285_v37  ;;  %11535 = vmatprep.subr.bf16.mxu0 %v15938_v12  ;;  %v7375_v55 = vld [vmem:[#allocation2 + $0x270] sm:$0xff]  ;;  %v7376_v29 = vld [vmem:[#allocation2 + $0x278] sm:$0xff] }
 0x2f3   : > { %5832 = vst.msk [vmem:[#allocation2 + $0x310] sm:$0xff] %vm708_vm4, %v5828_v54  ;;  %v6029_v13 = vpop.f32.mrb[2].mxu0  ;;  %11553 = vmatprep.subr.bf16.mxu1 %v15938_v12  ;;  %v15394_v54 = vpack.c.bf16 %v7376_v29, %v7375_v55 }
 0x2f4   : > { %v6035_v62 = vmax.f32 %v5936_v44, %v6033_v18  ;;  %v6030_v36 = vadd.f32 %v6029_v13, %v15287_v4  ;;  %v6031_v15 = vpop.f32.mrb[3].mxu0  ;;  %v7471_v18 = vld [vmem:[#allocation2 + $0x288] sm:$0xff] }
 0x2f5   : > { %7133 = vmatmul.mubr.f32.vlgmr.msra.gmra.mrb[12].mxu1 %v15164_v53  ;;  %11537 = vmatpush1.bf16.msra.mxu0 %v15230_v39  ;;  %v15416_v13 = vpack.c.bf16 %v7471_v18, %v7470_v51 }
 0x2f6   : > { %v6034_v41 = vmax.f32 %v6030_v36, 0.0  ;;  %11555 = vmatpush1.bf16.msra.mxu1 %v15129_v22  ;;  %9381 = vmatprep.mubr.msk.f32.mxu1 %vm5854_vm6, %v15176_v52  ;;  %v7473_v36 = vld [vmem:[#allocation2 + $0x298] sm:$0xff] }
 0x2f7   : > { %11538 = vmatprep.subr.bf16.mxu0 %v15938_v12  ;;  %11556 = vmatprep.subr.bf16.mxu1 %v15938_v12 }
 0x2f8   : > { %v6036_v24 = vmax.f32 %v5937_v49, %v6034_v41 }
 0x2f9   : > { %7138 = vmatmul.mubr.f32.gmra.mrb[14].mxu1 %v15187_v8  ;;  %11540 = vmatpush1.bf16.msra.mxu0 %v15238_v38 }
 0x2fa   : > { %11558 = vmatpush1.bf16.msra.mxu1 %v15149_v9  ;;  %11541 = vmatprep.subr.bf16.mxu0 %v15938_v12  ;;  %v7163_v9 = vld [vmem:[#allocation2 + $0x220] sm:$0xff] }
 0x2fb   : > { %11559 = vmatprep.subr.bf16.mxu1 %v15938_v12  ;;  %9384 = vmatprep.mubr.msk.f32.mxu1 %vm5854_vm6, %v15134_v40  ;;  %v15321_v43 = vpack.c.bf16 %v7164_v45, %v7163_v9 }
 0x2fd   : > { %11543 = vmatpush1.bf16.msra.mxu0 %v15271_v26 }
 0x2fe   : > { %11561 = vmatpush1.bf16.msra.mxu1 %v15230_v39  ;;  %11544 = vmatprep.subr.bf16.mxu0 %v15938_v12 }
 0x2ff   : > { %v6123_v22 = vpop.f32.mrb[248].mxu1  ;;  %11562 = vmatprep.subr.bf16.mxu1 %v15938_v12 }
 0x300   : > { %v6124_v47 = vadd.f32 %v6123_v22, %v15273_v61  ;;  %v6125_v11 = vpop.f32.mrb[249].mxu1 }
 0x301   : > { %11546 = vmatpush1.bf16.msra.mxu0 %v15285_v37 }
 0x302   : > { %v6132_v48 = vmax.f32 %v6124_v47, 0.0  ;;  %11564 = vmatpush1.bf16.msra.mxu1 %v15238_v38  ;;  %11547 = vmatprep.subr.bf16.mxu0 %v15938_v12 }
 0x303   : > { %v6128_v30 = vpop.f32.mrb[250].mxu1  ;;  %11565 = vmatprep.subr.bf16.mxu1 %v15938_v12 }
 0x304   : > { %v6134_v59 = vmax.f32 %v6035_v62, %v6132_v48  ;;  %v6129_v21 = vadd.f32 %v6128_v30, %v15287_v4  ;;  %v6130_v10 = vpop.f32.mrb[251].mxu1  ;;  %v7472_v62 = vld [vmem:[#allocation2 + $0x290] sm:$0xff]  ;;  %v7569_v48 = vld [vmem:[#allocation2 + $0x2a0] sm:$0xff]  ;;  %v7570_v30 = vld [vmem:[#allocation2 + $0x2a8] sm:$0xff] }
 0x305   : > { %11549 = vmatpush1.bf16.msra.mxu0 %v15321_v43  ;;  %v15422_v49 = vpack.c.bf16 %v7473_v36, %v7472_v62  ;;  %v15453_v34 = vpack.c.bf16 %v7570_v30, %v7569_v48  ;;  %v7878_v36 = vld [vmem:[#allocation2 + $0x300] sm:$0xff] }
 0x306   : > { %v6133_v50 = vmax.f32 %v6129_v21, 0.0  ;;  %11567 = vmatpush1.bf16.msra.mxu1 %v15271_v26  ;;  %11550 = vmatprep.subr.bf16.mxu0 %v15938_v12 }
 0x307   : > { %11568 = vmatprep.subr.bf16.mxu1 %v15938_v12 }
 0x308   : > { %v6135_v28 = vmax.f32 %v6036_v24, %v6133_v50 }
 0x309   : > { %11552 = vmatpush1.bf16.msra.mxu0 %v15328_v23 }
 0x30a   : > { %11570 = vmatpush1.bf16.msra.mxu1 %v15285_v37  ;;  %11583 = vmatprep.subr.bf16.mxu0 %v15938_v12 }
 0x30b   : > { %11571 = vmatprep.subr.bf16.mxu1 %v15938_v12 }
 0x30c   : > { %7232 = vmatmul.mubr.f32.vlgmr.msra.gmra.mrb[24].mxu0 %v15164_v53 }
 0x30d   : > { %11585 = vmatpush1.bf16.msra.mxu0 %v15230_v39  ;;  %9383 = vmatprep.mubr.msk.f32.mxu0 %vm5854_vm6, %v15176_v52  ;;  %v15348_v39 = vpack.c.bf16 %v7263_v0, %v7262_v42 }
 0x30e   : > { %11573 = vmatpush1.bf16.msra.mxu1 %v15321_v43  ;;  %11586 = vmatprep.subr.bf16.mxu0 %v15938_v12 }
 0x30f   : > { %11574 = vmatprep.subr.bf16.mxu1 %v15938_v12 }
 0x310   : > { %7237 = vmatmul.mubr.f32.gmra.mrb[26].mxu0 %v15187_v8 }
 0x311   : > { %11588 = vmatpush1.bf16.msra.mxu0 %v15238_v38  ;;  %9386 = vmatprep.mubr.msk.f32.mxu0 %vm5854_vm6, %v15134_v40 }
 0x312   : > { %11576 = vmatpush1.bf16.msra.mxu1 %v15328_v23  ;;  %11589 = vmatprep.subr.bf16.mxu0 %v15938_v12 }
 0x313   : > { %11577 = vmatprep.subr.bf16.mxu1 %v15938_v12 }
 0x315   : > { %11591 = vmatpush1.bf16.msra.mxu0 %v15271_v26 }
 0x316   : > { %11579 = vmatpush1.bf16.msra.mxu1 %v15348_v39  ;;  %11592 = vmatprep.subr.bf16.mxu0 %v15938_v12 }
 0x317   : > { %v6222_v38 = vpop.f32.mrb[4].mxu0  ;;  %11580 = vmatprep.subr.bf16.mxu1 %v15938_v12 }
 0x318   : > { %v6223_v56 = vadd.f32 %v6222_v38, %v15273_v61  ;;  %v6224_v46 = vpop.f32.mrb[5].mxu0  ;;  %v7668_v38 = vld [vmem:[#allocation2 + $0x2c0] sm:$0xff] }
 0x319   : > { %11594 = vmatpush1.bf16.msra.mxu0 %v15285_v37  ;;  %v7670_v46 = vld [vmem:[#allocation2 + $0x2d0] sm:$0xff] }
 0x31a   : > { %v6231_v5 = vmax.f32 %v6223_v56, 0.0  ;;  %11582 = vmatpush1.bf16.msra.mxu1 %v15355_v33  ;;  %11595 = vmatprep.subr.bf16.mxu0 %v15938_v12  ;;  %v7669_v56 = vld [vmem:[#allocation2 + $0x2c8] sm:$0xff] }
 0x31b   : > { %v6227_v20 = vpop.f32.mrb[6].mxu0  ;;  %11613 = vmatprep.subr.bf16.mxu1 %v15938_v12 }
 0x31c   : > { %v6233_v27 = vmax.f32 %v6134_v59, %v6231_v5  ;;  %v6228_v35 = vadd.f32 %v6227_v20, %v15287_v4  ;;  %v6229_v63 = vpop.f32.mrb[7].mxu0  ;;  %v7671_v5 = vld [vmem:[#allocation2 + $0x2d8] sm:$0xff] }
 0x31d   : > { %7331 = vmatmul.mubr.f32.vlgmr.msra.gmra.mrb[16].mxu1 %v15164_v53  ;;  %11597 = vmatpush1.bf16.msra.mxu0 %v15321_v43 }
 0x31e   : > { %v6232_v58 = vmax.f32 %v6228_v35, 0.0  ;;  %11615 = vmatpush1.bf16.msra.mxu1 %v15271_v26  ;;  %9385 = vmatprep.mubr.msk.f32.mxu1 %vm5854_vm6, %v15176_v52  ;;  %v15487_v35 = vpack.c.bf16 %v7671_v5, %v7670_v46  ;;  %v8074_v46 = vld [vmem:[#allocation2 + $0x340] sm:$0xff]  ;;  %v8075_v5 = vld [vmem:[#allocation2 + $0x348] sm:$0xff] }
 0x31f   : > { %11598 = vmatprep.subr.bf16.mxu0 %v15938_v12  ;;  %11616 = vmatprep.subr.bf16.mxu1 %v15938_v12 }
 0x320   : > { %v6234_v14 = vmax.f32 %v6135_v28, %v6232_v58  ;;  %v7572_v28 = vld [vmem:[#allocation2 + $0x2b8] sm:$0xff] }
 0x321   : > { %7336 = vmatmul.mubr.f32.gmra.mrb[18].mxu1 %v15187_v8  ;;  %11600 = vmatpush1.bf16.msra.mxu0 %v15328_v23 }
 0x322   : > { %11618 = vmatpush1.bf16.msra.mxu1 %v15285_v37  ;;  %11601 = vmatprep.subr.bf16.mxu0 %v15938_v12 }
 0x323   : > { %11619 = vmatprep.subr.bf16.mxu1 %v15938_v12  ;;  %9388 = vmatprep.mubr.msk.f32.mxu1 %vm5854_vm6, %v15134_v40 }
 0x325   : > { %11603 = vmatpush1.bf16.msra.mxu0 %v15348_v39 }
 0x326   : > { %11621 = vmatpush1.bf16.msra.mxu1 %v15321_v43  ;;  %11604 = vmatprep.subr.bf16.mxu0 %v15938_v12 }
 0x327   : > { %v6321_v25 = vpop.f32.mrb[252].mxu1  ;;  %11622 = vmatprep.subr.bf16.mxu1 %v15938_v12 }
 0x328   : > { %v6322_v26 = vadd.f32 %v6321_v25, %v15273_v61  ;;  %v6323_v16 = vpop.f32.mrb[253].mxu1 }
 0x329   : > { %11606 = vmatpush1.bf16.msra.mxu0 %v15355_v33 }
 0x32a   : > { %v6330_v3 = vmax.f32 %v6322_v26, 0.0  ;;  %11624 = vmatpush1.bf16.msra.mxu1 %v15328_v23  ;;  %11607 = vmatprep.subr.bf16.mxu0 %v15938_v12 }
 0x32b   : > { %v6326_v32 = vpop.f32.mrb[254].mxu1  ;;  %11625 = vmatprep.subr.bf16.mxu1 %v15938_v12 }
 0x32c   : > { %v6332_v57 = vmax.f32 %v6233_v27, %v6330_v3  ;;  %v6327_v7 = vadd.f32 %v6326_v32, %v15287_v4  ;;  %v6328_v37 = vpop.f32.mrb[255].mxu1 }
 0x32d   : > { %11609 = vmatpush1.bf16.msra.mxu0 %v15385_v6 }
 0x32e   : > { %6334 = vst.msk [vmem:[#allocation3] sm:$0xff] %vm729_vm5, %v6332_v57  ;;  %v6331_v60 = vmax.f32 %v6327_v7, 0.0  ;;  %11627 = vmatpush1.bf16.msra.mxu1 %v15348_v39  ;;  %6338 = vrot.lane.b32.xlu0 %v6332_v57, %s12059_s8  ;;  %v7767_v57 = vld [vmem:[#allocation2 + $0x2e0] sm:$0xff]  ;;  %v7768_v7 = vld [vmem:[#allocation2 + $0x2e8] sm:$0xff] }
 0x32f   : > { %11610 = vmatprep.subr.bf16.mxu0 %v15938_v12  ;;  %11628 = vmatprep.subr.bf16.mxu1 %v15938_v12  ;;  %v15517_v29 = vpack.c.bf16 %v7768_v7, %v7767_v57 }
 0x330   : > { %v6333_v44 = vmax.f32 %v6234_v14, %v6331_v60 }
 0x331   : > { %11612 = vmatpush1.bf16.msra.mxu0 %v15394_v54 }
 0x332   : > { %6335 = vst.msk [vmem:[#allocation3 + $0x8] sm:$0xff] %vm729_vm5, %v6333_v44  ;;  %11630 = vmatpush1.bf16.msra.mxu1 %v15355_v33  ;;  %6340 = vrot.lane.b32.xlu1 %v6333_v44, %s12059_s8  ;;  %v7770_v44 = vld [vmem:[#allocation2 + $0x2f8] sm:$0xff] }
 0x333   : > { %11631 = vmatprep.subr.bf16.mxu1 %v15938_v12  ;;  %11643 = vmatprep.subr.bf16.mxu0 %v15938_v12 }
 0x334   : > { %7442 = vmatmul.mubr.f32.vlgmr.msra.gmra.mrb[28].mxu0 %v15164_v53 }
 0x335   : > { %11645 = vmatpush1.bf16.msra.mxu0 %v15321_v43  ;;  %9387 = vmatprep.mubr.msk.f32.mxu0 %vm5854_vm6, %v15176_v52 }
 0x336   : > { %11633 = vmatpush1.bf16.msra.mxu1 %v15385_v6  ;;  %11646 = vmatprep.subr.bf16.mxu0 %v15938_v12 }
 0x337   : > { %11634 = vmatprep.subr.bf16.mxu1 %v15938_v12 }
 0x338   : > { %7447 = vmatmul.mubr.f32.gmra.mrb[30].mxu0 %v15187_v8 }
 0x339   : > { %11648 = vmatpush1.bf16.msra.mxu0 %v15328_v23  ;;  %9390 = vmatprep.mubr.msk.f32.mxu0 %vm5854_vm6, %v15134_v40  ;;  %v7571_v23 = vld [vmem:[#allocation2 + $0x2b0] sm:$0xff] }
 0x33a   : > { %11636 = vmatpush1.bf16.msra.mxu1 %v15394_v54  ;;  %11649 = vmatprep.subr.bf16.mxu0 %v15938_v12  ;;  %v15460_v17 = vpack.c.bf16 %v7572_v28, %v7571_v23 }
 0x33b   : > { %11637 = vmatprep.subr.bf16.mxu1 %v15938_v12 }
 0x33d   : > { %11651 = vmatpush1.bf16.msra.mxu0 %v15348_v39 }
 0x33e   : > { %11639 = vmatpush1.bf16.msra.mxu1 %v15416_v13  ;;  %11652 = vmatprep.subr.bf16.mxu0 %v15938_v12 }
 0x33f   : > { %v6433_v15 = vpop.f32.mrb[8].mxu0  ;;  %11640 = vmatprep.subr.bf16.mxu1 %v15938_v12 }
 0x340   : > { %v6435_v41 = vpop.f32.mrb[9].mxu0  ;;  %v6434_v47 = vadd.f32 %v6433_v15, %v15273_v61  ;;  %v7879_v15 = vld [vmem:[#allocation2 + $0x308] sm:$0xff] }
 0x341   : > { %11654 = vmatpush1.bf16.msra.mxu0 %v15355_v33  ;;  %v15549_v41 = vpack.c.bf16 %v7879_v15, %v7878_v36  ;;  %v8176_v36 = vld [vmem:[#allocation2 + $0x378] sm:$0xff] }
 0x342   : > { %11642 = vmatpush1.bf16.msra.mxu1 %v15422_v49  ;;  %11655 = vmatprep.subr.bf16.mxu0 %v15938_v12  ;;  %v6442_v43 = vmax.f32 %v6434_v47, 0.0 }
 0x343   : > { %v6438_v24 = vpop.f32.mrb[10].mxu0  ;;  %11673 = vmatprep.subr.bf16.mxu1 %v15938_v12 }
 0x344   : > { %v6440_v22 = vpop.f32.mrb[11].mxu0  ;;  %v6439_v59 = vadd.f32 %v6438_v24, %v15287_v4  ;;  %v7880_v24 = vld [vmem:[#allocation2 + $0x310] sm:$0xff] }
 0x345   : > { %7539 = vmatmul.mubr.f32.vlgmr.msra.gmra.mrb[20].mxu1 %v15164_v53  ;;  %11657 = vmatpush1.bf16.msra.mxu0 %v15385_v6  ;;  %v7881_v22 = vld [vmem:[#allocation2 + $0x318] sm:$0xff] }
 0x346   : > { %11675 = vmatpush1.bf16.msra.mxu1 %v15348_v39  ;;  %9389 = vmatprep.mubr.msk.f32.mxu1 %vm5854_vm6, %v15176_v52  ;;  %v6443_v0 = vmax.f32 %v6439_v59, 0.0 }
 0x347   : > { %11658 = vmatprep.subr.bf16.mxu0 %v15938_v12  ;;  %11676 = vmatprep.subr.bf16.mxu1 %v15938_v12 }
 0x349   : > { %7544 = vmatmul.mubr.f32.gmra.mrb[22].mxu1 %v15187_v8  ;;  %11660 = vmatpush1.bf16.msra.mxu0 %v15394_v54 }
 0x34a   : > { %11678 = vmatpush1.bf16.msra.mxu1 %v15355_v33  ;;  %11661 = vmatprep.subr.bf16.mxu0 %v15938_v12  ;;  %v15480_v33 = vpack.c.bf16 %v7669_v56, %v7668_v38  ;;  %v15606_v38 = vld [vmem:[%s15786_s3] sm:$0xff]  ;;  %v15613_v56 = vld [vmem:[%s15786_s3 + $0x18] sm:$0xff] }
 0x34b   : > { %11679 = vmatprep.subr.bf16.mxu1 %v15938_v12  ;;  %9392 = vmatprep.mubr.msk.f32.mxu1 %vm5854_vm6, %v15134_v40 }
 0x34d   : > { %11663 = vmatpush1.bf16.msra.mxu0 %v15416_v13 }
 0x34e   : > { %11681 = vmatpush1.bf16.msra.mxu1 %v15385_v6  ;;  %11664 = vmatprep.subr.bf16.mxu0 %v15938_v12 }
 0x34f   : > { %v6530_v11 = vpop.f32.mrb[0].mxu1  ;;  %11682 = vmatprep.subr.bf16.mxu1 %v15938_v12 }
 0x350   : > { %v6531_v9 = vadd.f32 %v6530_v11, %v15273_v61  ;;  %v6532_v45 = vpop.f32.mrb[1].mxu1 }
 0x351   : > { %11666 = vmatpush1.bf16.msra.mxu0 %v15422_v49 }
 0x352   : > { %v6539_v21 = vmax.f32 %v6531_v9, 0.0  ;;  %11684 = vmatpush1.bf16.msra.mxu1 %v15394_v54  ;;  %11667 = vmatprep.subr.bf16.mxu0 %v15938_v12  ;;  %v15556_v9 = vpack.c.bf16 %v7881_v22, %v7880_v24 }
 0x353   : > { %v6535_v2 = vpop.f32.mrb[2].mxu1  ;;  %11685 = vmatprep.subr.bf16.mxu1 %v15938_v12 }
 0x354   : > { %v6541_v10 = vmax.f32 %v6442_v43, %v6539_v21  ;;  %v6536_v50 = vadd.f32 %v6535_v2, %v15287_v4  ;;  %v6537_v42 = vpop.f32.mrb[3].mxu1 }
 0x355   : > { %11669 = vmatpush1.bf16.msra.mxu0 %v15453_v34 }
 0x356   : > { %v6540_v39 = vmax.f32 %v6536_v50, 0.0  ;;  %11687 = vmatpush1.bf16.msra.mxu1 %v15416_v13  ;;  %11670 = vmatprep.subr.bf16.mxu0 %v15938_v12  ;;  %v7976_v50 = vld [vmem:[#allocation2 + $0x328] sm:$0xff] }
 0x357   : > { %11688 = vmatprep.subr.bf16.mxu1 %v15938_v12 }
 0x358   : > { %v6542_v19 = vmax.f32 %v6443_v0, %v6540_v39  ;;  %v7977_v0 = vld [vmem:[#allocation2 + $0x330] sm:$0xff]  ;;  %v7978_v39 = vld [vmem:[#allocation2 + $0x338] sm:$0xff] }
 0x359   : > { %11672 = vmatpush1.bf16.msra.mxu0 %v15460_v17 }
 0x35a   : > { %11690 = vmatpush1.bf16.msra.mxu1 %v15422_v49  ;;  %11703 = vmatprep.subr.bf16.mxu0 %v15938_v12 }
 0x35b   : > { %11691 = vmatprep.subr.bf16.mxu1 %v15938_v12 }
 0x35c   : > { %7638 = vmatmul.mubr.f32.vlgmr.msra.gmra.mrb[32].mxu0 %v15164_v53 }
 0x35d   : > { %11705 = vmatpush1.bf16.msra.mxu0 %v15385_v6  ;;  %9391 = vmatprep.mubr.msk.f32.mxu0 %vm5854_vm6, %v15176_v52 }
 0x35e   : > { %11693 = vmatpush1.bf16.msra.mxu1 %v15453_v34  ;;  %11706 = vmatprep.subr.bf16.mxu0 %v15938_v12 }
 0x35f   : > { %11694 = vmatprep.subr.bf16.mxu1 %v15938_v12 }
 0x360   : > { %7643 = vmatmul.mubr.f32.gmra.mrb[34].mxu0 %v15187_v8 }
 0x361   : > { %11708 = vmatpush1.bf16.msra.mxu0 %v15394_v54  ;;  %9394 = vmatprep.mubr.msk.f32.mxu0 %vm5854_vm6, %v15134_v40  ;;  %v7769_v54 = vld [vmem:[#allocation2 + $0x2f0] sm:$0xff] }
 0x362   : > { %11696 = vmatpush1.bf16.msra.mxu1 %v15460_v17  ;;  %11709 = vmatprep.subr.bf16.mxu0 %v15938_v12 }
 0x363   : > { %11697 = vmatprep.subr.bf16.mxu1 %v15938_v12 }
 0x365   : > { %11711 = vmatpush1.bf16.msra.mxu0 %v15416_v13 }
 0x366   : > { %11699 = vmatpush1.bf16.msra.mxu1 %v15480_v33  ;;  %11712 = vmatprep.subr.bf16.mxu0 %v15938_v12 }
 0x367   : > { %v6629_v20 = vpop.f32.mrb[12].mxu0  ;;  %11700 = vmatprep.subr.bf16.mxu1 %v15938_v12 }
 0x368   : > { %v6630_v27 = vadd.f32 %v6629_v20, %v15273_v61  ;;  %v6631_v63 = vpop.f32.mrb[13].mxu0  ;;  %v11818_v20 = vpack.c.bf16 %v8075_v5, %v8074_v46 }
 0x369   : > { %11714 = vmatpush1.bf16.msra.mxu0 %v15422_v49 }
 0x36a   : > { %v6638_v58 = vmax.f32 %v6630_v27, 0.0  ;;  %11702 = vmatpush1.bf16.msra.mxu1 %v15487_v35  ;;  %11715 = vmatprep.subr.bf16.mxu0 %v15938_v12  ;;  %v8076_v27 = vld [vmem:[#allocation2 + $0x350] sm:$0xff] }
 0x36b   : > { %v6634_v14 = vpop.f32.mrb[14].mxu0  ;;  %11733 = vmatprep.subr.bf16.mxu1 %v15938_v12 }
 0x36c   : > { %v6640_v25 = vmax.f32 %v6541_v10, %v6638_v58  ;;  %v6635_v26 = vadd.f32 %v6634_v14, %v15287_v4  ;;  %v6636_v16 = vpop.f32.mrb[15].mxu0  ;;  %v7975_v10 = vld [vmem:[#allocation2 + $0x320] sm:$0xff] }
 0x36d   : > { %7737 = vmatmul.mubr.f32.vlgmr.msra.gmra.mrb[24].mxu1 %v15164_v53  ;;  %11717 = vmatpush1.bf16.msra.mxu0 %v15453_v34  ;;  %v15590_v28 = vpack.c.bf16 %v7976_v50, %v7975_v10 }
 0x36e   : > { %v6639_v31 = vmax.f32 %v6635_v26, 0.0  ;;  %11735 = vmatpush1.bf16.msra.mxu1 %v15416_v13  ;;  %9393 = vmatprep.mubr.msk.f32.mxu1 %vm5854_vm6, %v15176_v52  ;;  %v15524_v13 = vpack.c.bf16 %v7770_v44, %v7769_v54 }
 0x36f   : > { %11718 = vmatprep.subr.bf16.mxu0 %v15938_v12  ;;  %11736 = vmatprep.subr.bf16.mxu1 %v15938_v12 }
 0x370   : > { %v6641_v1 = vmax.f32 %v6542_v19, %v6639_v31  ;;  %v15597_v19 = vpack.c.bf16 %v7978_v39, %v7977_v0 }
 0x371   : > { %7742 = vmatmul.mubr.f32.gmra.mrb[26].mxu1 %v15187_v8  ;;  %11720 = vmatpush1.bf16.msra.mxu0 %v15460_v17 }
 0x372   : > { %11738 = vmatpush1.bf16.msra.mxu1 %v15422_v49  ;;  %11721 = vmatprep.subr.bf16.mxu0 %v15938_v12  ;;  %v15542_v49 = vld [vmem:[%s15786_s3 + $0x8] sm:$0xff] }
 0x373   : > { %11739 = vmatprep.subr.bf16.mxu1 %v15938_v12  ;;  %9396 = vmatprep.mubr.msk.f32.mxu1 %vm5854_vm6, %v15134_v40 }
 0x375   : > { %11723 = vmatpush1.bf16.msra.mxu0 %v15480_v33 }
 0x376   : > { %11741 = vmatpush1.bf16.msra.mxu1 %v15453_v34  ;;  %11724 = vmatprep.subr.bf16.mxu0 %v15938_v12 }
 0x377   : > { %v6728_v3 = vpop.f32.mrb[4].mxu1  ;;  %11742 = vmatprep.subr.bf16.mxu1 %v15938_v12 }
 0x378   : > { %v6729_v32 = vadd.f32 %v6728_v3, %v15273_v61  ;;  %v6730_v6 = vpop.f32.mrb[5].mxu1 }
 0x379   : > { %11726 = vmatpush1.bf16.msra.mxu0 %v15487_v35 }
 0x37a   : > { %v6737_v55 = vmax.f32 %v6729_v32, 0.0  ;;  %11744 = vmatpush1.bf16.msra.mxu1 %v15460_v17  ;;  %11727 = vmatprep.subr.bf16.mxu0 %v15938_v12 }
 0x37b   : > { %v6733_v40 = vpop.f32.mrb[6].mxu1  ;;  %11745 = vmatprep.subr.bf16.mxu1 %v15938_v12 }
 0x37c   : > { %v6739_v37 = vmax.f32 %v6640_v25, %v6737_v55  ;;  %v6734_v60 = vadd.f32 %v6733_v40, %v15287_v4  ;;  %v6735_v51 = vpop.f32.mrb[7].mxu1 }
 0x37d   : > { %11729 = vmatpush1.bf16.msra.mxu0 %v15517_v29 }
 0x37e   : > { %v6738_v18 = vmax.f32 %v6734_v60, 0.0  ;;  %11747 = vmatpush1.bf16.msra.mxu1 %v15480_v33  ;;  %11730 = vmatprep.subr.bf16.mxu0 %v15938_v12  ;;  %v8174_v60 = vld [vmem:[#allocation2 + $0x368] sm:$0xff] }
 0x37f   : > { %11748 = vmatprep.subr.bf16.mxu1 %v15938_v12 }
 0x380   : > { %v6740_v62 = vmax.f32 %v6641_v1, %v6738_v18 }
 0x381   : > { %11732 = vmatpush1.bf16.msra.mxu0 %v15524_v13 }
 0x382   : > { %11750 = vmatpush1.bf16.msra.mxu1 %v15487_v35  ;;  %11763 = vmatprep.subr.bf16.mxu0 %v15938_v12 }
 0x383   : > { %11751 = vmatprep.subr.bf16.mxu1 %v15938_v12 }
 0x384   : > { %7836 = vmatmul.mubr.f32.vlgmr.msra.gmra.mrb[36].mxu0 %v15164_v53 }
 0x385   : > { %11765 = vmatpush1.bf16.msra.mxu0 %v15453_v34  ;;  %9395 = vmatprep.mubr.msk.f32.mxu0 %vm5854_vm6, %v15176_v52 }
 0x386   : > { %11753 = vmatpush1.bf16.msra.mxu1 %v15517_v29  ;;  %11766 = vmatprep.subr.bf16.mxu0 %v15938_v12 }
 0x387   : > { %11754 = vmatprep.subr.bf16.mxu1 %v15938_v12 }
 0x388   : > { %7841 = vmatmul.mubr.f32.gmra.mrb[38].mxu0 %v15187_v8 }
 0x389   : > { %11768 = vmatpush1.bf16.msra.mxu0 %v15460_v17  ;;  %9398 = vmatprep.mubr.msk.f32.mxu0 %vm5854_vm6, %v15542_v49 }
 0x38a   : > { %11756 = vmatpush1.bf16.msra.mxu1 %v15524_v13  ;;  %11769 = vmatprep.subr.bf16.mxu0 %v15938_v12 }
 0x38b   : > { %11757 = vmatprep.subr.bf16.mxu1 %v15938_v12 }
 0x38d   : > { %11771 = vmatpush1.bf16.msra.mxu0 %v15480_v33 }
 0x38e   : > { %11759 = vmatpush1.bf16.msra.mxu1 %v15549_v41  ;;  %11772 = vmatprep.subr.bf16.mxu0 %v15938_v12 }
 0x38f   : > { %v6827_v47 = vpop.f32.mrb[16].mxu0  ;;  %11760 = vmatprep.subr.bf16.mxu1 %v15938_v12 }
 0x390   : > { %v6828_v11 = vadd.f32 %v6827_v47, %v15273_v61  ;;  %v6829_v45 = vpop.f32.mrb[17].mxu0  ;;  %v8358_v47 = vld [vmem:[#allocation3 + $0x8] sm:$0xff] }
 0x391   : > { %11774 = vmatpush1.bf16.msra.mxu0 %v15487_v35 }
 0x392   : > { %v6836_v48 = vmax.f32 %v6828_v11, 0.0  ;;  %11762 = vmatpush1.bf16.msra.mxu1 %v15556_v9  ;;  %11775 = vmatprep.subr.bf16.mxu0 %v15938_v12 }
 0x393   : > { %v6832_v30 = vpop.f32.mrb[18].mxu0  ;;  %11793 = vmatprep.subr.bf16.mxu1 %v15938_v12 }
 0x394   : > { %v6838_v43 = vmax.f32 %v6739_v37, %v6836_v48  ;;  %v6833_v59 = vadd.f32 %v6832_v30, %v15287_v4  ;;  %v6834_v21 = vpop.f32.mrb[19].mxu0  ;;  %v8173_v37 = vld [vmem:[#allocation2 + $0x360] sm:$0xff] }
 0x395   : > { %7947 = vmatmul.mubr.f32.vlgmr.msra.gmra.mrb[28].mxu1 %v15164_v53  ;;  %11777 = vmatpush1.bf16.msra.mxu0 %v15517_v29  ;;  %v11848_v18 = vpack.c.bf16 %v8174_v60, %v8173_v37  ;;  %v8273_v21 = vld [vmem:[#allocation2 + $0x388] sm:$0xff] }
 0x396   : > { %6840 = vst.msk [vmem:[#allocation3 + $0x10] sm:$0xff] %vm729_vm5, %v6838_v43  ;;  %v6837_v2 = vmax.f32 %v6833_v59, 0.0  ;;  %11795 = vmatpush1.bf16.msra.mxu1 %v15480_v33  ;;  %6844 = vrot.lane.b32.xlu0 %v6838_v43, %s12059_s8  ;;  %v15623_v33 = vld [vmem:[%s15786_s3 + $0x10] sm:$0xff]  ;;  %v8272_v59 = vld [vmem:[#allocation2 + $0x380] sm:$0xff] }
 0x397   : > { %9397 = vmatprep.mubr.msk.f32.mxu1 %vm5854_vm6, %v15176_v52  ;;  %11778 = vmatprep.subr.bf16.mxu0 %v15938_v12 }
 0x398   : > { %v6839_v34 = vmax.f32 %v6740_v62, %v6837_v2  ;;  %11796 = vmatprep.subr.bf16.mxu1 %v15938_v12  ;;  %v8175_v62 = vld [vmem:[#allocation2 + $0x370] sm:$0xff]  ;;  %v11878_v2 = vpack.c.bf16 %v8273_v21, %v8272_v59 }
 0x399   : > { %7952 = vmatmul.mubr.f32.gmra.mrb[30].mxu1 %v15187_v8  ;;  %11780 = vmatpush1.bf16.msra.mxu0 %v15524_v13  ;;  %v11851_v22 = vpack.c.bf16 %v8176_v36, %v8175_v62 }
 0x39a   : > { %6841 = vst.msk [vmem:[#allocation3 + $0x18] sm:$0xff] %vm729_vm5, %v6839_v34  ;;  %11798 = vmatpush1.bf16.msra.mxu1 %v15487_v35  ;;  %6846 = vrot.lane.b32.xlu1 %v6839_v34, %s12059_s8  ;;  %v8077_v35 = vld [vmem:[#allocation2 + $0x358] sm:$0xff]  ;;  %v8274_v34 = vld [vmem:[#allocation2 + $0x390] sm:$0xff] }
 0x39b   : > { %11781 = vmatprep.subr.bf16.mxu0 %v15938_v12  ;;  %11799 = vmatprep.subr.bf16.mxu1 %v15938_v12  ;;  %v11821_v25 = vpack.c.bf16 %v8077_v35, %v8076_v27 }
 0x39c   : > { %9400 = vmatprep.mubr.msk.f32.mxu1 %vm5854_vm6, %v15542_v49 }
 0x39d   : > { %11783 = vmatpush1.bf16.msra.mxu0 %v15549_v41  ;;  %v8359_v30 = vld [vmem:[#allocation3 + $0x10] sm:$0xff] }
 0x39e   : > { %11801 = vmatpush1.bf16.msra.mxu1 %v15517_v29  ;;  %11784 = vmatprep.subr.bf16.mxu0 %v15938_v12 }
 0x39f   : > { %v6938_v53 = vpop.f32.mrb[8].mxu1  ;;  %11802 = vmatprep.subr.bf16.mxu1 %v15938_v12 }
 0x3a0   : > { %v6339_v52 = vpop.permute.xlu0 %6338  ;;  %v6940_v8 = vpop.f32.mrb[9].mxu1  ;;  %v6939_v63 = vadd.f32 %v6938_v53, %v15273_v61  ;;  %v8275_v53 = vld [vmem:[#allocation2 + $0x398] sm:$0xff] }
 0x3a1   : > { %6345 = vst.msk [vmem:[#allocation3 + $0x50] sm:$0xff] %vm6344_vm7, %v6339_v52  ;;  %11786 = vmatpush1.bf16.msra.mxu0 %v15556_v9  ;;  %v8360_v48 = vld [vmem:[#allocation3 + $0x18] sm:$0xff]  ;;  %v11881_v10 = vpack.c.bf16 %v8275_v53, %v8274_v34 }
 0x3a2   : > { %11804 = vmatpush1.bf16.msra.mxu1 %v15524_v13  ;;  %11787 = vmatprep.subr.bf16.mxu0 %v15938_v12  ;;  %v6947_v16 = vmax.f32 %v6939_v63, 0.0  ;;  %v11887_v43 = vpack.c.bf16 %v8360_v48, %v8359_v30 }
 0x3a3   : > { %v6943_v23 = vpop.f32.mrb[10].mxu1  ;;  %11805 = vmatprep.subr.bf16.mxu1 %v15938_v12 }
 0x3a4   : > { %v6341_v42 = vpop.permute.xlu1 %6340  ;;  %v6945_v17 = vpop.f32.mrb[11].mxu1  ;;  %v6944_v31 = vadd.f32 %v6943_v23, %v15287_v4 }
 0x3a5   : > { %6346 = vst.msk [vmem:[#allocation3 + $0x58] sm:$0xff] %vm6344_vm7, %v6341_v42  ;;  %11789 = vmatpush1.bf16.msra.mxu0 %v15590_v28 }
 0x3a6   : > { %11807 = vmatpush1.bf16.msra.mxu1 %v15549_v41  ;;  %11790 = vmatprep.subr.bf16.mxu0 %v15938_v12  ;;  %v6948_v7 = vmax.f32 %v6944_v31, 0.0 }
 0x3a7   : > { %11808 = vmatprep.subr.bf16.mxu1 %v15938_v12 }
 0x3a9   : > { %11792 = vmatpush1.bf16.msra.mxu0 %v15597_v19 }
 0x3aa   : > { %11810 = vmatpush1.bf16.msra.mxu1 %v15556_v9  ;;  %11823 = vmatprep.subr.bf16.mxu0 %v15938_v12 }
 0x3ab   : > { %11811 = vmatprep.subr.bf16.mxu1 %v15938_v12 }
 0x3ac   : > { %8044 = vmatmul.mubr.f32.vlgmr.msra.gmra.mrb[40].mxu0 %v15606_v38 }
 0x3ad   : > { %11825 = vmatpush1.bf16.msra.mxu0 %v15517_v29  ;;  %9399 = vmatprep.mubr.msk.f32.mxu0 %vm5854_vm6, %v15613_v56 }
 0x3ae   : > { %11813 = vmatpush1.bf16.msra.mxu1 %v15590_v28  ;;  %11826 = vmatprep.subr.bf16.mxu0 %v15938_v12 }
 0x3af   : > { %11814 = vmatprep.subr.bf16.mxu1 %v15938_v12 }
 0x3b0   : > { %8049 = vmatmul.mubr.f32.gmra.mrb[42].mxu0 %v15623_v33 }
 0x3b1   : > { %11828 = vmatpush1.bf16.msra.mxu0 %v15524_v13  ;;  %9402 = vmatprep.mubr.msk.f32.mxu0 %vm5854_vm6, %v15542_v49 }
 0x3b2   : > { %11816 = vmatpush1.bf16.msra.mxu1 %v15597_v19  ;;  %11829 = vmatprep.subr.bf16.mxu0 %v15938_v12 }
 0x3b3   : > { %11817 = vmatprep.subr.bf16.mxu1 %v15938_v12 }
 0x3b5   : > { %11831 = vmatpush1.bf16.msra.mxu0 %v15549_v41 }
 0x3b6   : > { %11819 = vmatpush1.bf16.msra.mxu1 %v11818_v20  ;;  %11832 = vmatprep.subr.bf16.mxu0 %v15938_v12 }
 0x3b7   : > { %v7035_v58 = vpop.f32.mrb[20].mxu0  ;;  %11820 = vmatprep.subr.bf16.mxu1 %v15938_v12 }
 0x3b8   : > { %v7036_v14 = vadd.f32 %v7035_v58, %v15273_v61  ;;  %v7037_v26 = vpop.f32.mrb[21].mxu0 }
 0x3b9   : > { %11834 = vmatpush1.bf16.msra.mxu0 %v15556_v9 }
 0x3ba   : > { %v7044_v1 = vmax.f32 %v7036_v14, 0.0  ;;  %11822 = vmatpush1.bf16.msra.mxu1 %v11821_v25  ;;  %11835 = vmatprep.subr.bf16.mxu0 %v15938_v12 }
 0x3bb   : > { %v7040_v3 = vpop.f32.mrb[22].mxu0  ;;  %11853 = vmatprep.subr.bf16.mxu1 %v15938_v12 }
 0x3bc   : > { %v7046_v32 = vmax.f32 %v6947_v16, %v7044_v1  ;;  %v7041_v6 = vadd.f32 %v7040_v3, %v15287_v4  ;;  %v7042_v57 = vpop.f32.mrb[23].mxu0 }
 0x3bd   : > { %8143 = vmatmul.mubr.f32.vlgmr.msra.gmra.mrb[32].mxu1 %v15606_v38  ;;  %11837 = vmatpush1.bf16.msra.mxu0 %v15590_v28 }
 0x3be   : > { %v7045_v55 = vmax.f32 %v7041_v6, 0.0  ;;  %11855 = vmatpush1.bf16.msra.mxu1 %v15549_v41  ;;  %9401 = vmatprep.mubr.msk.f32.mxu1 %vm5854_vm6, %v15613_v56 }
 0x3bf   : > { %11838 = vmatprep.subr.bf16.mxu0 %v15938_v12  ;;  %11856 = vmatprep.subr.bf16.mxu1 %v15938_v12 }
 0x3c0   : > { %v7047_v40 = vmax.f32 %v6948_v7, %v7045_v55 }
 0x3c1   : > { %8148 = vmatmul.mubr.f32.gmra.mrb[34].mxu1 %v15623_v33  ;;  %11840 = vmatpush1.bf16.msra.mxu0 %v15597_v19 }
 0x3c2   : > { %11858 = vmatpush1.bf16.msra.mxu1 %v15556_v9  ;;  %11841 = vmatprep.subr.bf16.mxu0 %v15938_v12  ;;  %v8357_v9 = vld [vmem:[#allocation3] sm:$0xff] }
 0x3c3   : > { %11859 = vmatprep.subr.bf16.mxu1 %v15938_v12  ;;  %9404 = vmatprep.mubr.msk.f32.mxu1 %vm5854_vm6, %v15542_v49  ;;  %v11884_v45 = vpack.c.bf16 %v8358_v47, %v8357_v9 }
 0x3c5   : > { %11843 = vmatpush1.bf16.msra.mxu0 %v11818_v20 }
 0x3c6   : > { %11861 = vmatpush1.bf16.msra.mxu1 %v15590_v28  ;;  %11844 = vmatprep.subr.bf16.mxu0 %v15938_v12 }
 0x3c7   : > { %11862 = vmatprep.subr.bf16.mxu1 %v15938_v12 }
 0x3c8   : > { %v7134_v29 = vpop.f32.mrb[12].mxu1 }
 0x3c9   : > { %v7135_v54 = vadd.f32 %v7134_v29, %v15273_v61  ;;  %v7136_v44 = vpop.f32.mrb[13].mxu1  ;;  %11846 = vmatpush1.bf16.msra.mxu0 %v11821_v25 }
 0x3ca   : > { %11864 = vmatpush1.bf16.msra.mxu1 %v15597_v19  ;;  %11847 = vmatprep.subr.bf16.mxu0 %v15938_v12 }
 0x3cb   : > { %v7143_v51 = vmax.f32 %v7135_v54, 0.0  ;;  %11865 = vmatprep.subr.bf16.mxu1 %v15938_v12 }
 0x3cc   : > { %v7139_v13 = vpop.f32.mrb[14].mxu1 }
 0x3cd   : > { %v7145_v15 = vmax.f32 %v7046_v32, %v7143_v51  ;;  %v7140_v49 = vadd.f32 %v7139_v13, %v15287_v4  ;;  %11849 = vmatpush1.bf16.msra.mxu0 %v11848_v18  ;;  %v7141_v41 = vpop.f32.mrb[15].mxu1 }
 0x3ce   : > { %11867 = vmatpush1.bf16.msra.mxu1 %v11818_v20  ;;  %11850 = vmatprep.subr.bf16.mxu0 %v15938_v12 }
 0x3cf   : > { %v7144_v24 = vmax.f32 %v7140_v49, 0.0  ;;  %11868 = vmatprep.subr.bf16.mxu1 %v15938_v12 }
 0x3d1   : > { %v7146_v11 = vmax.f32 %v7047_v40, %v7144_v24  ;;  %11852 = vmatpush1.bf16.msra.mxu0 %v11851_v22 }
 0x3d2   : > { %11870 = vmatpush1.bf16.msra.mxu1 %v11821_v25  ;;  %11883 = vmatprep.subr.bf16.mxu0 %v15938_v12 }
 0x3d3   : > { %11871 = vmatprep.subr.bf16.mxu1 %v15938_v12 }
 0x3d4   : > { %8242 = vmatmul.mubr.f32.vlgmr.msra.gmra.mrb[44].mxu0 %v15606_v38 }
 0x3d5   : > { %11885 = vmatpush3.bf16.msra.mxu0 %v11884_v45  ;;  %9403 = vmatprep.mubr.msk.f32.mxu0 %vm5854_vm6, %v15613_v56 }
 0x3d6   : > { %11873 = vmatpush1.bf16.msra.mxu1 %v11848_v18  ;;  %11886 = vmatprep.subr.bf16.mxu0 %v15938_v12 }
 0x3d7   : > { %11874 = vmatprep.subr.bf16.mxu1 %v15938_v12 }
 0x3d8   : > { %8247 = vmatmul.mubr.f32.gmra.mrb[46].mxu0 %v15623_v33 }
 0x3d9   : > { %11888 = vmatpush3.bf16.msra.mxu0 %v11887_v43 }
 0x3da   : > { %11876 = vmatpush1.bf16.msra.mxu1 %v11851_v22  ;;  %11889 = vmatprep.subr.bf16.mxu0 %v15938_v12 }
 0x3db   : > { %11877 = vmatprep.subr.bf16.mxu1 %v15938_v12 }
 0x3de   : > { %11879 = vmatpush1.bf16.msra.mxu1 %v11878_v2 }
 0x3df   : > { %v7233_v52 = vpop.f32.mrb[24].mxu0  ;;  %11880 = vmatprep.subr.bf16.mxu1 %v15938_v12 }
 0x3e0   : > { %v7234_v8 = vadd.f32 %v7233_v52, %v15273_v61  ;;  %v7235_v50 = vpop.f32.mrb[25].mxu0 }
 0x3e1   : > { %v12062_v50 = vmov 0.0  }
 0x3e2   : > { %v7242_v23 = vmax.f32 %v7234_v8, 0.0  ;;  %11882 = vmatpush1.bf16.msra.mxu1 %v11881_v10  ;;  %10888 = vmatprep.mubr.msk.f32.mxu0 %vm12061_vm8, %v12062_v50 }
 0x3e3   : > { %v7238_v28 = vpop.f32.mrb[26].mxu0  ;;  %11898 = vmatprep.subr.bf16.mxu1 %v15938_v12 }
 0x3e4   : > { %v7244_v42 = vmax.f32 %v7145_v15, %v7242_v23  ;;  %v7239_v0 = vadd.f32 %v7238_v28, %v15287_v4  ;;  %v7240_v39 = vpop.f32.mrb[27].mxu0 }
 0x3e5   : > { %8341 = vmatmul.mubr.f32.vlgmr.msra.gmra.mrb[36].mxu1 %v15606_v38 }
 0x3e6   : > { %v7243_v17 = vmax.f32 %v7239_v0, 0.0  ;;  %11900 = vmatpush3.bf16.msra.mxu1 %v11887_v43  ;;  %9405 = vmatprep.mubr.msk.f32.mxu1 %vm5854_vm6, %v15613_v56 }
 0x3e7   : > { %11901 = vmatprep.subr.bf16.mxu1 %v15938_v12 }
 0x3e8   : > { %v7245_v19 = vmax.f32 %v7146_v11, %v7243_v17 }
 0x3e9   : > { %8346 = vmatmul.mubr.f32.gmra.mrb[38].mxu1 %v15623_v33 }
 0x3ea   : > { %10911 = vmatprep.mubr.msk.f32.mxu1 %vm12061_vm8, %v12062_v50 }
 0x3f0   : > { %v7332_v46 = vpop.f32.mrb[16].mxu1 }
 0x3f1   : > { %v7333_v5 = vadd.f32 %v7332_v46, %v15273_v61  ;;  %v7334_v20 = vpop.f32.mrb[17].mxu1 }
 0x3f2   : > { %v434_v20 = vld [vmem:[%s15789_s6] sm:$0xff] }
 0x3f3   : > { %v7341_v27 = vmax.f32 %v7333_v5, 0.0 }
 0x3f4   : > { %v7337_v35 = vpop.f32.mrb[18].mxu1 }
 0x3f5   : > { %v7343_v63 = vmax.f32 %v7244_v42, %v7341_v27  ;;  %v7338_v58 = vadd.f32 %v7337_v35, %v15287_v4  ;;  %v7339_v38 = vpop.f32.mrb[19].mxu1 }
 0x3f7   : > { %7345 = vst.msk [vmem:[#allocation3 + $0x20] sm:$0xff] %vm729_vm5, %v7343_v63  ;;  %v7342_v14 = vmax.f32 %v7338_v58, 0.0  ;;  %7349 = vrot.lane.b32.xlu0 %v7343_v63, %s12059_s8 }
 0x3f9   : > { %v7344_v56 = vmax.f32 %v7245_v19, %v7342_v14 }
 0x3fb   : > { %7346 = vst.msk [vmem:[#allocation3 + $0x28] sm:$0xff] %vm729_vm5, %v7344_v56  ;;  %7351 = vrot.lane.b32.xlu1 %v7344_v56, %s12059_s8 }
 0x3fe   : > { %v8361_v33 = vld [vmem:[#allocation3 + $0x20] sm:$0xff] }
 0x402   : > { %v8362_v25 = vld [vmem:[#allocation3 + $0x28] sm:$0xff] }
 0x403   : > { %v15691_v26 = vpack.c.bf16 %v8362_v25, %v8361_v33 }
 0x405   : > { %11891 = vmatpush3.bf16.msra.mxu0 %v15691_v26  ;;  %11903 = vmatpush3.bf16.msra.mxu1 %v15691_v26 }
 0x406   : > { %11892 = vmatprep.subr.bf16.mxu0 %v15938_v12  ;;  %11904 = vmatprep.subr.bf16.mxu1 %v15938_v12 }
 0x407   : > { %v7443_v16 = vpop.f32.mrb[28].mxu0 }
 0x408   : > { %v6845_v31 = vpop.permute.xlu0 %6844  ;;  %v7445_v1 = vpop.f32.mrb[29].mxu0  ;;  %v7444_v57 = vadd.f32 %v7443_v16, %v15273_v61 }
 0x409   : > { %6850 = vst.msk [vmem:[#allocation3 + $0x60] sm:$0xff] %vm6344_vm7, %v6845_v31 }
 0x40a   : > { %v7452_v29 = vmax.f32 %v7444_v57, 0.0 }
 0x40b   : > { %v7448_v3 = vpop.f32.mrb[30].mxu0 }
 0x40c   : > { %v6847_v32 = vpop.permute.xlu1 %6846  ;;  %v7450_v6 = vpop.f32.mrb[31].mxu0  ;;  %v7449_v37 = vadd.f32 %v7448_v3, %v15287_v4 }
 0x40d   : > { %6851 = vst.msk [vmem:[#allocation3 + $0x68] sm:$0xff] %vm6344_vm7, %v6847_v32 }
 0x40e   : > { %v7453_v13 = vmax.f32 %v7449_v37, 0.0 }
 0x418   : > { %v7540_v7 = vpop.f32.mrb[20].mxu1 }
 0x419   : > { %v7541_v55 = vadd.f32 %v7540_v7, %v15273_v61  ;;  %v7542_v40 = vpop.f32.mrb[21].mxu1 }
 0x41b   : > { %v7549_v60 = vmax.f32 %v7541_v55, 0.0 }
 0x41c   : > { %v7545_v54 = vpop.f32.mrb[22].mxu1 }
 0x41d   : > { %v7551_v44 = vmax.f32 %v7452_v29, %v7549_v60  ;;  %v7546_v51 = vadd.f32 %v7545_v54, %v15287_v4  ;;  %v7547_v18 = vpop.f32.mrb[23].mxu1 }
 0x41f   : > { %v7550_v62 = vmax.f32 %v7546_v51, 0.0 }
 0x421   : > { %v7552_v36 = vmax.f32 %v7453_v13, %v7550_v62 }
 0x42f   : > { %v7639_v15 = vpop.f32.mrb[32].mxu0 }
 0x430   : > { %v7640_v49 = vadd.f32 %v7639_v15, %v15273_v61  ;;  %v7641_v41 = vpop.f32.mrb[33].mxu0 }
 0x432   : > { %v7648_v24 = vmax.f32 %v7640_v49, 0.0 }
 0x433   : > { %v7644_v22 = vpop.f32.mrb[34].mxu0 }
 0x434   : > { %v7650_v47 = vmax.f32 %v7551_v44, %v7648_v24  ;;  %v7645_v11 = vadd.f32 %v7644_v22, %v15287_v4  ;;  %v7646_v9 = vpop.f32.mrb[35].mxu0 }
 0x436   : > { %v7649_v45 = vmax.f32 %v7645_v11, 0.0 }
 0x438   : > { %v7651_v48 = vmax.f32 %v7552_v36, %v7649_v45 }
 0x440   : > { %v7738_v30 = vpop.f32.mrb[24].mxu1 }
 0x441   : > { %v7739_v43 = vadd.f32 %v7738_v30, %v15273_v61  ;;  %v7740_v59 = vpop.f32.mrb[25].mxu1 }
 0x443   : > { %v7747_v21 = vmax.f32 %v7739_v43, 0.0 }
 0x444   : > { %v7743_v2 = vpop.f32.mrb[26].mxu1 }
 0x445   : > { %v7749_v34 = vmax.f32 %v7650_v47, %v7747_v21  ;;  %v7744_v53 = vadd.f32 %v7743_v2, %v15287_v4  ;;  %v7745_v52 = vpop.f32.mrb[27].mxu1 }
 0x447   : > { %v7748_v8 = vmax.f32 %v7744_v53, 0.0 }
 0x449   : > { %v7750_v10 = vmax.f32 %v7651_v48, %v7748_v8 }
 0x457   : > { %v7837_v23 = vpop.f32.mrb[36].mxu0 }
 0x458   : > { %v7838_v28 = vadd.f32 %v7837_v23, %v15273_v61  ;;  %v7839_v42 = vpop.f32.mrb[37].mxu0 }
 0x45a   : > { %v7846_v0 = vmax.f32 %v7838_v28, 0.0 }
 0x45b   : > { %v7842_v39 = vpop.f32.mrb[38].mxu0 }
 0x45c   : > { %v7848_v17 = vmax.f32 %v7749_v34, %v7846_v0  ;;  %v7843_v19 = vadd.f32 %v7842_v39, %v15287_v4  ;;  %v7844_v46 = vpop.f32.mrb[39].mxu0 }
 0x45e   : > { %7850 = vst.msk [vmem:[#allocation3 + $0x30] sm:$0xff] %vm729_vm5, %v7848_v17  ;;  %v7847_v5 = vmax.f32 %v7843_v19, 0.0  ;;  %7854 = vrot.lane.b32.xlu0 %v7848_v17, %s12059_s8 }
 0x460   : > { %v7849_v27 = vmax.f32 %v7750_v10, %v7847_v5  ;;  %v8451_v5 = vld [vmem:[#allocation3 + $0x58] sm:$0xff] }
 0x462   : > { %7851 = vst.msk [vmem:[#allocation3 + $0x38] sm:$0xff] %vm729_vm5, %v7849_v27  ;;  %7856 = vrot.lane.b32.xlu1 %v7849_v27, %s12059_s8  ;;  %437 = vperm.xlu0 %11975, %v434_v20  }
 0x465   : > { %v8446_v38 = vld [vmem:[#allocation3 + $0x30] sm:$0xff] }
 0x468   : > { %v7948_v35 = vpop.f32.mrb[28].mxu1 }
 0x469   : > { %v7350_v63 = vpop.permute.xlu0 %7349  ;;  %v7950_v58 = vpop.f32.mrb[29].mxu1  ;;  %v8447_v14 = vld [vmem:[#allocation3 + $0x38] sm:$0xff]  ;;  %v7949_v31 = vadd.f32 %v7948_v35, %v15273_v61 }
 0x46a   : > { %7355 = vst.msk [vmem:[#allocation3 + $0x70] sm:$0xff] %vm6344_vm7, %v7350_v63  ;;  %v15721_v56 = vpack.c.bf16 %v8447_v14, %v8446_v38  ;;  %v8532_v63 = vld [vmem:[#allocation3 + $0x60] sm:$0xff] }
 0x46b   : > { %v7957_v6 = vmax.f32 %v7949_v31, 0.0 }
 0x46c   : > { %v7953_v33 = vpop.f32.mrb[30].mxu1  ;;  %11906 = vmatpush3.bf16.msra.mxu1 %v15721_v56  ;;  %11894 = vmatpush3.bf16.msra.mxu0 %v15721_v56 }
 0x46d   : > { %v7352_v25 = vpop.permute.xlu1 %7351  ;;  %v7955_v16 = vpop.f32.mrb[31].mxu1  ;;  %11895 = vmatprep.subr.bf16.mxu0 %v15938_v12  ;;  %11907 = vmatprep.subr.bf16.mxu1 %v15938_v12  ;;  %v7954_v57 = vadd.f32 %v7953_v33, %v15287_v4 }
 0x46e   : > { %7356 = vst.msk [vmem:[#allocation3 + $0x78] sm:$0xff] %vm6344_vm7, %v7352_v25 }
 0x46f   : > { %v7958_v60 = vmax.f32 %v7954_v57, 0.0 }
 0x471   : > { %v8614_v14 = vld [vmem:[#allocation3 + $0x70] sm:$0xff] }
 0x475   : > { %v8615_v38 = vld [vmem:[#allocation3 + $0x78] sm:$0xff] }
 0x47f   : > { %v8045_v1 = vpop.f32.mrb[40].mxu0 }
 0x480   : > { %v8046_v3 = vadd.f32 %v8045_v1, %v15273_v61  ;;  %v8047_v32 = vpop.f32.mrb[41].mxu0 }
 0x482   : > { %v8054_v7 = vmax.f32 %v8046_v3, 0.0 }
 0x483   : > { %v8050_v55 = vpop.f32.mrb[42].mxu0 }
 0x484   : > { %v8056_v40 = vmax.f32 %v7957_v6, %v8054_v7  ;;  %v8051_v29 = vadd.f32 %v8050_v55, %v15287_v4  ;;  %v8052_v37 = vpop.f32.mrb[43].mxu0 }
 0x486   : > { %v8055_v54 = vmax.f32 %v8051_v29, 0.0 }
 0x488   : > { %v8057_v44 = vmax.f32 %v7958_v60, %v8055_v54 }
 0x490   : > { %v8144_v51 = vpop.f32.mrb[32].mxu1 }
 0x491   : > { %v8145_v18 = vadd.f32 %v8144_v51, %v15273_v61  ;;  %v8146_v13 = vpop.f32.mrb[33].mxu1 }
 0x493   : > { %v8153_v62 = vmax.f32 %v8145_v18, 0.0 }
 0x494   : > { %v8149_v36 = vpop.f32.mrb[34].mxu1 }
 0x495   : > { %v8155_v15 = vmax.f32 %v8056_v40, %v8153_v62  ;;  %v8150_v49 = vadd.f32 %v8149_v36, %v15287_v4  ;;  %v8151_v41 = vpop.f32.mrb[35].mxu1 }
 0x497   : > { %v8154_v24 = vmax.f32 %v8150_v49, 0.0 }
 0x499   : > { %v8156_v22 = vmax.f32 %v8057_v44, %v8154_v24 }
 0x4a7   : > { %v8243_v47 = vpop.f32.mrb[44].mxu0 }
 0x4a8   : > { %v8244_v11 = vadd.f32 %v8243_v47, %v15273_v61  ;;  %v8245_v9 = vpop.f32.mrb[45].mxu0 }
 0x4aa   : > { %v8252_v45 = vmax.f32 %v8244_v11, 0.0 }
 0x4ab   : > { %v8248_v48 = vpop.f32.mrb[46].mxu0 }
 0x4ac   : > { %v8254_v30 = vmax.f32 %v8155_v15, %v8252_v45  ;;  %v8249_v43 = vadd.f32 %v8248_v48, %v15287_v4  ;;  %v8250_v59 = vpop.f32.mrb[47].mxu0 }
 0x4ae   : > { %v8253_v21 = vmax.f32 %v8249_v43, 0.0 }
 0x4b0   : > { %v8255_v2 = vmax.f32 %v8156_v22, %v8253_v21 }
 0x4b8   : > { %v8342_v34 = vpop.f32.mrb[36].mxu1 }
 0x4b9   : > { %v8343_v53 = vadd.f32 %v8342_v34, %v15273_v61  ;;  %v8344_v52 = vpop.f32.mrb[37].mxu1  ;;  %v433_v61 = vld [vmem:[%s15788_s5] sm:$0xff] }
 0x4bb   : > { %v8351_v8 = vmax.f32 %v8343_v53, 0.0 }
 0x4bc   : > { %v8347_v10 = vpop.f32.mrb[38].mxu1 }
 0x4bd   : > { %v8353_v23 = vmax.f32 %v8254_v30, %v8351_v8  ;;  %v8348_v28 = vadd.f32 %v8347_v10, %v15287_v4  ;;  %v8349_v42 = vpop.f32.mrb[39].mxu1  ;;  %v8450_v4 = vld [vmem:[#allocation3 + $0x50] sm:$0xff] }
 0x4be   : > { %v11911_v20 = vpack.c.bf16 %v8451_v5, %v8450_v4 }
 0x4bf   : > { %8355 = vst.msk [vmem:[#allocation3 + $0x40] sm:$0xff] %vm729_vm5, %v8353_v23  ;;  %v8352_v0 = vmax.f32 %v8348_v28, 0.0 }
 0x4c1   : > { %v8354_v39 = vmax.f32 %v8255_v2, %v8352_v0 }
 0x4c3   : > { %8356 = vst.msk [vmem:[#allocation3 + $0x48] sm:$0xff] %vm729_vm5, %v8354_v39 }
 0x4c6   : > { %v8365_v17 = vld [vmem:[#allocation3 + $0x40] sm:$0xff] }
 0x4ca   : > { %v8366_v19 = vld [vmem:[#allocation3 + $0x48] sm:$0xff] }
 0x4cb   : > { %v11896_v46 = vpack.c.bf16 %v8366_v19, %v8365_v17 }
 0x4cd   : > { %11897 = vmatpush3.bf16.msra.mxu0 %v11896_v46  ;;  %11909 = vmatpush3.bf16.msra.mxu1 %v11896_v46 }
 0x4ce   : > { %11910 = vmatprep.subr.bf16.mxu1 %v15938_v12  ;;  %11913 = vmatprep.subr.bf16.mxu0 %v15938_v12 }
 0x4d0   : > { %10889 = vmatmul.mubr.msk.f32.vlgmr.msra.gmra.mrb[48].mxu0 %vm8367_vm9, %v433_v61  ;;  %v7855_v27 = vpop.permute.xlu0 %7854 }
 0x4d1   : > { %11912 = vmatpush3.bf16.msra.mxu1 %v11911_v20  ;;  %7860 = vst.msk [vmem:[#allocation3 + $0x80] sm:$0xff] %vm6344_vm7, %v7855_v27  ;;  %11915 = vmatpush3.bf16.msra.mxu0 %v15691_v26  ;;  %v8533_v26 = vld [vmem:[#allocation3 + $0x68] sm:$0xff] }
 0x4d2   : > { %11916 = vmatprep.subr.bf16.mxu0 %v15938_v12  ;;  %11928 = vmatprep.subr.bf16.mxu1 %v15938_v12  ;;  %v11926_v58 = vpack.c.bf16 %v8533_v26, %v8532_v63 }
 0x4d3   : > { %10934 = vmatprep.mubr.msk.f32.mxu0 %vm12061_vm8, %v12062_v50 }
 0x4d4   : > { %10912 = vmatmul.mubr.msk.f32.vlgmr.msra.gmra.mrb[40].mxu1 %vm8367_vm9, %v433_v61  ;;  %v7857_v35 = vpop.permute.xlu1 %7856 }
 0x4d5   : > { %7861 = vst.msk [vmem:[#allocation3 + $0x88] sm:$0xff] %vm6344_vm7, %v7857_v35  ;;  %11918 = vmatpush3.bf16.msra.mxu0 %v15721_v56  ;;  %11930 = vmatpush3.bf16.msra.mxu1 %v15721_v56  ;;  %v11941_v56 = vpack.c.bf16 %v8615_v38, %v8614_v14 }
 0x4d6   : > { %11919 = vmatprep.subr.bf16.mxu0 %v15938_v12  ;;  %11931 = vmatprep.subr.bf16.mxu1 %v15938_v12 }
 0x4d7   : > { %10957 = vmatprep.mubr.msk.f32.mxu1 %vm12061_vm8, %v12062_v50 }
 0x4d8   : > { %v8696_v25 = vld [vmem:[#allocation3 + $0x80] sm:$0xff] }
 0x4d9   : > { %11921 = vmatpush3.bf16.msra.mxu0 %v11896_v46  ;;  %11933 = vmatpush3.bf16.msra.mxu1 %v11896_v46 }
 0x4da   : > { %11922 = vmatprep.subr.bf16.mxu0 %v15938_v12  ;;  %11934 = vmatprep.subr.bf16.mxu1 %v15938_v12 }
 0x4dc   : > { %v8697_v33 = vld [vmem:[#allocation3 + $0x88] sm:$0xff] }
 0x4dd   : > { %11924 = vmatpush3.bf16.msra.mxu0 %v11911_v20  ;;  %11936 = vmatpush3.bf16.msra.mxu1 %v11911_v20  ;;  %v11956_v16 = vpack.c.bf16 %v8697_v33, %v8696_v25 }
 0x4de   : > { %11925 = vmatprep.subr.bf16.mxu0 %v15938_v12  ;;  %11937 = vmatprep.subr.bf16.mxu1 %v15938_v12 }
 0x4e1   : > { %11927 = vmatpush3.bf16.msra.mxu0 %v11926_v58  ;;  %11939 = vmatpush3.bf16.msra.mxu1 %v11926_v58 }
 0x4e2   : > { %11940 = vmatprep.subr.bf16.mxu1 %v15938_v12  ;;  %11943 = vmatprep.subr.bf16.mxu0 %v15938_v12 }
 0x4e4   : > { %10935 = vmatmul.mubr.msk.f32.vlgmr.msra.gmra.mrb[50].mxu0 %vm8367_vm9, %v433_v61 }
 0x4e5   : > { %11942 = vmatpush3.bf16.msra.mxu1 %v11941_v56  ;;  %11945 = vmatpush3.bf16.msra.mxu0 %v11896_v46 }
 0x4e6   : > { %11946 = vmatprep.subr.bf16.mxu0 %v15938_v12  ;;  %10980 = vmatprep.mubr.msk.f32.mxu0 %vm12061_vm8, %v12062_v50  ;;  %v438_v50 = vpop.permute.xlu0 %437 }
 0x4e8   : > { %10958 = vmatmul.mubr.msk.f32.vlgmr.msra.gmra.mrb[42].mxu1 %vm8367_vm9, %v433_v61 }
 0x4e9   : > { %11948 = vmatpush3.bf16.msra.mxu0 %v11911_v20 }
 0x4ea   : > { %11949 = vmatprep.subr.bf16.mxu0 %v15938_v12 }
 0x4ed   : > { %11951 = vmatpush3.bf16.msra.mxu0 %v11926_v58 }
 0x4ee   : > { %11952 = vmatprep.subr.bf16.mxu0 %v15938_v12 }
 0x4f1   : > { %11954 = vmatpush3.bf16.msra.mxu0 %v11941_v56 }
 0x4f2   : > { %11955 = vmatprep.subr.bf16.mxu0 %v15938_v12 }
 0x4f5   : > { %11957 = vmatpush3.bf16.msra.mxu0 %v11956_v16 }
 0x4f8   : > { %10981 = vmatmul.mubr.msk.f32.vlgmr.msra.gmra.mrb[52].mxu0 %vm8367_vm9, %v433_v61 }
 0x5a3   : > { %v8437_v31 = vpop.f32.mrb[48].mxu0 }
 0x5a4   : > { %v10890_v1 = vpop.f32.mrb[49].mxu0  ;;  %v8438_v3 = vadd.f32 %v8437_v31, %v438_v50 }
 0x5a6   : > { %v8441_v7 = vmax.f32 %v8438_v3, 0.0 }
 0x5a7   : > { %v8518_v32 = vpop.f32.mrb[40].mxu1 }
 0x5a8   : > { %v8519_v6 = vadd.f32 %v8518_v32, %v438_v50  ;;  %v10913_v57 = vpop.f32.mrb[41].mxu1 }
 0x5aa   : > { %v8522_v55 = vmax.f32 %v8519_v6, 0.0 }
 0x5ac   : > { %v8523_v40 = vmax.f32 %v8441_v7, %v8522_v55 }
 0x5b7   : > { %v8600_v29 = vpop.f32.mrb[50].mxu0 }
 0x5b8   : > { %v8601_v37 = vadd.f32 %v8600_v29, %v438_v50  ;;  %v10936_v60 = vpop.f32.mrb[51].mxu0 }
 0x5ba   : > { %v8604_v12 = vmax.f32 %v8601_v37, 0.0 }
 0x5bb   : > { %v8682_v54 = vpop.f32.mrb[42].mxu1 }
 0x5bc   : > { %v8605_v44 = vmax.f32 %v8523_v40, %v8604_v12  ;;  %v8683_v51 = vadd.f32 %v8682_v54, %v438_v50  ;;  %v10959_v18 = vpop.f32.mrb[43].mxu1 }
 0x5be   : > { %v8686_v13 = vmax.f32 %v8683_v51, 0.0 }
 0x5c0   : > { %v8687_v62 = vmax.f32 %v8605_v44, %v8686_v13 }
 0x5cb   : > { %v8764_v36 = vpop.f32.mrb[52].mxu0 }
 0x5cc   : > { %v8765_v15 = vadd.f32 %v8764_v36, %v438_v50  ;;  %v10982_v49 = vpop.f32.mrb[53].mxu0 }
 0x5ce   : > { %v8768_v41 = vmax.f32 %v8765_v15, 0.0 }
 0x5d0   : > { %v8769_v24 = vmax.f32 %v8687_v62, %v8768_v41 }
 0x5d2   : > { %8770 = vst.msk [vmem:[%s276_s14] sm:$0xff] %vm6344_vm7, %v8769_v24 }
 0x5d3 PF: > { %s17_s24 = sadd.s32 1, %s12055_s24  }
 0x5d4   : > { %p14_p4 = scmp.ge.s32.totalorder %s17_s24, 4  }
 0x5d6   :  { %16 = sbr.rel (!%p14_p4) target bundleno = 1 (0x1), region = 78 }

</bundles_post_ra>
